<compile_context>
chip_gen: v7x
topology: tpu7x:2x2x1
jax: 0.10.0
libtpu: 0.0.40
codegen_flags: <defaults>
</compile_context>

<pallas_src>
import functools
import numpy as np

import jax
import jax.numpy as jnp
from jax import lax
from jax.experimental import pallas as pl
from jax.experimental.pallas import tpu as pltpu

ALPHA = float(np.sqrt(23.0 / 32.0))
BETA = float(np.sqrt(3.0 / 2.0))


# --------------------------------------------------------------------------
# Separable zero-padded 3x3 cross-correlation on a (B*img_h, W) slab.
# 4 XLU rolls + 4 selects (down from 12 rolls / 8 selects in the tap loop).
# Cross-image sublane wrap is harmless: wrapped rows are exactly the rows the
# per-image row mask zeroes (zero-pad conv semantics).
# --------------------------------------------------------------------------
def _conv3x3(x, w_ref, img_h):
    R, W = x.shape
    col = lax.broadcasted_iota(jnp.int32, (R, W), 1)
    row = lax.broadcasted_iota(jnp.int32, (R, W), 0)
    if (img_h & (img_h - 1)) == 0:
        local = row & (img_h - 1)
    else:
        local = row % img_h
    x_l = jnp.where(col >= 1, pltpu.roll(x, 1, axis=1), 0.0)          # x[., c-1]
    x_r = jnp.where(col <= W - 2, pltpu.roll(x, W - 1, axis=1), 0.0)  # x[., c+1]
    h_top = w_ref[0] * x_l + w_ref[1] * x + w_ref[2] * x_r   # taps of row dy=-1
    h_mid = w_ref[3] * x_l + w_ref[4] * x + w_ref[5] * x_r   # taps of row dy= 0
    h_bot = w_ref[6] * x_l + w_ref[7] * x + w_ref[8] * x_r   # taps of row dy=+1
    acc0 = h_mid + jnp.where(local >= 1, pltpu.roll(h_top, 1, axis=0), 0.0)
    acc1 = jnp.where(local <= img_h - 2, pltpu.roll(h_bot, R - 1, axis=0), 0.0)
    return acc0 + acc1


# --------------------------------------------------------------------------
# Encode kernel: one lifting item per grid step
#   out = ca * base + cb * conv3x3(0.5*(m0*r0 + m1*r1)) + cb * bias
# with the space-entropy model (round / dequant / bit cost) fused in for the
# first n_rec items (bits accumulated over the first n_bits items).
# --------------------------------------------------------------------------
def _encode_kernel(ca, cb, img_h, n_rec, n_bits,
                   sidx_ref, w_ref, cons_ref,
                   r0_ref, m0_ref, r1_ref, m1_ref, base_ref,
                   out_ref, *ent_refs):
    del sidx_ref  # only consumed by the index_maps
    m0 = m0_ref[...].astype(jnp.float32)
    m1 = m1_ref[...].astype(jnp.float32)
    blend = 0.5 * (m0 * r0_ref[...] + m1 * r1_ref[...])
    conv = _conv3x3(blend, w_ref, img_h)
    res = ca * base_ref[...] + cb * conv + cb * cons_ref[0]
    out_ref[...] = res

    if n_rec:                                   # static Python switch
        rec_ref, bits_ref = ent_refs
        g = pl.program_id(0)

        @pl.when(g == 0)
        def _init():
            bits_ref[...] = jnp.zeros_like(bits_ref)

        @pl.when(g < n_rec)
        def _quant():
            q = jnp.round(res * cons_ref[1])
            rec_ref[...] = q * cons_ref[2]

            @pl.when(g < n_bits)
            def _bits():
                bits_ref[...] += jnp.sum(jnp.log2(1.0 + jnp.abs(q)),
                                         axis=0, keepdims=True)


def encode_stage(conv_params, ca, cb, src_r, src_base, mask_s, idx_np, img_h,
                 *, n_rec=0, n_bits=0, scale=None):
    """src_r / src_base / mask_s: (C, B*H, W) slabs.
    idx_np: (N, 6) int32 table [r0, m0, r1, m1, base, rec_pos]."""
    w, b = conv_params
    N = int(idx_np.shape[0])
    _, R, W = src_r.shape
    if scale is None:
        cons = jnp.stack([b[0], jnp.float32(1.0), jnp.float32(1.0)])
    else:
        cons = jnp.stack([b[0], scale, 1.0 / scale]).astype(jnp.float32)
    sidx = jnp.asarray(idx_np, jnp.int32)

    def gather_spec(col):
        return pl.BlockSpec((None, R, W),
                            lambda g, s, c=col: (s[g, c], 0, 0))

    smem = pl.BlockSpec(memory_space=pltpu.MemorySpace.SMEM)
    in_specs = [smem, smem,
                gather_spec(0), gather_spec(1), gather_spec(2),
                gather_spec(3), gather_spec(4)]

    out_specs = [pl.BlockSpec((None, R, W), lambda g, s: (g, 0, 0))]
    out_shapes = [jax.ShapeDtypeStruct((N, R, W), jnp.float32)]
    if n_rec:
        out_specs.append(pl.BlockSpec((None, R, W),
                                      lambda g, s: (s[g, 5], 0, 0)))
        out_specs.append(pl.BlockSpec((1, W), lambda g, s: (0, 0)))
        out_shapes.append(jax.ShapeDtypeStruct((n_rec, R, W), jnp.float32))
        out_shapes.append(jax.ShapeDtypeStruct((1, W), jnp.float32))

    rw = R * W
    cost = pl.CostEstimate(flops=30 * N * rw,
                           transcendentals=(n_bits * rw if n_rec else 0),
                           bytes_accessed=4 * 7 * N * rw)
    sem = ("arbitrary",) if n_rec else ("parallel",)

    res = pl.pallas_call(
        functools.partial(_encode_kernel, float(ca), float(cb), int(img_h),
                          n_rec, n_bits),
        out_shape=tuple(out_shapes) if n_rec else out_shapes[0],
        grid_spec=pltpu.PrefetchScalarGridSpec(
            num_scalar_prefetch=1,
            grid=(N,),
            in_specs=in_specs,
            out_specs=out_specs if n_rec else out_specs[0],
        ),
        compiler_params=pltpu.CompilerParams(dimension_semantics=sem),
        cost_estimate=cost,
    )(sidx, w, cons, src_r, mask_s, src_r, mask_s, src_base)
    return res


# --------------------------------------------------------------------------
# Decode kernel: fuses one level's (update_decode, predict_decode) pair.
#   steps [0, n_upd):  L[i] = (1/b)*baseL[i] + (-1/a)*conv_u(blend(recH)) + ...
#   steps [n_upd, N):  H[j] = (1/a)*recH[j]  + (+1 )*conv_p(blend(L[j],L[j+1]))
# L items live in VMEM scratch; the output is written interleaved [L,H,L,...]
# directly via the data-dependent output index map (column 5 of the table).
# --------------------------------------------------------------------------
def _decode_kernel(ca_u, cb_u, ca_p, cb_p, img_h, n_upd,
                   sidx_ref, wu_ref, wp_ref, cons_ref,
                   r0_ref, x_ref, m0_ref, m1_ref, baseL_ref,
                   out_ref, lbuf_ref):
    del sidx_ref
    g = pl.program_id(0)
    m0 = m0_ref[...].astype(jnp.float32)
    m1 = m1_ref[...].astype(jnp.float32)

    @pl.when(g < n_upd)
    def _update():
        blend = 0.5 * (m0 * r0_ref[...] + m1 * x_ref[...])
        conv = _conv3x3(blend, wu_ref, img_h)
        res = ca_u * baseL_ref[...] + cb_u * conv + cb_u * cons_ref[0]
        out_ref[...] = res
        lbuf_ref[g] = res

    @pl.when(g >= n_upd)
    def _predict():
        j = g - n_upd
        blend = 0.5 * (m0 * lbuf_ref[j] + m1 * lbuf_ref[j + 1])
        conv = _conv3x3(blend, wp_ref, img_h)
        out_ref[...] = ca_p * x_ref[...] + cb_p * conv + cb_p * cons_ref[1]


def decode_stage(upd_params, pred_params, recH, baseL, mask_s, idx_np, n_upd,
                 img_h):
    """idx_np: (N, 6) int32 [recH_r0, recH_x, m0, m1, baseL, out_pos]."""
    wu, bu = upd_params
    wp, bp = pred_params
    N = int(idx_np.shape[0])
    _, R, W = recH.shape
    cons = jnp.stack([bu[0], bp[0]]).astype(jnp.float32)
    sidx = jnp.asarray(idx_np, jnp.int32)

    def gather_spec(col):
        return pl.BlockSpec((None, R, W),
                            lambda g, s, c=col: (s[g, c], 0, 0))

    smem = pl.BlockSpec(memory_space=pltpu.MemorySpace.SMEM)
    rw = R * W
    return pl.pallas_call(
        functools.partial(_decode_kernel, 1.0 / BETA, -1.0 / ALPHA,
                          1.0 / ALPHA, 1.0, int(img_h), int(n_upd)),
        out_shape=jax.ShapeDtypeStruct((N, R, W), jnp.float32),
        grid_spec=pltpu.PrefetchScalarGridSpec(
            num_scalar_prefetch=1,
            grid=(N,),
            in_specs=[smem, smem, smem,
                      gather_spec(0), gather_spec(1), gather_spec(2),
                      gather_spec(3), gather_spec(4)],
            out_specs=pl.BlockSpec((None, R, W),
                                   lambda g, s: (s[g, 5], 0, 0)),
            scratch_shapes=[pltpu.VMEM((n_upd, R, W), jnp.float32)],
        ),
        compiler_params=pltpu.CompilerParams(
            dimension_semantics=("arbitrary",)),
        cost_estimate=pl.CostEstimate(flops=30 * N * rw, transcendentals=0,
                                      bytes_accessed=4 * 7 * N * rw),
    )(sidx, wu, wp, cons, recH, recH, mask_s, mask_s, baseL)


# --------------------------------------------------------------------------
# Deterministic parameter init (shapes implied by the module structure)
# --------------------------------------------------------------------------
def init_params(key):
    def conv_params(k):
        w = (jnp.full((9,), 1.0 / 9.0, jnp.float32)
             + 0.01 * jax.random.normal(k, (9,), jnp.float32))
        b = jnp.zeros((1,), jnp.float32)
        return (w, b)

    names = ["pred_enc_H1", "upd_enc_H1", "pred_dec_H1", "upd_dec_H1",
             "pred_enc_H2", "upd_enc_H2", "pred_dec_H2", "upd_dec_H2",
             "pred_enc_H3", "upd_enc_H3", "pred_dec_H3", "upd_dec_H3"]
    params = {}
    for i, n in enumerate(names):
        params[n] = conv_params(jax.random.fold_in(key, i))
    for j, n in enumerate(["ent_H1", "ent_H2", "ent_H3", "ent_L"]):
        params[n] = jnp.float32(1.0 + 0.1 * j)
    return params


# --------------------------------------------------------------------------
# Model_all forward (faithful composition, 9 fused pallas_calls total)
# --------------------------------------------------------------------------
def model_all_forward(params, frame, mask, mv, grid_up, grid_org, train,
                      alpha_list, part_bitplane=6):
    # TODO(synk): grid_sample warping (mv/grid_up/grid_org) not implemented;
    #             train / part_bitplane have no effect in the synthesized
    #             deterministic entropy model.
    del mv, grid_up, grid_org, train, part_bitplane
    B, CF, H, W = frame.shape
    CM = mask.shape[1]
    R = B * H

    # One-time layout change: (B, C, H, W) -> (C, B*H, W) lane-dense slabs.
    frame_s = jnp.transpose(frame, (1, 0, 2, 3)).reshape(CF, R, W)
    # Masks are [0,1] gating weights; bf16 halves their (most-reused) HBM
    # traffic; they are upconverted to f32 on load inside the kernels.
    mask_s = jnp.transpose(mask, (1, 0, 2, 3)).reshape(CM, R, W).astype(
        jnp.bfloat16)

    def wscale(theta, a_col):
        return jax.nn.softplus(theta) * (1.0 + jnp.mean(a_col))

    ws_H1 = wscale(params["ent_H1"], alpha_list[:, 0])
    ws_H2 = wscale(params["ent_H2"], alpha_list[:, 1])
    ws_H3 = wscale(params["ent_H3"], alpha_list[:, 2])
    ws_L = wscale(params["ent_L"], alpha_list[:, 3])

    # ---- static per-stage index tables: [r0, m0, r1, m1, base, rec_pos] ----
    i11 = np.arange(11)
    idx_H1 = np.stack([2 * i11, 2 * i11, 2 * i11 + 2, 2 * i11 + 1, 2 * i11 + 1,
                       np.minimum(i11, 4)], 1)
    idx_L1 = np.stack([np.maximum(i11 - 1, 0), 22 + 2 * i11, i11, 23 + 2 * i11,
                       2 * i11, np.zeros_like(i11)], 1)
    i5 = np.arange(5)
    idx_H2 = np.stack([2 * i5, 44 + 2 * i5, 2 * i5 + 2, 45 + 2 * i5, 2 * i5 + 1,
                       np.minimum(i5, 2)], 1)
    idx_L2 = np.stack([np.maximum(i5 - 1, 0), 54 + 2 * i5, i5, 55 + 2 * i5,
                       2 * i5, np.zeros_like(i5)], 1)
    idx_H3 = np.array([[0, 64, 2, 65, 1, 0],
                       [2, 66, 4, 67, 3, 1]])
    idx_L3 = np.array([[0, 68, 0, 69, 0, 0],
                       [0, 70, 1, 71, 2, 1]])

    # ---------------- encode (analysis lifting), entropy fused ---------------
    H1, rec5_H1, bp_H1 = encode_stage(
        params["pred_enc_H1"], ALPHA, -ALPHA, frame_s, frame_s, mask_s,
        idx_H1, H, n_rec=5, n_bits=4, scale=ws_H1)
    L1 = encode_stage(params["upd_enc_H1"], BETA, BETA / ALPHA,
                      H1, frame_s, mask_s, idx_L1, H)
    H2, rec3_H2, bp_H2 = encode_stage(
        params["pred_enc_H2"], ALPHA, -ALPHA, L1, L1, mask_s,
        idx_H2, H, n_rec=3, n_bits=2, scale=ws_H2)
    L2 = encode_stage(params["upd_enc_H2"], BETA, BETA / ALPHA,
                      H2, L1, mask_s, idx_L2, H)
    H3, rec2_H3, bp_H3 = encode_stage(
        params["pred_enc_H3"], ALPHA, -ALPHA, L2, L2, mask_s,
        idx_H3, H, n_rec=2, n_bits=1, scale=ws_H3)
    _L3, rec2_L, bp_L = encode_stage(
        params["upd_enc_H3"], BETA, BETA / ALPHA, H3, L2, mask_s,
        idx_L3, H, n_rec=2, n_bits=1, scale=ws_L)

    # ---------------- decode (synthesis lifting), one kernel per level -------
    # decode idx columns: [recH_r0, recH_x(=base in pred phase), m0, m1, baseL, out]
    dec_idx3 = np.array([[0, 0, 68, 69, 0, 0],
                         [0, 1, 70, 71, 1, 2],
                         [0, 0, 64, 65, 0, 1]])
    L3ru = decode_stage(params["upd_dec_H3"], params["pred_dec_H3"],
                        rec2_H3, rec2_L, mask_s, dec_idx3, 2, H)

    dec_idx2 = np.array([[0, 0, 54, 55, 0, 0],
                         [0, 1, 56, 57, 1, 2],
                         [1, 2, 58, 59, 2, 4],
                         [0, 0, 44, 45, 0, 1],
                         [0, 1, 46, 47, 0, 3]])
    L2ru = decode_stage(params["upd_dec_H2"], params["pred_dec_H2"],
                        rec3_H2, L3ru, mask_s, dec_idx2, 3, H)

    dec_idx1 = np.array([[0, 0, 22, 23, 0, 0],
                         [0, 1, 24, 25, 1, 2],
                         [1, 2, 26, 27, 2, 4],
                         [2, 3, 28, 29, 3, 6],
                         [3, 4, 30, 31, 4, 8],
                         [0, 0,  0,  1, 0, 1],
                         [0, 1,  2,  3, 0, 3],
                         [0, 2,  4,  5, 0, 5],
                         [0, 3,  6,  7, 0, 7]])
    L1ru = decode_stage(params["upd_dec_H1"], params["pred_dec_H1"],
                        rec5_H1, L2ru, mask_s, dec_idx1, 5, H)

    out = jnp.transpose(L1ru.reshape(9, B, H, W), (1, 0, 2, 3))
    bits = [jnp.sum(bp_H1), jnp.sum(bp_H2), jnp.sum(bp_H3), jnp.sum(bp_L)]
    return out, bits, [ws_H1, ws_H2, ws_H3, ws_L]


# --------------------------------------------------------------------------
if __name__ == "__main__":
    key = jax.random.PRNGKey(0)
    B, H, W = 2, 16, 128  # small, vreg-aligned spatial shape

    params = init_params(jax.random.fold_in(key, 100))

    k1, k2, k3, k4 = jax.random.split(key, 4)
    frame = jax.random.normal(k1, (B, 23, H, W), jnp.float32)
    mask = jax.nn.sigmoid(jax.random.normal(k2, (B, 72, H, W), jnp.float32))
    mv = 0.1 * jax.random.normal(k3, (B, 144, H, W), jnp.float32)
    grid_up = jnp.zeros((B, H, W, 2), jnp.float32)
    grid_org = jnp.zeros((B, H, W, 2), jnp.float32)
    alpha_list = jnp.abs(jax.random.normal(k4, (B, 4), jnp.float32))

    fwd = jax.jit(lambda p, f, m, v, gu, go, al:
                  model_all_forward(p, f, m, v, gu, go, True, al))
    out, bits_list, ws_list = fwd(params, frame, mask, mv, grid_up, grid_org,
                                  alpha_list)

    out = jax.block_until_ready(out)
    for b in bits_list:
        jax.block_until_ready(b)
    for s in ws_list:
        jax.block_until_ready(s)

    assert out.shape == (B, 9, H, W), out.shape
    assert bool(jnp.all(jnp.isfinite(out)))
    assert all(bool(jnp.isfinite(jnp.asarray(b))) for b in bits_list)
    print("KERNEL_OK")
</pallas_src>

<mosaic_0001>
module attributes {stable_mosaic.version = 11 : i64} {
  func.func @_encode_kernel(%arg0: i32, %arg1: memref<11x6xi32, #tpu.memory_space<smem>>, %arg2: memref<9xf32, #tpu.memory_space<smem>>, %arg3: memref<3xf32, #tpu.memory_space<smem>>, %arg4: memref<1x32x128xf32, #tpu.memory_space<vmem>>, %arg5: memref<1x32x128xbf16, #tpu.memory_space<vmem>>, %arg6: memref<1x32x128xf32, #tpu.memory_space<vmem>>, %arg7: memref<1x32x128xbf16, #tpu.memory_space<vmem>>, %arg8: memref<1x32x128xf32, #tpu.memory_space<vmem>>, %arg9: memref<1x32x128xf32, #tpu.memory_space<vmem>>) attributes {dimension_semantics = [#tpu.dimension_semantics<parallel>], iteration_bounds = array<i64: 11>, scalar_prefetch = 1 : i64, scratch_operands = 0 : i64, tpu.core_type = #tpu.core_type<tc>, window_params = [{transform_indices = @transform_0, window_bounds = array<i64: 9>}, {transform_indices = @transform_1, window_bounds = array<i64: 3>}, {transform_indices = @transform_2, window_bounds = array<i64: 1, 32, 128>}, {transform_indices = @transform_3, window_bounds = array<i64: 1, 32, 128>}, {transform_indices = @transform_4, window_bounds = array<i64: 1, 32, 128>}, {transform_indices = @transform_5, window_bounds = array<i64: 1, 32, 128>}, {transform_indices = @transform_6, window_bounds = array<i64: 1, 32, 128>}, {transform_indices = @transform_7, window_bounds = array<i64: 1, 32, 128>}]} {
    %c0 = arith.constant 0 : index
    %c0_0 = arith.constant 0 : index
    %c0_1 = arith.constant 0 : index
    %0 = vector.load %arg5[%c0, %c0_0, %c0_1] : memref<1x32x128xbf16, #tpu.memory_space<vmem>>, vector<1x32x128xbf16>
    %1 = vector.shape_cast %0 : vector<1x32x128xbf16> to vector<32x128xbf16>
    %2 = arith.extf %1 : vector<32x128xbf16> to vector<32x128xf32>
    %c0_2 = arith.constant 0 : index
    %c0_3 = arith.constant 0 : index
    %c0_4 = arith.constant 0 : index
    %3 = vector.load %arg7[%c0_2, %c0_3, %c0_4] : memref<1x32x128xbf16, #tpu.memory_space<vmem>>, vector<1x32x128xbf16>
    %4 = vector.shape_cast %3 : vector<1x32x128xbf16> to vector<32x128xbf16>
    %5 = arith.extf %4 : vector<32x128xbf16> to vector<32x128xf32>
    %c0_5 = arith.constant 0 : index
    %c0_6 = arith.constant 0 : index
    %c0_7 = arith.constant 0 : index
    %6 = vector.load %arg4[%c0_5, %c0_6, %c0_7] : memref<1x32x128xf32, #tpu.memory_space<vmem>>, vector<1x32x128xf32>
    %7 = vector.shape_cast %6 : vector<1x32x128xf32> to vector<32x128xf32>
    %8 = arith.mulf %2, %7 : vector<32x128xf32>
    %c0_8 = arith.constant 0 : index
    %c0_9 = arith.constant 0 : index
    %c0_10 = arith.constant 0 : index
    %9 = vector.load %arg6[%c0_8, %c0_9, %c0_10] : memref<1x32x128xf32, #tpu.memory_space<vmem>>, vector<1x32x128xf32>
    %10 = vector.shape_cast %9 : vector<1x32x128xf32> to vector<32x128xf32>
    %11 = arith.mulf %5, %10 : vector<32x128xf32>
    %12 = arith.addf %8, %11 : vector<32x128xf32>
    %cst = arith.constant 5.000000e-01 : f32
    %13 = vector.broadcast %cst : f32 to vector<32x128xf32>
    %14 = arith.mulf %13, %12 : vector<32x128xf32>
    %15 = tpu.iota {dimensions = array<i32: 1>} : vector<32x128xi32>
    %16 = tpu.iota {dimensions = array<i32: 0>} : vector<32x128xi32>
    %c15_i32 = arith.constant 15 : i32
    %17 = vector.broadcast %c15_i32 : i32 to vector<32x128xi32>
    %18 = arith.andi %16, %17 : vector<32x128xi32>
    %c1_i32 = arith.constant 1 : i32
    %19 = vector.broadcast %c1_i32 : i32 to vector<32x128xi32>
    %20 = arith.cmpi sge, %15, %19 : vector<32x128xi32>
    %c1_i32_11 = arith.constant 1 : i32
    %21 = tpu.dynamic_rotate %14 by %c1_i32_11 dim 1 : vector<32x128xf32>, i32 -> vector<32x128xf32>
    %cst_12 = arith.constant 0.000000e+00 : f32
    %22 = vector.broadcast %cst_12 : f32 to vector<32x128xf32>
    %23 = arith.select %20, %21, %22 : vector<32x128xi1>, vector<32x128xf32>
    %c126_i32 = arith.constant 126 : i32
    %24 = vector.broadcast %c126_i32 : i32 to vector<32x128xi32>
    %25 = arith.cmpi sle, %15, %24 : vector<32x128xi32>
    %c127_i32 = arith.constant 127 : i32
    %26 = tpu.dynamic_rotate %14 by %c127_i32 dim 1 : vector<32x128xf32>, i32 -> vector<32x128xf32>
    %cst_13 = arith.constant 0.000000e+00 : f32
    %27 = vector.broadcast %cst_13 : f32 to vector<32x128xf32>
    %28 = arith.select %25, %26, %27 : vector<32x128xi1>, vector<32x128xf32>
    %c0_14 = arith.constant 0 : index
    %29 = memref.load %arg2[%c0_14] : memref<9xf32, #tpu.memory_space<smem>>
    %30 = vector.broadcast %29 : f32 to vector<32x128xf32>
    %31 = arith.mulf %30, %23 : vector<32x128xf32>
    %c1 = arith.constant 1 : index
    %32 = memref.load %arg2[%c1] : memref<9xf32, #tpu.memory_space<smem>>
    %33 = vector.broadcast %32 : f32 to vector<32x128xf32>
    %34 = arith.mulf %33, %14 : vector<32x128xf32>
    %35 = arith.addf %31, %34 : vector<32x128xf32>
    %c2 = arith.constant 2 : index
    %36 = memref.load %arg2[%c2] : memref<9xf32, #tpu.memory_space<smem>>
    %37 = vector.broadcast %36 : f32 to vector<32x128xf32>
    %38 = arith.mulf %37, %28 : vector<32x128xf32>
    %39 = arith.addf %35, %38 : vector<32x128xf32>
    %c3 = arith.constant 3 : index
    %40 = memref.load %arg2[%c3] : memref<9xf32, #tpu.memory_space<smem>>
    %41 = vector.broadcast %40 : f32 to vector<32x128xf32>
    %42 = arith.mulf %41, %23 : vector<32x128xf32>
    %c4 = arith.constant 4 : index
    %43 = memref.load %arg2[%c4] : memref<9xf32, #tpu.memory_space<smem>>
    %44 = vector.broadcast %43 : f32 to vector<32x128xf32>
    %45 = arith.mulf %44, %14 : vector<32x128xf32>
    %46 = arith.addf %42, %45 : vector<32x128xf32>
    %c5 = arith.constant 5 : index
    %47 = memref.load %arg2[%c5] : memref<9xf32, #tpu.memory_space<smem>>
    %48 = vector.broadcast %47 : f32 to vector<32x128xf32>
    %49 = arith.mulf %48, %28 : vector<32x128xf32>
    %50 = arith.addf %46, %49 : vector<32x128xf32>
    %c6 = arith.constant 6 : index
    %51 = memref.load %arg2[%c6] : memref<9xf32, #tpu.memory_space<smem>>
    %52 = vector.broadcast %51 : f32 to vector<32x128xf32>
    %53 = arith.mulf %52, %23 : vector<32x128xf32>
    %c7 = arith.constant 7 : index
    %54 = memref.load %arg2[%c7] : memref<9xf32, #tpu.memory_space<smem>>
    %55 = vector.broadcast %54 : f32 to vector<32x128xf32>
    %56 = arith.mulf %55, %14 : vector<32x128xf32>
    %57 = arith.addf %53, %56 : vector<32x128xf32>
    %c8 = arith.constant 8 : index
    %58 = memref.load %arg2[%c8] : memref<9xf32, #tpu.memory_space<smem>>
    %59 = vector.broadcast %58 : f32 to vector<32x128xf32>
    %60 = arith.mulf %59, %28 : vector<32x128xf32>
    %61 = arith.addf %57, %60 : vector<32x128xf32>
    %c1_i32_15 = arith.constant 1 : i32
    %62 = vector.broadcast %c1_i32_15 : i32 to vector<32x128xi32>
    %63 = arith.cmpi sge, %18, %62 : vector<32x128xi32>
    %c1_i32_16 = arith.constant 1 : i32
    %64 = tpu.dynamic_rotate %39 by %c1_i32_16 dim 0 : vector<32x128xf32>, i32 -> vector<32x128xf32>
    %cst_17 = arith.constant 0.000000e+00 : f32
    %65 = vector.broadcast %cst_17 : f32 to vector<32x128xf32>
    %66 = arith.select %63, %64, %65 : vector<32x128xi1>, vector<32x128xf32>
    %67 = arith.addf %50, %66 : vector<32x128xf32>
    %c14_i32 = arith.constant 14 : i32
    %68 = vector.broadcast %c14_i32 : i32 to vector<32x128xi32>
    %69 = arith.cmpi sle, %18, %68 : vector<32x128xi32>
    %c31_i32 = arith.constant 31 : i32
    %70 = tpu.dynamic_rotate %61 by %c31_i32 dim 0 : vector<32x128xf32>, i32 -> vector<32x128xf32>
    %cst_18 = arith.constant 0.000000e+00 : f32
    %71 = vector.broadcast %cst_18 : f32 to vector<32x128xf32>
    %72 = arith.select %69, %70, %71 : vector<32x128xi1>, vector<32x128xf32>
    %73 = arith.addf %67, %72 : vector<32x128xf32>
    %c0_19 = arith.constant 0 : index
    %c0_20 = arith.constant 0 : index
    %c0_21 = arith.constant 0 : index
    %74 = vector.load %arg8[%c0_19, %c0_20, %c0_21] : memref<1x32x128xf32, #tpu.memory_space<vmem>>, vector<1x32x128xf32>
    %75 = vector.shape_cast %74 : vector<1x32x128xf32> to vector<32x128xf32>
    %cst_22 = arith.constant 1.22474492 : f32
    %76 = vector.broadcast %cst_22 : f32 to vector<32x128xf32>
    %77 = arith.mulf %76, %75 : vector<32x128xf32>
    %cst_23 = arith.constant 1.44463027 : f32
    %78 = vector.broadcast %cst_23 : f32 to vector<32x128xf32>
    %79 = arith.mulf %78, %73 : vector<32x128xf32>
    %80 = arith.addf %77, %79 : vector<32x128xf32>
    %c0_24 = arith.constant 0 : index
    %81 = memref.load %arg3[%c0_24] : memref<3xf32, #tpu.memory_space<smem>>
    %cst_25 = arith.constant 1.44463027 : f32
    %82 = arith.mulf %cst_25, %81 : f32
    %83 = vector.broadcast %82 : f32 to vector<32x128xf32>
    %84 = arith.addf %80, %83 : vector<32x128xf32>
    %c0_26 = arith.constant 0 : index
    %c0_27 = arith.constant 0 : index
    %c0_28 = arith.constant 0 : index
    %85 = vector.load %arg9[%c0_26, %c0_27, %c0_28] : memref<1x32x128xf32, #tpu.memory_space<vmem>>, vector<1x32x128xf32>
    %86 = vector.shape_cast %85 : vector<1x32x128xf32> to vector<32x128xf32>
    %87 = vector.shape_cast %84 : vector<32x128xf32> to vector<1x32x128xf32>
    tpu.vector_store %arg9[%c0_26, %c0_27, %c0_28], %87 {strides = array<i32>} : memref<1x32x128xf32, #tpu.memory_space<vmem>>, vector<1x32x128xf32>,
    return
  }
  func.func @transform_0(%arg0: i32, %arg1: memref<11x6xi32, #tpu.memory_space<smem>>) -> i32 {
    %c0_i32 = arith.constant 0 : i32
    %c0_i32_0 = arith.constant 0 : i32
    return %c0_i32 : i32
  }
  func.func @transform_1(%arg0: i32, %arg1: memref<11x6xi32, #tpu.memory_space<smem>>) -> i32 {
    %c0_i32 = arith.constant 0 : i32
    %c0_i32_0 = arith.constant 0 : i32
    return %c0_i32 : i32
  }
  func.func @transform_2(%arg0: i32, %arg1: memref<11x6xi32, #tpu.memory_space<smem>>) -> (i32, i32, i32) {
    %0 = arith.index_cast %arg0 : i32 to index
    %c0 = arith.constant 0 : index
    %1 = memref.load %arg1[%0, %c0] : memref<11x6xi32, #tpu.memory_space<smem>>
    %c0_i32 = arith.constant 0 : i32
    %c0_i32_0 = arith.constant 0 : i32
    %c0_i32_1 = arith.constant 0 : i32
    return %1, %c0_i32, %c0_i32_0 : i32, i32, i32
  }
  func.func @transform_3(%arg0: i32, %arg1: memref<11x6xi32, #tpu.memory_space<smem>>) -> (i32, i32, i32) {
    %0 = arith.index_cast %arg0 : i32 to index
    %c1 = arith.constant 1 : index
    %1 = memref.load %arg1[%0, %c1] : memref<11x6xi32, #tpu.memory_space<smem>>
    %c0_i32 = arith.constant 0 : i32
    %c0_i32_0 = arith.constant 0 : i32
    %c0_i32_1 = arith.constant 0 : i32
    return %1, %c0_i32, %c0_i32_0 : i32, i32, i32
  }
  func.func @transform_4(%arg0: i32, %arg1: memref<11x6xi32, #tpu.memory_space<smem>>) -> (i32, i32, i32) {
    %0 = arith.index_cast %arg0 : i32 to index
    %c2 = arith.constant 2 : index
    %1 = memref.load %arg1[%0, %c2] : memref<11x6xi32, #tpu.memory_space<smem>>
    %c0_i32 = arith.constant 0 : i32
    %c0_i32_0 = arith.constant 0 : i32
    %c0_i32_1 = arith.constant 0 : i32
    return %1, %c0_i32, %c0_i32_0 : i32, i32, i32
  }
  func.func @transform_5(%arg0: i32, %arg1: memref<11x6xi32, #tpu.memory_space<smem>>) -> (i32, i32, i32) {
    %0 = arith.index_cast %arg0 : i32 to index
    %c3 = arith.constant 3 : index
    %1 = memref.load %arg1[%0, %c3] : memref<11x6xi32, #tpu.memory_space<smem>>
    %c0_i32 = arith.constant 0 : i32
    %c0_i32_0 = arith.constant 0 : i32
    %c0_i32_1 = arith.constant 0 : i32
    return %1, %c0_i32, %c0_i32_0 : i32, i32, i32
  }
  func.func @transform_6(%arg0: i32, %arg1: memref<11x6xi32, #tpu.memory_space<smem>>) -> (i32, i32, i32) {
    %0 = arith.index_cast %arg0 : i32 to index
    %c4 = arith.constant 4 : index
    %1 = memref.load %arg1[%0, %c4] : memref<11x6xi32, #tpu.memory_space<smem>>
    %c0_i32 = arith.constant 0 : i32
    %c0_i32_0 = arith.constant 0 : i32
    %c0_i32_1 = arith.constant 0 : i32
    return %1, %c0_i32, %c0_i32_0 : i32, i32, i32
  }
  func.func @transform_7(%arg0: i32, %arg1: memref<11x6xi32, #tpu.memory_space<smem>>) -> (i32, i32, i32) {
    %c0_i32 = arith.constant 0 : i32
    %c0_i32_0 = arith.constant 0 : i32
    %c0_i32_1 = arith.constant 0 : i32
    return %arg0, %c0_i32, %c0_i32_0 : i32, i32, i32
  }
}

module attributes {stable_mosaic.version = 11 : i64} {
  func.func @_encode_kernel(%arg0: i32, %arg1: memref<5x6xi32, #tpu.memory_space<smem>>, %arg2: memref<9xf32, #tpu.memory_space<smem>>, %arg3: memref<3xf32, #tpu.memory_space<smem>>, %arg4: memref<1x32x128xf32, #tpu.memory_space<vmem>>, %arg5: memref<1x32x128xbf16, #tpu.memory_space<vmem>>, %arg6: memref<1x32x128xf32, #tpu.memory_space<vmem>>, %arg7: memref<1x32x128xbf16, #tpu.memory_space<vmem>>, %arg8: memref<1x32x128xf32, #tpu.memory_space<vmem>>, %arg9: memref<1x32x128xf32, #tpu.memory_space<vmem>>, %arg10: memref<1x32x128xf32, #tpu.memory_space<vmem>>, %arg11: memref<1x128xf32, #tpu.memory_space<vmem>>) attributes {dimension_semantics = [#tpu.dimension_semantics<arbitrary>], iteration_bounds = array<i64: 5>, scalar_prefetch = 1 : i64, scratch_operands = 0 : i64, tpu.core_type = #tpu.core_type<tc>, window_params = [{transform_indices = @transform_0, window_bounds = array<i64: 9>}, {transform_indices = @transform_1, window_bounds = array<i64: 3>}, {transform_indices = @transform_2, window_bounds = array<i64: 1, 32, 128>}, {transform_indices = @transform_3, window_bounds = array<i64: 1, 32, 128>}, {transform_indices = @transform_4, window_bounds = array<i64: 1, 32, 128>}, {transform_indices = @transform_5, window_bounds = array<i64: 1, 32, 128>}, {transform_indices = @transform_6, window_bounds = array<i64: 1, 32, 128>}, {transform_indices = @transform_7, window_bounds = array<i64: 1, 32, 128>}, {transform_indices = @transform_8, window_bounds = array<i64: 1, 32, 128>}, {pipeline_mode = #tpu.pipeline_mode<synchronous>, transform_indices = @transform_9, window_bounds = array<i64: 1, 128>}]} {
    %c0 = arith.constant 0 : index
    %c0_0 = arith.constant 0 : index
    %c0_1 = arith.constant 0 : index
    %0 = vector.load %arg5[%c0, %c0_0, %c0_1] : memref<1x32x128xbf16, #tpu.memory_space<vmem>>, vector<1x32x128xbf16>
    %1 = vector.shape_cast %0 : vector<1x32x128xbf16> to vector<32x128xbf16>
    %2 = arith.extf %1 : vector<32x128xbf16> to vector<32x128xf32>
    %c0_2 = arith.constant 0 : index
    %c0_3 = arith.constant 0 : index
    %c0_4 = arith.constant 0 : index
    %3 = vector.load %arg7[%c0_2, %c0_3, %c0_4] : memref<1x32x128xbf16, #tpu.memory_space<vmem>>, vector<1x32x128xbf16>
    %4 = vector.shape_cast %3 : vector<1x32x128xbf16> to vector<32x128xbf16>
    %5 = arith.extf %4 : vector<32x128xbf16> to vector<32x128xf32>
    %c0_5 = arith.constant 0 : index
    %c0_6 = arith.constant 0 : index
    %c0_7 = arith.constant 0 : index
    %6 = vector.load %arg4[%c0_5, %c0_6, %c0_7] : memref<1x32x128xf32, #tpu.memory_space<vmem>>, vector<1x32x128xf32>
    %7 = vector.shape_cast %6 : vector<1x32x128xf32> to vector<32x128xf32>
    %8 = arith.mulf %2, %7 : vector<32x128xf32>
    %c0_8 = arith.constant 0 : index
    %c0_9 = arith.constant 0 : index
    %c0_10 = arith.constant 0 : index
    %9 = vector.load %arg6[%c0_8, %c0_9, %c0_10] : memref<1x32x128xf32, #tpu.memory_space<vmem>>, vector<1x32x128xf32>
    %10 = vector.shape_cast %9 : vector<1x32x128xf32> to vector<32x128xf32>
    %11 = arith.mulf %5, %10 : vector<32x128xf32>
    %12 = arith.addf %8, %11 : vector<32x128xf32>
    %cst = arith.constant 5.000000e-01 : f32
    %13 = vector.broadcast %cst : f32 to vector<32x128xf32>
    %14 = arith.mulf %13, %12 : vector<32x128xf32>
    %15 = tpu.iota {dimensions = array<i32: 1>} : vector<32x128xi32>
    %16 = tpu.iota {dimensions = array<i32: 0>} : vector<32x128xi32>
    %c15_i32 = arith.constant 15 : i32
    %17 = vector.broadcast %c15_i32 : i32 to vector<32x128xi32>
    %18 = arith.andi %16, %17 : vector<32x128xi32>
    %c1_i32 = arith.constant 1 : i32
    %19 = vector.broadcast %c1_i32 : i32 to vector<32x128xi32>
    %20 = arith.cmpi sge, %15, %19 : vector<32x128xi32>
    %c1_i32_11 = arith.constant 1 : i32
    %21 = tpu.dynamic_rotate %14 by %c1_i32_11 dim 1 : vector<32x128xf32>, i32 -> vector<32x128xf32>
    %cst_12 = arith.constant 0.000000e+00 : f32
    %22 = vector.broadcast %cst_12 : f32 to vector<32x128xf32>
    %23 = arith.select %20, %21, %22 : vector<32x128xi1>, vector<32x128xf32>
    %c126_i32 = arith.constant 126 : i32
    %24 = vector.broadcast %c126_i32 : i32 to vector<32x128xi32>
    %25 = arith.cmpi sle, %15, %24 : vector<32x128xi32>
    %c127_i32 = arith.constant 127 : i32
    %26 = tpu.dynamic_rotate %14 by %c127_i32 dim 1 : vector<32x128xf32>, i32 -> vector<32x128xf32>
    %cst_13 = arith.constant 0.000000e+00 : f32
    %27 = vector.broadcast %cst_13 : f32 to vector<32x128xf32>
    %28 = arith.select %25, %26, %27 : vector<32x128xi1>, vector<32x128xf32>
    %c0_14 = arith.constant 0 : index
    %29 = memref.load %arg2[%c0_14] : memref<9xf32, #tpu.memory_space<smem>>
    %30 = vector.broadcast %29 : f32 to vector<32x128xf32>
    %31 = arith.mulf %30, %23 : vector<32x128xf32>
    %c1 = arith.constant 1 : index
    %32 = memref.load %arg2[%c1] : memref<9xf32, #tpu.memory_space<smem>>
    %33 = vector.broadcast %32 : f32 to vector<32x128xf32>
    %34 = arith.mulf %33, %14 : vector<32x128xf32>
    %35 = arith.addf %31, %34 : vector<32x128xf32>
    %c2 = arith.constant 2 : index
    %36 = memref.load %arg2[%c2] : memref<9xf32, #tpu.memory_space<smem>>
    %37 = vector.broadcast %36 : f32 to vector<32x128xf32>
    %38 = arith.mulf %37, %28 : vector<32x128xf32>
    %39 = arith.addf %35, %38 : vector<32x128xf32>
    %c3 = arith.constant 3 : index
    %40 = memref.load %arg2[%c3] : memref<9xf32, #tpu.memory_space<smem>>
    %41 = vector.broadcast %40 : f32 to vector<32x128xf32>
    %42 = arith.mulf %41, %23 : vector<32x128xf32>
    %c4 = arith.constant 4 : index
    %43 = memref.load %arg2[%c4] : memref<9xf32, #tpu.memory_space<smem>>
    %44 = vector.broadcast %43 : f32 to vector<32x128xf32>
    %45 = arith.mulf %44, %14 : vector<32x128xf32>
    %46 = arith.addf %42, %45 : vector<32x128xf32>
    %c5 = arith.constant 5 : index
    %47 = memref.load %arg2[%c5] : memref<9xf32, #tpu.memory_space<smem>>
    %48 = vector.broadcast %47 : f32 to vector<32x128xf32>
    %49 = arith.mulf %48, %28 : vector<32x128xf32>
    %50 = arith.addf %46, %49 : vector<32x128xf32>
    %c6 = arith.constant 6 : index
    %51 = memref.load %arg2[%c6] : memref<9xf32, #tpu.memory_space<smem>>
    %52 = vector.broadcast %51 : f32 to vector<32x128xf32>
    %53 = arith.mulf %52, %23 : vector<32x128xf32>
    %c7 = arith.constant 7 : index
    %54 = memref.load %arg2[%c7] : memref<9xf32, #tpu.memory_space<smem>>
    %55 = vector.broadcast %54 : f32 to vector<32x128xf32>
    %56 = arith.mulf %55, %14 : vector<32x128xf32>
    %57 = arith.addf %53, %56 : vector<32x128xf32>
    %c8 = arith.constant 8 : index
    %58 = memref.load %arg2[%c8] : memref<9xf32, #tpu.memory_space<smem>>
    %59 = vector.broadcast %58 : f32 to vector<32x128xf32>
    %60 = arith.mulf %59, %28 : vector<32x128xf32>
    %61 = arith.addf %57, %60 : vector<32x128xf32>
    %c1_i32_15 = arith.constant 1 : i32
    %62 = vector.broadcast %c1_i32_15 : i32 to vector<32x128xi32>
    %63 = arith.cmpi sge, %18, %62 : vector<32x128xi32>
    %c1_i32_16 = arith.constant 1 : i32
    %64 = tpu.dynamic_rotate %39 by %c1_i32_16 dim 0 : vector<32x128xf32>, i32 -> vector<32x128xf32>
    %cst_17 = arith.constant 0.000000e+00 : f32
    %65 = vector.broadcast %cst_17 : f32 to vector<32x128xf32>
    %66 = arith.select %63, %64, %65 : vector<32x128xi1>, vector<32x128xf32>
    %67 = arith.addf %50, %66 : vector<32x128xf32>
    %c14_i32 = arith.constant 14 : i32
    %68 = vector.broadcast %c14_i32 : i32 to vector<32x128xi32>
    %69 = arith.cmpi sle, %18, %68 : vector<32x128xi32>
    %c31_i32 = arith.constant 31 : i32
    %70 = tpu.dynamic_rotate %61 by %c31_i32 dim 0 : vector<32x128xf32>, i32 -> vector<32x128xf32>
    %cst_18 = arith.constant 0.000000e+00 : f32
    %71 = vector.broadcast %cst_18 : f32 to vector<32x128xf32>
    %72 = arith.select %69, %70, %71 : vector<32x128xi1>, vector<32x128xf32>
    %73 = arith.addf %67, %72 : vector<32x128xf32>
    %c0_19 = arith.constant 0 : index
    %c0_20 = arith.constant 0 : index
    %c0_21 = arith.constant 0 : index
    %74 = vector.load %arg8[%c0_19, %c0_20, %c0_21] : memref<1x32x128xf32, #tpu.memory_space<vmem>>, vector<1x32x128xf32>
    %75 = vector.shape_cast %74 : vector<1x32x128xf32> to vector<32x128xf32>
    %cst_22 = arith.constant 0.847791254 : f32
    %76 = vector.broadcast %cst_22 : f32 to vector<32x128xf32>
    %77 = arith.mulf %76, %75 : vector<32x128xf32>
    %cst_23 = arith.constant -0.847791254 : f32
    %78 = vector.broadcast %cst_23 : f32 to vector<32x128xf32>
    %79 = arith.mulf %78, %73 : vector<32x128xf32>
    %80 = arith.addf %77, %79 : vector<32x128xf32>
    %c0_24 = arith.constant 0 : index
    %81 = memref.load %arg3[%c0_24] : memref<3xf32, #tpu.memory_space<smem>>
    %cst_25 = arith.constant -0.847791254 : f32
    %82 = arith.mulf %cst_25, %81 : f32
    %83 = vector.broadcast %82 : f32 to vector<32x128xf32>
    %84 = arith.addf %80, %83 : vector<32x128xf32>
    %c0_26 = arith.constant 0 : index
    %c0_27 = arith.constant 0 : index
    %c0_28 = arith.constant 0 : index
    %85 = vector.load %arg9[%c0_26, %c0_27, %c0_28] : memref<1x32x128xf32, #tpu.memory_space<vmem>>, vector<1x32x128xf32>
    %86 = vector.shape_cast %85 : vector<1x32x128xf32> to vector<32x128xf32>
    %87 = vector.shape_cast %84 : vector<32x128xf32> to vector<1x32x128xf32>
    tpu.vector_store %arg9[%c0_26, %c0_27, %c0_28], %87 {strides = array<i32>} : memref<1x32x128xf32, #tpu.memory_space<vmem>>, vector<1x32x128xf32>,
    %c0_i32 = arith.constant 0 : i32
    %88 = arith.cmpi eq, %arg0, %c0_i32 : i32
    %89 = arith.extui %88 : i1 to i32
    %c0_i32_29 = arith.constant 0 : i32
    %90 = arith.cmpi ne, %89, %c0_i32_29 : i32
    scf.if %90 {
      %cst_31 = arith.constant 0.000000e+00 : f32
      %94 = vector.broadcast %cst_31 : f32 to vector<1x128xf32>
      %c0_32 = arith.constant 0 : index
      %c0_33 = arith.constant 0 : index
      %95 = vector.load %arg11[%c0_32, %c0_33] : memref<1x128xf32, #tpu.memory_space<vmem>>, vector<1x128xf32>
      tpu.vector_store %arg11[%c0_32, %c0_33], %94 {strides = array<i32>} : memref<1x128xf32, #tpu.memory_space<vmem>>, vector<1x128xf32>,
    } else {
    }
    %c3_i32 = arith.constant 3 : i32
    %91 = arith.cmpi slt, %arg0, %c3_i32 : i32
    %92 = arith.extui %91 : i1 to i32
    %c0_i32_30 = arith.constant 0 : i32
    %93 = arith.cmpi ne, %92, %c0_i32_30 : i32
    scf.if %93 {
      %c1_31 = arith.constant 1 : index
      %94 = memref.load %arg3[%c1_31] : memref<3xf32, #tpu.memory_space<smem>>
      %95 = vector.broadcast %94 : f32 to vector<32x128xf32>
      %96 = arith.mulf %84, %95 : vector<32x128xf32>
      %97 = math.roundeven %96 : vector<32x128xf32>
      %c2_32 = arith.constant 2 : index
      %98 = memref.load %arg3[%c2_32] : memref<3xf32, #tpu.memory_space<smem>>
      %99 = vector.broadcast %98 : f32 to vector<32x128xf32>
      %100 = arith.mulf %97, %99 : vector<32x128xf32>
      %c0_33 = arith.constant 0 : index
      %c0_34 = arith.constant 0 : index
      %c0_35 = arith.constant 0 : index
      %101 = vector.load %arg10[%c0_33, %c0_34, %c0_35] : memref<1x32x128xf32, #tpu.memory_space<vmem>>, vector<1x32x128xf32>
      %102 = vector.shape_cast %101 : vector<1x32x128xf32> to vector<32x128xf32>
      %103 = vector.shape_cast %100 : vector<32x128xf32> to vector<1x32x128xf32>
      tpu.vector_store %arg10[%c0_33, %c0_34, %c0_35], %103 {strides = array<i32>} : memref<1x32x128xf32, #tpu.memory_space<vmem>>, vector<1x32x128xf32>,
      %c2_i32 = arith.constant 2 : i32
      %104 = arith.cmpi slt, %arg0, %c2_i32 : i32
      %105 = arith.extui %104 : i1 to i32
      %c0_i32_36 = arith.constant 0 : i32
      %106 = arith.cmpi ne, %105, %c0_i32_36 : i32
      scf.if %106 {
        %c0_37 = arith.constant 0 : index
        %c0_38 = arith.constant 0 : index
        %107 = vector.load %arg11[%c0_37, %c0_38] : memref<1x128xf32, #tpu.memory_space<vmem>>, vector<1x128xf32>
        %108 = math.absf %97 : vector<32x128xf32>
        %cst_39 = arith.constant 1.000000e+00 : f32
        %109 = vector.broadcast %cst_39 : f32 to vector<32x128xf32>
        %110 = arith.addf %109, %108 : vector<32x128xf32>
        %111 = math.log %110 : vector<32x128xf32>
        %cst_40 = arith.constant 2.000000e+00 : f32
        %112 = math.log %cst_40 : f32
        %113 = vector.broadcast %112 : f32 to vector<32x128xf32>
        %114 = arith.divf %111, %113 : vector<32x128xf32>
        %cst_41 = arith.constant dense<0.000000e+00> : vector<128xf32>
        %115 = vector.multi_reduction <add>, %114, %cst_41 [0] : vector<32x128xf32> to vector<128xf32>
        %116 = vector.shape_cast %115 : vector<128xf32> to vector<1x128xf32>
        %117 = arith.addf %107, %116 : vector<1x128xf32>
        %c0_42 = arith.constant 0 : index
        %c0_43 = arith.constant 0 : index
        %118 = vector.load %arg11[%c0_42, %c0_43] : memref<1x128xf32, #tpu.memory_space<vmem>>, vector<1x128xf32>
        tpu.vector_store %arg11[%c0_42, %c0_43], %117 {strides = array<i32>} : memref<1x128xf32, #tpu.memory_space<vmem>>, vector<1x128xf32>,
      } else {
      }
    } else {
    }
    return
  }
  func.func @transform_0(%arg0: i32, %arg1: memref<5x6xi32, #tpu.memory_space<smem>>) -> i32 {
    %c0_i32 = arith.constant 0 : i32
    %c0_i32_0 = arith.constant 0 : i32
    return %c0_i32 : i32
  }
  func.func @transform_1(%arg0: i32, %arg1: memref<5x6xi32, #tpu.memory_space<smem>>) -> i32 {
    %c0_i32 = arith.constant 0 : i32
    %c0_i32_0 = arith.constant 0 : i32
    return %c0_i32 : i32
  }
  func.func @transform_2(%arg0: i32, %arg1: memref<5x6xi32, #tpu.memory_space<smem>>) -> (i32, i32, i32) {
    %0 = arith.index_cast %arg0 : i32 to index
    %c0 = arith.constant 0 : index
    %1 = memref.load %arg1[%0, %c0] : memref<5x6xi32, #tpu.memory_space<smem>>
    %c0_i32 = arith.constant 0 : i32
    %c0_i32_0 = arith.constant 0 : i32
    %c0_i32_1 = arith.constant 0 : i32
    return %1, %c0_i32, %c0_i32_0 : i32, i32, i32
  }
  func.func @transform_3(%arg0: i32, %arg1: memref<5x6xi32, #tpu.memory_space<smem>>) -> (i32, i32, i32) {
    %0 = arith.index_cast %arg0 : i32 to index
    %c1 = arith.constant 1 : index
    %1 = memref.load %arg1[%0, %c1] : memref<5x6xi32, #tpu.memory_space<smem>>
    %c0_i32 = arith.constant 0 : i32
    %c0_i32_0 = arith.constant 0 : i32
    %c0_i32_1 = arith.constant 0 : i32
    return %1, %c0_i32, %c0_i32_0 : i32, i32, i32
  }
  func.func @transform_4(%arg0: i32, %arg1: memref<5x6xi32, #tpu.memory_space<smem>>) -> (i32, i32, i32) {
    %0 = arith.index_cast %arg0 : i32 to index
    %c2 = arith.constant 2 : index
    %1 = memref.load %arg1[%0, %c2] : memref<5x6xi32, #tpu.memory_space<smem>>
    %c0_i32 = arith.constant 0 : i32
    %c0_i32_0 = arith.constant 0 : i32
    %c0_i32_1 = arith.constant 0 : i32
    return %1, %c0_i32, %c0_i32_0 : i32, i32, i32
  }
  func.func @transform_5(%arg0: i32, %arg1: memref<5x6xi32, #tpu.memory_space<smem>>) -> (i32, i32, i32) {
    %0 = arith.index_cast %arg0 : i32 to index
    %c3 = arith.constant 3 : index
    %1 = memref.load %arg1[%0, %c3] : memref<5x6xi32, #tpu.memory_space<smem>>
    %c0_i32 = arith.constant 0 : i32
    %c0_i32_0 = arith.constant 0 : i32
    %c0_i32_1 = arith.constant 0 : i32
    return %1, %c0_i32, %c0_i32_0 : i32, i32, i32
  }
  func.func @transform_6(%arg0: i32, %arg1: memref<5x6xi32, #tpu.memory_space<smem>>) -> (i32, i32, i32) {
    %0 = arith.index_cast %arg0 : i32 to index
    %c4 = arith.constant 4 : index
    %1 = memref.load %arg1[%0, %c4] : memref<5x6xi32, #tpu.memory_space<smem>>
    %c0_i32 = arith.constant 0 : i32
    %c0_i32_0 = arith.constant 0 : i32
    %c0_i32_1 = arith.constant 0 : i32
    return %1, %c0_i32, %c0_i32_0 : i32, i32, i32
  }
  func.func @transform_7(%arg0: i32, %arg1: memref<5x6xi32, #tpu.memory_space<smem>>) -> (i32, i32, i32) {
    %c0_i32 = arith.constant 0 : i32
    %c0_i32_0 = arith.constant 0 : i32
    %c0_i32_1 = arith.constant 0 : i32
    return %arg0, %c0_i32, %c0_i32_0 : i32, i32, i32
  }
  func.func @transform_8(%arg0: i32, %arg1: memref<5x6xi32, #tpu.memory_space<smem>>) -> (i32, i32, i32) {
    %0 = arith.index_cast %arg0 : i32 to index
    %c5 = arith.constant 5 : index
    %1 = memref.load %arg1[%0, %c5] : memref<5x6xi32, #tpu.memory_space<smem>>
    %c0_i32 = arith.constant 0 : i32
    %c0_i32_0 = arith.constant 0 : i32
    %c0_i32_1 = arith.constant 0 : i32
    return %1, %c0_i32, %c0_i32_0 : i32, i32, i32
  }
  func.func @transform_9(%arg0: i32, %arg1: memref<5x6xi32, #tpu.memory_space<smem>>) -> (i32, i32) {
    %c0_i32 = arith.constant 0 : i32
    %c0_i32_0 = arith.constant 0 : i32
    %c0_i32_1 = arith.constant 0 : i32
    return %c0_i32, %c0_i32_0 : i32, i32
  }
}

module attributes {stable_mosaic.version = 11 : i64} {
  func.func @_encode_kernel(%arg0: i32, %arg1: memref<11x6xi32, #tpu.memory_space<smem>>, %arg2: memref<9xf32, #tpu.memory_space<smem>>, %arg3: memref<3xf32, #tpu.memory_space<smem>>, %arg4: memref<1x32x128xf32, #tpu.memory_space<vmem>>, %arg5: memref<1x32x128xbf16, #tpu.memory_space<vmem>>, %arg6: memref<1x32x128xf32, #tpu.memory_space<vmem>>, %arg7: memref<1x32x128xbf16, #tpu.memory_space<vmem>>, %arg8: memref<1x32x128xf32, #tpu.memory_space<vmem>>, %arg9: memref<1x32x128xf32, #tpu.memory_space<vmem>>, %arg10: memref<1x32x128xf32, #tpu.memory_space<vmem>>, %arg11: memref<1x128xf32, #tpu.memory_space<vmem>>) attributes {dimension_semantics = [#tpu.dimension_semantics<arbitrary>], iteration_bounds = array<i64: 11>, scalar_prefetch = 1 : i64, scratch_operands = 0 : i64, tpu.core_type = #tpu.core_type<tc>, window_params = [{transform_indices = @transform_0, window_bounds = array<i64: 9>}, {transform_indices = @transform_1, window_bounds = array<i64: 3>}, {transform_indices = @transform_2, window_bounds = array<i64: 1, 32, 128>}, {transform_indices = @transform_3, window_bounds = array<i64: 1, 32, 128>}, {transform_indices = @transform_4, window_bounds = array<i64: 1, 32, 128>}, {transform_indices = @transform_5, window_bounds = array<i64: 1, 32, 128>}, {transform_indices = @transform_6, window_bounds = array<i64: 1, 32, 128>}, {transform_indices = @transform_7, window_bounds = array<i64: 1, 32, 128>}, {transform_indices = @transform_8, window_bounds = array<i64: 1, 32, 128>}, {pipeline_mode = #tpu.pipeline_mode<synchronous>, transform_indices = @transform_9, window_bounds = array<i64: 1, 128>}]} {
    %c0 = arith.constant 0 : index
    %c0_0 = arith.constant 0 : index
    %c0_1 = arith.constant 0 : index
    %0 = vector.load %arg5[%c0, %c0_0, %c0_1] : memref<1x32x128xbf16, #tpu.memory_space<vmem>>, vector<1x32x128xbf16>
    %1 = vector.shape_cast %0 : vector<1x32x128xbf16> to vector<32x128xbf16>
    %2 = arith.extf %1 : vector<32x128xbf16> to vector<32x128xf32>
    %c0_2 = arith.constant 0 : index
    %c0_3 = arith.constant 0 : index
    %c0_4 = arith.constant 0 : index
    %3 = vector.load %arg7[%c0_2, %c0_3, %c0_4] : memref<1x32x128xbf16, #tpu.memory_space<vmem>>, vector<1x32x128xbf16>
    %4 = vector.shape_cast %3 : vector<1x32x128xbf16> to vector<32x128xbf16>
    %5 = arith.extf %4 : vector<32x128xbf16> to vector<32x128xf32>
    %c0_5 = arith.constant 0 : index
    %c0_6 = arith.constant 0 : index
    %c0_7 = arith.constant 0 : index
    %6 = vector.load %arg4[%c0_5, %c0_6, %c0_7] : memref<1x32x128xf32, #tpu.memory_space<vmem>>, vector<1x32x128xf32>
    %7 = vector.shape_cast %6 : vector<1x32x128xf32> to vector<32x128xf32>
    %8 = arith.mulf %2, %7 : vector<32x128xf32>
    %c0_8 = arith.constant 0 : index
    %c0_9 = arith.constant 0 : index
    %c0_10 = arith.constant 0 : index
    %9 = vector.load %arg6[%c0_8, %c0_9, %c0_10] : memref<1x32x128xf32, #tpu.memory_space<vmem>>, vector<1x32x128xf32>
    %10 = vector.shape_cast %9 : vector<1x32x128xf32> to vector<32x128xf32>
    %11 = arith.mulf %5, %10 : vector<32x128xf32>
    %12 = arith.addf %8, %11 : vector<32x128xf32>
    %cst = arith.constant 5.000000e-01 : f32
    %13 = vector.broadcast %cst : f32 to vector<32x128xf32>
    %14 = arith.mulf %13, %12 : vector<32x128xf32>
    %15 = tpu.iota {dimensions = array<i32: 1>} : vector<32x128xi32>
    %16 = tpu.iota {dimensions = array<i32: 0>} : vector<32x128xi32>
    %c15_i32 = arith.constant 15 : i32
    %17 = vector.broadcast %c15_i32 : i32 to vector<32x128xi32>
    %18 = arith.andi %16, %17 : vector<32x128xi32>
    %c1_i32 = arith.constant 1 : i32
    %19 = vector.broadcast %c1_i32 : i32 to vector<32x128xi32>
    %20 = arith.cmpi sge, %15, %19 : vector<32x128xi32>
    %c1_i32_11 = arith.constant 1 : i32
    %21 = tpu.dynamic_rotate %14 by %c1_i32_11 dim 1 : vector<32x128xf32>, i32 -> vector<32x128xf32>
    %cst_12 = arith.constant 0.000000e+00 : f32
    %22 = vector.broadcast %cst_12 : f32 to vector<32x128xf32>
    %23 = arith.select %20, %21, %22 : vector<32x128xi1>, vector<32x128xf32>
    %c126_i32 = arith.constant 126 : i32
    %24 = vector.broadcast %c126_i32 : i32 to vector<32x128xi32>
    %25 = arith.cmpi sle, %15, %24 : vector<32x128xi32>
    %c127_i32 = arith.constant 127 : i32
    %26 = tpu.dynamic_rotate %14 by %c127_i32 dim 1 : vector<32x128xf32>, i32 -> vector<32x128xf32>
    %cst_13 = arith.constant 0.000000e+00 : f32
    %27 = vector.broadcast %cst_13 : f32 to vector<32x128xf32>
    %28 = arith.select %25, %26, %27 : vector<32x128xi1>, vector<32x128xf32>
    %c0_14 = arith.constant 0 : index
    %29 = memref.load %arg2[%c0_14] : memref<9xf32, #tpu.memory_space<smem>>
    %30 = vector.broadcast %29 : f32 to vector<32x128xf32>
    %31 = arith.mulf %30, %23 : vector<32x128xf32>
    %c1 = arith.constant 1 : index
    %32 = memref.load %arg2[%c1] : memref<9xf32, #tpu.memory_space<smem>>
    %33 = vector.broadcast %32 : f32 to vector<32x128xf32>
    %34 = arith.mulf %33, %14 : vector<32x128xf32>
    %35 = arith.addf %31, %34 : vector<32x128xf32>
    %c2 = arith.constant 2 : index
    %36 = memref.load %arg2[%c2] : memref<9xf32, #tpu.memory_space<smem>>
    %37 = vector.broadcast %36 : f32 to vector<32x128xf32>
    %38 = arith.mulf %37, %28 : vector<32x128xf32>
    %39 = arith.addf %35, %38 : vector<32x128xf32>
    %c3 = arith.constant 3 : index
    %40 = memref.load %arg2[%c3] : memref<9xf32, #tpu.memory_space<smem>>
    %41 = vector.broadcast %40 : f32 to vector<32x128xf32>
    %42 = arith.mulf %41, %23 : vector<32x128xf32>
    %c4 = arith.constant 4 : index
    %43 = memref.load %arg2[%c4] : memref<9xf32, #tpu.memory_space<smem>>
    %44 = vector.broadcast %43 : f32 to vector<32x128xf32>
    %45 = arith.mulf %44, %14 : vector<32x128xf32>
    %46 = arith.addf %42, %45 : vector<32x128xf32>
    %c5 = arith.constant 5 : index
    %47 = memref.load %arg2[%c5] : memref<9xf32, #tpu.memory_space<smem>>
    %48 = vector.broadcast %47 : f32 to vector<32x128xf32>
    %49 = arith.mulf %48, %28 : vector<32x128xf32>
    %50 = arith.addf %46, %49 : vector<32x128xf32>
    %c6 = arith.constant 6 : index
    %51 = memref.load %arg2[%c6] : memref<9xf32, #tpu.memory_space<smem>>
    %52 = vector.broadcast %51 : f32 to vector<32x128xf32>
    %53 = arith.mulf %52, %23 : vector<32x128xf32>
    %c7 = arith.constant 7 : index
    %54 = memref.load %arg2[%c7] : memref<9xf32, #tpu.memory_space<smem>>
    %55 = vector.broadcast %54 : f32 to vector<32x128xf32>
    %56 = arith.mulf %55, %14 : vector<32x128xf32>
    %57 = arith.addf %53, %56 : vector<32x128xf32>
    %c8 = arith.constant 8 : index
    %58 = memref.load %arg2[%c8] : memref<9xf32, #tpu.memory_space<smem>>
    %59 = vector.broadcast %58 : f32 to vector<32x128xf32>
    %60 = arith.mulf %59, %28 : vector<32x128xf32>
    %61 = arith.addf %57, %60 : vector<32x128xf32>
    %c1_i32_15 = arith.constant 1 : i32
    %62 = vector.broadcast %c1_i32_15 : i32 to vector<32x128xi32>
    %63 = arith.cmpi sge, %18, %62 : vector<32x128xi32>
    %c1_i32_16 = arith.constant 1 : i32
    %64 = tpu.dynamic_rotate %39 by %c1_i32_16 dim 0 : vector<32x128xf32>, i32 -> vector<32x128xf32>
    %cst_17 = arith.constant 0.000000e+00 : f32
    %65 = vector.broadcast %cst_17 : f32 to vector<32x128xf32>
    %66 = arith.select %63, %64, %65 : vector<32x128xi1>, vector<32x128xf32>
    %67 = arith.addf %50, %66 : vector<32x128xf32>
    %c14_i32 = arith.constant 14 : i32
    %68 = vector.broadcast %c14_i32 : i32 to vector<32x128xi32>
    %69 = arith.cmpi sle, %18, %68 : vector<32x128xi32>
    %c31_i32 = arith.constant 31 : i32
    %70 = tpu.dynamic_rotate %61 by %c31_i32 dim 0 : vector<32x128xf32>, i32 -> vector<32x128xf32>
    %cst_18 = arith.constant 0.000000e+00 : f32
    %71 = vector.broadcast %cst_18 : f32 to vector<32x128xf32>
    %72 = arith.select %69, %70, %71 : vector<32x128xi1>, vector<32x128xf32>
    %73 = arith.addf %67, %72 : vector<32x128xf32>
    %c0_19 = arith.constant 0 : index
    %c0_20 = arith.constant 0 : index
    %c0_21 = arith.constant 0 : index
    %74 = vector.load %arg8[%c0_19, %c0_20, %c0_21] : memref<1x32x128xf32, #tpu.memory_space<vmem>>, vector<1x32x128xf32>
    %75 = vector.shape_cast %74 : vector<1x32x128xf32> to vector<32x128xf32>
    %cst_22 = arith.constant 0.847791254 : f32
    %76 = vector.broadcast %cst_22 : f32 to vector<32x128xf32>
    %77 = arith.mulf %76, %75 : vector<32x128xf32>
    %cst_23 = arith.constant -0.847791254 : f32
    %78 = vector.broadcast %cst_23 : f32 to vector<32x128xf32>
    %79 = arith.mulf %78, %73 : vector<32x128xf32>
    %80 = arith.addf %77, %79 : vector<32x128xf32>
    %c0_24 = arith.constant 0 : index
    %81 = memref.load %arg3[%c0_24] : memref<3xf32, #tpu.memory_space<smem>>
    %cst_25 = arith.constant -0.847791254 : f32
    %82 = arith.mulf %cst_25, %81 : f32
    %83 = vector.broadcast %82 : f32 to vector<32x128xf32>
    %84 = arith.addf %80, %83 : vector<32x128xf32>
    %c0_26 = arith.constant 0 : index
    %c0_27 = arith.constant 0 : index
    %c0_28 = arith.constant 0 : index
    %85 = vector.load %arg9[%c0_26, %c0_27, %c0_28] : memref<1x32x128xf32, #tpu.memory_space<vmem>>, vector<1x32x128xf32>
    %86 = vector.shape_cast %85 : vector<1x32x128xf32> to vector<32x128xf32>
    %87 = vector.shape_cast %84 : vector<32x128xf32> to vector<1x32x128xf32>
    tpu.vector_store %arg9[%c0_26, %c0_27, %c0_28], %87 {strides = array<i32>} : memref<1x32x128xf32, #tpu.memory_space<vmem>>, vector<1x32x128xf32>,
    %c0_i32 = arith.constant 0 : i32
    %88 = arith.cmpi eq, %arg0, %c0_i32 : i32
    %89 = arith.extui %88 : i1 to i32
    %c0_i32_29 = arith.constant 0 : i32
    %90 = arith.cmpi ne, %89, %c0_i32_29 : i32
    scf.if %90 {
      %cst_31 = arith.constant 0.000000e+00 : f32
      %94 = vector.broadcast %cst_31 : f32 to vector<1x128xf32>
      %c0_32 = arith.constant 0 : index
      %c0_33 = arith.constant 0 : index
      %95 = vector.load %arg11[%c0_32, %c0_33] : memref<1x128xf32, #tpu.memory_space<vmem>>, vector<1x128xf32>
      tpu.vector_store %arg11[%c0_32, %c0_33], %94 {strides = array<i32>} : memref<1x128xf32, #tpu.memory_space<vmem>>, vector<1x128xf32>,
    } else {
    }
    %c5_i32 = arith.constant 5 : i32
    %91 = arith.cmpi slt, %arg0, %c5_i32 : i32
    %92 = arith.extui %91 : i1 to i32
    %c0_i32_30 = arith.constant 0 : i32
    %93 = arith.cmpi ne, %92, %c0_i32_30 : i32
    scf.if %93 {
      %c1_31 = arith.constant 1 : index
      %94 = memref.load %arg3[%c1_31] : memref<3xf32, #tpu.memory_space<smem>>
      %95 = vector.broadcast %94 : f32 to vector<32x128xf32>
      %96 = arith.mulf %84, %95 : vector<32x128xf32>
      %97 = math.roundeven %96 : vector<32x128xf32>
      %c2_32 = arith.constant 2 : index
      %98 = memref.load %arg3[%c2_32] : memref<3xf32, #tpu.memory_space<smem>>
      %99 = vector.broadcast %98 : f32 to vector<32x128xf32>
      %100 = arith.mulf %97, %99 : vector<32x128xf32>
      %c0_33 = arith.constant 0 : index
      %c0_34 = arith.constant 0 : index
      %c0_35 = arith.constant 0 : index
      %101 = vector.load %arg10[%c0_33, %c0_34, %c0_35] : memref<1x32x128xf32, #tpu.memory_space<vmem>>, vector<1x32x128xf32>
      %102 = vector.shape_cast %101 : vector<1x32x128xf32> to vector<32x128xf32>
      %103 = vector.shape_cast %100 : vector<32x128xf32> to vector<1x32x128xf32>
      tpu.vector_store %arg10[%c0_33, %c0_34, %c0_35], %103 {strides = array<i32>} : memref<1x32x128xf32, #tpu.memory_space<vmem>>, vector<1x32x128xf32>,
      %c4_i32 = arith.constant 4 : i32
      %104 = arith.cmpi slt, %arg0, %c4_i32 : i32
      %105 = arith.extui %104 : i1 to i32
      %c0_i32_36 = arith.constant 0 : i32
      %106 = arith.cmpi ne, %105, %c0_i32_36 : i32
      scf.if %106 {
        %c0_37 = arith.constant 0 : index
        %c0_38 = arith.constant 0 : index
        %107 = vector.load %arg11[%c0_37, %c0_38] : memref<1x128xf32, #tpu.memory_space<vmem>>, vector<1x128xf32>
        %108 = math.absf %97 : vector<32x128xf32>
        %cst_39 = arith.constant 1.000000e+00 : f32
        %109 = vector.broadcast %cst_39 : f32 to vector<32x128xf32>
        %110 = arith.addf %109, %108 : vector<32x128xf32>
        %111 = math.log %110 : vector<32x128xf32>
        %cst_40 = arith.constant 2.000000e+00 : f32
        %112 = math.log %cst_40 : f32
        %113 = vector.broadcast %112 : f32 to vector<32x128xf32>
        %114 = arith.divf %111, %113 : vector<32x128xf32>
        %cst_41 = arith.constant dense<0.000000e+00> : vector<128xf32>
        %115 = vector.multi_reduction <add>, %114, %cst_41 [0] : vector<32x128xf32> to vector<128xf32>
        %116 = vector.shape_cast %115 : vector<128xf32> to vector<1x128xf32>
        %117 = arith.addf %107, %116 : vector<1x128xf32>
        %c0_42 = arith.constant 0 : index
        %c0_43 = arith.constant 0 : index
        %118 = vector.load %arg11[%c0_42, %c0_43] : memref<1x128xf32, #tpu.memory_space<vmem>>, vector<1x128xf32>
        tpu.vector_store %arg11[%c0_42, %c0_43], %117 {strides = array<i32>} : memref<1x128xf32, #tpu.memory_space<vmem>>, vector<1x128xf32>,
      } else {
      }
    } else {
    }
    return
  }
  func.func @transform_0(%arg0: i32, %arg1: memref<11x6xi32, #tpu.memory_space<smem>>) -> i32 {
    %c0_i32 = arith.constant 0 : i32
    %c0_i32_0 = arith.constant 0 : i32
    return %c0_i32 : i32
  }
  func.func @transform_1(%arg0: i32, %arg1: memref<11x6xi32, #tpu.memory_space<smem>>) -> i32 {
    %c0_i32 = arith.constant 0 : i32
    %c0_i32_0 = arith.constant 0 : i32
    return %c0_i32 : i32
  }
  func.func @transform_2(%arg0: i32, %arg1: memref<11x6xi32, #tpu.memory_space<smem>>) -> (i32, i32, i32) {
    %0 = arith.index_cast %arg0 : i32 to index
    %c0 = arith.constant 0 : index
    %1 = memref.load %arg1[%0, %c0] : memref<11x6xi32, #tpu.memory_space<smem>>
    %c0_i32 = arith.constant 0 : i32
    %c0_i32_0 = arith.constant 0 : i32
    %c0_i32_1 = arith.constant 0 : i32
    return %1, %c0_i32, %c0_i32_0 : i32, i32, i32
  }
  func.func @transform_3(%arg0: i32, %arg1: memref<11x6xi32, #tpu.memory_space<smem>>) -> (i32, i32, i32) {
    %0 = arith.index_cast %arg0 : i32 to index
    %c1 = arith.constant 1 : index
    %1 = memref.load %arg1[%0, %c1] : memref<11x6xi32, #tpu.memory_space<smem>>
    %c0_i32 = arith.constant 0 : i32
    %c0_i32_0 = arith.constant 0 : i32
    %c0_i32_1 = arith.constant 0 : i32
    return %1, %c0_i32, %c0_i32_0 : i32, i32, i32
  }
  func.func @transform_4(%arg0: i32, %arg1: memref<11x6xi32, #tpu.memory_space<smem>>) -> (i32, i32, i32) {
    %0 = arith.index_cast %arg0 : i32 to index
    %c2 = arith.constant 2 : index
    %1 = memref.load %arg1[%0, %c2] : memref<11x6xi32, #tpu.memory_space<smem>>
    %c0_i32 = arith.constant 0 : i32
    %c0_i32_0 = arith.constant 0 : i32
    %c0_i32_1 = arith.constant 0 : i32
    return %1, %c0_i32, %c0_i32_0 : i32, i32, i32
  }
  func.func @transform_5(%arg0: i32, %arg1: memref<11x6xi32, #tpu.memory_space<smem>>) -> (i32, i32, i32) {
    %0 = arith.index_cast %arg0 : i32 to index
    %c3 = arith.constant 3 : index
    %1 = memref.load %arg1[%0, %c3] : memref<11x6xi32, #tpu.memory_space<smem>>
    %c0_i32 = arith.constant 0 : i32
    %c0_i32_0 = arith.constant 0 : i32
    %c0_i32_1 = arith.constant 0 : i32
    return %1, %c0_i32, %c0_i32_0 : i32, i32, i32
  }
  func.func @transform_6(%arg0: i32, %arg1: memref<11x6xi32, #tpu.memory_space<smem>>) -> (i32, i32, i32) {
    %0 = arith.index_cast %arg0 : i32 to index
    %c4 = arith.constant 4 : index
    %1 = memref.load %arg1[%0, %c4] : memref<11x6xi32, #tpu.memory_space<smem>>
    %c0_i32 = arith.constant 0 : i32
    %c0_i32_0 = arith.constant 0 : i32
    %c0_i32_1 = arith.constant 0 : i32
    return %1, %c0_i32, %c0_i32_0 : i32, i32, i32
  }
  func.func @transform_7(%arg0: i32, %arg1: memref<11x6xi32, #tpu.memory_space<smem>>) -> (i32, i32, i32) {
    %c0_i32 = arith.constant 0 : i32
    %c0_i32_0 = arith.constant 0 : i32
    %c0_i32_1 = arith.constant 0 : i32
    return %arg0, %c0_i32, %c0_i32_0 : i32, i32, i32
  }
  func.func @transform_8(%arg0: i32, %arg1: memref<11x6xi32, #tpu.memory_space<smem>>) -> (i32, i32, i32) {
    %0 = arith.index_cast %arg0 : i32 to index
    %c5 = arith.constant 5 : index
    %1 = memref.load %arg1[%0, %c5] : memref<11x6xi32, #tpu.memory_space<smem>>
    %c0_i32 = arith.constant 0 : i32
    %c0_i32_0 = arith.constant 0 : i32
    %c0_i32_1 = arith.constant 0 : i32
    return %1, %c0_i32, %c0_i32_0 : i32, i32, i32
  }
  func.func @transform_9(%arg0: i32, %arg1: memref<11x6xi32, #tpu.memory_space<smem>>) -> (i32, i32) {
    %c0_i32 = arith.constant 0 : i32
    %c0_i32_0 = arith.constant 0 : i32
    %c0_i32_1 = arith.constant 0 : i32
    return %c0_i32, %c0_i32_0 : i32, i32
  }
}

module attributes {stable_mosaic.version = 11 : i64} {
  func.func @_encode_kernel(%arg0: i32, %arg1: memref<5x6xi32, #tpu.memory_space<smem>>, %arg2: memref<9xf32, #tpu.memory_space<smem>>, %arg3: memref<3xf32, #tpu.memory_space<smem>>, %arg4: memref<1x32x128xf32, #tpu.memory_space<vmem>>, %arg5: memref<1x32x128xbf16, #tpu.memory_space<vmem>>, %arg6: memref<1x32x128xf32, #tpu.memory_space<vmem>>, %arg7: memref<1x32x128xbf16, #tpu.memory_space<vmem>>, %arg8: memref<1x32x128xf32, #tpu.memory_space<vmem>>, %arg9: memref<1x32x128xf32, #tpu.memory_space<vmem>>) attributes {dimension_semantics = [#tpu.dimension_semantics<parallel>], iteration_bounds = array<i64: 5>, scalar_prefetch = 1 : i64, scratch_operands = 0 : i64, tpu.core_type = #tpu.core_type<tc>, window_params = [{transform_indices = @transform_0, window_bounds = array<i64: 9>}, {transform_indices = @transform_1, window_bounds = array<i64: 3>}, {transform_indices = @transform_2, window_bounds = array<i64: 1, 32, 128>}, {transform_indices = @transform_3, window_bounds = array<i64: 1, 32, 128>}, {transform_indices = @transform_4, window_bounds = array<i64: 1, 32, 128>}, {transform_indices = @transform_5, window_bounds = array<i64: 1, 32, 128>}, {transform_indices = @transform_6, window_bounds = array<i64: 1, 32, 128>}, {transform_indices = @transform_7, window_bounds = array<i64: 1, 32, 128>}]} {
    %c0 = arith.constant 0 : index
    %c0_0 = arith.constant 0 : index
    %c0_1 = arith.constant 0 : index
    %0 = vector.load %arg5[%c0, %c0_0, %c0_1] : memref<1x32x128xbf16, #tpu.memory_space<vmem>>, vector<1x32x128xbf16>
    %1 = vector.shape_cast %0 : vector<1x32x128xbf16> to vector<32x128xbf16>
    %2 = arith.extf %1 : vector<32x128xbf16> to vector<32x128xf32>
    %c0_2 = arith.constant 0 : index
    %c0_3 = arith.constant 0 : index
    %c0_4 = arith.constant 0 : index
    %3 = vector.load %arg7[%c0_2, %c0_3, %c0_4] : memref<1x32x128xbf16, #tpu.memory_space<vmem>>, vector<1x32x128xbf16>
    %4 = vector.shape_cast %3 : vector<1x32x128xbf16> to vector<32x128xbf16>
    %5 = arith.extf %4 : vector<32x128xbf16> to vector<32x128xf32>
    %c0_5 = arith.constant 0 : index
    %c0_6 = arith.constant 0 : index
    %c0_7 = arith.constant 0 : index
    %6 = vector.load %arg4[%c0_5, %c0_6, %c0_7] : memref<1x32x128xf32, #tpu.memory_space<vmem>>, vector<1x32x128xf32>
    %7 = vector.shape_cast %6 : vector<1x32x128xf32> to vector<32x128xf32>
    %8 = arith.mulf %2, %7 : vector<32x128xf32>
    %c0_8 = arith.constant 0 : index
    %c0_9 = arith.constant 0 : index
    %c0_10 = arith.constant 0 : index
    %9 = vector.load %arg6[%c0_8, %c0_9, %c0_10] : memref<1x32x128xf32, #tpu.memory_space<vmem>>, vector<1x32x128xf32>
    %10 = vector.shape_cast %9 : vector<1x32x128xf32> to vector<32x128xf32>
    %11 = arith.mulf %5, %10 : vector<32x128xf32>
    %12 = arith.addf %8, %11 : vector<32x128xf32>
    %cst = arith.constant 5.000000e-01 : f32
    %13 = vector.broadcast %cst : f32 to vector<32x128xf32>
    %14 = arith.mulf %13, %12 : vector<32x128xf32>
    %15 = tpu.iota {dimensions = array<i32: 1>} : vector<32x128xi32>
    %16 = tpu.iota {dimensions = array<i32: 0>} : vector<32x128xi32>
    %c15_i32 = arith.constant 15 : i32
    %17 = vector.broadcast %c15_i32 : i32 to vector<32x128xi32>
    %18 = arith.andi %16, %17 : vector<32x128xi32>
    %c1_i32 = arith.constant 1 : i32
    %19 = vector.broadcast %c1_i32 : i32 to vector<32x128xi32>
    %20 = arith.cmpi sge, %15, %19 : vector<32x128xi32>
    %c1_i32_11 = arith.constant 1 : i32
    %21 = tpu.dynamic_rotate %14 by %c1_i32_11 dim 1 : vector<32x128xf32>, i32 -> vector<32x128xf32>
    %cst_12 = arith.constant 0.000000e+00 : f32
    %22 = vector.broadcast %cst_12 : f32 to vector<32x128xf32>
    %23 = arith.select %20, %21, %22 : vector<32x128xi1>, vector<32x128xf32>
    %c126_i32 = arith.constant 126 : i32
    %24 = vector.broadcast %c126_i32 : i32 to vector<32x128xi32>
    %25 = arith.cmpi sle, %15, %24 : vector<32x128xi32>
    %c127_i32 = arith.constant 127 : i32
    %26 = tpu.dynamic_rotate %14 by %c127_i32 dim 1 : vector<32x128xf32>, i32 -> vector<32x128xf32>
    %cst_13 = arith.constant 0.000000e+00 : f32
    %27 = vector.broadcast %cst_13 : f32 to vector<32x128xf32>
    %28 = arith.select %25, %26, %27 : vector<32x128xi1>, vector<32x128xf32>
    %c0_14 = arith.constant 0 : index
    %29 = memref.load %arg2[%c0_14] : memref<9xf32, #tpu.memory_space<smem>>
    %30 = vector.broadcast %29 : f32 to vector<32x128xf32>
    %31 = arith.mulf %30, %23 : vector<32x128xf32>
    %c1 = arith.constant 1 : index
    %32 = memref.load %arg2[%c1] : memref<9xf32, #tpu.memory_space<smem>>
    %33 = vector.broadcast %32 : f32 to vector<32x128xf32>
    %34 = arith.mulf %33, %14 : vector<32x128xf32>
    %35 = arith.addf %31, %34 : vector<32x128xf32>
    %c2 = arith.constant 2 : index
    %36 = memref.load %arg2[%c2] : memref<9xf32, #tpu.memory_space<smem>>
    %37 = vector.broadcast %36 : f32 to vector<32x128xf32>
    %38 = arith.mulf %37, %28 : vector<32x128xf32>
    %39 = arith.addf %35, %38 : vector<32x128xf32>
    %c3 = arith.constant 3 : index
    %40 = memref.load %arg2[%c3] : memref<9xf32, #tpu.memory_space<smem>>
    %41 = vector.broadcast %40 : f32 to vector<32x128xf32>
    %42 = arith.mulf %41, %23 : vector<32x128xf32>
    %c4 = arith.constant 4 : index
    %43 = memref.load %arg2[%c4] : memref<9xf32, #tpu.memory_space<smem>>
    %44 = vector.broadcast %43 : f32 to vector<32x128xf32>
    %45 = arith.mulf %44, %14 : vector<32x128xf32>
    %46 = arith.addf %42, %45 : vector<32x128xf32>
    %c5 = arith.constant 5 : index
    %47 = memref.load %arg2[%c5] : memref<9xf32, #tpu.memory_space<smem>>
    %48 = vector.broadcast %47 : f32 to vector<32x128xf32>
    %49 = arith.mulf %48, %28 : vector<32x128xf32>
    %50 = arith.addf %46, %49 : vector<32x128xf32>
    %c6 = arith.constant 6 : index
    %51 = memref.load %arg2[%c6] : memref<9xf32, #tpu.memory_space<smem>>
    %52 = vector.broadcast %51 : f32 to vector<32x128xf32>
    %53 = arith.mulf %52, %23 : vector<32x128xf32>
    %c7 = arith.constant 7 : index
    %54 = memref.load %arg2[%c7] : memref<9xf32, #tpu.memory_space<smem>>
    %55 = vector.broadcast %54 : f32 to vector<32x128xf32>
    %56 = arith.mulf %55, %14 : vector<32x128xf32>
    %57 = arith.addf %53, %56 : vector<32x128xf32>
    %c8 = arith.constant 8 : index
    %58 = memref.load %arg2[%c8] : memref<9xf32, #tpu.memory_space<smem>>
    %59 = vector.broadcast %58 : f32 to vector<32x128xf32>
    %60 = arith.mulf %59, %28 : vector<32x128xf32>
    %61 = arith.addf %57, %60 : vector<32x128xf32>
    %c1_i32_15 = arith.constant 1 : i32
    %62 = vector.broadcast %c1_i32_15 : i32 to vector<32x128xi32>
    %63 = arith.cmpi sge, %18, %62 : vector<32x128xi32>
    %c1_i32_16 = arith.constant 1 : i32
    %64 = tpu.dynamic_rotate %39 by %c1_i32_16 dim 0 : vector<32x128xf32>, i32 -> vector<32x128xf32>
    %cst_17 = arith.constant 0.000000e+00 : f32
    %65 = vector.broadcast %cst_17 : f32 to vector<32x128xf32>
    %66 = arith.select %63, %64, %65 : vector<32x128xi1>, vector<32x128xf32>
    %67 = arith.addf %50, %66 : vector<32x128xf32>
    %c14_i32 = arith.constant 14 : i32
    %68 = vector.broadcast %c14_i32 : i32 to vector<32x128xi32>
    %69 = arith.cmpi sle, %18, %68 : vector<32x128xi32>
    %c31_i32 = arith.constant 31 : i32
    %70 = tpu.dynamic_rotate %61 by %c31_i32 dim 0 : vector<32x128xf32>, i32 -> vector<32x128xf32>
    %cst_18 = arith.constant 0.000000e+00 : f32
    %71 = vector.broadcast %cst_18 : f32 to vector<32x128xf32>
    %72 = arith.select %69, %70, %71 : vector<32x128xi1>, vector<32x128xf32>
    %73 = arith.addf %67, %72 : vector<32x128xf32>
    %c0_19 = arith.constant 0 : index
    %c0_20 = arith.constant 0 : index
    %c0_21 = arith.constant 0 : index
    %74 = vector.load %arg8[%c0_19, %c0_20, %c0_21] : memref<1x32x128xf32, #tpu.memory_space<vmem>>, vector<1x32x128xf32>
    %75 = vector.shape_cast %74 : vector<1x32x128xf32> to vector<32x128xf32>
    %cst_22 = arith.constant 1.22474492 : f32
    %76 = vector.broadcast %cst_22 : f32 to vector<32x128xf32>
    %77 = arith.mulf %76, %75 : vector<32x128xf32>
    %cst_23 = arith.constant 1.44463027 : f32
    %78 = vector.broadcast %cst_23 : f32 to vector<32x128xf32>
    %79 = arith.mulf %78, %73 : vector<32x128xf32>
    %80 = arith.addf %77, %79 : vector<32x128xf32>
    %c0_24 = arith.constant 0 : index
    %81 = memref.load %arg3[%c0_24] : memref<3xf32, #tpu.memory_space<smem>>
    %cst_25 = arith.constant 1.44463027 : f32
    %82 = arith.mulf %cst_25, %81 : f32
    %83 = vector.broadcast %82 : f32 to vector<32x128xf32>
    %84 = arith.addf %80, %83 : vector<32x128xf32>
    %c0_26 = arith.constant 0 : index
    %c0_27 = arith.constant 0 : index
    %c0_28 = arith.constant 0 : index
    %85 = vector.load %arg9[%c0_26, %c0_27, %c0_28] : memref<1x32x128xf32, #tpu.memory_space<vmem>>, vector<1x32x128xf32>
    %86 = vector.shape_cast %85 : vector<1x32x128xf32> to vector<32x128xf32>
    %87 = vector.shape_cast %84 : vector<32x128xf32> to vector<1x32x128xf32>
    tpu.vector_store %arg9[%c0_26, %c0_27, %c0_28], %87 {strides = array<i32>} : memref<1x32x128xf32, #tpu.memory_space<vmem>>, vector<1x32x128xf32>,
    return
  }
  func.func @transform_0(%arg0: i32, %arg1: memref<5x6xi32, #tpu.memory_space<smem>>) -> i32 {
    %c0_i32 = arith.constant 0 : i32
    %c0_i32_0 = arith.constant 0 : i32
    return %c0_i32 : i32
  }
  func.func @transform_1(%arg0: i32, %arg1: memref<5x6xi32, #tpu.memory_space<smem>>) -> i32 {
    %c0_i32 = arith.constant 0 : i32
    %c0_i32_0 = arith.constant 0 : i32
    return %c0_i32 : i32
  }
  func.func @transform_2(%arg0: i32, %arg1: memref<5x6xi32, #tpu.memory_space<smem>>) -> (i32, i32, i32) {
    %0 = arith.index_cast %arg0 : i32 to index
    %c0 = arith.constant 0 : index
    %1 = memref.load %arg1[%0, %c0] : memref<5x6xi32, #tpu.memory_space<smem>>
    %c0_i32 = arith.constant 0 : i32
    %c0_i32_0 = arith.constant 0 : i32
    %c0_i32_1 = arith.constant 0 : i32
    return %1, %c0_i32, %c0_i32_0 : i32, i32, i32
  }
  func.func @transform_3(%arg0: i32, %arg1: memref<5x6xi32, #tpu.memory_space<smem>>) -> (i32, i32, i32) {
    %0 = arith.index_cast %arg0 : i32 to index
    %c1 = arith.constant 1 : index
    %1 = memref.load %arg1[%0, %c1] : memref<5x6xi32, #tpu.memory_space<smem>>
    %c0_i32 = arith.constant 0 : i32
    %c0_i32_0 = arith.constant 0 : i32
    %c0_i32_1 = arith.constant 0 : i32
    return %1, %c0_i32, %c0_i32_0 : i32, i32, i32
  }
  func.func @transform_4(%arg0: i32, %arg1: memref<5x6xi32, #tpu.memory_space<smem>>) -> (i32, i32, i32) {
    %0 = arith.index_cast %arg0 : i32 to index
    %c2 = arith.constant 2 : index
    %1 = memref.load %arg1[%0, %c2] : memref<5x6xi32, #tpu.memory_space<smem>>
    %c0_i32 = arith.constant 0 : i32
    %c0_i32_0 = arith.constant 0 : i32
    %c0_i32_1 = arith.constant 0 : i32
    return %1, %c0_i32, %c0_i32_0 : i32, i32, i32
  }
  func.func @transform_5(%arg0: i32, %arg1: memref<5x6xi32, #tpu.memory_space<smem>>) -> (i32, i32, i32) {
    %0 = arith.index_cast %arg0 : i32 to index
    %c3 = arith.constant 3 : index
    %1 = memref.load %arg1[%0, %c3] : memref<5x6xi32, #tpu.memory_space<smem>>
    %c0_i32 = arith.constant 0 : i32
    %c0_i32_0 = arith.constant 0 : i32
    %c0_i32_1 = arith.constant 0 : i32
    return %1, %c0_i32, %c0_i32_0 : i32, i32, i32
  }
  func.func @transform_6(%arg0: i32, %arg1: memref<5x6xi32, #tpu.memory_space<smem>>) -> (i32, i32, i32) {
    %0 = arith.index_cast %arg0 : i32 to index
    %c4 = arith.constant 4 : index
    %1 = memref.load %arg1[%0, %c4] : memref<5x6xi32, #tpu.memory_space<smem>>
    %c0_i32 = arith.constant 0 : i32
    %c0_i32_0 = arith.constant 0 : i32
    %c0_i32_1 = arith.constant 0 : i32
    return %1, %c0_i32, %c0_i32_0 : i32, i32, i32
  }
  func.func @transform_7(%arg0: i32, %arg1: memref<5x6xi32, #tpu.memory_space<smem>>) -> (i32, i32, i32) {
    %c0_i32 = arith.constant 0 : i32
    %c0_i32_0 = arith.constant 0 : i32
    %c0_i32_1 = arith.constant 0 : i32
    return %arg0, %c0_i32, %c0_i32_0 : i32, i32, i32
  }
}

module attributes {stable_mosaic.version = 11 : i64} {
  func.func @_encode_kernel(%arg0: i32, %arg1: memref<2x6xi32, #tpu.memory_space<smem>>, %arg2: memref<9xf32, #tpu.memory_space<smem>>, %arg3: memref<3xf32, #tpu.memory_space<smem>>, %arg4: memref<1x32x128xf32, #tpu.memory_space<vmem>>, %arg5: memref<1x32x128xbf16, #tpu.memory_space<vmem>>, %arg6: memref<1x32x128xf32, #tpu.memory_space<vmem>>, %arg7: memref<1x32x128xbf16, #tpu.memory_space<vmem>>, %arg8: memref<1x32x128xf32, #tpu.memory_space<vmem>>, %arg9: memref<1x32x128xf32, #tpu.memory_space<vmem>>, %arg10: memref<1x32x128xf32, #tpu.memory_space<vmem>>, %arg11: memref<1x128xf32, #tpu.memory_space<vmem>>) attributes {dimension_semantics = [#tpu.dimension_semantics<arbitrary>], iteration_bounds = array<i64: 2>, scalar_prefetch = 1 : i64, scratch_operands = 0 : i64, tpu.core_type = #tpu.core_type<tc>, window_params = [{transform_indices = @transform_0, window_bounds = array<i64: 9>}, {transform_indices = @transform_1, window_bounds = array<i64: 3>}, {transform_indices = @transform_2, window_bounds = array<i64: 1, 32, 128>}, {transform_indices = @transform_3, window_bounds = array<i64: 1, 32, 128>}, {transform_indices = @transform_4, window_bounds = array<i64: 1, 32, 128>}, {transform_indices = @transform_5, window_bounds = array<i64: 1, 32, 128>}, {transform_indices = @transform_6, window_bounds = array<i64: 1, 32, 128>}, {transform_indices = @transform_7, window_bounds = array<i64: 1, 32, 128>}, {transform_indices = @transform_8, window_bounds = array<i64: 1, 32, 128>}, {pipeline_mode = #tpu.pipeline_mode<synchronous>, transform_indices = @transform_9, window_bounds = array<i64: 1, 128>}]} {
    %c0 = arith.constant 0 : index
    %c0_0 = arith.constant 0 : index
    %c0_1 = arith.constant 0 : index
    %0 = vector.load %arg5[%c0, %c0_0, %c0_1] : memref<1x32x128xbf16, #tpu.memory_space<vmem>>, vector<1x32x128xbf16>
    %1 = vector.shape_cast %0 : vector<1x32x128xbf16> to vector<32x128xbf16>
    %2 = arith.extf %1 : vector<32x128xbf16> to vector<32x128xf32>
    %c0_2 = arith.constant 0 : index
    %c0_3 = arith.constant 0 : index
    %c0_4 = arith.constant 0 : index
    %3 = vector.load %arg7[%c0_2, %c0_3, %c0_4] : memref<1x32x128xbf16, #tpu.memory_space<vmem>>, vector<1x32x128xbf16>
    %4 = vector.shape_cast %3 : vector<1x32x128xbf16> to vector<32x128xbf16>
    %5 = arith.extf %4 : vector<32x128xbf16> to vector<32x128xf32>
    %c0_5 = arith.constant 0 : index
    %c0_6 = arith.constant 0 : index
    %c0_7 = arith.constant 0 : index
    %6 = vector.load %arg4[%c0_5, %c0_6, %c0_7] : memref<1x32x128xf32, #tpu.memory_space<vmem>>, vector<1x32x128xf32>
    %7 = vector.shape_cast %6 : vector<1x32x128xf32> to vector<32x128xf32>
    %8 = arith.mulf %2, %7 : vector<32x128xf32>
    %c0_8 = arith.constant 0 : index
    %c0_9 = arith.constant 0 : index
    %c0_10 = arith.constant 0 : index
    %9 = vector.load %arg6[%c0_8, %c0_9, %c0_10] : memref<1x32x128xf32, #tpu.memory_space<vmem>>, vector<1x32x128xf32>
    %10 = vector.shape_cast %9 : vector<1x32x128xf32> to vector<32x128xf32>
    %11 = arith.mulf %5, %10 : vector<32x128xf32>
    %12 = arith.addf %8, %11 : vector<32x128xf32>
    %cst = arith.constant 5.000000e-01 : f32
    %13 = vector.broadcast %cst : f32 to vector<32x128xf32>
    %14 = arith.mulf %13, %12 : vector<32x128xf32>
    %15 = tpu.iota {dimensions = array<i32: 1>} : vector<32x128xi32>
    %16 = tpu.iota {dimensions = array<i32: 0>} : vector<32x128xi32>
    %c15_i32 = arith.constant 15 : i32
    %17 = vector.broadcast %c15_i32 : i32 to vector<32x128xi32>
    %18 = arith.andi %16, %17 : vector<32x128xi32>
    %c1_i32 = arith.constant 1 : i32
    %19 = vector.broadcast %c1_i32 : i32 to vector<32x128xi32>
    %20 = arith.cmpi sge, %15, %19 : vector<32x128xi32>
    %c1_i32_11 = arith.constant 1 : i32
    %21 = tpu.dynamic_rotate %14 by %c1_i32_11 dim 1 : vector<32x128xf32>, i32 -> vector<32x128xf32>
    %cst_12 = arith.constant 0.000000e+00 : f32
    %22 = vector.broadcast %cst_12 : f32 to vector<32x128xf32>
    %23 = arith.select %20, %21, %22 : vector<32x128xi1>, vector<32x128xf32>
    %c126_i32 = arith.constant 126 : i32
    %24 = vector.broadcast %c126_i32 : i32 to vector<32x128xi32>
    %25 = arith.cmpi sle, %15, %24 : vector<32x128xi32>
    %c127_i32 = arith.constant 127 : i32
    %26 = tpu.dynamic_rotate %14 by %c127_i32 dim 1 : vector<32x128xf32>, i32 -> vector<32x128xf32>
    %cst_13 = arith.constant 0.000000e+00 : f32
    %27 = vector.broadcast %cst_13 : f32 to vector<32x128xf32>
    %28 = arith.select %25, %26, %27 : vector<32x128xi1>, vector<32x128xf32>
    %c0_14 = arith.constant 0 : index
    %29 = memref.load %arg2[%c0_14] : memref<9xf32, #tpu.memory_space<smem>>
    %30 = vector.broadcast %29 : f32 to vector<32x128xf32>
    %31 = arith.mulf %30, %23 : vector<32x128xf32>
    %c1 = arith.constant 1 : index
    %32 = memref.load %arg2[%c1] : memref<9xf32, #tpu.memory_space<smem>>
    %33 = vector.broadcast %32 : f32 to vector<32x128xf32>
    %34 = arith.mulf %33, %14 : vector<32x128xf32>
    %35 = arith.addf %31, %34 : vector<32x128xf32>
    %c2 = arith.constant 2 : index
    %36 = memref.load %arg2[%c2] : memref<9xf32, #tpu.memory_space<smem>>
    %37 = vector.broadcast %36 : f32 to vector<32x128xf32>
    %38 = arith.mulf %37, %28 : vector<32x128xf32>
    %39 = arith.addf %35, %38 : vector<32x128xf32>
    %c3 = arith.constant 3 : index
    %40 = memref.load %arg2[%c3] : memref<9xf32, #tpu.memory_space<smem>>
    %41 = vector.broadcast %40 : f32 to vector<32x128xf32>
    %42 = arith.mulf %41, %23 : vector<32x128xf32>
    %c4 = arith.constant 4 : index
    %43 = memref.load %arg2[%c4] : memref<9xf32, #tpu.memory_space<smem>>
    %44 = vector.broadcast %43 : f32 to vector<32x128xf32>
    %45 = arith.mulf %44, %14 : vector<32x128xf32>
    %46 = arith.addf %42, %45 : vector<32x128xf32>
    %c5 = arith.constant 5 : index
    %47 = memref.load %arg2[%c5] : memref<9xf32, #tpu.memory_space<smem>>
    %48 = vector.broadcast %47 : f32 to vector<32x128xf32>
    %49 = arith.mulf %48, %28 : vector<32x128xf32>
    %50 = arith.addf %46, %49 : vector<32x128xf32>
    %c6 = arith.constant 6 : index
    %51 = memref.load %arg2[%c6] : memref<9xf32, #tpu.memory_space<smem>>
    %52 = vector.broadcast %51 : f32 to vector<32x128xf32>
    %53 = arith.mulf %52, %23 : vector<32x128xf32>
    %c7 = arith.constant 7 : index
    %54 = memref.load %arg2[%c7] : memref<9xf32, #tpu.memory_space<smem>>
    %55 = vector.broadcast %54 : f32 to vector<32x128xf32>
    %56 = arith.mulf %55, %14 : vector<32x128xf32>
    %57 = arith.addf %53, %56 : vector<32x128xf32>
    %c8 = arith.constant 8 : index
    %58 = memref.load %arg2[%c8] : memref<9xf32, #tpu.memory_space<smem>>
    %59 = vector.broadcast %58 : f32 to vector<32x128xf32>
    %60 = arith.mulf %59, %28 : vector<32x128xf32>
    %61 = arith.addf %57, %60 : vector<32x128xf32>
    %c1_i32_15 = arith.constant 1 : i32
    %62 = vector.broadcast %c1_i32_15 : i32 to vector<32x128xi32>
    %63 = arith.cmpi sge, %18, %62 : vector<32x128xi32>
    %c1_i32_16 = arith.constant 1 : i32
    %64 = tpu.dynamic_rotate %39 by %c1_i32_16 dim 0 : vector<32x128xf32>, i32 -> vector<32x128xf32>
    %cst_17 = arith.constant 0.000000e+00 : f32
    %65 = vector.broadcast %cst_17 : f32 to vector<32x128xf32>
    %66 = arith.select %63, %64, %65 : vector<32x128xi1>, vector<32x128xf32>
    %67 = arith.addf %50, %66 : vector<32x128xf32>
    %c14_i32 = arith.constant 14 : i32
    %68 = vector.broadcast %c14_i32 : i32 to vector<32x128xi32>
    %69 = arith.cmpi sle, %18, %68 : vector<32x128xi32>
    %c31_i32 = arith.constant 31 : i32
    %70 = tpu.dynamic_rotate %61 by %c31_i32 dim 0 : vector<32x128xf32>, i32 -> vector<32x128xf32>
    %cst_18 = arith.constant 0.000000e+00 : f32
    %71 = vector.broadcast %cst_18 : f32 to vector<32x128xf32>
    %72 = arith.select %69, %70, %71 : vector<32x128xi1>, vector<32x128xf32>
    %73 = arith.addf %67, %72 : vector<32x128xf32>
    %c0_19 = arith.constant 0 : index
    %c0_20 = arith.constant 0 : index
    %c0_21 = arith.constant 0 : index
    %74 = vector.load %arg8[%c0_19, %c0_20, %c0_21] : memref<1x32x128xf32, #tpu.memory_space<vmem>>, vector<1x32x128xf32>
    %75 = vector.shape_cast %74 : vector<1x32x128xf32> to vector<32x128xf32>
    %cst_22 = arith.constant 0.847791254 : f32
    %76 = vector.broadcast %cst_22 : f32 to vector<32x128xf32>
    %77 = arith.mulf %76, %75 : vector<32x128xf32>
    %cst_23 = arith.constant -0.847791254 : f32
    %78 = vector.broadcast %cst_23 : f32 to vector<32x128xf32>
    %79 = arith.mulf %78, %73 : vector<32x128xf32>
    %80 = arith.addf %77, %79 : vector<32x128xf32>
    %c0_24 = arith.constant 0 : index
    %81 = memref.load %arg3[%c0_24] : memref<3xf32, #tpu.memory_space<smem>>
    %cst_25 = arith.constant -0.847791254 : f32
    %82 = arith.mulf %cst_25, %81 : f32
    %83 = vector.broadcast %82 : f32 to vector<32x128xf32>
    %84 = arith.addf %80, %83 : vector<32x128xf32>
    %c0_26 = arith.constant 0 : index
    %c0_27 = arith.constant 0 : index
    %c0_28 = arith.constant 0 : index
    %85 = vector.load %arg9[%c0_26, %c0_27, %c0_28] : memref<1x32x128xf32, #tpu.memory_space<vmem>>, vector<1x32x128xf32>
    %86 = vector.shape_cast %85 : vector<1x32x128xf32> to vector<32x128xf32>
    %87 = vector.shape_cast %84 : vector<32x128xf32> to vector<1x32x128xf32>
    tpu.vector_store %arg9[%c0_26, %c0_27, %c0_28], %87 {strides = array<i32>} : memref<1x32x128xf32, #tpu.memory_space<vmem>>, vector<1x32x128xf32>,
    %c0_i32 = arith.constant 0 : i32
    %88 = arith.cmpi eq, %arg0, %c0_i32 : i32
    %89 = arith.extui %88 : i1 to i32
    %c0_i32_29 = arith.constant 0 : i32
    %90 = arith.cmpi ne, %89, %c0_i32_29 : i32
    scf.if %90 {
      %cst_31 = arith.constant 0.000000e+00 : f32
      %94 = vector.broadcast %cst_31 : f32 to vector<1x128xf32>
      %c0_32 = arith.constant 0 : index
      %c0_33 = arith.constant 0 : index
      %95 = vector.load %arg11[%c0_32, %c0_33] : memref<1x128xf32, #tpu.memory_space<vmem>>, vector<1x128xf32>
      tpu.vector_store %arg11[%c0_32, %c0_33], %94 {strides = array<i32>} : memref<1x128xf32, #tpu.memory_space<vmem>>, vector<1x128xf32>,
    } else {
    }
    %c2_i32 = arith.constant 2 : i32
    %91 = arith.cmpi slt, %arg0, %c2_i32 : i32
    %92 = arith.extui %91 : i1 to i32
    %c0_i32_30 = arith.constant 0 : i32
    %93 = arith.cmpi ne, %92, %c0_i32_30 : i32
    scf.if %93 {
      %c1_31 = arith.constant 1 : index
      %94 = memref.load %arg3[%c1_31] : memref<3xf32, #tpu.memory_space<smem>>
      %95 = vector.broadcast %94 : f32 to vector<32x128xf32>
      %96 = arith.mulf %84, %95 : vector<32x128xf32>
      %97 = math.roundeven %96 : vector<32x128xf32>
      %c2_32 = arith.constant 2 : index
      %98 = memref.load %arg3[%c2_32] : memref<3xf32, #tpu.memory_space<smem>>
      %99 = vector.broadcast %98 : f32 to vector<32x128xf32>
      %100 = arith.mulf %97, %99 : vector<32x128xf32>
      %c0_33 = arith.constant 0 : index
      %c0_34 = arith.constant 0 : index
      %c0_35 = arith.constant 0 : index
      %101 = vector.load %arg10[%c0_33, %c0_34, %c0_35] : memref<1x32x128xf32, #tpu.memory_space<vmem>>, vector<1x32x128xf32>
      %102 = vector.shape_cast %101 : vector<1x32x128xf32> to vector<32x128xf32>
      %103 = vector.shape_cast %100 : vector<32x128xf32> to vector<1x32x128xf32>
      tpu.vector_store %arg10[%c0_33, %c0_34, %c0_35], %103 {strides = array<i32>} : memref<1x32x128xf32, #tpu.memory_space<vmem>>, vector<1x32x128xf32>,
      %c1_i32_36 = arith.constant 1 : i32
      %104 = arith.cmpi slt, %arg0, %c1_i32_36 : i32
      %105 = arith.extui %104 : i1 to i32
      %c0_i32_37 = arith.constant 0 : i32
      %106 = arith.cmpi ne, %105, %c0_i32_37 : i32
      scf.if %106 {
        %c0_38 = arith.constant 0 : index
        %c0_39 = arith.constant 0 : index
        %107 = vector.load %arg11[%c0_38, %c0_39] : memref<1x128xf32, #tpu.memory_space<vmem>>, vector<1x128xf32>
        %108 = math.absf %97 : vector<32x128xf32>
        %cst_40 = arith.constant 1.000000e+00 : f32
        %109 = vector.broadcast %cst_40 : f32 to vector<32x128xf32>
        %110 = arith.addf %109, %108 : vector<32x128xf32>
        %111 = math.log %110 : vector<32x128xf32>
        %cst_41 = arith.constant 2.000000e+00 : f32
        %112 = math.log %cst_41 : f32
        %113 = vector.broadcast %112 : f32 to vector<32x128xf32>
        %114 = arith.divf %111, %113 : vector<32x128xf32>
        %cst_42 = arith.constant dense<0.000000e+00> : vector<128xf32>
        %115 = vector.multi_reduction <add>, %114, %cst_42 [0] : vector<32x128xf32> to vector<128xf32>
        %116 = vector.shape_cast %115 : vector<128xf32> to vector<1x128xf32>
        %117 = arith.addf %107, %116 : vector<1x128xf32>
        %c0_43 = arith.constant 0 : index
        %c0_44 = arith.constant 0 : index
        %118 = vector.load %arg11[%c0_43, %c0_44] : memref<1x128xf32, #tpu.memory_space<vmem>>, vector<1x128xf32>
        tpu.vector_store %arg11[%c0_43, %c0_44], %117 {strides = array<i32>} : memref<1x128xf32, #tpu.memory_space<vmem>>, vector<1x128xf32>,
      } else {
      }
    } else {
    }
    return
  }
  func.func @transform_0(%arg0: i32, %arg1: memref<2x6xi32, #tpu.memory_space<smem>>) -> i32 {
    %c0_i32 = arith.constant 0 : i32
    %c0_i32_0 = arith.constant 0 : i32
    return %c0_i32 : i32
  }
  func.func @transform_1(%arg0: i32, %arg1: memref<2x6xi32, #tpu.memory_space<smem>>) -> i32 {
    %c0_i32 = arith.constant 0 : i32
    %c0_i32_0 = arith.constant 0 : i32
    return %c0_i32 : i32
  }
  func.func @transform_2(%arg0: i32, %arg1: memref<2x6xi32, #tpu.memory_space<smem>>) -> (i32, i32, i32) {
    %0 = arith.index_cast %arg0 : i32 to index
    %c0 = arith.constant 0 : index
    %1 = memref.load %arg1[%0, %c0] : memref<2x6xi32, #tpu.memory_space<smem>>
    %c0_i32 = arith.constant 0 : i32
    %c0_i32_0 = arith.constant 0 : i32
    %c0_i32_1 = arith.constant 0 : i32
    return %1, %c0_i32, %c0_i32_0 : i32, i32, i32
  }
  func.func @transform_3(%arg0: i32, %arg1: memref<2x6xi32, #tpu.memory_space<smem>>) -> (i32, i32, i32) {
    %0 = arith.index_cast %arg0 : i32 to index
    %c1 = arith.constant 1 : index
    %1 = memref.load %arg1[%0, %c1] : memref<2x6xi32, #tpu.memory_space<smem>>
    %c0_i32 = arith.constant 0 : i32
    %c0_i32_0 = arith.constant 0 : i32
    %c0_i32_1 = arith.constant 0 : i32
    return %1, %c0_i32, %c0_i32_0 : i32, i32, i32
  }
  func.func @transform_4(%arg0: i32, %arg1: memref<2x6xi32, #tpu.memory_space<smem>>) -> (i32, i32, i32) {
    %0 = arith.index_cast %arg0 : i32 to index
    %c2 = arith.constant 2 : index
    %1 = memref.load %arg1[%0, %c2] : memref<2x6xi32, #tpu.memory_space<smem>>
    %c0_i32 = arith.constant 0 : i32
    %c0_i32_0 = arith.constant 0 : i32
    %c0_i32_1 = arith.constant 0 : i32
    return %1, %c0_i32, %c0_i32_0 : i32, i32, i32
  }
  func.func @transform_5(%arg0: i32, %arg1: memref<2x6xi32, #tpu.memory_space<smem>>) -> (i32, i32, i32) {
    %0 = arith.index_cast %arg0 : i32 to index
    %c3 = arith.constant 3 : index
    %1 = memref.load %arg1[%0, %c3] : memref<2x6xi32, #tpu.memory_space<smem>>
    %c0_i32 = arith.constant 0 : i32
    %c0_i32_0 = arith.constant 0 : i32
    %c0_i32_1 = arith.constant 0 : i32
    return %1, %c0_i32, %c0_i32_0 : i32, i32, i32
  }
  func.func @transform_6(%arg0: i32, %arg1: memref<2x6xi32, #tpu.memory_space<smem>>) -> (i32, i32, i32) {
    %0 = arith.index_cast %arg0 : i32 to index
    %c4 = arith.constant 4 : index
    %1 = memref.load %arg1[%0, %c4] : memref<2x6xi32, #tpu.memory_space<smem>>
    %c0_i32 = arith.constant 0 : i32
    %c0_i32_0 = arith.constant 0 : i32
    %c0_i32_1 = arith.constant 0 : i32
    return %1, %c0_i32, %c0_i32_0 : i32, i32, i32
  }
  func.func @transform_7(%arg0: i32, %arg1: memref<2x6xi32, #tpu.memory_space<smem>>) -> (i32, i32, i32) {
    %c0_i32 = arith.constant 0 : i32
    %c0_i32_0 = arith.constant 0 : i32
    %c0_i32_1 = arith.constant 0 : i32
    return %arg0, %c0_i32, %c0_i32_0 : i32, i32, i32
  }
  func.func @transform_8(%arg0: i32, %arg1: memref<2x6xi32, #tpu.memory_space<smem>>) -> (i32, i32, i32) {
    %0 = arith.index_cast %arg0 : i32 to index
    %c5 = arith.constant 5 : index
    %1 = memref.load %arg1[%0, %c5] : memref<2x6xi32, #tpu.memory_space<smem>>
    %c0_i32 = arith.constant 0 : i32
    %c0_i32_0 = arith.constant 0 : i32
    %c0_i32_1 = arith.constant 0 : i32
    return %1, %c0_i32, %c0_i32_0 : i32, i32, i32
  }
  func.func @transform_9(%arg0: i32, %arg1: memref<2x6xi32, #tpu.memory_space<smem>>) -> (i32, i32) {
    %c0_i32 = arith.constant 0 : i32
    %c0_i32_0 = arith.constant 0 : i32
    %c0_i32_1 = arith.constant 0 : i32
    return %c0_i32, %c0_i32_0 : i32, i32
  }
}

module attributes {stable_mosaic.version = 11 : i64} {
  func.func @_encode_kernel(%arg0: i32, %arg1: memref<2x6xi32, #tpu.memory_space<smem>>, %arg2: memref<9xf32, #tpu.memory_space<smem>>, %arg3: memref<3xf32, #tpu.memory_space<smem>>, %arg4: memref<1x32x128xf32, #tpu.memory_space<vmem>>, %arg5: memref<1x32x128xbf16, #tpu.memory_space<vmem>>, %arg6: memref<1x32x128xf32, #tpu.memory_space<vmem>>, %arg7: memref<1x32x128xbf16, #tpu.memory_space<vmem>>, %arg8: memref<1x32x128xf32, #tpu.memory_space<vmem>>, %arg9: memref<1x32x128xf32, #tpu.memory_space<vmem>>, %arg10: memref<1x32x128xf32, #tpu.memory_space<vmem>>, %arg11: memref<1x128xf32, #tpu.memory_space<vmem>>) attributes {dimension_semantics = [#tpu.dimension_semantics<arbitrary>], iteration_bounds = array<i64: 2>, scalar_prefetch = 1 : i64, scratch_operands = 0 : i64, tpu.core_type = #tpu.core_type<tc>, window_params = [{transform_indices = @transform_0, window_bounds = array<i64: 9>}, {transform_indices = @transform_1, window_bounds = array<i64: 3>}, {transform_indices = @transform_2, window_bounds = array<i64: 1, 32, 128>}, {transform_indices = @transform_3, window_bounds = array<i64: 1, 32, 128>}, {transform_indices = @transform_4, window_bounds = array<i64: 1, 32, 128>}, {transform_indices = @transform_5, window_bounds = array<i64: 1, 32, 128>}, {transform_indices = @transform_6, window_bounds = array<i64: 1, 32, 128>}, {transform_indices = @transform_7, window_bounds = array<i64: 1, 32, 128>}, {transform_indices = @transform_8, window_bounds = array<i64: 1, 32, 128>}, {pipeline_mode = #tpu.pipeline_mode<synchronous>, transform_indices = @transform_9, window_bounds = array<i64: 1, 128>}]} {
    %c0 = arith.constant 0 : index
    %c0_0 = arith.constant 0 : index
    %c0_1 = arith.constant 0 : index
    %0 = vector.load %arg5[%c0, %c0_0, %c0_1] : memref<1x32x128xbf16, #tpu.memory_space<vmem>>, vector<1x32x128xbf16>
    %1 = vector.shape_cast %0 : vector<1x32x128xbf16> to vector<32x128xbf16>
    %2 = arith.extf %1 : vector<32x128xbf16> to vector<32x128xf32>
    %c0_2 = arith.constant 0 : index
    %c0_3 = arith.constant 0 : index
    %c0_4 = arith.constant 0 : index
    %3 = vector.load %arg7[%c0_2, %c0_3, %c0_4] : memref<1x32x128xbf16, #tpu.memory_space<vmem>>, vector<1x32x128xbf16>
    %4 = vector.shape_cast %3 : vector<1x32x128xbf16> to vector<32x128xbf16>
    %5 = arith.extf %4 : vector<32x128xbf16> to vector<32x128xf32>
    %c0_5 = arith.constant 0 : index
    %c0_6 = arith.constant 0 : index
    %c0_7 = arith.constant 0 : index
    %6 = vector.load %arg4[%c0_5, %c0_6, %c0_7] : memref<1x32x128xf32, #tpu.memory_space<vmem>>, vector<1x32x128xf32>
    %7 = vector.shape_cast %6 : vector<1x32x128xf32> to vector<32x128xf32>
    %8 = arith.mulf %2, %7 : vector<32x128xf32>
    %c0_8 = arith.constant 0 : index
    %c0_9 = arith.constant 0 : index
    %c0_10 = arith.constant 0 : index
    %9 = vector.load %arg6[%c0_8, %c0_9, %c0_10] : memref<1x32x128xf32, #tpu.memory_space<vmem>>, vector<1x32x128xf32>
    %10 = vector.shape_cast %9 : vector<1x32x128xf32> to vector<32x128xf32>
    %11 = arith.mulf %5, %10 : vector<32x128xf32>
    %12 = arith.addf %8, %11 : vector<32x128xf32>
    %cst = arith.constant 5.000000e-01 : f32
    %13 = vector.broadcast %cst : f32 to vector<32x128xf32>
    %14 = arith.mulf %13, %12 : vector<32x128xf32>
    %15 = tpu.iota {dimensions = array<i32: 1>} : vector<32x128xi32>
    %16 = tpu.iota {dimensions = array<i32: 0>} : vector<32x128xi32>
    %c15_i32 = arith.constant 15 : i32
    %17 = vector.broadcast %c15_i32 : i32 to vector<32x128xi32>
    %18 = arith.andi %16, %17 : vector<32x128xi32>
    %c1_i32 = arith.constant 1 : i32
    %19 = vector.broadcast %c1_i32 : i32 to vector<32x128xi32>
    %20 = arith.cmpi sge, %15, %19 : vector<32x128xi32>
    %c1_i32_11 = arith.constant 1 : i32
    %21 = tpu.dynamic_rotate %14 by %c1_i32_11 dim 1 : vector<32x128xf32>, i32 -> vector<32x128xf32>
    %cst_12 = arith.constant 0.000000e+00 : f32
    %22 = vector.broadcast %cst_12 : f32 to vector<32x128xf32>
    %23 = arith.select %20, %21, %22 : vector<32x128xi1>, vector<32x128xf32>
    %c126_i32 = arith.constant 126 : i32
    %24 = vector.broadcast %c126_i32 : i32 to vector<32x128xi32>
    %25 = arith.cmpi sle, %15, %24 : vector<32x128xi32>
    %c127_i32 = arith.constant 127 : i32
    %26 = tpu.dynamic_rotate %14 by %c127_i32 dim 1 : vector<32x128xf32>, i32 -> vector<32x128xf32>
    %cst_13 = arith.constant 0.000000e+00 : f32
    %27 = vector.broadcast %cst_13 : f32 to vector<32x128xf32>
    %28 = arith.select %25, %26, %27 : vector<32x128xi1>, vector<32x128xf32>
    %c0_14 = arith.constant 0 : index
    %29 = memref.load %arg2[%c0_14] : memref<9xf32, #tpu.memory_space<smem>>
    %30 = vector.broadcast %29 : f32 to vector<32x128xf32>
    %31 = arith.mulf %30, %23 : vector<32x128xf32>
    %c1 = arith.constant 1 : index
    %32 = memref.load %arg2[%c1] : memref<9xf32, #tpu.memory_space<smem>>
    %33 = vector.broadcast %32 : f32 to vector<32x128xf32>
    %34 = arith.mulf %33, %14 : vector<32x128xf32>
    %35 = arith.addf %31, %34 : vector<32x128xf32>
    %c2 = arith.constant 2 : index
    %36 = memref.load %arg2[%c2] : memref<9xf32, #tpu.memory_space<smem>>
    %37 = vector.broadcast %36 : f32 to vector<32x128xf32>
    %38 = arith.mulf %37, %28 : vector<32x128xf32>
    %39 = arith.addf %35, %38 : vector<32x128xf32>
    %c3 = arith.constant 3 : index
    %40 = memref.load %arg2[%c3] : memref<9xf32, #tpu.memory_space<smem>>
    %41 = vector.broadcast %40 : f32 to vector<32x128xf32>
    %42 = arith.mulf %41, %23 : vector<32x128xf32>
    %c4 = arith.constant 4 : index
    %43 = memref.load %arg2[%c4] : memref<9xf32, #tpu.memory_space<smem>>
    %44 = vector.broadcast %43 : f32 to vector<32x128xf32>
    %45 = arith.mulf %44, %14 : vector<32x128xf32>
    %46 = arith.addf %42, %45 : vector<32x128xf32>
    %c5 = arith.constant 5 : index
    %47 = memref.load %arg2[%c5] : memref<9xf32, #tpu.memory_space<smem>>
    %48 = vector.broadcast %47 : f32 to vector<32x128xf32>
    %49 = arith.mulf %48, %28 : vector<32x128xf32>
    %50 = arith.addf %46, %49 : vector<32x128xf32>
    %c6 = arith.constant 6 : index
    %51 = memref.load %arg2[%c6] : memref<9xf32, #tpu.memory_space<smem>>
    %52 = vector.broadcast %51 : f32 to vector<32x128xf32>
    %53 = arith.mulf %52, %23 : vector<32x128xf32>
    %c7 = arith.constant 7 : index
    %54 = memref.load %arg2[%c7] : memref<9xf32, #tpu.memory_space<smem>>
    %55 = vector.broadcast %54 : f32 to vector<32x128xf32>
    %56 = arith.mulf %55, %14 : vector<32x128xf32>
    %57 = arith.addf %53, %56 : vector<32x128xf32>
    %c8 = arith.constant 8 : index
    %58 = memref.load %arg2[%c8] : memref<9xf32, #tpu.memory_space<smem>>
    %59 = vector.broadcast %58 : f32 to vector<32x128xf32>
    %60 = arith.mulf %59, %28 : vector<32x128xf32>
    %61 = arith.addf %57, %60 : vector<32x128xf32>
    %c1_i32_15 = arith.constant 1 : i32
    %62 = vector.broadcast %c1_i32_15 : i32 to vector<32x128xi32>
    %63 = arith.cmpi sge, %18, %62 : vector<32x128xi32>
    %c1_i32_16 = arith.constant 1 : i32
    %64 = tpu.dynamic_rotate %39 by %c1_i32_16 dim 0 : vector<32x128xf32>, i32 -> vector<32x128xf32>
    %cst_17 = arith.constant 0.000000e+00 : f32
    %65 = vector.broadcast %cst_17 : f32 to vector<32x128xf32>
    %66 = arith.select %63, %64, %65 : vector<32x128xi1>, vector<32x128xf32>
    %67 = arith.addf %50, %66 : vector<32x128xf32>
    %c14_i32 = arith.constant 14 : i32
    %68 = vector.broadcast %c14_i32 : i32 to vector<32x128xi32>
    %69 = arith.cmpi sle, %18, %68 : vector<32x128xi32>
    %c31_i32 = arith.constant 31 : i32
    %70 = tpu.dynamic_rotate %61 by %c31_i32 dim 0 : vector<32x128xf32>, i32 -> vector<32x128xf32>
    %cst_18 = arith.constant 0.000000e+00 : f32
    %71 = vector.broadcast %cst_18 : f32 to vector<32x128xf32>
    %72 = arith.select %69, %70, %71 : vector<32x128xi1>, vector<32x128xf32>
    %73 = arith.addf %67, %72 : vector<32x128xf32>
    %c0_19 = arith.constant 0 : index
    %c0_20 = arith.constant 0 : index
    %c0_21 = arith.constant 0 : index
    %74 = vector.load %arg8[%c0_19, %c0_20, %c0_21] : memref<1x32x128xf32, #tpu.memory_space<vmem>>, vector<1x32x128xf32>
    %75 = vector.shape_cast %74 : vector<1x32x128xf32> to vector<32x128xf32>
    %cst_22 = arith.constant 1.22474492 : f32
    %76 = vector.broadcast %cst_22 : f32 to vector<32x128xf32>
    %77 = arith.mulf %76, %75 : vector<32x128xf32>
    %cst_23 = arith.constant 1.44463027 : f32
    %78 = vector.broadcast %cst_23 : f32 to vector<32x128xf32>
    %79 = arith.mulf %78, %73 : vector<32x128xf32>
    %80 = arith.addf %77, %79 : vector<32x128xf32>
    %c0_24 = arith.constant 0 : index
    %81 = memref.load %arg3[%c0_24] : memref<3xf32, #tpu.memory_space<smem>>
    %cst_25 = arith.constant 1.44463027 : f32
    %82 = arith.mulf %cst_25, %81 : f32
    %83 = vector.broadcast %82 : f32 to vector<32x128xf32>
    %84 = arith.addf %80, %83 : vector<32x128xf32>
    %c0_26 = arith.constant 0 : index
    %c0_27 = arith.constant 0 : index
    %c0_28 = arith.constant 0 : index
    %85 = vector.load %arg9[%c0_26, %c0_27, %c0_28] : memref<1x32x128xf32, #tpu.memory_space<vmem>>, vector<1x32x128xf32>
    %86 = vector.shape_cast %85 : vector<1x32x128xf32> to vector<32x128xf32>
    %87 = vector.shape_cast %84 : vector<32x128xf32> to vector<1x32x128xf32>
    tpu.vector_store %arg9[%c0_26, %c0_27, %c0_28], %87 {strides = array<i32>} : memref<1x32x128xf32, #tpu.memory_space<vmem>>, vector<1x32x128xf32>,
    %c0_i32 = arith.constant 0 : i32
    %88 = arith.cmpi eq, %arg0, %c0_i32 : i32
    %89 = arith.extui %88 : i1 to i32
    %c0_i32_29 = arith.constant 0 : i32
    %90 = arith.cmpi ne, %89, %c0_i32_29 : i32
    scf.if %90 {
      %cst_31 = arith.constant 0.000000e+00 : f32
      %94 = vector.broadcast %cst_31 : f32 to vector<1x128xf32>
      %c0_32 = arith.constant 0 : index
      %c0_33 = arith.constant 0 : index
      %95 = vector.load %arg11[%c0_32, %c0_33] : memref<1x128xf32, #tpu.memory_space<vmem>>, vector<1x128xf32>
      tpu.vector_store %arg11[%c0_32, %c0_33], %94 {strides = array<i32>} : memref<1x128xf32, #tpu.memory_space<vmem>>, vector<1x128xf32>,
    } else {
    }
    %c2_i32 = arith.constant 2 : i32
    %91 = arith.cmpi slt, %arg0, %c2_i32 : i32
    %92 = arith.extui %91 : i1 to i32
    %c0_i32_30 = arith.constant 0 : i32
    %93 = arith.cmpi ne, %92, %c0_i32_30 : i32
    scf.if %93 {
      %c1_31 = arith.constant 1 : index
      %94 = memref.load %arg3[%c1_31] : memref<3xf32, #tpu.memory_space<smem>>
      %95 = vector.broadcast %94 : f32 to vector<32x128xf32>
      %96 = arith.mulf %84, %95 : vector<32x128xf32>
      %97 = math.roundeven %96 : vector<32x128xf32>
      %c2_32 = arith.constant 2 : index
      %98 = memref.load %arg3[%c2_32] : memref<3xf32, #tpu.memory_space<smem>>
      %99 = vector.broadcast %98 : f32 to vector<32x128xf32>
      %100 = arith.mulf %97, %99 : vector<32x128xf32>
      %c0_33 = arith.constant 0 : index
      %c0_34 = arith.constant 0 : index
      %c0_35 = arith.constant 0 : index
      %101 = vector.load %arg10[%c0_33, %c0_34, %c0_35] : memref<1x32x128xf32, #tpu.memory_space<vmem>>, vector<1x32x128xf32>
      %102 = vector.shape_cast %101 : vector<1x32x128xf32> to vector<32x128xf32>
      %103 = vector.shape_cast %100 : vector<32x128xf32> to vector<1x32x128xf32>
      tpu.vector_store %arg10[%c0_33, %c0_34, %c0_35], %103 {strides = array<i32>} : memref<1x32x128xf32, #tpu.memory_space<vmem>>, vector<1x32x128xf32>,
      %c1_i32_36 = arith.constant 1 : i32
      %104 = arith.cmpi slt, %arg0, %c1_i32_36 : i32
      %105 = arith.extui %104 : i1 to i32
      %c0_i32_37 = arith.constant 0 : i32
      %106 = arith.cmpi ne, %105, %c0_i32_37 : i32
      scf.if %106 {
        %c0_38 = arith.constant 0 : index
        %c0_39 = arith.constant 0 : index
        %107 = vector.load %arg11[%c0_38, %c0_39] : memref<1x128xf32, #tpu.memory_space<vmem>>, vector<1x128xf32>
        %108 = math.absf %97 : vector<32x128xf32>
        %cst_40 = arith.constant 1.000000e+00 : f32
        %109 = vector.broadcast %cst_40 : f32 to vector<32x128xf32>
        %110 = arith.addf %109, %108 : vector<32x128xf32>
        %111 = math.log %110 : vector<32x128xf32>
        %cst_41 = arith.constant 2.000000e+00 : f32
        %112 = math.log %cst_41 : f32
        %113 = vector.broadcast %112 : f32 to vector<32x128xf32>
        %114 = arith.divf %111, %113 : vector<32x128xf32>
        %cst_42 = arith.constant dense<0.000000e+00> : vector<128xf32>
        %115 = vector.multi_reduction <add>, %114, %cst_42 [0] : vector<32x128xf32> to vector<128xf32>
        %116 = vector.shape_cast %115 : vector<128xf32> to vector<1x128xf32>
        %117 = arith.addf %107, %116 : vector<1x128xf32>
        %c0_43 = arith.constant 0 : index
        %c0_44 = arith.constant 0 : index
        %118 = vector.load %arg11[%c0_43, %c0_44] : memref<1x128xf32, #tpu.memory_space<vmem>>, vector<1x128xf32>
        tpu.vector_store %arg11[%c0_43, %c0_44], %117 {strides = array<i32>} : memref<1x128xf32, #tpu.memory_space<vmem>>, vector<1x128xf32>,
      } else {
      }
    } else {
    }
    return
  }
  func.func @transform_0(%arg0: i32, %arg1: memref<2x6xi32, #tpu.memory_space<smem>>) -> i32 {
    %c0_i32 = arith.constant 0 : i32
    %c0_i32_0 = arith.constant 0 : i32
    return %c0_i32 : i32
  }
  func.func @transform_1(%arg0: i32, %arg1: memref<2x6xi32, #tpu.memory_space<smem>>) -> i32 {
    %c0_i32 = arith.constant 0 : i32
    %c0_i32_0 = arith.constant 0 : i32
    return %c0_i32 : i32
  }
  func.func @transform_2(%arg0: i32, %arg1: memref<2x6xi32, #tpu.memory_space<smem>>) -> (i32, i32, i32) {
    %0 = arith.index_cast %arg0 : i32 to index
    %c0 = arith.constant 0 : index
    %1 = memref.load %arg1[%0, %c0] : memref<2x6xi32, #tpu.memory_space<smem>>
    %c0_i32 = arith.constant 0 : i32
    %c0_i32_0 = arith.constant 0 : i32
    %c0_i32_1 = arith.constant 0 : i32
    return %1, %c0_i32, %c0_i32_0 : i32, i32, i32
  }
  func.func @transform_3(%arg0: i32, %arg1: memref<2x6xi32, #tpu.memory_space<smem>>) -> (i32, i32, i32) {
    %0 = arith.index_cast %arg0 : i32 to index
    %c1 = arith.constant 1 : index
    %1 = memref.load %arg1[%0, %c1] : memref<2x6xi32, #tpu.memory_space<smem>>
    %c0_i32 = arith.constant 0 : i32
    %c0_i32_0 = arith.constant 0 : i32
    %c0_i32_1 = arith.constant 0 : i32
    return %1, %c0_i32, %c0_i32_0 : i32, i32, i32
  }
  func.func @transform_4(%arg0: i32, %arg1: memref<2x6xi32, #tpu.memory_space<smem>>) -> (i32, i32, i32) {
    %0 = arith.index_cast %arg0 : i32 to index
    %c2 = arith.constant 2 : index
    %1 = memref.load %arg1[%0, %c2] : memref<2x6xi32, #tpu.memory_space<smem>>
    %c0_i32 = arith.constant 0 : i32
    %c0_i32_0 = arith.constant 0 : i32
    %c0_i32_1 = arith.constant 0 : i32
    return %1, %c0_i32, %c0_i32_0 : i32, i32, i32
  }
  func.func @transform_5(%arg0: i32, %arg1: memref<2x6xi32, #tpu.memory_space<smem>>) -> (i32, i32, i32) {
    %0 = arith.index_cast %arg0 : i32 to index
    %c3 = arith.constant 3 : index
    %1 = memref.load %arg1[%0, %c3] : memref<2x6xi32, #tpu.memory_space<smem>>
    %c0_i32 = arith.constant 0 : i32
    %c0_i32_0 = arith.constant 0 : i32
    %c0_i32_1 = arith.constant 0 : i32
    return %1, %c0_i32, %c0_i32_0 : i32, i32, i32
  }
  func.func @transform_6(%arg0: i32, %arg1: memref<2x6xi32, #tpu.memory_space<smem>>) -> (i32, i32, i32) {
    %0 = arith.index_cast %arg0 : i32 to index
    %c4 = arith.constant 4 : index
    %1 = memref.load %arg1[%0, %c4] : memref<2x6xi32, #tpu.memory_space<smem>>
    %c0_i32 = arith.constant 0 : i32
    %c0_i32_0 = arith.constant 0 : i32
    %c0_i32_1 = arith.constant 0 : i32
    return %1, %c0_i32, %c0_i32_0 : i32, i32, i32
  }
  func.func @transform_7(%arg0: i32, %arg1: memref<2x6xi32, #tpu.memory_space<smem>>) -> (i32, i32, i32) {
    %c0_i32 = arith.constant 0 : i32
    %c0_i32_0 = arith.constant 0 : i32
    %c0_i32_1 = arith.constant 0 : i32
    return %arg0, %c0_i32, %c0_i32_0 : i32, i32, i32
  }
  func.func @transform_8(%arg0: i32, %arg1: memref<2x6xi32, #tpu.memory_space<smem>>) -> (i32, i32, i32) {
    %0 = arith.index_cast %arg0 : i32 to index
    %c5 = arith.constant 5 : index
    %1 = memref.load %arg1[%0, %c5] : memref<2x6xi32, #tpu.memory_space<smem>>
    %c0_i32 = arith.constant 0 : i32
    %c0_i32_0 = arith.constant 0 : i32
    %c0_i32_1 = arith.constant 0 : i32
    return %1, %c0_i32, %c0_i32_0 : i32, i32, i32
  }
  func.func @transform_9(%arg0: i32, %arg1: memref<2x6xi32, #tpu.memory_space<smem>>) -> (i32, i32) {
    %c0_i32 = arith.constant 0 : i32
    %c0_i32_0 = arith.constant 0 : i32
    %c0_i32_1 = arith.constant 0 : i32
    return %c0_i32, %c0_i32_0 : i32, i32
  }
}

module attributes {stable_mosaic.version = 11 : i64} {
  func.func @_decode_kernel(%arg0: i32, %arg1: memref<3x6xi32, #tpu.memory_space<smem>>, %arg2: memref<9xf32, #tpu.memory_space<smem>>, %arg3: memref<9xf32, #tpu.memory_space<smem>>, %arg4: memref<2xf32, #tpu.memory_space<smem>>, %arg5: memref<1x32x128xf32, #tpu.memory_space<vmem>>, %arg6: memref<1x32x128xf32, #tpu.memory_space<vmem>>, %arg7: memref<1x32x128xbf16, #tpu.memory_space<vmem>>, %arg8: memref<1x32x128xbf16, #tpu.memory_space<vmem>>, %arg9: memref<1x32x128xf32, #tpu.memory_space<vmem>>, %arg10: memref<1x32x128xf32, #tpu.memory_space<vmem>>, %arg11: memref<2x32x128xf32, #tpu.memory_space<vmem>>) attributes {dimension_semantics = [#tpu.dimension_semantics<arbitrary>], iteration_bounds = array<i64: 3>, scalar_prefetch = 1 : i64, scratch_operands = 1 : i64, tpu.core_type = #tpu.core_type<tc>, window_params = [{transform_indices = @transform_0, window_bounds = array<i64: 9>}, {transform_indices = @transform_1, window_bounds = array<i64: 9>}, {transform_indices = @transform_2, window_bounds = array<i64: 2>}, {transform_indices = @transform_3, window_bounds = array<i64: 1, 32, 128>}, {transform_indices = @transform_4, window_bounds = array<i64: 1, 32, 128>}, {transform_indices = @transform_5, window_bounds = array<i64: 1, 32, 128>}, {transform_indices = @transform_6, window_bounds = array<i64: 1, 32, 128>}, {transform_indices = @transform_7, window_bounds = array<i64: 1, 32, 128>}, {transform_indices = @transform_8, window_bounds = array<i64: 1, 32, 128>}]} {
    %c0 = arith.constant 0 : index
    %c0_0 = arith.constant 0 : index
    %c0_1 = arith.constant 0 : index
    %0 = vector.load %arg7[%c0, %c0_0, %c0_1] : memref<1x32x128xbf16, #tpu.memory_space<vmem>>, vector<1x32x128xbf16>
    %1 = vector.shape_cast %0 : vector<1x32x128xbf16> to vector<32x128xbf16>
    %2 = arith.extf %1 : vector<32x128xbf16> to vector<32x128xf32>
    %c0_2 = arith.constant 0 : index
    %c0_3 = arith.constant 0 : index
    %c0_4 = arith.constant 0 : index
    %3 = vector.load %arg8[%c0_2, %c0_3, %c0_4] : memref<1x32x128xbf16, #tpu.memory_space<vmem>>, vector<1x32x128xbf16>
    %4 = vector.shape_cast %3 : vector<1x32x128xbf16> to vector<32x128xbf16>
    %5 = arith.extf %4 : vector<32x128xbf16> to vector<32x128xf32>
    %c2_i32 = arith.constant 2 : i32
    %6 = arith.cmpi slt, %arg0, %c2_i32 : i32
    %7 = arith.extui %6 : i1 to i32
    %c0_i32 = arith.constant 0 : i32
    %8 = arith.cmpi ne, %7, %c0_i32 : i32
    scf.if %8 {
      %c0_7 = arith.constant 0 : index
      %c0_8 = arith.constant 0 : index
      %c0_9 = arith.constant 0 : index
      %12 = vector.load %arg5[%c0_7, %c0_8, %c0_9] : memref<1x32x128xf32, #tpu.memory_space<vmem>>, vector<1x32x128xf32>
      %13 = vector.shape_cast %12 : vector<1x32x128xf32> to vector<32x128xf32>
      %14 = arith.mulf %2, %13 : vector<32x128xf32>
      %c0_10 = arith.constant 0 : index
      %c0_11 = arith.constant 0 : index
      %c0_12 = arith.constant 0 : index
      %15 = vector.load %arg6[%c0_10, %c0_11, %c0_12] : memref<1x32x128xf32, #tpu.memory_space<vmem>>, vector<1x32x128xf32>
      %16 = vector.shape_cast %15 : vector<1x32x128xf32> to vector<32x128xf32>
      %17 = arith.mulf %5, %16 : vector<32x128xf32>
      %18 = arith.addf %14, %17 : vector<32x128xf32>
      %cst = arith.constant 5.000000e-01 : f32
      %19 = vector.broadcast %cst : f32 to vector<32x128xf32>
      %20 = arith.mulf %19, %18 : vector<32x128xf32>
      %21 = tpu.iota {dimensions = array<i32: 1>} : vector<32x128xi32>
      %22 = tpu.iota {dimensions = array<i32: 0>} : vector<32x128xi32>
      %c15_i32 = arith.constant 15 : i32
      %23 = vector.broadcast %c15_i32 : i32 to vector<32x128xi32>
      %24 = arith.andi %22, %23 : vector<32x128xi32>
      %c1_i32 = arith.constant 1 : i32
      %25 = vector.broadcast %c1_i32 : i32 to vector<32x128xi32>
      %26 = arith.cmpi sge, %21, %25 : vector<32x128xi32>
      %c1_i32_13 = arith.constant 1 : i32
      %27 = tpu.dynamic_rotate %20 by %c1_i32_13 dim 1 : vector<32x128xf32>, i32 -> vector<32x128xf32>
      %cst_14 = arith.constant 0.000000e+00 : f32
      %28 = vector.broadcast %cst_14 : f32 to vector<32x128xf32>
      %29 = arith.select %26, %27, %28 : vector<32x128xi1>, vector<32x128xf32>
      %c126_i32 = arith.constant 126 : i32
      %30 = vector.broadcast %c126_i32 : i32 to vector<32x128xi32>
      %31 = arith.cmpi sle, %21, %30 : vector<32x128xi32>
      %c127_i32 = arith.constant 127 : i32
      %32 = tpu.dynamic_rotate %20 by %c127_i32 dim 1 : vector<32x128xf32>, i32 -> vector<32x128xf32>
      %cst_15 = arith.constant 0.000000e+00 : f32
      %33 = vector.broadcast %cst_15 : f32 to vector<32x128xf32>
      %34 = arith.select %31, %32, %33 : vector<32x128xi1>, vector<32x128xf32>
      %c0_16 = arith.constant 0 : index
      %35 = memref.load %arg2[%c0_16] : memref<9xf32, #tpu.memory_space<smem>>
      %36 = vector.broadcast %35 : f32 to vector<32x128xf32>
      %37 = arith.mulf %36, %29 : vector<32x128xf32>
      %c1 = arith.constant 1 : index
      %38 = memref.load %arg2[%c1] : memref<9xf32, #tpu.memory_space<smem>>
      %39 = vector.broadcast %38 : f32 to vector<32x128xf32>
      %40 = arith.mulf %39, %20 : vector<32x128xf32>
      %41 = arith.addf %37, %40 : vector<32x128xf32>
      %c2 = arith.constant 2 : index
      %42 = memref.load %arg2[%c2] : memref<9xf32, #tpu.memory_space<smem>>
      %43 = vector.broadcast %42 : f32 to vector<32x128xf32>
      %44 = arith.mulf %43, %34 : vector<32x128xf32>
      %45 = arith.addf %41, %44 : vector<32x128xf32>
      %c3 = arith.constant 3 : index
      %46 = memref.load %arg2[%c3] : memref<9xf32, #tpu.memory_space<smem>>
      %47 = vector.broadcast %46 : f32 to vector<32x128xf32>
      %48 = arith.mulf %47, %29 : vector<32x128xf32>
      %c4 = arith.constant 4 : index
      %49 = memref.load %arg2[%c4] : memref<9xf32, #tpu.memory_space<smem>>
      %50 = vector.broadcast %49 : f32 to vector<32x128xf32>
      %51 = arith.mulf %50, %20 : vector<32x128xf32>
      %52 = arith.addf %48, %51 : vector<32x128xf32>
      %c5 = arith.constant 5 : index
      %53 = memref.load %arg2[%c5] : memref<9xf32, #tpu.memory_space<smem>>
      %54 = vector.broadcast %53 : f32 to vector<32x128xf32>
      %55 = arith.mulf %54, %34 : vector<32x128xf32>
      %56 = arith.addf %52, %55 : vector<32x128xf32>
      %c6 = arith.constant 6 : index
      %57 = memref.load %arg2[%c6] : memref<9xf32, #tpu.memory_space<smem>>
      %58 = vector.broadcast %57 : f32 to vector<32x128xf32>
      %59 = arith.mulf %58, %29 : vector<32x128xf32>
      %c7 = arith.constant 7 : index
      %60 = memref.load %arg2[%c7] : memref<9xf32, #tpu.memory_space<smem>>
      %61 = vector.broadcast %60 : f32 to vector<32x128xf32>
      %62 = arith.mulf %61, %20 : vector<32x128xf32>
      %63 = arith.addf %59, %62 : vector<32x128xf32>
      %c8 = arith.constant 8 : index
      %64 = memref.load %arg2[%c8] : memref<9xf32, #tpu.memory_space<smem>>
      %65 = vector.broadcast %64 : f32 to vector<32x128xf32>
      %66 = arith.mulf %65, %34 : vector<32x128xf32>
      %67 = arith.addf %63, %66 : vector<32x128xf32>
      %c1_i32_17 = arith.constant 1 : i32
      %68 = vector.broadcast %c1_i32_17 : i32 to vector<32x128xi32>
      %69 = arith.cmpi sge, %24, %68 : vector<32x128xi32>
      %c1_i32_18 = arith.constant 1 : i32
      %70 = tpu.dynamic_rotate %45 by %c1_i32_18 dim 0 : vector<32x128xf32>, i32 -> vector<32x128xf32>
      %cst_19 = arith.constant 0.000000e+00 : f32
      %71 = vector.broadcast %cst_19 : f32 to vector<32x128xf32>
      %72 = arith.select %69, %70, %71 : vector<32x128xi1>, vector<32x128xf32>
      %73 = arith.addf %56, %72 : vector<32x128xf32>
      %c14_i32 = arith.constant 14 : i32
      %74 = vector.broadcast %c14_i32 : i32 to vector<32x128xi32>
      %75 = arith.cmpi sle, %24, %74 : vector<32x128xi32>
      %c31_i32 = arith.constant 31 : i32
      %76 = tpu.dynamic_rotate %67 by %c31_i32 dim 0 : vector<32x128xf32>, i32 -> vector<32x128xf32>
      %cst_20 = arith.constant 0.000000e+00 : f32
      %77 = vector.broadcast %cst_20 : f32 to vector<32x128xf32>
      %78 = arith.select %75, %76, %77 : vector<32x128xi1>, vector<32x128xf32>
      %79 = arith.addf %73, %78 : vector<32x128xf32>
      %c0_21 = arith.constant 0 : index
      %c0_22 = arith.constant 0 : index
      %c0_23 = arith.constant 0 : index
      %80 = vector.load %arg9[%c0_21, %c0_22, %c0_23] : memref<1x32x128xf32, #tpu.memory_space<vmem>>, vector<1x32x128xf32>
      %81 = vector.shape_cast %80 : vector<1x32x128xf32> to vector<32x128xf32>
      %cst_24 = arith.constant 0.816496611 : f32
      %82 = vector.broadcast %cst_24 : f32 to vector<32x128xf32>
      %83 = arith.mulf %82, %81 : vector<32x128xf32>
      %cst_25 = arith.constant -1.17953563 : f32
      %84 = vector.broadcast %cst_25 : f32 to vector<32x128xf32>
      %85 = arith.mulf %84, %79 : vector<32x128xf32>
      %86 = arith.addf %83, %85 : vector<32x128xf32>
      %c0_26 = arith.constant 0 : index
      %87 = memref.load %arg4[%c0_26] : memref<2xf32, #tpu.memory_space<smem>>
      %cst_27 = arith.constant -1.17953563 : f32
      %88 = arith.mulf %cst_27, %87 : f32
      %89 = vector.broadcast %88 : f32 to vector<32x128xf32>
      %90 = arith.addf %86, %89 : vector<32x128xf32>
      %c0_28 = arith.constant 0 : index
      %c0_29 = arith.constant 0 : index
      %c0_30 = arith.constant 0 : index
      %91 = vector.load %arg10[%c0_28, %c0_29, %c0_30] : memref<1x32x128xf32, #tpu.memory_space<vmem>>, vector<1x32x128xf32>
      %92 = vector.shape_cast %91 : vector<1x32x128xf32> to vector<32x128xf32>
      %93 = vector.shape_cast %90 : vector<32x128xf32> to vector<1x32x128xf32>
      tpu.vector_store %arg10[%c0_28, %c0_29, %c0_30], %93 {strides = array<i32>} : memref<1x32x128xf32, #tpu.memory_space<vmem>>, vector<1x32x128xf32>,
      %94 = arith.index_cast %arg0 : i32 to index
      %c0_31 = arith.constant 0 : index
      %c0_32 = arith.constant 0 : index
      %95 = vector.load %arg11[%94, %c0_31, %c0_32] : memref<2x32x128xf32, #tpu.memory_space<vmem>>, vector<1x32x128xf32>
      %96 = vector.shape_cast %95 : vector<1x32x128xf32> to vector<32x128xf32>
      %97 = vector.shape_cast %90 : vector<32x128xf32> to vector<1x32x128xf32>
      tpu.vector_store %arg11[%94, %c0_31, %c0_32], %97 {strides = array<i32>} : memref<2x32x128xf32, #tpu.memory_space<vmem>>, vector<1x32x128xf32>,
    } else {
    }
    %c2_i32_5 = arith.constant 2 : i32
    %9 = arith.cmpi sge, %arg0, %c2_i32_5 : i32
    %10 = arith.extui %9 : i1 to i32
    %c0_i32_6 = arith.constant 0 : i32
    %11 = arith.cmpi ne, %10, %c0_i32_6 : i32
    scf.if %11 {
      %c2_i32_7 = arith.constant 2 : i32
      %12 = arith.subi %arg0, %c2_i32_7 : i32
      %13 = arith.index_cast %12 : i32 to index
      %c0_8 = arith.constant 0 : index
      %c0_9 = arith.constant 0 : index
      %14 = vector.load %arg11[%13, %c0_8, %c0_9] : memref<2x32x128xf32, #tpu.memory_space<vmem>>, vector<1x32x128xf32>
      %15 = vector.shape_cast %14 : vector<1x32x128xf32> to vector<32x128xf32>
      %16 = arith.mulf %2, %15 : vector<32x128xf32>
      %c1_i32 = arith.constant 1 : i32
      %17 = arith.addi %12, %c1_i32 : i32
      %18 = arith.index_cast %17 : i32 to index
      %c0_10 = arith.constant 0 : index
      %c0_11 = arith.constant 0 : index
      %19 = vector.load %arg11[%18, %c0_10, %c0_11] : memref<2x32x128xf32, #tpu.memory_space<vmem>>, vector<1x32x128xf32>
      %20 = vector.shape_cast %19 : vector<1x32x128xf32> to vector<32x128xf32>
      %21 = arith.mulf %5, %20 : vector<32x128xf32>
      %22 = arith.addf %16, %21 : vector<32x128xf32>
      %cst = arith.constant 5.000000e-01 : f32
      %23 = vector.broadcast %cst : f32 to vector<32x128xf32>
      %24 = arith.mulf %23, %22 : vector<32x128xf32>
      %25 = tpu.iota {dimensions = array<i32: 1>} : vector<32x128xi32>
      %26 = tpu.iota {dimensions = array<i32: 0>} : vector<32x128xi32>
      %c15_i32 = arith.constant 15 : i32
      %27 = vector.broadcast %c15_i32 : i32 to vector<32x128xi32>
      %28 = arith.andi %26, %27 : vector<32x128xi32>
      %c1_i32_12 = arith.constant 1 : i32
      %29 = vector.broadcast %c1_i32_12 : i32 to vector<32x128xi32>
      %30 = arith.cmpi sge, %25, %29 : vector<32x128xi32>
      %c1_i32_13 = arith.constant 1 : i32
      %31 = tpu.dynamic_rotate %24 by %c1_i32_13 dim 1 : vector<32x128xf32>, i32 -> vector<32x128xf32>
      %cst_14 = arith.constant 0.000000e+00 : f32
      %32 = vector.broadcast %cst_14 : f32 to vector<32x128xf32>
      %33 = arith.select %30, %31, %32 : vector<32x128xi1>, vector<32x128xf32>
      %c126_i32 = arith.constant 126 : i32
      %34 = vector.broadcast %c126_i32 : i32 to vector<32x128xi32>
      %35 = arith.cmpi sle, %25, %34 : vector<32x128xi32>
      %c127_i32 = arith.constant 127 : i32
      %36 = tpu.dynamic_rotate %24 by %c127_i32 dim 1 : vector<32x128xf32>, i32 -> vector<32x128xf32>
      %cst_15 = arith.constant 0.000000e+00 : f32
      %37 = vector.broadcast %cst_15 : f32 to vector<32x128xf32>
      %38 = arith.select %35, %36, %37 : vector<32x128xi1>, vector<32x128xf32>
      %c0_16 = arith.constant 0 : index
      %39 = memref.load %arg3[%c0_16] : memref<9xf32, #tpu.memory_space<smem>>
      %40 = vector.broadcast %39 : f32 to vector<32x128xf32>
      %41 = arith.mulf %40, %33 : vector<32x128xf32>
      %c1 = arith.constant 1 : index
      %42 = memref.load %arg3[%c1] : memref<9xf32, #tpu.memory_space<smem>>
      %43 = vector.broadcast %42 : f32 to vector<32x128xf32>
      %44 = arith.mulf %43, %24 : vector<32x128xf32>
      %45 = arith.addf %41, %44 : vector<32x128xf32>
      %c2 = arith.constant 2 : index
      %46 = memref.load %arg3[%c2] : memref<9xf32, #tpu.memory_space<smem>>
      %47 = vector.broadcast %46 : f32 to vector<32x128xf32>
      %48 = arith.mulf %47, %38 : vector<32x128xf32>
      %49 = arith.addf %45, %48 : vector<32x128xf32>
      %c3 = arith.constant 3 : index
      %50 = memref.load %arg3[%c3] : memref<9xf32, #tpu.memory_space<smem>>
      %51 = vector.broadcast %50 : f32 to vector<32x128xf32>
      %52 = arith.mulf %51, %33 : vector<32x128xf32>
      %c4 = arith.constant 4 : index
      %53 = memref.load %arg3[%c4] : memref<9xf32, #tpu.memory_space<smem>>
      %54 = vector.broadcast %53 : f32 to vector<32x128xf32>
      %55 = arith.mulf %54, %24 : vector<32x128xf32>
      %56 = arith.addf %52, %55 : vector<32x128xf32>
      %c5 = arith.constant 5 : index
      %57 = memref.load %arg3[%c5] : memref<9xf32, #tpu.memory_space<smem>>
      %58 = vector.broadcast %57 : f32 to vector<32x128xf32>
      %59 = arith.mulf %58, %38 : vector<32x128xf32>
      %60 = arith.addf %56, %59 : vector<32x128xf32>
      %c6 = arith.constant 6 : index
      %61 = memref.load %arg3[%c6] : memref<9xf32, #tpu.memory_space<smem>>
      %62 = vector.broadcast %61 : f32 to vector<32x128xf32>
      %63 = arith.mulf %62, %33 : vector<32x128xf32>
      %c7 = arith.constant 7 : index
      %64 = memref.load %arg3[%c7] : memref<9xf32, #tpu.memory_space<smem>>
      %65 = vector.broadcast %64 : f32 to vector<32x128xf32>
      %66 = arith.mulf %65, %24 : vector<32x128xf32>
      %67 = arith.addf %63, %66 : vector<32x128xf32>
      %c8 = arith.constant 8 : index
      %68 = memref.load %arg3[%c8] : memref<9xf32, #tpu.memory_space<smem>>
      %69 = vector.broadcast %68 : f32 to vector<32x128xf32>
      %70 = arith.mulf %69, %38 : vector<32x128xf32>
      %71 = arith.addf %67, %70 : vector<32x128xf32>
      %c1_i32_17 = arith.constant 1 : i32
      %72 = vector.broadcast %c1_i32_17 : i32 to vector<32x128xi32>
      %73 = arith.cmpi sge, %28, %72 : vector<32x128xi32>
      %c1_i32_18 = arith.constant 1 : i32
      %74 = tpu.dynamic_rotate %49 by %c1_i32_18 dim 0 : vector<32x128xf32>, i32 -> vector<32x128xf32>
      %cst_19 = arith.constant 0.000000e+00 : f32
      %75 = vector.broadcast %cst_19 : f32 to vector<32x128xf32>
      %76 = arith.select %73, %74, %75 : vector<32x128xi1>, vector<32x128xf32>
      %77 = arith.addf %60, %76 : vector<32x128xf32>
      %c14_i32 = arith.constant 14 : i32
      %78 = vector.broadcast %c14_i32 : i32 to vector<32x128xi32>
      %79 = arith.cmpi sle, %28, %78 : vector<32x128xi32>
      %c31_i32 = arith.constant 31 : i32
      %80 = tpu.dynamic_rotate %71 by %c31_i32 dim 0 : vector<32x128xf32>, i32 -> vector<32x128xf32>
      %cst_20 = arith.constant 0.000000e+00 : f32
      %81 = vector.broadcast %cst_20 : f32 to vector<32x128xf32>
      %82 = arith.select %79, %80, %81 : vector<32x128xi1>, vector<32x128xf32>
      %83 = arith.addf %77, %82 : vector<32x128xf32>
      %c0_21 = arith.constant 0 : index
      %c0_22 = arith.constant 0 : index
      %c0_23 = arith.constant 0 : index
      %84 = vector.load %arg6[%c0_21, %c0_22, %c0_23] : memref<1x32x128xf32, #tpu.memory_space<vmem>>, vector<1x32x128xf32>
      %85 = vector.shape_cast %84 : vector<1x32x128xf32> to vector<32x128xf32>
      %cst_24 = arith.constant 1.17953563 : f32
      %86 = vector.broadcast %cst_24 : f32 to vector<32x128xf32>
      %87 = arith.mulf %86, %85 : vector<32x128xf32>
      %cst_25 = arith.constant 1.000000e+00 : f32
      %88 = vector.broadcast %cst_25 : f32 to vector<32x128xf32>
      %89 = arith.mulf %88, %83 : vector<32x128xf32>
      %90 = arith.addf %87, %89 : vector<32x128xf32>
      %c1_26 = arith.constant 1 : index
      %91 = memref.load %arg4[%c1_26] : memref<2xf32, #tpu.memory_space<smem>>
      %cst_27 = arith.constant 1.000000e+00 : f32
      %92 = arith.mulf %cst_27, %91 : f32
      %93 = vector.broadcast %92 : f32 to vector<32x128xf32>
      %94 = arith.addf %90, %93 : vector<32x128xf32>
      %c0_28 = arith.constant 0 : index
      %c0_29 = arith.constant 0 : index
      %c0_30 = arith.constant 0 : index
      %95 = vector.load %arg10[%c0_28, %c0_29, %c0_30] : memref<1x32x128xf32, #tpu.memory_space<vmem>>, vector<1x32x128xf32>
      %96 = vector.shape_cast %95 : vector<1x32x128xf32> to vector<32x128xf32>
      %97 = vector.shape_cast %94 : vector<32x128xf32> to vector<1x32x128xf32>
      tpu.vector_store %arg10[%c0_28, %c0_29, %c0_30], %97 {strides = array<i32>} : memref<1x32x128xf32, #tpu.memory_space<vmem>>, vector<1x32x128xf32>,
    } else {
    }
    return
  }
  func.func @transform_0(%arg0: i32, %arg1: memref<3x6xi32, #tpu.memory_space<smem>>) -> i32 {
    %c0_i32 = arith.constant 0 : i32
    %c0_i32_0 = arith.constant 0 : i32
    return %c0_i32 : i32
  }
  func.func @transform_1(%arg0: i32, %arg1: memref<3x6xi32, #tpu.memory_space<smem>>) -> i32 {
    %c0_i32 = arith.constant 0 : i32
    %c0_i32_0 = arith.constant 0 : i32
    return %c0_i32 : i32
  }
  func.func @transform_2(%arg0: i32, %arg1: memref<3x6xi32, #tpu.memory_space<smem>>) -> i32 {
    %c0_i32 = arith.constant 0 : i32
    %c0_i32_0 = arith.constant 0 : i32
    return %c0_i32 : i32
  }
  func.func @transform_3(%arg0: i32, %arg1: memref<3x6xi32, #tpu.memory_space<smem>>) -> (i32, i32, i32) {
    %0 = arith.index_cast %arg0 : i32 to index
    %c0 = arith.constant 0 : index
    %1 = memref.load %arg1[%0, %c0] : memref<3x6xi32, #tpu.memory_space<smem>>
    %c0_i32 = arith.constant 0 : i32
    %c0_i32_0 = arith.constant 0 : i32
    %c0_i32_1 = arith.constant 0 : i32
    return %1, %c0_i32, %c0_i32_0 : i32, i32, i32
  }
  func.func @transform_4(%arg0: i32, %arg1: memref<3x6xi32, #tpu.memory_space<smem>>) -> (i32, i32, i32) {
    %0 = arith.index_cast %arg0 : i32 to index
    %c1 = arith.constant 1 : index
    %1 = memref.load %arg1[%0, %c1] : memref<3x6xi32, #tpu.memory_space<smem>>
    %c0_i32 = arith.constant 0 : i32
    %c0_i32_0 = arith.constant 0 : i32
    %c0_i32_1 = arith.constant 0 : i32
    return %1, %c0_i32, %c0_i32_0 : i32, i32, i32
  }
  func.func @transform_5(%arg0: i32, %arg1: memref<3x6xi32, #tpu.memory_space<smem>>) -> (i32, i32, i32) {
    %0 = arith.index_cast %arg0 : i32 to index
    %c2 = arith.constant 2 : index
    %1 = memref.load %arg1[%0, %c2] : memref<3x6xi32, #tpu.memory_space<smem>>
    %c0_i32 = arith.constant 0 : i32
    %c0_i32_0 = arith.constant 0 : i32
    %c0_i32_1 = arith.constant 0 : i32
    return %1, %c0_i32, %c0_i32_0 : i32, i32, i32
  }
  func.func @transform_6(%arg0: i32, %arg1: memref<3x6xi32, #tpu.memory_space<smem>>) -> (i32, i32, i32) {
    %0 = arith.index_cast %arg0 : i32 to index
    %c3 = arith.constant 3 : index
    %1 = memref.load %arg1[%0, %c3] : memref<3x6xi32, #tpu.memory_space<smem>>
    %c0_i32 = arith.constant 0 : i32
    %c0_i32_0 = arith.constant 0 : i32
    %c0_i32_1 = arith.constant 0 : i32
    return %1, %c0_i32, %c0_i32_0 : i32, i32, i32
  }
  func.func @transform_7(%arg0: i32, %arg1: memref<3x6xi32, #tpu.memory_space<smem>>) -> (i32, i32, i32) {
    %0 = arith.index_cast %arg0 : i32 to index
    %c4 = arith.constant 4 : index
    %1 = memref.load %arg1[%0, %c4] : memref<3x6xi32, #tpu.memory_space<smem>>
    %c0_i32 = arith.constant 0 : i32
    %c0_i32_0 = arith.constant 0 : i32
    %c0_i32_1 = arith.constant 0 : i32
    return %1, %c0_i32, %c0_i32_0 : i32, i32, i32
  }
  func.func @transform_8(%arg0: i32, %arg1: memref<3x6xi32, #tpu.memory_space<smem>>) -> (i32, i32, i32) {
    %0 = arith.index_cast %arg0 : i32 to index
    %c5 = arith.constant 5 : index
    %1 = memref.load %arg1[%0, %c5] : memref<3x6xi32, #tpu.memory_space<smem>>
    %c0_i32 = arith.constant 0 : i32
    %c0_i32_0 = arith.constant 0 : i32
    %c0_i32_1 = arith.constant 0 : i32
    return %1, %c0_i32, %c0_i32_0 : i32, i32, i32
  }
}

module attributes {stable_mosaic.version = 11 : i64} {
  func.func @_decode_kernel(%arg0: i32, %arg1: memref<5x6xi32, #tpu.memory_space<smem>>, %arg2: memref<9xf32, #tpu.memory_space<smem>>, %arg3: memref<9xf32, #tpu.memory_space<smem>>, %arg4: memref<2xf32, #tpu.memory_space<smem>>, %arg5: memref<1x32x128xf32, #tpu.memory_space<vmem>>, %arg6: memref<1x32x128xf32, #tpu.memory_space<vmem>>, %arg7: memref<1x32x128xbf16, #tpu.memory_space<vmem>>, %arg8: memref<1x32x128xbf16, #tpu.memory_space<vmem>>, %arg9: memref<1x32x128xf32, #tpu.memory_space<vmem>>, %arg10: memref<1x32x128xf32, #tpu.memory_space<vmem>>, %arg11: memref<3x32x128xf32, #tpu.memory_space<vmem>>) attributes {dimension_semantics = [#tpu.dimension_semantics<arbitrary>], iteration_bounds = array<i64: 5>, scalar_prefetch = 1 : i64, scratch_operands = 1 : i64, tpu.core_type = #tpu.core_type<tc>, window_params = [{transform_indices = @transform_0, window_bounds = array<i64: 9>}, {transform_indices = @transform_1, window_bounds = array<i64: 9>}, {transform_indices = @transform_2, window_bounds = array<i64: 2>}, {transform_indices = @transform_3, window_bounds = array<i64: 1, 32, 128>}, {transform_indices = @transform_4, window_bounds = array<i64: 1, 32, 128>}, {transform_indices = @transform_5, window_bounds = array<i64: 1, 32, 128>}, {transform_indices = @transform_6, window_bounds = array<i64: 1, 32, 128>}, {transform_indices = @transform_7, window_bounds = array<i64: 1, 32, 128>}, {transform_indices = @transform_8, window_bounds = array<i64: 1, 32, 128>}]} {
    %c0 = arith.constant 0 : index
    %c0_0 = arith.constant 0 : index
    %c0_1 = arith.constant 0 : index
    %0 = vector.load %arg7[%c0, %c0_0, %c0_1] : memref<1x32x128xbf16, #tpu.memory_space<vmem>>, vector<1x32x128xbf16>
    %1 = vector.shape_cast %0 : vector<1x32x128xbf16> to vector<32x128xbf16>
    %2 = arith.extf %1 : vector<32x128xbf16> to vector<32x128xf32>
    %c0_2 = arith.constant 0 : index
    %c0_3 = arith.constant 0 : index
    %c0_4 = arith.constant 0 : index
    %3 = vector.load %arg8[%c0_2, %c0_3, %c0_4] : memref<1x32x128xbf16, #tpu.memory_space<vmem>>, vector<1x32x128xbf16>
    %4 = vector.shape_cast %3 : vector<1x32x128xbf16> to vector<32x128xbf16>
    %5 = arith.extf %4 : vector<32x128xbf16> to vector<32x128xf32>
    %c3_i32 = arith.constant 3 : i32
    %6 = arith.cmpi slt, %arg0, %c3_i32 : i32
    %7 = arith.extui %6 : i1 to i32
    %c0_i32 = arith.constant 0 : i32
    %8 = arith.cmpi ne, %7, %c0_i32 : i32
    scf.if %8 {
      %c0_7 = arith.constant 0 : index
      %c0_8 = arith.constant 0 : index
      %c0_9 = arith.constant 0 : index
      %12 = vector.load %arg5[%c0_7, %c0_8, %c0_9] : memref<1x32x128xf32, #tpu.memory_space<vmem>>, vector<1x32x128xf32>
      %13 = vector.shape_cast %12 : vector<1x32x128xf32> to vector<32x128xf32>
      %14 = arith.mulf %2, %13 : vector<32x128xf32>
      %c0_10 = arith.constant 0 : index
      %c0_11 = arith.constant 0 : index
      %c0_12 = arith.constant 0 : index
      %15 = vector.load %arg6[%c0_10, %c0_11, %c0_12] : memref<1x32x128xf32, #tpu.memory_space<vmem>>, vector<1x32x128xf32>
      %16 = vector.shape_cast %15 : vector<1x32x128xf32> to vector<32x128xf32>
      %17 = arith.mulf %5, %16 : vector<32x128xf32>
      %18 = arith.addf %14, %17 : vector<32x128xf32>
      %cst = arith.constant 5.000000e-01 : f32
      %19 = vector.broadcast %cst : f32 to vector<32x128xf32>
      %20 = arith.mulf %19, %18 : vector<32x128xf32>
      %21 = tpu.iota {dimensions = array<i32: 1>} : vector<32x128xi32>
      %22 = tpu.iota {dimensions = array<i32: 0>} : vector<32x128xi32>
      %c15_i32 = arith.constant 15 : i32
      %23 = vector.broadcast %c15_i32 : i32 to vector<32x128xi32>
      %24 = arith.andi %22, %23 : vector<32x128xi32>
      %c1_i32 = arith.constant 1 : i32
      %25 = vector.broadcast %c1_i32 : i32 to vector<32x128xi32>
      %26 = arith.cmpi sge, %21, %25 : vector<32x128xi32>
      %c1_i32_13 = arith.constant 1 : i32
      %27 = tpu.dynamic_rotate %20 by %c1_i32_13 dim 1 : vector<32x128xf32>, i32 -> vector<32x128xf32>
      %cst_14 = arith.constant 0.000000e+00 : f32
      %28 = vector.broadcast %cst_14 : f32 to vector<32x128xf32>
      %29 = arith.select %26, %27, %28 : vector<32x128xi1>, vector<32x128xf32>
      %c126_i32 = arith.constant 126 : i32
      %30 = vector.broadcast %c126_i32 : i32 to vector<32x128xi32>
      %31 = arith.cmpi sle, %21, %30 : vector<32x128xi32>
      %c127_i32 = arith.constant 127 : i32
      %32 = tpu.dynamic_rotate %20 by %c127_i32 dim 1 : vector<32x128xf32>, i32 -> vector<32x128xf32>
      %cst_15 = arith.constant 0.000000e+00 : f32
      %33 = vector.broadcast %cst_15 : f32 to vector<32x128xf32>
      %34 = arith.select %31, %32, %33 : vector<32x128xi1>, vector<32x128xf32>
      %c0_16 = arith.constant 0 : index
      %35 = memref.load %arg2[%c0_16] : memref<9xf32, #tpu.memory_space<smem>>
      %36 = vector.broadcast %35 : f32 to vector<32x128xf32>
      %37 = arith.mulf %36, %29 : vector<32x128xf32>
      %c1 = arith.constant 1 : index
      %38 = memref.load %arg2[%c1] : memref<9xf32, #tpu.memory_space<smem>>
      %39 = vector.broadcast %38 : f32 to vector<32x128xf32>
      %40 = arith.mulf %39, %20 : vector<32x128xf32>
      %41 = arith.addf %37, %40 : vector<32x128xf32>
      %c2 = arith.constant 2 : index
      %42 = memref.load %arg2[%c2] : memref<9xf32, #tpu.memory_space<smem>>
      %43 = vector.broadcast %42 : f32 to vector<32x128xf32>
      %44 = arith.mulf %43, %34 : vector<32x128xf32>
      %45 = arith.addf %41, %44 : vector<32x128xf32>
      %c3 = arith.constant 3 : index
      %46 = memref.load %arg2[%c3] : memref<9xf32, #tpu.memory_space<smem>>
      %47 = vector.broadcast %46 : f32 to vector<32x128xf32>
      %48 = arith.mulf %47, %29 : vector<32x128xf32>
      %c4 = arith.constant 4 : index
      %49 = memref.load %arg2[%c4] : memref<9xf32, #tpu.memory_space<smem>>
      %50 = vector.broadcast %49 : f32 to vector<32x128xf32>
      %51 = arith.mulf %50, %20 : vector<32x128xf32>
      %52 = arith.addf %48, %51 : vector<32x128xf32>
      %c5 = arith.constant 5 : index
      %53 = memref.load %arg2[%c5] : memref<9xf32, #tpu.memory_space<smem>>
      %54 = vector.broadcast %53 : f32 to vector<32x128xf32>
      %55 = arith.mulf %54, %34 : vector<32x128xf32>
      %56 = arith.addf %52, %55 : vector<32x128xf32>
      %c6 = arith.constant 6 : index
      %57 = memref.load %arg2[%c6] : memref<9xf32, #tpu.memory_space<smem>>
      %58 = vector.broadcast %57 : f32 to vector<32x128xf32>
      %59 = arith.mulf %58, %29 : vector<32x128xf32>
      %c7 = arith.constant 7 : index
      %60 = memref.load %arg2[%c7] : memref<9xf32, #tpu.memory_space<smem>>
      %61 = vector.broadcast %60 : f32 to vector<32x128xf32>
      %62 = arith.mulf %61, %20 : vector<32x128xf32>
      %63 = arith.addf %59, %62 : vector<32x128xf32>
      %c8 = arith.constant 8 : index
      %64 = memref.load %arg2[%c8] : memref<9xf32, #tpu.memory_space<smem>>
      %65 = vector.broadcast %64 : f32 to vector<32x128xf32>
      %66 = arith.mulf %65, %34 : vector<32x128xf32>
      %67 = arith.addf %63, %66 : vector<32x128xf32>
      %c1_i32_17 = arith.constant 1 : i32
      %68 = vector.broadcast %c1_i32_17 : i32 to vector<32x128xi32>
      %69 = arith.cmpi sge, %24, %68 : vector<32x128xi32>
      %c1_i32_18 = arith.constant 1 : i32
      %70 = tpu.dynamic_rotate %45 by %c1_i32_18 dim 0 : vector<32x128xf32>, i32 -> vector<32x128xf32>
      %cst_19 = arith.constant 0.000000e+00 : f32
      %71 = vector.broadcast %cst_19 : f32 to vector<32x128xf32>
      %72 = arith.select %69, %70, %71 : vector<32x128xi1>, vector<32x128xf32>
      %73 = arith.addf %56, %72 : vector<32x128xf32>
      %c14_i32 = arith.constant 14 : i32
      %74 = vector.broadcast %c14_i32 : i32 to vector<32x128xi32>
      %75 = arith.cmpi sle, %24, %74 : vector<32x128xi32>
      %c31_i32 = arith.constant 31 : i32
      %76 = tpu.dynamic_rotate %67 by %c31_i32 dim 0 : vector<32x128xf32>, i32 -> vector<32x128xf32>
      %cst_20 = arith.constant 0.000000e+00 : f32
      %77 = vector.broadcast %cst_20 : f32 to vector<32x128xf32>
      %78 = arith.select %75, %76, %77 : vector<32x128xi1>, vector<32x128xf32>
      %79 = arith.addf %73, %78 : vector<32x128xf32>
      %c0_21 = arith.constant 0 : index
      %c0_22 = arith.constant 0 : index
      %c0_23 = arith.constant 0 : index
      %80 = vector.load %arg9[%c0_21, %c0_22, %c0_23] : memref<1x32x128xf32, #tpu.memory_space<vmem>>, vector<1x32x128xf32>
      %81 = vector.shape_cast %80 : vector<1x32x128xf32> to vector<32x128xf32>
      %cst_24 = arith.constant 0.816496611 : f32
      %82 = vector.broadcast %cst_24 : f32 to vector<32x128xf32>
      %83 = arith.mulf %82, %81 : vector<32x128xf32>
      %cst_25 = arith.constant -1.17953563 : f32
      %84 = vector.broadcast %cst_25 : f32 to vector<32x128xf32>
      %85 = arith.mulf %84, %79 : vector<32x128xf32>
      %86 = arith.addf %83, %85 : vector<32x128xf32>
      %c0_26 = arith.constant 0 : index
      %87 = memref.load %arg4[%c0_26] : memref<2xf32, #tpu.memory_space<smem>>
      %cst_27 = arith.constant -1.17953563 : f32
      %88 = arith.mulf %cst_27, %87 : f32
      %89 = vector.broadcast %88 : f32 to vector<32x128xf32>
      %90 = arith.addf %86, %89 : vector<32x128xf32>
      %c0_28 = arith.constant 0 : index
      %c0_29 = arith.constant 0 : index
      %c0_30 = arith.constant 0 : index
      %91 = vector.load %arg10[%c0_28, %c0_29, %c0_30] : memref<1x32x128xf32, #tpu.memory_space<vmem>>, vector<1x32x128xf32>
      %92 = vector.shape_cast %91 : vector<1x32x128xf32> to vector<32x128xf32>
      %93 = vector.shape_cast %90 : vector<32x128xf32> to vector<1x32x128xf32>
      tpu.vector_store %arg10[%c0_28, %c0_29, %c0_30], %93 {strides = array<i32>} : memref<1x32x128xf32, #tpu.memory_space<vmem>>, vector<1x32x128xf32>,
      %94 = arith.index_cast %arg0 : i32 to index
      %c0_31 = arith.constant 0 : index
      %c0_32 = arith.constant 0 : index
      %95 = vector.load %arg11[%94, %c0_31, %c0_32] : memref<3x32x128xf32, #tpu.memory_space<vmem>>, vector<1x32x128xf32>
      %96 = vector.shape_cast %95 : vector<1x32x128xf32> to vector<32x128xf32>
      %97 = vector.shape_cast %90 : vector<32x128xf32> to vector<1x32x128xf32>
      tpu.vector_store %arg11[%94, %c0_31, %c0_32], %97 {strides = array<i32>} : memref<3x32x128xf32, #tpu.memory_space<vmem>>, vector<1x32x128xf32>,
    } else {
    }
    %c3_i32_5 = arith.constant 3 : i32
    %9 = arith.cmpi sge, %arg0, %c3_i32_5 : i32
    %10 = arith.extui %9 : i1 to i32
    %c0_i32_6 = arith.constant 0 : i32
    %11 = arith.cmpi ne, %10, %c0_i32_6 : i32
    scf.if %11 {
      %c3_i32_7 = arith.constant 3 : i32
      %12 = arith.subi %arg0, %c3_i32_7 : i32
      %13 = arith.index_cast %12 : i32 to index
      %c0_8 = arith.constant 0 : index
      %c0_9 = arith.constant 0 : index
      %14 = vector.load %arg11[%13, %c0_8, %c0_9] : memref<3x32x128xf32, #tpu.memory_space<vmem>>, vector<1x32x128xf32>
      %15 = vector.shape_cast %14 : vector<1x32x128xf32> to vector<32x128xf32>
      %16 = arith.mulf %2, %15 : vector<32x128xf32>
      %c1_i32 = arith.constant 1 : i32
      %17 = arith.addi %12, %c1_i32 : i32
      %18 = arith.index_cast %17 : i32 to index
      %c0_10 = arith.constant 0 : index
      %c0_11 = arith.constant 0 : index
      %19 = vector.load %arg11[%18, %c0_10, %c0_11] : memref<3x32x128xf32, #tpu.memory_space<vmem>>, vector<1x32x128xf32>
      %20 = vector.shape_cast %19 : vector<1x32x128xf32> to vector<32x128xf32>
      %21 = arith.mulf %5, %20 : vector<32x128xf32>
      %22 = arith.addf %16, %21 : vector<32x128xf32>
      %cst = arith.constant 5.000000e-01 : f32
      %23 = vector.broadcast %cst : f32 to vector<32x128xf32>
      %24 = arith.mulf %23, %22 : vector<32x128xf32>
      %25 = tpu.iota {dimensions = array<i32: 1>} : vector<32x128xi32>
      %26 = tpu.iota {dimensions = array<i32: 0>} : vector<32x128xi32>
      %c15_i32 = arith.constant 15 : i32
      %27 = vector.broadcast %c15_i32 : i32 to vector<32x128xi32>
      %28 = arith.andi %26, %27 : vector<32x128xi32>
      %c1_i32_12 = arith.constant 1 : i32
      %29 = vector.broadcast %c1_i32_12 : i32 to vector<32x128xi32>
      %30 = arith.cmpi sge, %25, %29 : vector<32x128xi32>
      %c1_i32_13 = arith.constant 1 : i32
      %31 = tpu.dynamic_rotate %24 by %c1_i32_13 dim 1 : vector<32x128xf32>, i32 -> vector<32x128xf32>
      %cst_14 = arith.constant 0.000000e+00 : f32
      %32 = vector.broadcast %cst_14 : f32 to vector<32x128xf32>
      %33 = arith.select %30, %31, %32 : vector<32x128xi1>, vector<32x128xf32>
      %c126_i32 = arith.constant 126 : i32
      %34 = vector.broadcast %c126_i32 : i32 to vector<32x128xi32>
      %35 = arith.cmpi sle, %25, %34 : vector<32x128xi32>
      %c127_i32 = arith.constant 127 : i32
      %36 = tpu.dynamic_rotate %24 by %c127_i32 dim 1 : vector<32x128xf32>, i32 -> vector<32x128xf32>
      %cst_15 = arith.constant 0.000000e+00 : f32
      %37 = vector.broadcast %cst_15 : f32 to vector<32x128xf32>
      %38 = arith.select %35, %36, %37 : vector<32x128xi1>, vector<32x128xf32>
      %c0_16 = arith.constant 0 : index
      %39 = memref.load %arg3[%c0_16] : memref<9xf32, #tpu.memory_space<smem>>
      %40 = vector.broadcast %39 : f32 to vector<32x128xf32>
      %41 = arith.mulf %40, %33 : vector<32x128xf32>
      %c1 = arith.constant 1 : index
      %42 = memref.load %arg3[%c1] : memref<9xf32, #tpu.memory_space<smem>>
      %43 = vector.broadcast %42 : f32 to vector<32x128xf32>
      %44 = arith.mulf %43, %24 : vector<32x128xf32>
      %45 = arith.addf %41, %44 : vector<32x128xf32>
      %c2 = arith.constant 2 : index
      %46 = memref.load %arg3[%c2] : memref<9xf32, #tpu.memory_space<smem>>
      %47 = vector.broadcast %46 : f32 to vector<32x128xf32>
      %48 = arith.mulf %47, %38 : vector<32x128xf32>
      %49 = arith.addf %45, %48 : vector<32x128xf32>
      %c3 = arith.constant 3 : index
      %50 = memref.load %arg3[%c3] : memref<9xf32, #tpu.memory_space<smem>>
      %51 = vector.broadcast %50 : f32 to vector<32x128xf32>
      %52 = arith.mulf %51, %33 : vector<32x128xf32>
      %c4 = arith.constant 4 : index
      %53 = memref.load %arg3[%c4] : memref<9xf32, #tpu.memory_space<smem>>
      %54 = vector.broadcast %53 : f32 to vector<32x128xf32>
      %55 = arith.mulf %54, %24 : vector<32x128xf32>
      %56 = arith.addf %52, %55 : vector<32x128xf32>
      %c5 = arith.constant 5 : index
      %57 = memref.load %arg3[%c5] : memref<9xf32, #tpu.memory_space<smem>>
      %58 = vector.broadcast %57 : f32 to vector<32x128xf32>
      %59 = arith.mulf %58, %38 : vector<32x128xf32>
      %60 = arith.addf %56, %59 : vector<32x128xf32>
      %c6 = arith.constant 6 : index
      %61 = memref.load %arg3[%c6] : memref<9xf32, #tpu.memory_space<smem>>
      %62 = vector.broadcast %61 : f32 to vector<32x128xf32>
      %63 = arith.mulf %62, %33 : vector<32x128xf32>
      %c7 = arith.constant 7 : index
      %64 = memref.load %arg3[%c7] : memref<9xf32, #tpu.memory_space<smem>>
      %65 = vector.broadcast %64 : f32 to vector<32x128xf32>
      %66 = arith.mulf %65, %24 : vector<32x128xf32>
      %67 = arith.addf %63, %66 : vector<32x128xf32>
      %c8 = arith.constant 8 : index
      %68 = memref.load %arg3[%c8] : memref<9xf32, #tpu.memory_space<smem>>
      %69 = vector.broadcast %68 : f32 to vector<32x128xf32>
      %70 = arith.mulf %69, %38 : vector<32x128xf32>
      %71 = arith.addf %67, %70 : vector<32x128xf32>
      %c1_i32_17 = arith.constant 1 : i32
      %72 = vector.broadcast %c1_i32_17 : i32 to vector<32x128xi32>
      %73 = arith.cmpi sge, %28, %72 : vector<32x128xi32>
      %c1_i32_18 = arith.constant 1 : i32
      %74 = tpu.dynamic_rotate %49 by %c1_i32_18 dim 0 : vector<32x128xf32>, i32 -> vector<32x128xf32>
      %cst_19 = arith.constant 0.000000e+00 : f32
      %75 = vector.broadcast %cst_19 : f32 to vector<32x128xf32>
      %76 = arith.select %73, %74, %75 : vector<32x128xi1>, vector<32x128xf32>
      %77 = arith.addf %60, %76 : vector<32x128xf32>
      %c14_i32 = arith.constant 14 : i32
      %78 = vector.broadcast %c14_i32 : i32 to vector<32x128xi32>
      %79 = arith.cmpi sle, %28, %78 : vector<32x128xi32>
      %c31_i32 = arith.constant 31 : i32
      %80 = tpu.dynamic_rotate %71 by %c31_i32 dim 0 : vector<32x128xf32>, i32 -> vector<32x128xf32>
      %cst_20 = arith.constant 0.000000e+00 : f32
      %81 = vector.broadcast %cst_20 : f32 to vector<32x128xf32>
      %82 = arith.select %79, %80, %81 : vector<32x128xi1>, vector<32x128xf32>
      %83 = arith.addf %77, %82 : vector<32x128xf32>
      %c0_21 = arith.constant 0 : index
      %c0_22 = arith.constant 0 : index
      %c0_23 = arith.constant 0 : index
      %84 = vector.load %arg6[%c0_21, %c0_22, %c0_23] : memref<1x32x128xf32, #tpu.memory_space<vmem>>, vector<1x32x128xf32>
      %85 = vector.shape_cast %84 : vector<1x32x128xf32> to vector<32x128xf32>
      %cst_24 = arith.constant 1.17953563 : f32
      %86 = vector.broadcast %cst_24 : f32 to vector<32x128xf32>
      %87 = arith.mulf %86, %85 : vector<32x128xf32>
      %cst_25 = arith.constant 1.000000e+00 : f32
      %88 = vector.broadcast %cst_25 : f32 to vector<32x128xf32>
      %89 = arith.mulf %88, %83 : vector<32x128xf32>
      %90 = arith.addf %87, %89 : vector<32x128xf32>
      %c1_26 = arith.constant 1 : index
      %91 = memref.load %arg4[%c1_26] : memref<2xf32, #tpu.memory_space<smem>>
      %cst_27 = arith.constant 1.000000e+00 : f32
      %92 = arith.mulf %cst_27, %91 : f32
      %93 = vector.broadcast %92 : f32 to vector<32x128xf32>
      %94 = arith.addf %90, %93 : vector<32x128xf32>
      %c0_28 = arith.constant 0 : index
      %c0_29 = arith.constant 0 : index
      %c0_30 = arith.constant 0 : index
      %95 = vector.load %arg10[%c0_28, %c0_29, %c0_30] : memref<1x32x128xf32, #tpu.memory_space<vmem>>, vector<1x32x128xf32>
      %96 = vector.shape_cast %95 : vector<1x32x128xf32> to vector<32x128xf32>
      %97 = vector.shape_cast %94 : vector<32x128xf32> to vector<1x32x128xf32>
      tpu.vector_store %arg10[%c0_28, %c0_29, %c0_30], %97 {strides = array<i32>} : memref<1x32x128xf32, #tpu.memory_space<vmem>>, vector<1x32x128xf32>,
    } else {
    }
    return
  }
  func.func @transform_0(%arg0: i32, %arg1: memref<5x6xi32, #tpu.memory_space<smem>>) -> i32 {
    %c0_i32 = arith.constant 0 : i32
    %c0_i32_0 = arith.constant 0 : i32
    return %c0_i32 : i32
  }
  func.func @transform_1(%arg0: i32, %arg1: memref<5x6xi32, #tpu.memory_space<smem>>) -> i32 {
    %c0_i32 = arith.constant 0 : i32
    %c0_i32_0 = arith.constant 0 : i32
    return %c0_i32 : i32
  }
  func.func @transform_2(%arg0: i32, %arg1: memref<5x6xi32, #tpu.memory_space<smem>>) -> i32 {
    %c0_i32 = arith.constant 0 : i32
    %c0_i32_0 = arith.constant 0 : i32
    return %c0_i32 : i32
  }
  func.func @transform_3(%arg0: i32, %arg1: memref<5x6xi32, #tpu.memory_space<smem>>) -> (i32, i32, i32) {
    %0 = arith.index_cast %arg0 : i32 to index
    %c0 = arith.constant 0 : index
    %1 = memref.load %arg1[%0, %c0] : memref<5x6xi32, #tpu.memory_space<smem>>
    %c0_i32 = arith.constant 0 : i32
    %c0_i32_0 = arith.constant 0 : i32
    %c0_i32_1 = arith.constant 0 : i32
    return %1, %c0_i32, %c0_i32_0 : i32, i32, i32
  }
  func.func @transform_4(%arg0: i32, %arg1: memref<5x6xi32, #tpu.memory_space<smem>>) -> (i32, i32, i32) {
    %0 = arith.index_cast %arg0 : i32 to index
    %c1 = arith.constant 1 : index
    %1 = memref.load %arg1[%0, %c1] : memref<5x6xi32, #tpu.memory_space<smem>>
    %c0_i32 = arith.constant 0 : i32
    %c0_i32_0 = arith.constant 0 : i32
    %c0_i32_1 = arith.constant 0 : i32
    return %1, %c0_i32, %c0_i32_0 : i32, i32, i32
  }
  func.func @transform_5(%arg0: i32, %arg1: memref<5x6xi32, #tpu.memory_space<smem>>) -> (i32, i32, i32) {
    %0 = arith.index_cast %arg0 : i32 to index
    %c2 = arith.constant 2 : index
    %1 = memref.load %arg1[%0, %c2] : memref<5x6xi32, #tpu.memory_space<smem>>
    %c0_i32 = arith.constant 0 : i32
    %c0_i32_0 = arith.constant 0 : i32
    %c0_i32_1 = arith.constant 0 : i32
    return %1, %c0_i32, %c0_i32_0 : i32, i32, i32
  }
  func.func @transform_6(%arg0: i32, %arg1: memref<5x6xi32, #tpu.memory_space<smem>>) -> (i32, i32, i32) {
    %0 = arith.index_cast %arg0 : i32 to index
    %c3 = arith.constant 3 : index
    %1 = memref.load %arg1[%0, %c3] : memref<5x6xi32, #tpu.memory_space<smem>>
    %c0_i32 = arith.constant 0 : i32
    %c0_i32_0 = arith.constant 0 : i32
    %c0_i32_1 = arith.constant 0 : i32
    return %1, %c0_i32, %c0_i32_0 : i32, i32, i32
  }
  func.func @transform_7(%arg0: i32, %arg1: memref<5x6xi32, #tpu.memory_space<smem>>) -> (i32, i32, i32) {
    %0 = arith.index_cast %arg0 : i32 to index
    %c4 = arith.constant 4 : index
    %1 = memref.load %arg1[%0, %c4] : memref<5x6xi32, #tpu.memory_space<smem>>
    %c0_i32 = arith.constant 0 : i32
    %c0_i32_0 = arith.constant 0 : i32
    %c0_i32_1 = arith.constant 0 : i32
    return %1, %c0_i32, %c0_i32_0 : i32, i32, i32
  }
  func.func @transform_8(%arg0: i32, %arg1: memref<5x6xi32, #tpu.memory_space<smem>>) -> (i32, i32, i32) {
    %0 = arith.index_cast %arg0 : i32 to index
    %c5 = arith.constant 5 : index
    %1 = memref.load %arg1[%0, %c5] : memref<5x6xi32, #tpu.memory_space<smem>>
    %c0_i32 = arith.constant 0 : i32
    %c0_i32_0 = arith.constant 0 : i32
    %c0_i32_1 = arith.constant 0 : i32
    return %1, %c0_i32, %c0_i32_0 : i32, i32, i32
  }
}

module attributes {stable_mosaic.version = 11 : i64} {
  func.func @_decode_kernel(%arg0: i32, %arg1: memref<9x6xi32, #tpu.memory_space<smem>>, %arg2: memref<9xf32, #tpu.memory_space<smem>>, %arg3: memref<9xf32, #tpu.memory_space<smem>>, %arg4: memref<2xf32, #tpu.memory_space<smem>>, %arg5: memref<1x32x128xf32, #tpu.memory_space<vmem>>, %arg6: memref<1x32x128xf32, #tpu.memory_space<vmem>>, %arg7: memref<1x32x128xbf16, #tpu.memory_space<vmem>>, %arg8: memref<1x32x128xbf16, #tpu.memory_space<vmem>>, %arg9: memref<1x32x128xf32, #tpu.memory_space<vmem>>, %arg10: memref<1x32x128xf32, #tpu.memory_space<vmem>>, %arg11: memref<5x32x128xf32, #tpu.memory_space<vmem>>) attributes {dimension_semantics = [#tpu.dimension_semantics<arbitrary>], iteration_bounds = array<i64: 9>, scalar_prefetch = 1 : i64, scratch_operands = 1 : i64, tpu.core_type = #tpu.core_type<tc>, window_params = [{transform_indices = @transform_0, window_bounds = array<i64: 9>}, {transform_indices = @transform_1, window_bounds = array<i64: 9>}, {transform_indices = @transform_2, window_bounds = array<i64: 2>}, {transform_indices = @transform_3, window_bounds = array<i64: 1, 32, 128>}, {transform_indices = @transform_4, window_bounds = array<i64: 1, 32, 128>}, {transform_indices = @transform_5, window_bounds = array<i64: 1, 32, 128>}, {transform_indices = @transform_6, window_bounds = array<i64: 1, 32, 128>}, {transform_indices = @transform_7, window_bounds = array<i64: 1, 32, 128>}, {transform_indices = @transform_8, window_bounds = array<i64: 1, 32, 128>}]} {
    %c0 = arith.constant 0 : index
    %c0_0 = arith.constant 0 : index
    %c0_1 = arith.constant 0 : index
    %0 = vector.load %arg7[%c0, %c0_0, %c0_1] : memref<1x32x128xbf16, #tpu.memory_space<vmem>>, vector<1x32x128xbf16>
    %1 = vector.shape_cast %0 : vector<1x32x128xbf16> to vector<32x128xbf16>
    %2 = arith.extf %1 : vector<32x128xbf16> to vector<32x128xf32>
    %c0_2 = arith.constant 0 : index
    %c0_3 = arith.constant 0 : index
    %c0_4 = arith.constant 0 : index
    %3 = vector.load %arg8[%c0_2, %c0_3, %c0_4] : memref<1x32x128xbf16, #tpu.memory_space<vmem>>, vector<1x32x128xbf16>
    %4 = vector.shape_cast %3 : vector<1x32x128xbf16> to vector<32x128xbf16>
    %5 = arith.extf %4 : vector<32x128xbf16> to vector<32x128xf32>
    %c5_i32 = arith.constant 5 : i32
    %6 = arith.cmpi slt, %arg0, %c5_i32 : i32
    %7 = arith.extui %6 : i1 to i32
    %c0_i32 = arith.constant 0 : i32
    %8 = arith.cmpi ne, %7, %c0_i32 : i32
    scf.if %8 {
      %c0_7 = arith.constant 0 : index
      %c0_8 = arith.constant 0 : index
      %c0_9 = arith.constant 0 : index
      %12 = vector.load %arg5[%c0_7, %c0_8, %c0_9] : memref<1x32x128xf32, #tpu.memory_space<vmem>>, vector<1x32x128xf32>
      %13 = vector.shape_cast %12 : vector<1x32x128xf32> to vector<32x128xf32>
      %14 = arith.mulf %2, %13 : vector<32x128xf32>
      %c0_10 = arith.constant 0 : index
      %c0_11 = arith.constant 0 : index
      %c0_12 = arith.constant 0 : index
      %15 = vector.load %arg6[%c0_10, %c0_11, %c0_12] : memref<1x32x128xf32, #tpu.memory_space<vmem>>, vector<1x32x128xf32>
      %16 = vector.shape_cast %15 : vector<1x32x128xf32> to vector<32x128xf32>
      %17 = arith.mulf %5, %16 : vector<32x128xf32>
      %18 = arith.addf %14, %17 : vector<32x128xf32>
      %cst = arith.constant 5.000000e-01 : f32
      %19 = vector.broadcast %cst : f32 to vector<32x128xf32>
      %20 = arith.mulf %19, %18 : vector<32x128xf32>
      %21 = tpu.iota {dimensions = array<i32: 1>} : vector<32x128xi32>
      %22 = tpu.iota {dimensions = array<i32: 0>} : vector<32x128xi32>
      %c15_i32 = arith.constant 15 : i32
      %23 = vector.broadcast %c15_i32 : i32 to vector<32x128xi32>
      %24 = arith.andi %22, %23 : vector<32x128xi32>
      %c1_i32 = arith.constant 1 : i32
      %25 = vector.broadcast %c1_i32 : i32 to vector<32x128xi32>
      %26 = arith.cmpi sge, %21, %25 : vector<32x128xi32>
      %c1_i32_13 = arith.constant 1 : i32
      %27 = tpu.dynamic_rotate %20 by %c1_i32_13 dim 1 : vector<32x128xf32>, i32 -> vector<32x128xf32>
      %cst_14 = arith.constant 0.000000e+00 : f32
      %28 = vector.broadcast %cst_14 : f32 to vector<32x128xf32>
      %29 = arith.select %26, %27, %28 : vector<32x128xi1>, vector<32x128xf32>
      %c126_i32 = arith.constant 126 : i32
      %30 = vector.broadcast %c126_i32 : i32 to vector<32x128xi32>
      %31 = arith.cmpi sle, %21, %30 : vector<32x128xi32>
      %c127_i32 = arith.constant 127 : i32
      %32 = tpu.dynamic_rotate %20 by %c127_i32 dim 1 : vector<32x128xf32>, i32 -> vector<32x128xf32>
      %cst_15 = arith.constant 0.000000e+00 : f32
      %33 = vector.broadcast %cst_15 : f32 to vector<32x128xf32>
      %34 = arith.select %31, %32, %33 : vector<32x128xi1>, vector<32x128xf32>
      %c0_16 = arith.constant 0 : index
      %35 = memref.load %arg2[%c0_16] : memref<9xf32, #tpu.memory_space<smem>>
      %36 = vector.broadcast %35 : f32 to vector<32x128xf32>
      %37 = arith.mulf %36, %29 : vector<32x128xf32>
      %c1 = arith.constant 1 : index
      %38 = memref.load %arg2[%c1] : memref<9xf32, #tpu.memory_space<smem>>
      %39 = vector.broadcast %38 : f32 to vector<32x128xf32>
      %40 = arith.mulf %39, %20 : vector<32x128xf32>
      %41 = arith.addf %37, %40 : vector<32x128xf32>
      %c2 = arith.constant 2 : index
      %42 = memref.load %arg2[%c2] : memref<9xf32, #tpu.memory_space<smem>>
      %43 = vector.broadcast %42 : f32 to vector<32x128xf32>
      %44 = arith.mulf %43, %34 : vector<32x128xf32>
      %45 = arith.addf %41, %44 : vector<32x128xf32>
      %c3 = arith.constant 3 : index
      %46 = memref.load %arg2[%c3] : memref<9xf32, #tpu.memory_space<smem>>
      %47 = vector.broadcast %46 : f32 to vector<32x128xf32>
      %48 = arith.mulf %47, %29 : vector<32x128xf32>
      %c4 = arith.constant 4 : index
      %49 = memref.load %arg2[%c4] : memref<9xf32, #tpu.memory_space<smem>>
      %50 = vector.broadcast %49 : f32 to vector<32x128xf32>
      %51 = arith.mulf %50, %20 : vector<32x128xf32>
      %52 = arith.addf %48, %51 : vector<32x128xf32>
      %c5 = arith.constant 5 : index
      %53 = memref.load %arg2[%c5] : memref<9xf32, #tpu.memory_space<smem>>
      %54 = vector.broadcast %53 : f32 to vector<32x128xf32>
      %55 = arith.mulf %54, %34 : vector<32x128xf32>
      %56 = arith.addf %52, %55 : vector<32x128xf32>
      %c6 = arith.constant 6 : index
      %57 = memref.load %arg2[%c6] : memref<9xf32, #tpu.memory_space<smem>>
      %58 = vector.broadcast %57 : f32 to vector<32x128xf32>
      %59 = arith.mulf %58, %29 : vector<32x128xf32>
      %c7 = arith.constant 7 : index
      %60 = memref.load %arg2[%c7] : memref<9xf32, #tpu.memory_space<smem>>
      %61 = vector.broadcast %60 : f32 to vector<32x128xf32>
      %62 = arith.mulf %61, %20 : vector<32x128xf32>
      %63 = arith.addf %59, %62 : vector<32x128xf32>
      %c8 = arith.constant 8 : index
      %64 = memref.load %arg2[%c8] : memref<9xf32, #tpu.memory_space<smem>>
      %65 = vector.broadcast %64 : f32 to vector<32x128xf32>
      %66 = arith.mulf %65, %34 : vector<32x128xf32>
      %67 = arith.addf %63, %66 : vector<32x128xf32>
      %c1_i32_17 = arith.constant 1 : i32
      %68 = vector.broadcast %c1_i32_17 : i32 to vector<32x128xi32>
      %69 = arith.cmpi sge, %24, %68 : vector<32x128xi32>
      %c1_i32_18 = arith.constant 1 : i32
      %70 = tpu.dynamic_rotate %45 by %c1_i32_18 dim 0 : vector<32x128xf32>, i32 -> vector<32x128xf32>
      %cst_19 = arith.constant 0.000000e+00 : f32
      %71 = vector.broadcast %cst_19 : f32 to vector<32x128xf32>
      %72 = arith.select %69, %70, %71 : vector<32x128xi1>, vector<32x128xf32>
      %73 = arith.addf %56, %72 : vector<32x128xf32>
      %c14_i32 = arith.constant 14 : i32
      %74 = vector.broadcast %c14_i32 : i32 to vector<32x128xi32>
      %75 = arith.cmpi sle, %24, %74 : vector<32x128xi32>
      %c31_i32 = arith.constant 31 : i32
      %76 = tpu.dynamic_rotate %67 by %c31_i32 dim 0 : vector<32x128xf32>, i32 -> vector<32x128xf32>
      %cst_20 = arith.constant 0.000000e+00 : f32
      %77 = vector.broadcast %cst_20 : f32 to vector<32x128xf32>
      %78 = arith.select %75, %76, %77 : vector<32x128xi1>, vector<32x128xf32>
      %79 = arith.addf %73, %78 : vector<32x128xf32>
      %c0_21 = arith.constant 0 : index
      %c0_22 = arith.constant 0 : index
      %c0_23 = arith.constant 0 : index
      %80 = vector.load %arg9[%c0_21, %c0_22, %c0_23] : memref<1x32x128xf32, #tpu.memory_space<vmem>>, vector<1x32x128xf32>
      %81 = vector.shape_cast %80 : vector<1x32x128xf32> to vector<32x128xf32>
      %cst_24 = arith.constant 0.816496611 : f32
      %82 = vector.broadcast %cst_24 : f32 to vector<32x128xf32>
      %83 = arith.mulf %82, %81 : vector<32x128xf32>
      %cst_25 = arith.constant -1.17953563 : f32
      %84 = vector.broadcast %cst_25 : f32 to vector<32x128xf32>
      %85 = arith.mulf %84, %79 : vector<32x128xf32>
      %86 = arith.addf %83, %85 : vector<32x128xf32>
      %c0_26 = arith.constant 0 : index
      %87 = memref.load %arg4[%c0_26] : memref<2xf32, #tpu.memory_space<smem>>
      %cst_27 = arith.constant -1.17953563 : f32
      %88 = arith.mulf %cst_27, %87 : f32
      %89 = vector.broadcast %88 : f32 to vector<32x128xf32>
      %90 = arith.addf %86, %89 : vector<32x128xf32>
      %c0_28 = arith.constant 0 : index
      %c0_29 = arith.constant 0 : index
      %c0_30 = arith.constant 0 : index
      %91 = vector.load %arg10[%c0_28, %c0_29, %c0_30] : memref<1x32x128xf32, #tpu.memory_space<vmem>>, vector<1x32x128xf32>
      %92 = vector.shape_cast %91 : vector<1x32x128xf32> to vector<32x128xf32>
      %93 = vector.shape_cast %90 : vector<32x128xf32> to vector<1x32x128xf32>
      tpu.vector_store %arg10[%c0_28, %c0_29, %c0_30], %93 {strides = array<i32>} : memref<1x32x128xf32, #tpu.memory_space<vmem>>, vector<1x32x128xf32>,
      %94 = arith.index_cast %arg0 : i32 to index
      %c0_31 = arith.constant 0 : index
      %c0_32 = arith.constant 0 : index
      %95 = vector.load %arg11[%94, %c0_31, %c0_32] : memref<5x32x128xf32, #tpu.memory_space<vmem>>, vector<1x32x128xf32>
      %96 = vector.shape_cast %95 : vector<1x32x128xf32> to vector<32x128xf32>
      %97 = vector.shape_cast %90 : vector<32x128xf32> to vector<1x32x128xf32>
      tpu.vector_store %arg11[%94, %c0_31, %c0_32], %97 {strides = array<i32>} : memref<5x32x128xf32, #tpu.memory_space<vmem>>, vector<1x32x128xf32>,
    } else {
    }
    %c5_i32_5 = arith.constant 5 : i32
    %9 = arith.cmpi sge, %arg0, %c5_i32_5 : i32
    %10 = arith.extui %9 : i1 to i32
    %c0_i32_6 = arith.constant 0 : i32
    %11 = arith.cmpi ne, %10, %c0_i32_6 : i32
    scf.if %11 {
      %c5_i32_7 = arith.constant 5 : i32
      %12 = arith.subi %arg0, %c5_i32_7 : i32
      %13 = arith.index_cast %12 : i32 to index
      %c0_8 = arith.constant 0 : index
      %c0_9 = arith.constant 0 : index
      %14 = vector.load %arg11[%13, %c0_8, %c0_9] : memref<5x32x128xf32, #tpu.memory_space<vmem>>, vector<1x32x128xf32>
      %15 = vector.shape_cast %14 : vector<1x32x128xf32> to vector<32x128xf32>
      %16 = arith.mulf %2, %15 : vector<32x128xf32>
      %c1_i32 = arith.constant 1 : i32
      %17 = arith.addi %12, %c1_i32 : i32
      %18 = arith.index_cast %17 : i32 to index
      %c0_10 = arith.constant 0 : index
      %c0_11 = arith.constant 0 : index
      %19 = vector.load %arg11[%18, %c0_10, %c0_11] : memref<5x32x128xf32, #tpu.memory_space<vmem>>, vector<1x32x128xf32>
      %20 = vector.shape_cast %19 : vector<1x32x128xf32> to vector<32x128xf32>
      %21 = arith.mulf %5, %20 : vector<32x128xf32>
      %22 = arith.addf %16, %21 : vector<32x128xf32>
      %cst = arith.constant 5.000000e-01 : f32
      %23 = vector.broadcast %cst : f32 to vector<32x128xf32>
      %24 = arith.mulf %23, %22 : vector<32x128xf32>
      %25 = tpu.iota {dimensions = array<i32: 1>} : vector<32x128xi32>
      %26 = tpu.iota {dimensions = array<i32: 0>} : vector<32x128xi32>
      %c15_i32 = arith.constant 15 : i32
      %27 = vector.broadcast %c15_i32 : i32 to vector<32x128xi32>
      %28 = arith.andi %26, %27 : vector<32x128xi32>
      %c1_i32_12 = arith.constant 1 : i32
      %29 = vector.broadcast %c1_i32_12 : i32 to vector<32x128xi32>
      %30 = arith.cmpi sge, %25, %29 : vector<32x128xi32>
      %c1_i32_13 = arith.constant 1 : i32
      %31 = tpu.dynamic_rotate %24 by %c1_i32_13 dim 1 : vector<32x128xf32>, i32 -> vector<32x128xf32>
      %cst_14 = arith.constant 0.000000e+00 : f32
      %32 = vector.broadcast %cst_14 : f32 to vector<32x128xf32>
      %33 = arith.select %30, %31, %32 : vector<32x128xi1>, vector<32x128xf32>
      %c126_i32 = arith.constant 126 : i32
      %34 = vector.broadcast %c126_i32 : i32 to vector<32x128xi32>
      %35 = arith.cmpi sle, %25, %34 : vector<32x128xi32>
      %c127_i32 = arith.constant 127 : i32
      %36 = tpu.dynamic_rotate %24 by %c127_i32 dim 1 : vector<32x128xf32>, i32 -> vector<32x128xf32>
      %cst_15 = arith.constant 0.000000e+00 : f32
      %37 = vector.broadcast %cst_15 : f32 to vector<32x128xf32>
      %38 = arith.select %35, %36, %37 : vector<32x128xi1>, vector<32x128xf32>
      %c0_16 = arith.constant 0 : index
      %39 = memref.load %arg3[%c0_16] : memref<9xf32, #tpu.memory_space<smem>>
      %40 = vector.broadcast %39 : f32 to vector<32x128xf32>
      %41 = arith.mulf %40, %33 : vector<32x128xf32>
      %c1 = arith.constant 1 : index
      %42 = memref.load %arg3[%c1] : memref<9xf32, #tpu.memory_space<smem>>
      %43 = vector.broadcast %42 : f32 to vector<32x128xf32>
      %44 = arith.mulf %43, %24 : vector<32x128xf32>
      %45 = arith.addf %41, %44 : vector<32x128xf32>
      %c2 = arith.constant 2 : index
      %46 = memref.load %arg3[%c2] : memref<9xf32, #tpu.memory_space<smem>>
      %47 = vector.broadcast %46 : f32 to vector<32x128xf32>
      %48 = arith.mulf %47, %38 : vector<32x128xf32>
      %49 = arith.addf %45, %48 : vector<32x128xf32>
      %c3 = arith.constant 3 : index
      %50 = memref.load %arg3[%c3] : memref<9xf32, #tpu.memory_space<smem>>
      %51 = vector.broadcast %50 : f32 to vector<32x128xf32>
      %52 = arith.mulf %51, %33 : vector<32x128xf32>
      %c4 = arith.constant 4 : index
      %53 = memref.load %arg3[%c4] : memref<9xf32, #tpu.memory_space<smem>>
      %54 = vector.broadcast %53 : f32 to vector<32x128xf32>
      %55 = arith.mulf %54, %24 : vector<32x128xf32>
      %56 = arith.addf %52, %55 : vector<32x128xf32>
      %c5 = arith.constant 5 : index
      %57 = memref.load %arg3[%c5] : memref<9xf32, #tpu.memory_space<smem>>
      %58 = vector.broadcast %57 : f32 to vector<32x128xf32>
      %59 = arith.mulf %58, %38 : vector<32x128xf32>
      %60 = arith.addf %56, %59 : vector<32x128xf32>
      %c6 = arith.constant 6 : index
      %61 = memref.load %arg3[%c6] : memref<9xf32, #tpu.memory_space<smem>>
      %62 = vector.broadcast %61 : f32 to vector<32x128xf32>
      %63 = arith.mulf %62, %33 : vector<32x128xf32>
      %c7 = arith.constant 7 : index
      %64 = memref.load %arg3[%c7] : memref<9xf32, #tpu.memory_space<smem>>
      %65 = vector.broadcast %64 : f32 to vector<32x128xf32>
      %66 = arith.mulf %65, %24 : vector<32x128xf32>
      %67 = arith.addf %63, %66 : vector<32x128xf32>
      %c8 = arith.constant 8 : index
      %68 = memref.load %arg3[%c8] : memref<9xf32, #tpu.memory_space<smem>>
      %69 = vector.broadcast %68 : f32 to vector<32x128xf32>
      %70 = arith.mulf %69, %38 : vector<32x128xf32>
      %71 = arith.addf %67, %70 : vector<32x128xf32>
      %c1_i32_17 = arith.constant 1 : i32
      %72 = vector.broadcast %c1_i32_17 : i32 to vector<32x128xi32>
      %73 = arith.cmpi sge, %28, %72 : vector<32x128xi32>
      %c1_i32_18 = arith.constant 1 : i32
      %74 = tpu.dynamic_rotate %49 by %c1_i32_18 dim 0 : vector<32x128xf32>, i32 -> vector<32x128xf32>
      %cst_19 = arith.constant 0.000000e+00 : f32
      %75 = vector.broadcast %cst_19 : f32 to vector<32x128xf32>
      %76 = arith.select %73, %74, %75 : vector<32x128xi1>, vector<32x128xf32>
      %77 = arith.addf %60, %76 : vector<32x128xf32>
      %c14_i32 = arith.constant 14 : i32
      %78 = vector.broadcast %c14_i32 : i32 to vector<32x128xi32>
      %79 = arith.cmpi sle, %28, %78 : vector<32x128xi32>
      %c31_i32 = arith.constant 31 : i32
      %80 = tpu.dynamic_rotate %71 by %c31_i32 dim 0 : vector<32x128xf32>, i32 -> vector<32x128xf32>
      %cst_20 = arith.constant 0.000000e+00 : f32
      %81 = vector.broadcast %cst_20 : f32 to vector<32x128xf32>
      %82 = arith.select %79, %80, %81 : vector<32x128xi1>, vector<32x128xf32>
      %83 = arith.addf %77, %82 : vector<32x128xf32>
      %c0_21 = arith.constant 0 : index
      %c0_22 = arith.constant 0 : index
      %c0_23 = arith.constant 0 : index
      %84 = vector.load %arg6[%c0_21, %c0_22, %c0_23] : memref<1x32x128xf32, #tpu.memory_space<vmem>>, vector<1x32x128xf32>
      %85 = vector.shape_cast %84 : vector<1x32x128xf32> to vector<32x128xf32>
      %cst_24 = arith.constant 1.17953563 : f32
      %86 = vector.broadcast %cst_24 : f32 to vector<32x128xf32>
      %87 = arith.mulf %86, %85 : vector<32x128xf32>
      %cst_25 = arith.constant 1.000000e+00 : f32
      %88 = vector.broadcast %cst_25 : f32 to vector<32x128xf32>
      %89 = arith.mulf %88, %83 : vector<32x128xf32>
      %90 = arith.addf %87, %89 : vector<32x128xf32>
      %c1_26 = arith.constant 1 : index
      %91 = memref.load %arg4[%c1_26] : memref<2xf32, #tpu.memory_space<smem>>
      %cst_27 = arith.constant 1.000000e+00 : f32
      %92 = arith.mulf %cst_27, %91 : f32
      %93 = vector.broadcast %92 : f32 to vector<32x128xf32>
      %94 = arith.addf %90, %93 : vector<32x128xf32>
      %c0_28 = arith.constant 0 : index
      %c0_29 = arith.constant 0 : index
      %c0_30 = arith.constant 0 : index
      %95 = vector.load %arg10[%c0_28, %c0_29, %c0_30] : memref<1x32x128xf32, #tpu.memory_space<vmem>>, vector<1x32x128xf32>
      %96 = vector.shape_cast %95 : vector<1x32x128xf32> to vector<32x128xf32>
      %97 = vector.shape_cast %94 : vector<32x128xf32> to vector<1x32x128xf32>
      tpu.vector_store %arg10[%c0_28, %c0_29, %c0_30], %97 {strides = array<i32>} : memref<1x32x128xf32, #tpu.memory_space<vmem>>, vector<1x32x128xf32>,
    } else {
    }
    return
  }
  func.func @transform_0(%arg0: i32, %arg1: memref<9x6xi32, #tpu.memory_space<smem>>) -> i32 {
    %c0_i32 = arith.constant 0 : i32
    %c0_i32_0 = arith.constant 0 : i32
    return %c0_i32 : i32
  }
  func.func @transform_1(%arg0: i32, %arg1: memref<9x6xi32, #tpu.memory_space<smem>>) -> i32 {
    %c0_i32 = arith.constant 0 : i32
    %c0_i32_0 = arith.constant 0 : i32
    return %c0_i32 : i32
  }
  func.func @transform_2(%arg0: i32, %arg1: memref<9x6xi32, #tpu.memory_space<smem>>) -> i32 {
    %c0_i32 = arith.constant 0 : i32
    %c0_i32_0 = arith.constant 0 : i32
    return %c0_i32 : i32
  }
  func.func @transform_3(%arg0: i32, %arg1: memref<9x6xi32, #tpu.memory_space<smem>>) -> (i32, i32, i32) {
    %0 = arith.index_cast %arg0 : i32 to index
    %c0 = arith.constant 0 : index
    %1 = memref.load %arg1[%0, %c0] : memref<9x6xi32, #tpu.memory_space<smem>>
    %c0_i32 = arith.constant 0 : i32
    %c0_i32_0 = arith.constant 0 : i32
    %c0_i32_1 = arith.constant 0 : i32
    return %1, %c0_i32, %c0_i32_0 : i32, i32, i32
  }
  func.func @transform_4(%arg0: i32, %arg1: memref<9x6xi32, #tpu.memory_space<smem>>) -> (i32, i32, i32) {
    %0 = arith.index_cast %arg0 : i32 to index
    %c1 = arith.constant 1 : index
    %1 = memref.load %arg1[%0, %c1] : memref<9x6xi32, #tpu.memory_space<smem>>
    %c0_i32 = arith.constant 0 : i32
    %c0_i32_0 = arith.constant 0 : i32
    %c0_i32_1 = arith.constant 0 : i32
    return %1, %c0_i32, %c0_i32_0 : i32, i32, i32
  }
  func.func @transform_5(%arg0: i32, %arg1: memref<9x6xi32, #tpu.memory_space<smem>>) -> (i32, i32, i32) {
    %0 = arith.index_cast %arg0 : i32 to index
    %c2 = arith.constant 2 : index
    %1 = memref.load %arg1[%0, %c2] : memref<9x6xi32, #tpu.memory_space<smem>>
    %c0_i32 = arith.constant 0 : i32
    %c0_i32_0 = arith.constant 0 : i32
    %c0_i32_1 = arith.constant 0 : i32
    return %1, %c0_i32, %c0_i32_0 : i32, i32, i32
  }
  func.func @transform_6(%arg0: i32, %arg1: memref<9x6xi32, #tpu.memory_space<smem>>) -> (i32, i32, i32) {
    %0 = arith.index_cast %arg0 : i32 to index
    %c3 = arith.constant 3 : index
    %1 = memref.load %arg1[%0, %c3] : memref<9x6xi32, #tpu.memory_space<smem>>
    %c0_i32 = arith.constant 0 : i32
    %c0_i32_0 = arith.constant 0 : i32
    %c0_i32_1 = arith.constant 0 : i32
    return %1, %c0_i32, %c0_i32_0 : i32, i32, i32
  }
  func.func @transform_7(%arg0: i32, %arg1: memref<9x6xi32, #tpu.memory_space<smem>>) -> (i32, i32, i32) {
    %0 = arith.index_cast %arg0 : i32 to index
    %c4 = arith.constant 4 : index
    %1 = memref.load %arg1[%0, %c4] : memref<9x6xi32, #tpu.memory_space<smem>>
    %c0_i32 = arith.constant 0 : i32
    %c0_i32_0 = arith.constant 0 : i32
    %c0_i32_1 = arith.constant 0 : i32
    return %1, %c0_i32, %c0_i32_0 : i32, i32, i32
  }
  func.func @transform_8(%arg0: i32, %arg1: memref<9x6xi32, #tpu.memory_space<smem>>) -> (i32, i32, i32) {
    %0 = arith.index_cast %arg0 : i32 to index
    %c5 = arith.constant 5 : index
    %1 = memref.load %arg1[%0, %c5] : memref<9x6xi32, #tpu.memory_space<smem>>
    %c0_i32 = arith.constant 0 : i32
    %c0_i32_0 = arith.constant 0 : i32
    %c0_i32_1 = arith.constant 0 : i32
    return %1, %c0_i32, %c0_i32_0 : i32, i32, i32
  }
}

</mosaic_0001>

<bundles_post_ra>
// kernel: _lambda_.10
= control target key start
LH: loop header
LB: loop body
LE: loop exit
PB: predicated region body
PF: predicated region fallthrough
CT: control target
= control target key end

     0   :  { %s1258_s0 = inlined_call_operand.vmem [shape: s32[11,6], index: 0, kind: input, shape index: {}]   ;;  %s1259_s1 = inlined_call_operand.vmem [shape: f32[9], index: 1, kind: input, shape index: {}]   ;;  %s1260_s2 = inlined_call_operand.vmem [shape: f32[3], index: 2, kind: input, shape index: {}]   ;;  %s1261_s3 = inlined_call_operand.vmem [shape: f32[11,32,128], index: 3, kind: input, shape index: {}, may-alias: {3,5}]   ;;  %s1262_s4 = inlined_call_operand.vmem [shape: bf16[72,32,128], index: 4, kind: input, shape index: {}, may-alias: {4,6}]   ;;  %s1263_s5 = inlined_call_operand.vmem [shape: f32[11,32,128], index: 5, kind: input, shape index: {}, may-alias: {3,5}]   ;;  %s1264_s6 = inlined_call_operand.vmem [shape: bf16[72,32,128], index: 6, kind: input, shape index: {}, may-alias: {4,6}]   ;;  %s1265_s7 = inlined_call_operand.vmem [shape: f32[23,32,128], index: 7, kind: input, shape index: {}]   ;;  %s1266_s8 = inlined_call_operand.vmem [shape: f32[11,32,128], index: 8, kind: output, shape index: {}]  }
   0x1   :  { %s13_s29 = sshll.u32 %s1258_s0, 4  ;;  %s14_s29 = int_to_ptr.vmem [resolvable:$true] %s13_s29 }
   0x2   :  { %s952_s30 = scalar_lea.vmem %s14_s29, 256  ;;  %p957_p1 = scmp.lt.s32.totalorder %s14_s29, %s14_s29 }
   0x3   :  { %p953_p0 = scmp.ne.s32.totalorder %s14_s29, %s952_s30  ;;  %p958_p2 = scmp.lt.s32.totalorder %s952_s30, %s952_s30 }
   0x5   :  { %p959_p3 = por %p958_p2, %p957_p1 }
   0x7   :  { %p960_p4 = pnand %p959_p3, %p953_p0 }
   0x9   :  { %963 = shalt.err (!%p960_p4)  }
   0xa   :  { %s1012_s9 = smov [#allocation3]  }
   0xb   :  { %16 = dma.vmem_to_smem %s14_s29, 256, %s1012_s9, [#allocation2] }
   0xc   :  { %998 = dma.done.wait [#allocation2], 256 }
   0xd   :  { %999 = vsyncadd [#allocation2], 4294967040 }
   0xe   :  { %18 = sfence }
   0xf   :  { %19 = vsyncpa [#allocation5], 0 }
  0x10   :  { %20 = vsyncpa [#allocation7], 0  ;;  %s1065_s10 = smov 0  }
  0x11 LB: > { %s1071_s0 = sadd.s32 4294967295, %s1010_s10   ;;  %p852_p5 = scmp.ge.s32.totalorder %s1010_s10, 1  ;;  %s1010_s10 = sphi %s1065_s10, %s26_s10  }
  0x12   : > { %p257_p6 = scmp.lt.s32.totalorder %s1010_s10, 12  ;;  %s270_s13 = sshll.u32 %s1259_s1, 4  ;;  %s271_s13 = int_to_ptr.vmem [resolvable:$true] %s270_s13 }
  0x13   : > { %p1267_p8 = scmp.eq.s32.totalorder %s1071_s0, 0  ;;  %s281_s17 = sshll.u32 %s1260_s2, 4  ;;  %s282_s17 = int_to_ptr.vmem [resolvable:$true] %s281_s17 }
  0x14   : > { %p1078_p7 = pnand %p852_p5, %p257_p6  ;;  %s964_s19 = scalar_lea.vmem %s271_s13, 16 }
  0x15   : > { %p965_p11 = scmp.ne.s32.totalorder %s271_s13, %s964_s19  ;;  %p972_p1 = scmp.lt.s32.totalorder %s271_s13, %s271_s13 }
  0x16   : > { %s1269_s14 = scalar_select %p1078_p7, 1, 0 }
  0x17   : > { %p928_p9 = pneg %p1078_p7  ;;  %p973_p2 = scmp.lt.s32.totalorder %s964_s19, %s964_s19 }
  0x19   : > { %p1090_p10 = pnand %p1267_p8, %p928_p9  ;;  %p974_p3 = por %p973_p2, %p972_p1 }
  0x1b   : > { %p966_p12 = pneg %p1090_p10 }
  0x1d   : > { %p967_p13 = pnand %p966_p12, %p965_p11 }
  0x1f   : > { %p968_p0 = pneg %p967_p13 }
  0x21   : > { %p975_p4 = pnand %p974_p3, %p968_p0 }
  0x23   : > { %978 = shalt.err (!%p975_p4)
}
  0x24   : > { %s1013_s20 = smov [#allocation4]   ;;  %s979_s21 = scalar_lea.vmem %s282_s17, 16 }
  0x25   : > { %931 = dma.vmem_to_smem (!%p1090_p10), %s271_s13, 16, %s1013_s20, [#allocation5]  }
  0x26   : > { %p980_p5 = scmp.ne.s32.totalorder %s282_s17, %s979_s21  ;;  %p987_p8 = scmp.lt.s32.totalorder %s282_s17, %s282_s17 }
  0x27   : > { %p988_p7 = scmp.lt.s32.totalorder %s979_s21, %s979_s21 }
  0x28   : > { %p982_p6 = pnand %p980_p5, %p966_p12 }
  0x29   : > { %p989_p11 = por %p988_p7, %p987_p8 }
  0x2a   : > { %p983_p9 = pneg %p982_p6 }
  0x2c   : > { %p990_p13 = pnand %p989_p11, %p983_p9 }
  0x2e   : > { %993 = shalt.err (!%p990_p13)
}
  0x2f   : > { %s1014_s22 = smov [#allocation6]   ;;  %p1271_p0 = scmp.ne.s32.totalorder %s1269_s14, 0 }
  0x30   : > { %934 = dma.vmem_to_smem (!%p1090_p10), %s282_s17, 16, %s1014_s22, [#allocation7]  }
  0x31   : > { %362 = sbr.rel (%p1271_p0) target bundleno = 238 (0xee), region = 48  ;;  %p1272_p1 = scmp.eq.s32.totalorder (!%p1271_p0), %s1071_s0, 0 }
  0x38   : > { %1001 = dma.done.wait (%p1272_p1), [#allocation5], 16   ;;  %p1273_p2 = pmov %p1272_p1 }
  0x39   : > { %p1274_p12 = pmov %p1272_p1 }
  0x3a   : > { %1003 = vsyncadd (%p1273_p2), [#allocation5], 4294967280 }
  0x3b   : > { %1005 = dma.done.wait (%p1274_p12), [#allocation7], 16   ;;  %p1275_p7 = pmov %p1272_p1 }
  0x3d   : > { %1007 = vsyncadd (%p1275_p7), [#allocation7], 4294967280 }
  0x3e   : > { %372 = sfence }
  0x3f   : > { %s1111_s23 = sshll.u32 %s1071_s0, 7  ;;  %v531_v36 = vlaneseq  ;;  %s878_s11 = sld [smem:[#allocation4 + $0x3]] }
  0x40   : > { %s434_s24 = sld [smem:[#allocation3 + %s1111_s23]]  ;;  %s443_s25 = sadd.s32 1, %s1111_s23 }
  0x41   : > { %s444_s26 = sld [smem:[#allocation3 + %s443_s25]]  ;;  %s454_s27 = sadd.s32 2, %s1111_s23  ;;  %v1129_v37 = vand.u32 127, %v531_v36  ;;  %v1131_v40 = vshrl.u32 %v531_v36, 7 }
  0x42   : > { %s455_s28 = sld [smem:[#allocation3 + %s454_s27]]  ;;  %s465_s29 = sadd.s32 3, %s1111_s23 }
  0x43   : > { %s466_s30 = sld [smem:[#allocation3 + %s465_s29]]  ;;  %s1015_s27 = smov 1   ;;  %vm542_vm0 = vcmp.ge.s32.totalorder %v1129_v37, 1  ;;  %vm555_vm1 = vcmp.le.s32.totalorder %v1129_v37, 126  ;;  %v537_v58 = vadd.s32 24, %v1131_v40  ;;  %v1154_v59 = vadd.s32 8, %v1131_v40 }
  0x44   : > { %s568_s29 = sld [smem:[#allocation4]]  ;;  %s882_s12 = sld [smem:[#allocation4 + $0x7]]  ;;  %v536_v63 = vadd.s32 16, %v1131_v40  ;;  %vm654_vm2 = vcmp.lt.s32.totalorder %v1131_v40, 1  ;;  %vm675_vm3 = vcmp.lt.s32.totalorder %v1131_v40, 7 }
  0x45   : > { %s880_s15 = sld [smem:[#allocation4 + $0x5]]  ;;  %s883_s16 = sld [smem:[#allocation4 + $0x8]]  ;;  %v595_v43 = vstv %s878_s11 }
  0x46   : > { %p435_p8 = scmp.lt.s32.totalorder %s434_s24, 10  ;;  %s1208_s19 = sld [smem:[#allocation6]] }
  0x47   : > { %p445_p10 = scmp.lt.s32.totalorder %s444_s26, 71  ;;  %p486_p6 = scmp.lt.s32.totalorder %s1071_s0, 10 }
  0x48   : > { %s1285_s24 = smov (!%p435_p8, %s434_s24), 10  ;;  %p456_p3 = scmp.lt.s32.totalorder %s455_s28, 10 }
  0x49   : > { %s1287_s26 = smov (!%p445_p10, %s444_s26), 71  ;;  %s896_s9 = sshll.u32 %s1285_s24, 5 }
  0x4a   : > { %s439_s13 = scalar_lea.vmem %s1261_s3, %s896_s9  ;;  %s897_s14 = sshll.u32 %s1287_s26, 4  ;;  %v569_v41 = vstv %s568_s29  ;;  %v627_v42 = vstv %s882_s12 }
  0x4b   : > { %s449_s17 = scalar_lea.vmem %s1262_s4, %s897_s14  ;;  %p467_p4 = scmp.lt.s32.totalorder %s466_s30, 71  ;;  %v509_v3 = vld [vmem:[%s439_s13 + $0x10] sm:$0xff]  ;;  %v507_v7 = vld [vmem:[%s439_s13] sm:$0xff]  ;;  %v510_v8 = vld [vmem:[%s439_s13 + $0x18] sm:$0xff]  ;;  %v1140_v48 = vstv %s880_s15 }
  0x4c   : > { %s1289_s28 = smov (!%p456_p3, %s455_s28), 10  ;;  %v918_v0 = vld [vmem:[%s449_s17 + $0x8] sm:$0xff]   ;;  %v903_v1 = vld [vmem:[%s449_s17] sm:$0xff]   ;;  %s879_s9 = sld [smem:[#allocation4 + $0x4]]  ;;  %v1142_v49 = vstv %s883_s16 }
  0x4d   : > { %s1291_s30 = smov (!%p467_p4, %s466_s30), 71  ;;  %v908_v2 = vunpack.c.l.bf16 %v918_v0  ;;  %v904_v4 = vunpack.c.l.bf16 %v903_v1  ;;  %v909_v5 = vunpack.c.h.bf16 %v918_v0  ;;  %v905_v6 = vunpack.c.h.bf16 %v903_v1  ;;  %s898_s18 = sshll.u32 %s1289_s28, 5  ;;  %v508_v9 = vld [vmem:[%s439_s13 + $0x8] sm:$0xff] }
  0x4e   : > { %s460_s21 = scalar_lea.vmem %s1263_s5, %s898_s18  ;;  %s899_s22 = sshll.u32 %s1291_s30, 4 }
  0x4f   : > { %s471_s26 = scalar_lea.vmem %s1264_s6, %s899_s22  ;;  %v517_v10 = vld [vmem:[%s460_s21 + $0x10] sm:$0xff]  ;;  %v515_v11 = vld [vmem:[%s460_s21] sm:$0xff]  ;;  %v518_v12 = vld [vmem:[%s460_s21 + $0x18] sm:$0xff]  ;;  %v513_v14 = vmul.f32 %v908_v2, %v509_v3  ;;  %v511_v16 = vmul.f32 %v904_v4, %v507_v7  ;;  %v514_v17 = vmul.f32 %v909_v5, %v510_v8  ;;  %v512_v18 = vmul.f32 %v905_v6, %v508_v9  ;;  %s1016_s28 = smov 127  }
  0x50   : > { %v919_v13 = vld [vmem:[%s471_s26 + $0x8] sm:$0xff]   ;;  %v911_v15 = vld [vmem:[%s471_s26] sm:$0xff]   ;;  %s876_s30 = sld [smem:[#allocation4 + $0x1]]  ;;  %s881_s13 = sld [smem:[#allocation4 + $0x6]]  ;;  %v538_v9 = vand.u32 15, %v1131_v40 }
  0x51   : > { %v516_v19 = vld [vmem:[%s460_s21 + $0x8] sm:$0xff]  ;;  %v916_v20 = vunpack.c.l.bf16 %v919_v13  ;;  %v912_v21 = vunpack.c.l.bf16 %v911_v15  ;;  %v917_v22 = vunpack.c.h.bf16 %v919_v13  ;;  %v913_v23 = vunpack.c.h.bf16 %v911_v15  ;;  %s877_s14 = sld [smem:[#allocation4 + $0x2]]  ;;  %s476_s17 = sadd.s32 4, %s1111_s23 }
  0x52   : > { %v601_v39 = vstv %s879_s9  ;;  %s1146_s23 = sld [smem:[#allocation3 + %s476_s17]]  ;;  %v539_v13 = vand.u32 15, %v1154_v59  ;;  %vm1177_vm4 = vcmp.ge.s32.totalorder %v538_v9, 1  ;;  %s1295_s0 = smov (!%p486_p6, %s1071_s0), 10 }
  0x53   : > { %v521_v24 = vmul.f32 %v916_v20, %v517_v10  ;;  %v519_v25 = vmul.f32 %v912_v21, %v515_v11  ;;  %v522_v26 = vmul.f32 %v917_v22, %v518_v12  ;;  %v520_v27 = vmul.f32 %v913_v23, %v516_v19  ;;  %s705_s24 = smul.f32 1.4446303, %s1208_s19  ;;  %s901_s25 = sshll.u32 %s1295_s0, 5 }
  0x54   : > { %v541_v12 = vand.u32 15, %v537_v58  ;;  %vm1224_vm7 = vcmp.le.s32.totalorder %v539_v13, 14 }
  0x55   : > { %v525_v28 = vadd.f32 %v521_v24, %v513_v14  ;;  %v523_v29 = vadd.f32 %v519_v25, %v511_v16  ;;  %v526_v30 = vadd.f32 %v522_v26, %v514_v17  ;;  %v524_v31 = vadd.f32 %v520_v27, %v512_v18 }
  0x56   : > { %v575_v38 = vstv %s876_s30  ;;  %v621_v44 = vstv %s881_s13  ;;  %v540_v17 = vand.u32 15, %v536_v63  ;;  %vm1183_vm5 = vcmp.le.s32.totalorder %v541_v12, 14 }
  0x57   : > { %v529_v32 = vmul.f32 0.5, %v525_v28  ;;  %v527_v33 = vmul.f32 0.5, %v523_v29  ;;  %v530_v34 = vmul.f32 0.5, %v526_v30  ;;  %v528_v35 = vmul.f32 0.5, %v524_v31 }
  0x58   : > { %v1136_v45 = vstv %s877_s14  ;;  %p478_p5 = scmp.lt.s32.totalorder %s1146_s23, 22  ;;  %vm1192_vm6 = vcmp.ge.s32.totalorder %v540_v17, 1  ;;  %v706_v40 = vstv %s705_s24 }
  0x59   : > { %547 = vrot.lane.b32.xlu1 %v529_v32, %s1015_s27  ;;  %543 = vrot.lane.b32.xlu0 %v527_v33, %s1015_s27  ;;  %v578_v46 = vmul.f32 %v575_v38, %v529_v32  ;;  %v1138_v47 = vmul.f32 %v601_v39, %v529_v32  ;;  %v630_v51 = vmul.f32 %v627_v42, %v529_v32 }
  0x5a   : > { %v576_v53 = vmul.f32 %v575_v38, %v527_v33  ;;  %v1144_v54 = vmul.f32 %v601_v39, %v527_v33  ;;  %v628_v55 = vmul.f32 %v627_v42, %v527_v33  ;;  %v579_v60 = vmul.f32 %v575_v38, %v530_v34  ;;  %s1293_s23 = smov (!%p478_p5, %s1146_s23), 22 }
  0x5b   : > { %v1156_v61 = vmul.f32 %v601_v39, %v530_v34  ;;  %v631_v62 = vmul.f32 %v627_v42, %v530_v34  ;;  %v577_v1 = vmul.f32 %v575_v38, %v528_v35  ;;  %v603_v2 = vmul.f32 %v601_v39, %v528_v35  ;;  %s900_s18 = sshll.u32 %s1293_s23, 5 }
  0x5c   : > { %v629_v3 = vmul.f32 %v627_v42, %v528_v35  ;;  %s482_s22 = scalar_lea.vmem %s1265_s7, %s900_s18 }
  0x5d   : > { %549 = vrot.lane.b32.xlu1 %v530_v34, %s1015_s27  ;;  %545 = vrot.lane.b32.xlu0 %v528_v35, %s1015_s27 }
  0x61   : > { %558 = vrot.lane.b32.xlu1 %v528_v35, %s1016_s28  ;;  %556 = vrot.lane.b32.xlu0 %v527_v33, %s1016_s28 }
  0x65   : > { %562 = vrot.lane.b32.xlu1 %v530_v34, %s1016_s28  ;;  %560 = vrot.lane.b32.xlu0 %v529_v32, %s1016_s28  ;;  %s490_s28 = scalar_lea.vmem %s1266_s8, %s901_s25 }
  0xcb   : > { %v548_v50 = vpop.permute.xlu1 %547  ;;  %v544_v52 = vpop.permute.xlu0 %543 }
  0xcc   : > { %v553_v56 = vsel %vm542_vm0, %v548_v50, 0.0  ;;  %v551_v57 = vsel %vm542_vm0, %v544_v52, 0.0 }
  0xcd   : > { %v572_v0 = vmul.f32 %v569_v41, %v553_v56  ;;  %v624_v4 = vmul.f32 %v621_v44, %v553_v56  ;;  %v570_v5 = vmul.f32 %v569_v41, %v551_v57  ;;  %v622_v6 = vmul.f32 %v621_v44, %v551_v57 }
  0xce   : > { %v1166_v14 = vmul.f32 %v595_v43, %v553_v56  ;;  %v596_v15 = vmul.f32 %v595_v43, %v551_v57 }
  0xcf   : > { %v550_v7 = vpop.permute.xlu1 %549  ;;  %v546_v8 = vpop.permute.xlu0 %545  ;;  %v582_v18 = vadd.f32 %v578_v46, %v572_v0  ;;  %v634_v22 = vadd.f32 %v630_v51, %v624_v4  ;;  %v580_v23 = vadd.f32 %v576_v53, %v570_v5  ;;  %v632_v24 = vadd.f32 %v628_v55, %v622_v6 }
  0xd0   : > { %v554_v10 = vsel %vm542_vm0, %v550_v7, 0.0  ;;  %v552_v11 = vsel %vm542_vm0, %v546_v8, 0.0 }
  0xd1   : > { %v571_v16 = vmul.f32 %v569_v41, %v552_v11  ;;  %v573_v19 = vmul.f32 %v569_v41, %v554_v10  ;;  %v625_v20 = vmul.f32 %v621_v44, %v554_v10  ;;  %v623_v21 = vmul.f32 %v621_v44, %v552_v11 }
  0xd2   : > { %v597_v25 = vmul.f32 %v595_v43, %v552_v11  ;;  %v599_v28 = vmul.f32 %v595_v43, %v554_v10 }
  0xd3   : > { %v559_v26 = vpop.permute.xlu1 %558  ;;  %v557_v27 = vpop.permute.xlu0 %556  ;;  %v581_v29 = vadd.f32 %v577_v1, %v571_v16  ;;  %v633_v32 = vadd.f32 %v629_v3, %v623_v21  ;;  %v583_v38 = vadd.f32 %v579_v60, %v573_v19  ;;  %v635_v39 = vadd.f32 %v631_v62, %v625_v20 }
  0xd4   : > { %v565_v30 = vsel %vm555_vm1, %v559_v26, 0.0  ;;  %v564_v31 = vsel %vm555_vm1, %v557_v27, 0.0  ;;  %v607_v44 = vadd.f32 %v603_v2, %v597_v25  ;;  %v608_v20 = vadd.f32 %v1138_v47, %v1166_v14  ;;  %v689_v25 = vld [vmem:[%s482_s22 + $0x8] sm:$0xff]  ;;  %v691_v26 = vld [vmem:[%s482_s22 + $0x18] sm:$0xff] }
  0xd5   : > { %v587_v33 = vmul.f32 %v1136_v45, %v565_v30  ;;  %v639_v34 = vmul.f32 %v1142_v49, %v565_v30  ;;  %v586_v35 = vmul.f32 %v1136_v45, %v564_v31  ;;  %v613_v41 = vmul.f32 %v1140_v48, %v565_v30 }
  0xd6   : > { %v638_v42 = vmul.f32 %v1142_v49, %v564_v31  ;;  %v612_v56 = vmul.f32 %v1140_v48, %v564_v31  ;;  %v609_v21 = vadd.f32 %v1156_v61, %v599_v28 }
  0xd7   : > { %v591_v46 = vadd.f32 %v587_v33, %v581_v29  ;;  %v643_v50 = vadd.f32 %v639_v34, %v633_v32  ;;  %v590_v51 = vadd.f32 %v586_v35, %v580_v23  ;;  %v563_v52 = vpop.permute.xlu1 %562  ;;  %v561_v55 = vpop.permute.xlu0 %560  ;;  %v617_v2 = vadd.f32 %v613_v41, %v607_v44  ;;  %v690_v29 = vld [vmem:[%s482_s22 + $0x10] sm:$0xff] }
  0xd8   : > { %v642_v57 = vadd.f32 %v638_v42, %v632_v24  ;;  %v567_v58 = vsel %vm555_vm1, %v563_v52, 0.0  ;;  %v566_v60 = vsel %vm555_vm1, %v561_v55, 0.0  ;;  %v695_v41 = vmul.f32 1.2247449, %v691_v26 }
  0xd9   : > { %v651_v62 = vrot.slane %v591_v46, 7  ;;  %v672_v63 = vrot.slane %v643_v50, 1  ;;  %v650_v0 = vrot.slane %v590_v51, 7  ;;  %v589_v1 = vmul.f32 %v1136_v45, %v567_v58 }
  0xda   : > { %v671_v3 = vrot.slane %v642_v57, 1  ;;  %v641_v4 = vmul.f32 %v1142_v49, %v567_v58  ;;  %v588_v5 = vmul.f32 %v1136_v45, %v566_v60  ;;  %v615_v37 = vmul.f32 %v1140_v48, %v567_v58 }
  0xdb   : > { %v657_v6 = vsel %vm654_vm2, %v650_v0, %v651_v62  ;;  %v593_v7 = vadd.f32 %v589_v1, %v583_v38  ;;  %v640_v8 = vmul.f32 %v1142_v49, %v566_v60  ;;  %v614_v12 = vmul.f32 %v1140_v48, %v566_v60 }
  0xdc   : > { %v664_v9 = vadd.f32 %v657_v6, %v617_v2  ;;  %v678_v10 = vsel %vm675_vm3, %v671_v3, %v672_v63  ;;  %v645_v11 = vadd.f32 %v641_v4, %v635_v39  ;;  %v606_v45 = vadd.f32 %v1144_v54, %v596_v15  ;;  %v688_v15 = vld [vmem:[%s482_s22] sm:$0xff] }
  0xdd   : > { %v653_v16 = vrot.slane %v593_v7, 7  ;;  %v592_v17 = vadd.f32 %v588_v5, %v582_v18  ;;  %v644_v19 = vadd.f32 %v640_v8, %v634_v22  ;;  %v619_v18 = vadd.f32 %v615_v37, %v609_v21 }
  0xde   : > { %v674_v49 = vrot.slane %v645_v11, 1  ;;  %v616_v54 = vadd.f32 %v612_v56, %v606_v45  ;;  %v618_v13 = vadd.f32 %v614_v12, %v608_v20  ;;  %v692_v34 = vmul.f32 1.2247449, %v688_v15 }
  0xdf   : > { %v658_v47 = vsel %vm654_vm2, %v653_v16, %v650_v0  ;;  %v652_v14 = vrot.slane %v592_v17, 7  ;;  %v673_v61 = vrot.slane %v644_v19, 1  ;;  %v693_v39 = vmul.f32 1.2247449, %v689_v25 }
  0xe0   : > { %v659_v22 = vsel %vm1177_vm4, %v658_v47, 0.0  ;;  %v679_v59 = vsel %vm675_vm3, %v674_v49, %v671_v3  ;;  %v694_v46 = vmul.f32 1.2247449, %v690_v29 }
  0xe1   : > { %v663_v23 = vadd.f32 %v659_v22, %v616_v54  ;;  %v683_v24 = vsel %vm1183_vm5, %v679_v59, 0.0  ;;  %v655_v27 = vsel %vm654_vm2, %v652_v14, %v653_v16  ;;  %v656_v28 = vsel %vm654_vm2, %v651_v62, %v652_v14 }
  0xe2   : > { %v661_v30 = vsel %vm1192_vm6, %v656_v28, 0.0  ;;  %v666_v31 = vadd.f32 %v655_v27, %v619_v18  ;;  %v676_v32 = vsel %vm675_vm3, %v673_v61, %v674_v49  ;;  %v677_v33 = vsel %vm675_vm3, %v672_v63, %v673_v61 }
  0xe3   : > { %v684_v35 = vadd.f32 %v678_v10, %v663_v23  ;;  %v665_v36 = vadd.f32 %v661_v30, %v618_v13  ;;  %v681_v38 = vsel %vm1224_vm7, %v677_v33, 0.0 }
  0xe4   : > { %v685_v42 = vadd.f32 %v681_v38, %v664_v9  ;;  %v687_v43 = vadd.f32 %v683_v24, %v666_v31 }
  0xe5   : > { %v696_v44 = vmul.f32 1.4446303, %v684_v35  ;;  %v686_v50 = vadd.f32 %v676_v32, %v665_v36 }
  0xe6   : > { %v697_v51 = vmul.f32 1.4446303, %v685_v42  ;;  %v699_v52 = vmul.f32 1.4446303, %v687_v43 }
  0xe7   : > { %v700_v53 = vadd.f32 %v696_v44, %v692_v34  ;;  %v698_v55 = vmul.f32 1.4446303, %v686_v50 }
  0xe8   : > { %v701_v56 = vadd.f32 %v697_v51, %v693_v39  ;;  %v703_v57 = vadd.f32 %v699_v52, %v695_v41 }
  0xe9   : > { %v702_v58 = vadd.f32 %v698_v55, %v694_v46  ;;  %v707_v60 = vadd.f32 %v706_v40, %v700_v53 }
  0xea   : > { %v708_v62 = vadd.f32 %v706_v40, %v701_v56  ;;  %v710_v63 = vadd.f32 %v706_v40, %v703_v57 }
  0xeb   : > { %v709_v0 = vadd.f32 %v706_v40, %v702_v58  ;;  %711 = vst [vmem:[%s490_s28] sm:$0xff] %v707_v60 }
  0xec   : > { %712 = vst [vmem:[%s490_s28 + $0x8] sm:$0xff] %v708_v62  ;;  %714 = vst [vmem:[%s490_s28 + $0x18] sm:$0xff] %v710_v63 }
  0xed   : > { %713 = vst [vmem:[%s490_s28 + $0x10] sm:$0xff] %v709_v0 }
  0xee PF: > { %s26_s10 = sadd.s32 1, %s1010_s10  }
  0xef   : > { %p23_p9 = scmp.ge.s32.totalorder %s26_s10, 13  }
  0xf1   :  { %25 = sbr.rel (!%p23_p9) target bundleno = 17 (0x11), region = 99 }
  0xf8   :  { %736 = vsyncpa [#allocation5], 1 }
  0xf9   :  { %738 = vsyncpa [#allocation5 + $0x1], 1 }
  0xfa   :  { %739 = vsyncpa [#allocation7], 1 }

// kernel: _lambda_.11
= control target key start
LH: loop header
LB: loop body
LE: loop exit
PB: predicated region body
PF: predicated region fallthrough
CT: control target
= control target key end

     0   :  { %s1512_s0 = inlined_call_operand.vmem [shape: s32[5,6], index: 0, kind: input, shape index: {}]   ;;  %s1513_s1 = inlined_call_operand.vmem [shape: f32[9], index: 1, kind: input, shape index: {}]   ;;  %s1514_s2 = inlined_call_operand.vmem [shape: f32[3], index: 2, kind: input, shape index: {}]   ;;  %s1515_s3 = inlined_call_operand.vmem [shape: f32[11,32,128], index: 3, kind: input, shape index: {}, may-alias: {3,5,7}]   ;;  %s1516_s4 = inlined_call_operand.vmem [shape: bf16[72,32,128], index: 4, kind: input, shape index: {}, may-alias: {4,6}]   ;;  %s1517_s5 = inlined_call_operand.vmem [shape: f32[11,32,128], index: 5, kind: input, shape index: {}, may-alias: {3,5,7}]   ;;  %s1518_s6 = inlined_call_operand.vmem [shape: bf16[72,32,128], index: 6, kind: input, shape index: {}, may-alias: {4,6}]   ;;  %s1519_s7 = inlined_call_operand.vmem [shape: f32[11,32,128], index: 7, kind: input, shape index: {}, may-alias: {3,5,7}]   ;;  %s1520_s8 = inlined_call_operand.vmem [shape: f32[5,32,128], index: 8, kind: output, shape index: {0}]   ;;  %s1521_s9 = inlined_call_operand.vmem [shape: f32[3,32,128], index: 9, kind: output, shape index: {1}]   ;;  %s1522_s10 = inlined_call_operand.vmem [shape: f32[1,128], index: 10, kind: output, shape index: {2}]  }
   0x1   :  { %s16_s15 = sshll.u32 %s1512_s0, 4  ;;  %s17_s15 = int_to_ptr.vmem [resolvable:$true] %s16_s15 }
   0x2   :  { %s1171_s16 = scalar_lea.vmem %s17_s15, 128  ;;  %p1176_p1 = scmp.lt.s32.totalorder %s17_s15, %s17_s15 }
   0x3   :  { %p1172_p0 = scmp.ne.s32.totalorder %s17_s15, %s1171_s16  ;;  %p1177_p2 = scmp.lt.s32.totalorder %s1171_s16, %s1171_s16 }
   0x5   :  { %p1178_p3 = por %p1177_p2, %p1176_p1 }
   0x7   :  { %p1179_p4 = pnand %p1178_p3, %p1172_p0 }
   0x9   :  { %1182 = shalt.err (!%p1179_p4)  }
   0xa   :  { %s1231_s17 = smov [#allocation3]  }
   0xb   :  { %19 = dma.vmem_to_smem %s17_s15, 128, %s1231_s17, [#allocation2] }
   0xc   :  { %1217 = dma.done.wait [#allocation2], 128 }
   0xd   :  { %1218 = vsyncadd [#allocation2], 4294967168 }
   0xe   :  { %21 = sfence }
   0xf   :  { %22 = vsyncpa [#allocation5], 0 }
  0x10   :  { %23 = vsyncpa [#allocation7], 0  ;;  %s1295_s18 = smov 0  }
  0x11 LB: > { %s1301_s0 = sadd.s32 4294967295, %s1229_s18   ;;  %p1047_p5 = scmp.ge.s32.totalorder %s1229_s18, 1  ;;  %s1229_s18 = sphi %s1295_s18, %s29_s18  }
  0x12   : > { %p313_p6 = scmp.lt.s32.totalorder %s1229_s18, 6  ;;  %s326_s21 = sshll.u32 %s1513_s1, 4  ;;  %s327_s21 = int_to_ptr.vmem [resolvable:$true] %s326_s21 }
  0x13   : > { %p1523_p9 = scmp.eq.s32.totalorder %s1301_s0, 0  ;;  %s337_s25 = sshll.u32 %s1514_s2, 4  ;;  %s338_s25 = int_to_ptr.vmem [resolvable:$true] %s337_s25 }
  0x14   : > { %p1309_p8 = pnand %p1047_p5, %p313_p6  ;;  %s1183_s27 = scalar_lea.vmem %s327_s21, 16 }
  0x15   : > { %p1184_p12 = scmp.ne.s32.totalorder %s327_s21, %s1183_s27  ;;  %p1191_p2 = scmp.lt.s32.totalorder %s327_s21, %s327_s21 }
  0x16   : > { %s1525_s22 = scalar_select %p1309_p8, 1, 0 }
  0x17   : > { %p1138_p10 = pneg %p1309_p8  ;;  %p1192_p3 = scmp.lt.s32.totalorder %s1183_s27, %s1183_s27 }
  0x19   : > { %p1321_p11 = pnand %p1523_p9, %p1138_p10  ;;  %p1193_p4 = por %p1192_p3, %p1191_p2 }
  0x1b   : > { %p1185_p13 = pneg %p1321_p11 }
  0x1d   : > { %p1186_p0 = pnand %p1185_p13, %p1184_p12 }
  0x1f   : > { %p1187_p1 = pneg %p1186_p0 }
  0x21   : > { %p1194_p5 = pnand %p1193_p4, %p1187_p1 }
  0x23   : > { %1197 = shalt.err (!%p1194_p5)
}
  0x24   : > { %s1232_s28 = smov [#allocation4]   ;;  %s1198_s29 = scalar_lea.vmem %s338_s25, 16 }
  0x25   : > { %1141 = dma.vmem_to_smem (!%p1321_p11), %s327_s21, 16, %s1232_s28, [#allocation5]  }
  0x26   : > { %p1199_p6 = scmp.ne.s32.totalorder %s338_s25, %s1198_s29  ;;  %p1206_p9 = scmp.lt.s32.totalorder %s338_s25, %s338_s25 }
  0x27   : > { %p1207_p8 = scmp.lt.s32.totalorder %s1198_s29, %s1198_s29 }
  0x28   : > { %p1201_p10 = pnand %p1199_p6, %p1185_p13 }
  0x29   : > { %p1208_p12 = por %p1207_p8, %p1206_p9 }
  0x2a   : > { %p1202_p7 = pneg %p1201_p10 }
  0x2c   : > { %p1209_p0 = pnand %p1208_p12, %p1202_p7 }
  0x2e   : > { %1212 = shalt.err (!%p1209_p0)
}
  0x2f   : > { %s1233_s30 = smov [#allocation6]   ;;  %p1527_p1 = scmp.ne.s32.totalorder %s1525_s22, 0 }
  0x30   : > { %1144 = dma.vmem_to_smem (!%p1321_p11), %s338_s25, 16, %s1233_s30, [#allocation7]  }
  0x31   : > { %418 = sbr.rel (%p1527_p1) target bundleno = 292 (0x124), region = 48  ;;  %p1528_p2 = scmp.eq.s32.totalorder (!%p1527_p1), %s1301_s0, 0 }
  0x38   : > { %1220 = dma.done.wait (%p1528_p2), [#allocation5], 16   ;;  %p1529_p3 = pmov %p1528_p2 }
  0x39   : > { %p1530_p13 = pmov %p1528_p2 }
  0x3a   : > { %1222 = vsyncadd (%p1529_p3), [#allocation5], 4294967280 }
  0x3b   : > { %1224 = dma.done.wait (%p1530_p13), [#allocation7], 16   ;;  %p1531_p8 = pmov %p1528_p2 }
  0x3d   : > { %1226 = vsyncadd (%p1531_p8), [#allocation7], 4294967280 }
  0x3e   : > { %428 = sfence }
  0x3f   : > { %s1342_s11 = sshll.u32 %s1301_s0, 7  ;;  %s1077_s27 = sld [smem:[#allocation4 + $0x4]]  ;;  %v610_v36 = vlaneseq }
  0x40   : > { %s502_s12 = sld [smem:[#allocation3 + %s1342_s11]]  ;;  %s511_s13 = sadd.s32 1, %s1342_s11 }
  0x41   : > { %s512_s14 = sld [smem:[#allocation3 + %s511_s13]]  ;;  %s522_s15 = sadd.s32 2, %s1342_s11  ;;  %v1366_v37 = vand.u32 127, %v610_v36  ;;  %v1368_v41 = vshrl.u32 %v610_v36, 7 }
  0x42   : > { %s523_s16 = sld [smem:[#allocation3 + %s522_s15]]  ;;  %s533_s17 = sadd.s32 3, %s1342_s11 }
  0x43   : > { %s534_s19 = sld [smem:[#allocation3 + %s533_s17]]  ;;  %s560_s20 = sadd.s32 5, %s1342_s11  ;;  %vm621_vm0 = vcmp.ge.s32.totalorder %v1366_v37, 1  ;;  %vm634_vm1 = vcmp.le.s32.totalorder %v1366_v37, 126  ;;  %v616_v58 = vadd.s32 24, %v1368_v41  ;;  %v1391_v59 = vadd.s32 8, %v1368_v41 }
  0x44   : > { %s561_s21 = sld [smem:[#allocation3 + %s560_s20]]  ;;  %s544_s17 = sadd.s32 4, %s1342_s11  ;;  %v615_v63 = vadd.s32 16, %v1368_v41  ;;  %vm733_vm2 = vcmp.lt.s32.totalorder %v1368_v41, 1  ;;  %vm754_vm3 = vcmp.lt.s32.totalorder %v1368_v41, 7 }
  0x45   : > { %s1080_s28 = sld [smem:[#allocation4 + $0x7]]  ;;  %s1075_s13 = sld [smem:[#allocation4 + $0x2]]  ;;  %v680_v39 = vstv %s1077_s27 }
  0x46   : > { %p503_p7 = scmp.lt.s32.totalorder %s502_s12, 10  ;;  %s1383_s11 = sld [smem:[#allocation3 + %s544_s17]] }
  0x47   : > { %p513_p9 = scmp.lt.s32.totalorder %s512_s14, 71  ;;  %p554_p10 = scmp.lt.s32.totalorder %s1301_s0, 4 }
  0x48   : > { %s1542_s12 = smov (!%p503_p7, %s502_s12), 10  ;;  %p524_p11 = scmp.lt.s32.totalorder %s523_s16, 10 }
  0x49   : > { %s1544_s14 = smov (!%p513_p9, %s512_s14), 71  ;;  %s1101_s22 = sshll.u32 %s1542_s12, 5 }
  0x4a   : > { %s507_s25 = scalar_lea.vmem %s1515_s3, %s1101_s22  ;;  %s1102_s26 = sshll.u32 %s1544_s14, 4 }
  0x4b   : > { %s517_s29 = scalar_lea.vmem %s1516_s4, %s1102_s26  ;;  %p535_p4 = scmp.lt.s32.totalorder %s534_s19, 71  ;;  %v588_v3 = vld [vmem:[%s507_s25 + $0x10] sm:$0xff]  ;;  %v586_v7 = vld [vmem:[%s507_s25] sm:$0xff]  ;;  %v589_v8 = vld [vmem:[%s507_s25 + $0x18] sm:$0xff]  ;;  %v706_v40 = vstv %s1080_s28 }
  0x4c   : > { %s1546_s16 = smov (!%p524_p11, %s523_s16), 10  ;;  %v1124_v0 = vld [vmem:[%s517_s29 + $0x8] sm:$0xff]   ;;  %v1109_v1 = vld [vmem:[%s517_s29] sm:$0xff]   ;;  %p562_p5 = scmp.lt.s32.totalorder %s561_s21, 2  ;;  %v1373_v45 = vstv %s1075_s13 }
  0x4d   : > { %s1548_s19 = smov (!%p535_p4, %s534_s19), 71  ;;  %v1114_v2 = vunpack.c.l.bf16 %v1124_v0  ;;  %v1110_v4 = vunpack.c.l.bf16 %v1109_v1  ;;  %v1115_v5 = vunpack.c.h.bf16 %v1124_v0  ;;  %v1111_v6 = vunpack.c.h.bf16 %v1109_v1  ;;  %s1103_s30 = sshll.u32 %s1546_s16, 5  ;;  %v587_v9 = vld [vmem:[%s507_s25 + $0x8] sm:$0xff] }
  0x4e   : > { %s528_s14 = scalar_lea.vmem %s1517_s5, %s1103_s30  ;;  %s1104_s15 = sshll.u32 %s1548_s19, 4 }
  0x4f   : > { %s539_s22 = scalar_lea.vmem %s1518_s6, %s1104_s15  ;;  %v596_v10 = vld [vmem:[%s528_s14 + $0x10] sm:$0xff]  ;;  %v594_v11 = vld [vmem:[%s528_s14] sm:$0xff]  ;;  %v597_v12 = vld [vmem:[%s528_s14 + $0x18] sm:$0xff]  ;;  %s1550_s21 = smov (!%p562_p5, %s561_s21), 2  ;;  %v592_v14 = vmul.f32 %v1114_v2, %v588_v3  ;;  %v590_v16 = vmul.f32 %v1110_v4, %v586_v7  ;;  %v593_v17 = vmul.f32 %v1115_v5, %v589_v8  ;;  %v591_v18 = vmul.f32 %v1111_v6, %v587_v9 }
  0x50   : > { %v1125_v13 = vld [vmem:[%s539_s22 + $0x8] sm:$0xff]   ;;  %v1117_v15 = vld [vmem:[%s539_s22] sm:$0xff]   ;;  %s1107_s16 = sshll.u32 %s1550_s21, 5  ;;  %s1234_s25 = smov 1   ;;  %v617_v9 = vand.u32 15, %v1368_v41 }
  0x51   : > { %v595_v19 = vld [vmem:[%s528_s14 + $0x8] sm:$0xff]  ;;  %v1122_v20 = vunpack.c.l.bf16 %v1125_v13  ;;  %v1118_v21 = vunpack.c.l.bf16 %v1117_v15  ;;  %v1123_v22 = vunpack.c.h.bf16 %v1125_v13  ;;  %v1119_v23 = vunpack.c.h.bf16 %v1117_v15  ;;  %s1364_s24 = scalar_lea.vmem %s1521_s9, %s1107_s16  ;;  %s1235_s21 = smov 127  }
  0x52   : > { %s1074_s26 = sld [smem:[#allocation4 + $0x1]]  ;;  %s647_s29 = sld [smem:[#allocation4]]  ;;  %v618_v13 = vand.u32 15, %v1391_v59  ;;  %vm1414_vm4 = vcmp.ge.s32.totalorder %v617_v9, 1 }
  0x53   : > { %v600_v24 = vmul.f32 %v1122_v20, %v596_v10  ;;  %v598_v25 = vmul.f32 %v1118_v21, %v594_v11  ;;  %v601_v26 = vmul.f32 %v1123_v22, %v597_v12  ;;  %v599_v27 = vmul.f32 %v1119_v23, %v595_v19  ;;  %s1076_s30 = sld [smem:[#allocation4 + $0x3]]  ;;  %s1079_s12 = sld [smem:[#allocation4 + $0x6]] }
  0x54   : > { %s1078_s14 = sld [smem:[#allocation4 + $0x5]]  ;;  %s1081_s15 = sld [smem:[#allocation4 + $0x8]]  ;;  %v620_v12 = vand.u32 15, %v616_v58  ;;  %vm1461_vm7 = vcmp.le.s32.totalorder %v618_v13, 14 }
  0x55   : > { %v604_v28 = vadd.f32 %v600_v24, %v592_v14  ;;  %v602_v29 = vadd.f32 %v598_v25, %v590_v16  ;;  %v605_v30 = vadd.f32 %v601_v26, %v593_v17  ;;  %v603_v31 = vadd.f32 %v599_v27, %v591_v18  ;;  %p546_p6 = scmp.lt.s32.totalorder %s1383_s11, 10  ;;  %s1445_s22 = sld [smem:[#allocation6]] }
  0x56   : > { %v619_v17 = vand.u32 15, %v615_v63  ;;  %vm1420_vm5 = vcmp.le.s32.totalorder %v620_v12, 14  ;;  %p1540_p12 = scmp.ne.s32.totalorder %s1301_s0, 0 }
  0x57   : > { %v608_v32 = vmul.f32 0.5, %v604_v28  ;;  %v606_v33 = vmul.f32 0.5, %v602_v29  ;;  %v609_v34 = vmul.f32 0.5, %v605_v30  ;;  %v607_v35 = vmul.f32 0.5, %v603_v31  ;;  %s1552_s11 = smov (!%p546_p6, %s1383_s11), 10 }
  0x58   : > { %v654_v38 = vstv %s1074_s26  ;;  %v648_v42 = vstv %s647_s29  ;;  %vm1429_vm6 = vcmp.ge.s32.totalorder %v619_v17, 1  ;;  %s1105_s20 = sshll.u32 %s1552_s11, 5 }
  0x59   : > { %626 = vrot.lane.b32.xlu1 %v608_v32, %s1234_s25  ;;  %622 = vrot.lane.b32.xlu0 %v606_v33, %s1234_s25  ;;  %v674_v43 = vstv %s1076_s30  ;;  %v700_v44 = vstv %s1079_s12  ;;  %v657_v46 = vmul.f32 %v654_v38, %v608_v32  ;;  %v1375_v47 = vmul.f32 %v680_v39, %v608_v32  ;;  %s550_s23 = scalar_lea.vmem %s1519_s7, %s1105_s20 }
  0x5a   : > { %v709_v48 = vmul.f32 %v706_v40, %v608_v32  ;;  %v1377_v49 = vstv %s1078_s14  ;;  %v655_v52 = vmul.f32 %v654_v38, %v606_v33  ;;  %v1379_v53 = vmul.f32 %v680_v39, %v606_v33 }
  0x5b   : > { %v707_v54 = vmul.f32 %v706_v40, %v606_v33  ;;  %v1381_v55 = vstv %s1081_s15  ;;  %v658_v60 = vmul.f32 %v654_v38, %v609_v34  ;;  %v1393_v61 = vmul.f32 %v680_v39, %v609_v34 }
  0x5c   : > { %v710_v62 = vmul.f32 %v706_v40, %v609_v34  ;;  %v656_v1 = vmul.f32 %v654_v38, %v607_v35  ;;  %v682_v2 = vmul.f32 %v680_v39, %v607_v35  ;;  %v708_v3 = vmul.f32 %v706_v40, %v607_v35 }
  0x5d   : > { %628 = vrot.lane.b32.xlu1 %v609_v34, %s1234_s25  ;;  %624 = vrot.lane.b32.xlu0 %v607_v35, %s1234_s25  ;;  %s555_s25 = scalar_select %p554_p10, %s1301_s0, 4 }
  0x5f   : > { %s1106_s26 = sshll.u32 %s555_s25, 5 }
  0x60   : > { %s558_s29 = scalar_lea.vmem %s1520_s8, %s1106_s26 }
  0x61   : > { %637 = vrot.lane.b32.xlu1 %v607_v35, %s1235_s21  ;;  %635 = vrot.lane.b32.xlu0 %v606_v33, %s1235_s21 }
  0x65   : > { %641 = vrot.lane.b32.xlu1 %v609_v34, %s1235_s21  ;;  %639 = vrot.lane.b32.xlu0 %v608_v32, %s1235_s21  ;;  %s784_s21 = smul.f32 -0.84779125, %s1445_s22 }
  0x67   : > { %v785_v41 = vstv %s784_s21 }
  0xcb   : > { %v627_v50 = vpop.permute.xlu1 %626  ;;  %v623_v51 = vpop.permute.xlu0 %622 }
  0xcc   : > { %v632_v56 = vsel %vm621_vm0, %v627_v50, 0.0  ;;  %v630_v57 = vsel %vm621_vm0, %v623_v51, 0.0 }
  0xcd   : > { %v651_v0 = vmul.f32 %v648_v42, %v632_v56  ;;  %v703_v4 = vmul.f32 %v700_v44, %v632_v56  ;;  %v649_v5 = vmul.f32 %v648_v42, %v630_v57  ;;  %v701_v6 = vmul.f32 %v700_v44, %v630_v57 }
  0xce   : > { %v1403_v14 = vmul.f32 %v674_v43, %v632_v56  ;;  %v675_v15 = vmul.f32 %v674_v43, %v630_v57 }
  0xcf   : > { %v629_v7 = vpop.permute.xlu1 %628  ;;  %v625_v8 = vpop.permute.xlu0 %624  ;;  %v661_v18 = vadd.f32 %v657_v46, %v651_v0  ;;  %v713_v22 = vadd.f32 %v709_v48, %v703_v4  ;;  %v659_v23 = vadd.f32 %v655_v52, %v649_v5  ;;  %v711_v24 = vadd.f32 %v707_v54, %v701_v6 }
  0xd0   : > { %v633_v10 = vsel %vm621_vm0, %v629_v7, 0.0  ;;  %v631_v11 = vsel %vm621_vm0, %v625_v8, 0.0 }
  0xd1   : > { %v650_v16 = vmul.f32 %v648_v42, %v631_v11  ;;  %v652_v19 = vmul.f32 %v648_v42, %v633_v10  ;;  %v704_v20 = vmul.f32 %v700_v44, %v633_v10  ;;  %v702_v21 = vmul.f32 %v700_v44, %v631_v11 }
  0xd2   : > { %v676_v25 = vmul.f32 %v674_v43, %v631_v11  ;;  %v678_v28 = vmul.f32 %v674_v43, %v633_v10 }
  0xd3   : > { %v638_v26 = vpop.permute.xlu1 %637  ;;  %v636_v27 = vpop.permute.xlu0 %635  ;;  %v660_v29 = vadd.f32 %v656_v1, %v650_v16  ;;  %v712_v32 = vadd.f32 %v708_v3, %v702_v21  ;;  %v662_v38 = vadd.f32 %v658_v60, %v652_v19  ;;  %v714_v39 = vadd.f32 %v710_v62, %v704_v20 }
  0xd4   : > { %v644_v30 = vsel %vm634_vm1, %v638_v26, 0.0  ;;  %v643_v31 = vsel %vm634_vm1, %v636_v27, 0.0  ;;  %v686_v44 = vadd.f32 %v682_v2, %v676_v25  ;;  %v687_v20 = vadd.f32 %v1375_v47, %v1403_v14  ;;  %v768_v25 = vld [vmem:[%s550_s23 + $0x8] sm:$0xff]  ;;  %v770_v26 = vld [vmem:[%s550_s23 + $0x18] sm:$0xff] }
  0xd5   : > { %v666_v33 = vmul.f32 %v1373_v45, %v644_v30  ;;  %v718_v34 = vmul.f32 %v1381_v55, %v644_v30  ;;  %v665_v35 = vmul.f32 %v1373_v45, %v643_v31  ;;  %v692_v40 = vmul.f32 %v1377_v49, %v644_v30 }
  0xd6   : > { %v717_v42 = vmul.f32 %v1381_v55, %v643_v31  ;;  %v691_v56 = vmul.f32 %v1377_v49, %v643_v31  ;;  %v688_v21 = vadd.f32 %v1393_v61, %v678_v28 }
  0xd7   : > { %v670_v46 = vadd.f32 %v666_v33, %v660_v29  ;;  %v722_v48 = vadd.f32 %v718_v34, %v712_v32  ;;  %v669_v50 = vadd.f32 %v665_v35, %v659_v23  ;;  %v642_v51 = vpop.permute.xlu1 %641  ;;  %v640_v54 = vpop.permute.xlu0 %639  ;;  %v696_v2 = vadd.f32 %v692_v40, %v686_v44  ;;  %v769_v29 = vld [vmem:[%s550_s23 + $0x10] sm:$0xff] }
  0xd8   : > { %v721_v57 = vadd.f32 %v717_v42, %v711_v24  ;;  %v646_v58 = vsel %vm634_vm1, %v642_v51, 0.0  ;;  %v645_v60 = vsel %vm634_vm1, %v640_v54, 0.0  ;;  %v774_v40 = vmul.f32 0.84779125, %v770_v26 }
  0xd9   : > { %v730_v62 = vrot.slane %v670_v46, 7  ;;  %v751_v63 = vrot.slane %v722_v48, 1  ;;  %v729_v0 = vrot.slane %v669_v50, 7  ;;  %v668_v1 = vmul.f32 %v1373_v45, %v646_v58 }
  0xda   : > { %v750_v3 = vrot.slane %v721_v57, 1  ;;  %v720_v4 = vmul.f32 %v1381_v55, %v646_v58  ;;  %v667_v5 = vmul.f32 %v1373_v45, %v645_v60  ;;  %v694_v37 = vmul.f32 %v1377_v49, %v646_v58 }
  0xdb   : > { %v736_v6 = vsel %vm733_vm2, %v729_v0, %v730_v62  ;;  %v672_v7 = vadd.f32 %v668_v1, %v662_v38  ;;  %v719_v8 = vmul.f32 %v1381_v55, %v645_v60  ;;  %v693_v12 = vmul.f32 %v1377_v49, %v645_v60 }
  0xdc   : > { %v743_v9 = vadd.f32 %v736_v6, %v696_v2  ;;  %v757_v10 = vsel %vm754_vm3, %v750_v3, %v751_v63  ;;  %v724_v11 = vadd.f32 %v720_v4, %v714_v39  ;;  %v685_v45 = vadd.f32 %v1379_v53, %v675_v15  ;;  %v767_v15 = vld [vmem:[%s550_s23] sm:$0xff] }
  0xdd   : > { %v732_v16 = vrot.slane %v672_v7, 7  ;;  %v671_v17 = vadd.f32 %v667_v5, %v661_v18  ;;  %v723_v19 = vadd.f32 %v719_v8, %v713_v22  ;;  %v698_v18 = vadd.f32 %v694_v37, %v688_v21 }
  0xde   : > { %v753_v55 = vrot.slane %v724_v11, 1  ;;  %v695_v53 = vadd.f32 %v691_v56, %v685_v45  ;;  %v697_v13 = vadd.f32 %v693_v12, %v687_v20  ;;  %v771_v34 = vmul.f32 0.84779125, %v767_v15 }
  0xdf   : > { %v737_v47 = vsel %vm733_vm2, %v732_v16, %v729_v0  ;;  %v731_v14 = vrot.slane %v671_v17, 7  ;;  %v752_v61 = vrot.slane %v723_v19, 1  ;;  %v772_v39 = vmul.f32 0.84779125, %v768_v25 }
  0xe0   : > { %v738_v22 = vsel %vm1414_vm4, %v737_v47, 0.0  ;;  %v758_v59 = vsel %vm754_vm3, %v753_v55, %v750_v3  ;;  %v773_v46 = vmul.f32 0.84779125, %v769_v29  ;;  %v1236_v1 = vmov (!%p1540_p12), 0.0  }
  0xe1   : > { %v742_v23 = vadd.f32 %v738_v22, %v695_v53  ;;  %v762_v24 = vsel %vm1420_vm5, %v758_v59, 0.0  ;;  %v734_v27 = vsel %vm733_vm2, %v731_v14, %v732_v16  ;;  %v735_v28 = vsel %vm733_vm2, %v730_v62, %v731_v14  ;;  %798 = vst [vmem:[%s1522_s10] sm:$0x1] (!%p1540_p12), %v1236_v1 }
  0xe2   : > { %v740_v30 = vsel %vm1429_vm6, %v735_v28, 0.0  ;;  %v745_v31 = vadd.f32 %v734_v27, %v698_v18  ;;  %v755_v32 = vsel %vm754_vm3, %v752_v61, %v753_v55  ;;  %v756_v33 = vsel %vm754_vm3, %v751_v63, %v752_v61 }
  0xe3   : > { %v763_v35 = vadd.f32 %v757_v10, %v742_v23  ;;  %v744_v36 = vadd.f32 %v740_v30, %v697_v13  ;;  %v760_v38 = vsel %vm1461_vm7, %v756_v33, 0.0 }
  0xe4   : > { %v764_v42 = vadd.f32 %v760_v38, %v743_v9  ;;  %v766_v43 = vadd.f32 %v762_v24, %v745_v31 }
  0xe5   : > { %v775_v44 = vmul.f32 -0.84779125, %v763_v35  ;;  %v765_v48 = vadd.f32 %v755_v32, %v744_v36 }
  0xe6   : > { %v776_v50 = vmul.f32 -0.84779125, %v764_v42  ;;  %v778_v51 = vmul.f32 -0.84779125, %v766_v43 }
  0xe7   : > { %v779_v52 = vadd.f32 %v775_v44, %v771_v34  ;;  %v777_v54 = vmul.f32 -0.84779125, %v765_v48  ;;  %797 = sbr.rel (%p1540_p12) target bundleno = 238 (0xee), region = 60 }
  0xe8   : > { %v780_v56 = vadd.f32 %v776_v50, %v772_v39  ;;  %v782_v57 = vadd.f32 %v778_v51, %v774_v40 }
  0xe9   : > { %v781_v58 = vadd.f32 %v777_v54, %v773_v46  ;;  %v786_v60 = vadd.f32 %v785_v41, %v779_v52 }
  0xea   : > { %v787_v62 = vadd.f32 %v785_v41, %v780_v56  ;;  %v789_v63 = vadd.f32 %v785_v41, %v782_v57 }
  0xeb   : > { %v788_v0 = vadd.f32 %v785_v41, %v781_v58  ;;  %790 = vst [vmem:[%s558_s29] sm:$0xff] %v786_v60 }
  0xec   : > { %791 = vst [vmem:[%s558_s29 + $0x8] sm:$0xff] %v787_v62  ;;  %793 = vst [vmem:[%s558_s29 + $0x18] sm:$0xff] %v789_v63 }
  0xed   : > { %792 = vst [vmem:[%s558_s29 + $0x10] sm:$0xff] %v788_v0 }
  0xee PF: > { %p1083_p0 = scmp.ge.s32.totalorder %s1301_s0, 3 }
  0xef   : > { %s1084_s13 = sld [smem:[#allocation6 + $0x1]] (!%p1083_p0)  ;;  %s1085_s14 = sld [smem:[#allocation6 + $0x2]] (!%p1083_p0) }
  0xf0   : > { %802 = sbr.rel (%p1083_p0) target bundleno = 292 (0x124), region = 64  ;;  %p1086_p1 = scmp.ge.s32.totalorder (!%p1083_p0), %s1301_s0, 2 }
  0xf5   : > { %v804_v2 = vstv (!%p1083_p0), %s1084_s13  ;;  %v814_v7 = vstv (!%p1083_p0), %s1085_s14 }
  0xf6   : > { %v805_v3 = vmul.f32 (!%p1083_p0), %v804_v2, %v786_v60  ;;  %v806_v4 = vmul.f32 (!%p1083_p0), %v804_v2, %v787_v62  ;;  %v807_v5 = vmul.f32 (!%p1083_p0), %v804_v2, %v788_v0  ;;  %v808_v6 = vmul.f32 (!%p1083_p0), %v804_v2, %v789_v63 }
  0xf7   : > { %826 = sbr.rel (%p1086_p1) target bundleno = 292 (0x124), region = 68  ;;  %v827_v36 = vld [vmem:[%s1522_s10] sm:$0x1] (!%p1086_p1) }
  0xf8   : > { %v1126_v37 = vround.rtne.f32 %v805_v3  ;;  %v1127_v8 = vround.rtne.f32 %v806_v4  ;;  %v1128_v9 = vround.rtne.f32 %v807_v5  ;;  %v1129_v10 = vround.rtne.f32 %v808_v6 }
  0xfa   : > { %v815_v11 = vmul.f32 %v1126_v37, %v814_v7  ;;  %v816_v12 = vmul.f32 %v1127_v8, %v814_v7  ;;  %v817_v45 = vmul.f32 %v1128_v9, %v814_v7  ;;  %v818_v16 = vmul.f32 %v1129_v10, %v814_v7 }
  0xfb   : > { %v828_v17 = vand.u32 (!%p1086_p1), 2147483647, %v1126_v37  ;;  %v829_v19 = vand.u32 (!%p1086_p1), 2147483647, %v1127_v8  ;;  %v830_v20 = vand.u32 (!%p1086_p1), 2147483647, %v1128_v9 }
  0xfc   : > { %819 = vst [vmem:[%s1364_s24] sm:$0xff] %v815_v11  ;;  %820 = vst [vmem:[%s1364_s24 + $0x8] sm:$0xff] %v816_v12  ;;  %v831_v21 = vand.u32 (!%p1086_p1), 2147483647, %v1129_v10 }
  0xfd   : > { %821 = vst [vmem:[%s1364_s24 + $0x10] sm:$0xff] %v817_v45  ;;  %822 = vst [vmem:[%s1364_s24 + $0x18] sm:$0xff] %v818_v16  ;;  %v832_v55 = vadd.f32 (!%p1086_p1), 1.0, %v828_v17  ;;  %v833_v49 = vadd.f32 (!%p1086_p1), 1.0, %v829_v19  ;;  %v834_v53 = vadd.f32 (!%p1086_p1), 1.0, %v830_v20 }
  0xfe   : > { %v835_v47 = vadd.f32 1.0, %v831_v21 }
  0xff   : > { %1163 = vlog2.f32 %v832_v55 }
 0x100   : > { %1165 = vlog2.f32 %v833_v49 }
 0x101   : > { %1167 = vlog2.f32 %v834_v53 }
 0x102   : > { %1169 = vlog2.f32 %v835_v47 }
 0x109   : > { %v1164_v14 = vpop.eup %1163 }
 0x10a   : > { %v1166_v61 = vpop.eup %1165  ;;  %v837_v15 = vmul.f32 0.6931472, %v1164_v14 }
 0x10b   : > { %v1168_v18 = vpop.eup %1167  ;;  %v839_v22 = vmul.f32 0.6931472, %v1166_v61 }
 0x10c   : > { %v1170_v59 = vpop.eup %1169  ;;  %v841_v13 = vmul.f32 0.6931472, %v1168_v18  ;;  %v845_v23 = vmul.f32 1.442695, %v837_v15 }
 0x10d   : > { %v843_v24 = vmul.f32 0.6931472, %v1170_v59  ;;  %v846_v25 = vmul.f32 1.442695, %v839_v22 }
 0x10e   : > { %v847_v26 = vmul.f32 1.442695, %v841_v13 }
 0x10f   : > { %v848_v27 = vmul.f32 1.442695, %v843_v24  ;;  %v849_v28 = vadd.f32 %v846_v25, %v845_v23 }
 0x111   : > { %v850_v29 = vadd.f32 %v849_v28, %v847_v26 }
 0x113   : > { %v851_v30 = vadd.f32 %v850_v29, %v848_v27 }
 0x115   : > { %v852_v31 = vrot.slane %v851_v30, 4 }
 0x117   : > { %v853_v32 = vadd.f32 %v852_v31, %v851_v30 }
 0x119   : > { %v854_v33 = vrot.slane %v853_v32, 2 }
 0x11b   : > { %v855_v34 = vadd.f32 %v854_v33, %v853_v32 }
 0x11d   : > { %v856_v35 = vrot.slane %v855_v34, 1 }
 0x11f   : > { %v857_v38 = vadd.f32 %v856_v35, %v855_v34 }
 0x121   : > { %v858_v39 = vadd.f32 %v857_v38, %v827_v36 }
 0x123   : > { %859 = vst [vmem:[%s1522_s10] sm:$0x1] %v858_v39 }
 0x124 PF: > { %s29_s18 = sadd.s32 1, %s1229_s18  }
 0x125   : > { %p26_p2 = scmp.ge.s32.totalorder %s29_s18, 7  }
 0x127   :  { %28 = sbr.rel (!%p26_p2) target bundleno = 17 (0x11), region = 131 }
 0x12e   :  { %912 = vsyncpa [#allocation5], 1 }
 0x12f   :  { %914 = vsyncpa [#allocation5 + $0x1], 1 }
 0x130   :  { %915 = vsyncpa [#allocation7], 1 }

// kernel: _lambda_.9
= control target key start
LH: loop header
LB: loop body
LE: loop exit
PB: predicated region body
PF: predicated region fallthrough
CT: control target
= control target key end

     0   :  { %s1512_s0 = inlined_call_operand.vmem [shape: s32[11,6], index: 0, kind: input, shape index: {}]   ;;  %s1513_s1 = inlined_call_operand.vmem [shape: f32[9], index: 1, kind: input, shape index: {}]   ;;  %s1514_s2 = inlined_call_operand.vmem [shape: f32[3], index: 2, kind: input, shape index: {}]   ;;  %s1515_s3 = inlined_call_operand.vmem [shape: f32[23,32,128], index: 3, kind: input, shape index: {}, may-alias: {3,5,7}]   ;;  %s1516_s4 = inlined_call_operand.vmem [shape: bf16[72,32,128], index: 4, kind: input, shape index: {}, may-alias: {4,6}]   ;;  %s1517_s5 = inlined_call_operand.vmem [shape: f32[23,32,128], index: 5, kind: input, shape index: {}, may-alias: {3,5,7}]   ;;  %s1518_s6 = inlined_call_operand.vmem [shape: bf16[72,32,128], index: 6, kind: input, shape index: {}, may-alias: {4,6}]   ;;  %s1519_s7 = inlined_call_operand.vmem [shape: f32[23,32,128], index: 7, kind: input, shape index: {}, may-alias: {3,5,7}]   ;;  %s1520_s8 = inlined_call_operand.vmem [shape: f32[11,32,128], index: 8, kind: output, shape index: {0}]   ;;  %s1521_s9 = inlined_call_operand.vmem [shape: f32[5,32,128], index: 9, kind: output, shape index: {1}]   ;;  %s1522_s10 = inlined_call_operand.vmem [shape: f32[1,128], index: 10, kind: output, shape index: {2}]  }
   0x1   :  { %s16_s15 = sshll.u32 %s1512_s0, 4  ;;  %s17_s15 = int_to_ptr.vmem [resolvable:$true] %s16_s15 }
   0x2   :  { %s1171_s16 = scalar_lea.vmem %s17_s15, 256  ;;  %p1176_p1 = scmp.lt.s32.totalorder %s17_s15, %s17_s15 }
   0x3   :  { %p1172_p0 = scmp.ne.s32.totalorder %s17_s15, %s1171_s16  ;;  %p1177_p2 = scmp.lt.s32.totalorder %s1171_s16, %s1171_s16 }
   0x5   :  { %p1178_p3 = por %p1177_p2, %p1176_p1 }
   0x7   :  { %p1179_p4 = pnand %p1178_p3, %p1172_p0 }
   0x9   :  { %1182 = shalt.err (!%p1179_p4)  }
   0xa   :  { %s1231_s17 = smov [#allocation3]  }
   0xb   :  { %19 = dma.vmem_to_smem %s17_s15, 256, %s1231_s17, [#allocation2] }
   0xc   :  { %1217 = dma.done.wait [#allocation2], 256 }
   0xd   :  { %1218 = vsyncadd [#allocation2], 4294967040 }
   0xe   :  { %21 = sfence }
   0xf   :  { %22 = vsyncpa [#allocation5], 0 }
  0x10   :  { %23 = vsyncpa [#allocation7], 0  ;;  %s1295_s18 = smov 0  }
  0x11 LB: > { %s1301_s0 = sadd.s32 4294967295, %s1229_s18   ;;  %p1047_p5 = scmp.ge.s32.totalorder %s1229_s18, 1  ;;  %s1229_s18 = sphi %s1295_s18, %s29_s18  }
  0x12   : > { %p313_p6 = scmp.lt.s32.totalorder %s1229_s18, 12  ;;  %s326_s21 = sshll.u32 %s1513_s1, 4  ;;  %s327_s21 = int_to_ptr.vmem [resolvable:$true] %s326_s21 }
  0x13   : > { %p1523_p9 = scmp.eq.s32.totalorder %s1301_s0, 0  ;;  %s337_s25 = sshll.u32 %s1514_s2, 4  ;;  %s338_s25 = int_to_ptr.vmem [resolvable:$true] %s337_s25 }
  0x14   : > { %p1309_p8 = pnand %p1047_p5, %p313_p6  ;;  %s1183_s27 = scalar_lea.vmem %s327_s21, 16 }
  0x15   : > { %p1184_p12 = scmp.ne.s32.totalorder %s327_s21, %s1183_s27  ;;  %p1191_p2 = scmp.lt.s32.totalorder %s327_s21, %s327_s21 }
  0x16   : > { %s1525_s22 = scalar_select %p1309_p8, 1, 0 }
  0x17   : > { %p1138_p10 = pneg %p1309_p8  ;;  %p1192_p3 = scmp.lt.s32.totalorder %s1183_s27, %s1183_s27 }
  0x19   : > { %p1321_p11 = pnand %p1523_p9, %p1138_p10  ;;  %p1193_p4 = por %p1192_p3, %p1191_p2 }
  0x1b   : > { %p1185_p13 = pneg %p1321_p11 }
  0x1d   : > { %p1186_p0 = pnand %p1185_p13, %p1184_p12 }
  0x1f   : > { %p1187_p1 = pneg %p1186_p0 }
  0x21   : > { %p1194_p5 = pnand %p1193_p4, %p1187_p1 }
  0x23   : > { %1197 = shalt.err (!%p1194_p5)
}
  0x24   : > { %s1232_s28 = smov [#allocation4]   ;;  %s1198_s29 = scalar_lea.vmem %s338_s25, 16 }
  0x25   : > { %1141 = dma.vmem_to_smem (!%p1321_p11), %s327_s21, 16, %s1232_s28, [#allocation5]  }
  0x26   : > { %p1199_p6 = scmp.ne.s32.totalorder %s338_s25, %s1198_s29  ;;  %p1206_p9 = scmp.lt.s32.totalorder %s338_s25, %s338_s25 }
  0x27   : > { %p1207_p8 = scmp.lt.s32.totalorder %s1198_s29, %s1198_s29 }
  0x28   : > { %p1201_p10 = pnand %p1199_p6, %p1185_p13 }
  0x29   : > { %p1208_p12 = por %p1207_p8, %p1206_p9 }
  0x2a   : > { %p1202_p7 = pneg %p1201_p10 }
  0x2c   : > { %p1209_p0 = pnand %p1208_p12, %p1202_p7 }
  0x2e   : > { %1212 = shalt.err (!%p1209_p0)
}
  0x2f   : > { %s1233_s30 = smov [#allocation6]   ;;  %p1527_p1 = scmp.ne.s32.totalorder %s1525_s22, 0 }
  0x30   : > { %1144 = dma.vmem_to_smem (!%p1321_p11), %s338_s25, 16, %s1233_s30, [#allocation7]  }
  0x31   : > { %418 = sbr.rel (%p1527_p1) target bundleno = 292 (0x124), region = 48  ;;  %p1528_p2 = scmp.eq.s32.totalorder (!%p1527_p1), %s1301_s0, 0 }
  0x38   : > { %1220 = dma.done.wait (%p1528_p2), [#allocation5], 16   ;;  %p1529_p3 = pmov %p1528_p2 }
  0x39   : > { %p1530_p13 = pmov %p1528_p2 }
  0x3a   : > { %1222 = vsyncadd (%p1529_p3), [#allocation5], 4294967280 }
  0x3b   : > { %1224 = dma.done.wait (%p1530_p13), [#allocation7], 16   ;;  %p1531_p8 = pmov %p1528_p2 }
  0x3d   : > { %1226 = vsyncadd (%p1531_p8), [#allocation7], 4294967280 }
  0x3e   : > { %428 = sfence }
  0x3f   : > { %s1342_s11 = sshll.u32 %s1301_s0, 7  ;;  %s1077_s27 = sld [smem:[#allocation4 + $0x4]]  ;;  %v610_v36 = vlaneseq }
  0x40   : > { %s502_s12 = sld [smem:[#allocation3 + %s1342_s11]]  ;;  %s511_s13 = sadd.s32 1, %s1342_s11 }
  0x41   : > { %s512_s14 = sld [smem:[#allocation3 + %s511_s13]]  ;;  %s522_s15 = sadd.s32 2, %s1342_s11  ;;  %v1366_v37 = vand.u32 127, %v610_v36  ;;  %v1368_v41 = vshrl.u32 %v610_v36, 7 }
  0x42   : > { %s523_s16 = sld [smem:[#allocation3 + %s522_s15]]  ;;  %s533_s17 = sadd.s32 3, %s1342_s11 }
  0x43   : > { %s534_s19 = sld [smem:[#allocation3 + %s533_s17]]  ;;  %s560_s20 = sadd.s32 5, %s1342_s11  ;;  %vm621_vm0 = vcmp.ge.s32.totalorder %v1366_v37, 1  ;;  %vm634_vm1 = vcmp.le.s32.totalorder %v1366_v37, 126  ;;  %v616_v58 = vadd.s32 24, %v1368_v41  ;;  %v1391_v59 = vadd.s32 8, %v1368_v41 }
  0x44   : > { %s561_s21 = sld [smem:[#allocation3 + %s560_s20]]  ;;  %s544_s17 = sadd.s32 4, %s1342_s11  ;;  %v615_v63 = vadd.s32 16, %v1368_v41  ;;  %vm733_vm2 = vcmp.lt.s32.totalorder %v1368_v41, 1  ;;  %vm754_vm3 = vcmp.lt.s32.totalorder %v1368_v41, 7 }
  0x45   : > { %s1080_s28 = sld [smem:[#allocation4 + $0x7]]  ;;  %s1075_s13 = sld [smem:[#allocation4 + $0x2]]  ;;  %v680_v39 = vstv %s1077_s27 }
  0x46   : > { %p503_p7 = scmp.lt.s32.totalorder %s502_s12, 22  ;;  %s1383_s11 = sld [smem:[#allocation3 + %s544_s17]] }
  0x47   : > { %p513_p9 = scmp.lt.s32.totalorder %s512_s14, 71  ;;  %p554_p10 = scmp.lt.s32.totalorder %s1301_s0, 10 }
  0x48   : > { %s1542_s12 = smov (!%p503_p7, %s502_s12), 22  ;;  %p524_p11 = scmp.lt.s32.totalorder %s523_s16, 22 }
  0x49   : > { %s1544_s14 = smov (!%p513_p9, %s512_s14), 71  ;;  %s1101_s22 = sshll.u32 %s1542_s12, 5 }
  0x4a   : > { %s507_s25 = scalar_lea.vmem %s1515_s3, %s1101_s22  ;;  %s1102_s26 = sshll.u32 %s1544_s14, 4 }
  0x4b   : > { %s517_s29 = scalar_lea.vmem %s1516_s4, %s1102_s26  ;;  %p535_p4 = scmp.lt.s32.totalorder %s534_s19, 71  ;;  %v588_v3 = vld [vmem:[%s507_s25 + $0x10] sm:$0xff]  ;;  %v586_v7 = vld [vmem:[%s507_s25] sm:$0xff]  ;;  %v589_v8 = vld [vmem:[%s507_s25 + $0x18] sm:$0xff]  ;;  %v706_v40 = vstv %s1080_s28 }
  0x4c   : > { %s1546_s16 = smov (!%p524_p11, %s523_s16), 22  ;;  %v1124_v0 = vld [vmem:[%s517_s29 + $0x8] sm:$0xff]   ;;  %v1109_v1 = vld [vmem:[%s517_s29] sm:$0xff]   ;;  %p562_p5 = scmp.lt.s32.totalorder %s561_s21, 4  ;;  %v1373_v45 = vstv %s1075_s13 }
  0x4d   : > { %s1548_s19 = smov (!%p535_p4, %s534_s19), 71  ;;  %v1114_v2 = vunpack.c.l.bf16 %v1124_v0  ;;  %v1110_v4 = vunpack.c.l.bf16 %v1109_v1  ;;  %v1115_v5 = vunpack.c.h.bf16 %v1124_v0  ;;  %v1111_v6 = vunpack.c.h.bf16 %v1109_v1  ;;  %s1103_s30 = sshll.u32 %s1546_s16, 5  ;;  %v587_v9 = vld [vmem:[%s507_s25 + $0x8] sm:$0xff] }
  0x4e   : > { %s528_s14 = scalar_lea.vmem %s1517_s5, %s1103_s30  ;;  %s1104_s15 = sshll.u32 %s1548_s19, 4 }
  0x4f   : > { %s539_s22 = scalar_lea.vmem %s1518_s6, %s1104_s15  ;;  %v596_v10 = vld [vmem:[%s528_s14 + $0x10] sm:$0xff]  ;;  %v594_v11 = vld [vmem:[%s528_s14] sm:$0xff]  ;;  %v597_v12 = vld [vmem:[%s528_s14 + $0x18] sm:$0xff]  ;;  %s1550_s21 = smov (!%p562_p5, %s561_s21), 4  ;;  %v592_v14 = vmul.f32 %v1114_v2, %v588_v3  ;;  %v590_v16 = vmul.f32 %v1110_v4, %v586_v7  ;;  %v593_v17 = vmul.f32 %v1115_v5, %v589_v8  ;;  %v591_v18 = vmul.f32 %v1111_v6, %v587_v9 }
  0x50   : > { %v1125_v13 = vld [vmem:[%s539_s22 + $0x8] sm:$0xff]   ;;  %v1117_v15 = vld [vmem:[%s539_s22] sm:$0xff]   ;;  %s1107_s16 = sshll.u32 %s1550_s21, 5  ;;  %s1234_s25 = smov 1   ;;  %v617_v9 = vand.u32 15, %v1368_v41 }
  0x51   : > { %v595_v19 = vld [vmem:[%s528_s14 + $0x8] sm:$0xff]  ;;  %v1122_v20 = vunpack.c.l.bf16 %v1125_v13  ;;  %v1118_v21 = vunpack.c.l.bf16 %v1117_v15  ;;  %v1123_v22 = vunpack.c.h.bf16 %v1125_v13  ;;  %v1119_v23 = vunpack.c.h.bf16 %v1117_v15  ;;  %s1364_s24 = scalar_lea.vmem %s1521_s9, %s1107_s16  ;;  %s1235_s21 = smov 127  }
  0x52   : > { %s1074_s26 = sld [smem:[#allocation4 + $0x1]]  ;;  %s647_s29 = sld [smem:[#allocation4]]  ;;  %v618_v13 = vand.u32 15, %v1391_v59  ;;  %vm1414_vm4 = vcmp.ge.s32.totalorder %v617_v9, 1 }
  0x53   : > { %v600_v24 = vmul.f32 %v1122_v20, %v596_v10  ;;  %v598_v25 = vmul.f32 %v1118_v21, %v594_v11  ;;  %v601_v26 = vmul.f32 %v1123_v22, %v597_v12  ;;  %v599_v27 = vmul.f32 %v1119_v23, %v595_v19  ;;  %s1076_s30 = sld [smem:[#allocation4 + $0x3]]  ;;  %s1079_s12 = sld [smem:[#allocation4 + $0x6]] }
  0x54   : > { %s1078_s14 = sld [smem:[#allocation4 + $0x5]]  ;;  %s1081_s15 = sld [smem:[#allocation4 + $0x8]]  ;;  %v620_v12 = vand.u32 15, %v616_v58  ;;  %vm1461_vm7 = vcmp.le.s32.totalorder %v618_v13, 14 }
  0x55   : > { %v604_v28 = vadd.f32 %v600_v24, %v592_v14  ;;  %v602_v29 = vadd.f32 %v598_v25, %v590_v16  ;;  %v605_v30 = vadd.f32 %v601_v26, %v593_v17  ;;  %v603_v31 = vadd.f32 %v599_v27, %v591_v18  ;;  %p546_p6 = scmp.lt.s32.totalorder %s1383_s11, 22  ;;  %s1445_s22 = sld [smem:[#allocation6]] }
  0x56   : > { %v619_v17 = vand.u32 15, %v615_v63  ;;  %vm1420_vm5 = vcmp.le.s32.totalorder %v620_v12, 14  ;;  %p1540_p12 = scmp.ne.s32.totalorder %s1301_s0, 0 }
  0x57   : > { %v608_v32 = vmul.f32 0.5, %v604_v28  ;;  %v606_v33 = vmul.f32 0.5, %v602_v29  ;;  %v609_v34 = vmul.f32 0.5, %v605_v30  ;;  %v607_v35 = vmul.f32 0.5, %v603_v31  ;;  %s1552_s11 = smov (!%p546_p6, %s1383_s11), 22 }
  0x58   : > { %v654_v38 = vstv %s1074_s26  ;;  %v648_v42 = vstv %s647_s29  ;;  %vm1429_vm6 = vcmp.ge.s32.totalorder %v619_v17, 1  ;;  %s1105_s20 = sshll.u32 %s1552_s11, 5 }
  0x59   : > { %626 = vrot.lane.b32.xlu1 %v608_v32, %s1234_s25  ;;  %622 = vrot.lane.b32.xlu0 %v606_v33, %s1234_s25  ;;  %v674_v43 = vstv %s1076_s30  ;;  %v700_v44 = vstv %s1079_s12  ;;  %v657_v46 = vmul.f32 %v654_v38, %v608_v32  ;;  %v1375_v47 = vmul.f32 %v680_v39, %v608_v32  ;;  %s550_s23 = scalar_lea.vmem %s1519_s7, %s1105_s20 }
  0x5a   : > { %v709_v48 = vmul.f32 %v706_v40, %v608_v32  ;;  %v1377_v49 = vstv %s1078_s14  ;;  %v655_v52 = vmul.f32 %v654_v38, %v606_v33  ;;  %v1379_v53 = vmul.f32 %v680_v39, %v606_v33 }
  0x5b   : > { %v707_v54 = vmul.f32 %v706_v40, %v606_v33  ;;  %v1381_v55 = vstv %s1081_s15  ;;  %v658_v60 = vmul.f32 %v654_v38, %v609_v34  ;;  %v1393_v61 = vmul.f32 %v680_v39, %v609_v34 }
  0x5c   : > { %v710_v62 = vmul.f32 %v706_v40, %v609_v34  ;;  %v656_v1 = vmul.f32 %v654_v38, %v607_v35  ;;  %v682_v2 = vmul.f32 %v680_v39, %v607_v35  ;;  %v708_v3 = vmul.f32 %v706_v40, %v607_v35 }
  0x5d   : > { %628 = vrot.lane.b32.xlu1 %v609_v34, %s1234_s25  ;;  %624 = vrot.lane.b32.xlu0 %v607_v35, %s1234_s25  ;;  %s555_s25 = scalar_select %p554_p10, %s1301_s0, 10 }
  0x5f   : > { %s1106_s26 = sshll.u32 %s555_s25, 5 }
  0x60   : > { %s558_s29 = scalar_lea.vmem %s1520_s8, %s1106_s26 }
  0x61   : > { %637 = vrot.lane.b32.xlu1 %v607_v35, %s1235_s21  ;;  %635 = vrot.lane.b32.xlu0 %v606_v33, %s1235_s21 }
  0x65   : > { %641 = vrot.lane.b32.xlu1 %v609_v34, %s1235_s21  ;;  %639 = vrot.lane.b32.xlu0 %v608_v32, %s1235_s21  ;;  %s784_s21 = smul.f32 -0.84779125, %s1445_s22 }
  0x67   : > { %v785_v41 = vstv %s784_s21 }
  0xcb   : > { %v627_v50 = vpop.permute.xlu1 %626  ;;  %v623_v51 = vpop.permute.xlu0 %622 }
  0xcc   : > { %v632_v56 = vsel %vm621_vm0, %v627_v50, 0.0  ;;  %v630_v57 = vsel %vm621_vm0, %v623_v51, 0.0 }
  0xcd   : > { %v651_v0 = vmul.f32 %v648_v42, %v632_v56  ;;  %v703_v4 = vmul.f32 %v700_v44, %v632_v56  ;;  %v649_v5 = vmul.f32 %v648_v42, %v630_v57  ;;  %v701_v6 = vmul.f32 %v700_v44, %v630_v57 }
  0xce   : > { %v1403_v14 = vmul.f32 %v674_v43, %v632_v56  ;;  %v675_v15 = vmul.f32 %v674_v43, %v630_v57 }
  0xcf   : > { %v629_v7 = vpop.permute.xlu1 %628  ;;  %v625_v8 = vpop.permute.xlu0 %624  ;;  %v661_v18 = vadd.f32 %v657_v46, %v651_v0  ;;  %v713_v22 = vadd.f32 %v709_v48, %v703_v4  ;;  %v659_v23 = vadd.f32 %v655_v52, %v649_v5  ;;  %v711_v24 = vadd.f32 %v707_v54, %v701_v6 }
  0xd0   : > { %v633_v10 = vsel %vm621_vm0, %v629_v7, 0.0  ;;  %v631_v11 = vsel %vm621_vm0, %v625_v8, 0.0 }
  0xd1   : > { %v650_v16 = vmul.f32 %v648_v42, %v631_v11  ;;  %v652_v19 = vmul.f32 %v648_v42, %v633_v10  ;;  %v704_v20 = vmul.f32 %v700_v44, %v633_v10  ;;  %v702_v21 = vmul.f32 %v700_v44, %v631_v11 }
  0xd2   : > { %v676_v25 = vmul.f32 %v674_v43, %v631_v11  ;;  %v678_v28 = vmul.f32 %v674_v43, %v633_v10 }
  0xd3   : > { %v638_v26 = vpop.permute.xlu1 %637  ;;  %v636_v27 = vpop.permute.xlu0 %635  ;;  %v660_v29 = vadd.f32 %v656_v1, %v650_v16  ;;  %v712_v32 = vadd.f32 %v708_v3, %v702_v21  ;;  %v662_v38 = vadd.f32 %v658_v60, %v652_v19  ;;  %v714_v39 = vadd.f32 %v710_v62, %v704_v20 }
  0xd4   : > { %v644_v30 = vsel %vm634_vm1, %v638_v26, 0.0  ;;  %v643_v31 = vsel %vm634_vm1, %v636_v27, 0.0  ;;  %v686_v44 = vadd.f32 %v682_v2, %v676_v25  ;;  %v687_v20 = vadd.f32 %v1375_v47, %v1403_v14  ;;  %v768_v25 = vld [vmem:[%s550_s23 + $0x8] sm:$0xff]  ;;  %v770_v26 = vld [vmem:[%s550_s23 + $0x18] sm:$0xff] }
  0xd5   : > { %v666_v33 = vmul.f32 %v1373_v45, %v644_v30  ;;  %v718_v34 = vmul.f32 %v1381_v55, %v644_v30  ;;  %v665_v35 = vmul.f32 %v1373_v45, %v643_v31  ;;  %v692_v40 = vmul.f32 %v1377_v49, %v644_v30 }
  0xd6   : > { %v717_v42 = vmul.f32 %v1381_v55, %v643_v31  ;;  %v691_v56 = vmul.f32 %v1377_v49, %v643_v31  ;;  %v688_v21 = vadd.f32 %v1393_v61, %v678_v28 }
  0xd7   : > { %v670_v46 = vadd.f32 %v666_v33, %v660_v29  ;;  %v722_v48 = vadd.f32 %v718_v34, %v712_v32  ;;  %v669_v50 = vadd.f32 %v665_v35, %v659_v23  ;;  %v642_v51 = vpop.permute.xlu1 %641  ;;  %v640_v54 = vpop.permute.xlu0 %639  ;;  %v696_v2 = vadd.f32 %v692_v40, %v686_v44  ;;  %v769_v29 = vld [vmem:[%s550_s23 + $0x10] sm:$0xff] }
  0xd8   : > { %v721_v57 = vadd.f32 %v717_v42, %v711_v24  ;;  %v646_v58 = vsel %vm634_vm1, %v642_v51, 0.0  ;;  %v645_v60 = vsel %vm634_vm1, %v640_v54, 0.0  ;;  %v774_v40 = vmul.f32 0.84779125, %v770_v26 }
  0xd9   : > { %v730_v62 = vrot.slane %v670_v46, 7  ;;  %v751_v63 = vrot.slane %v722_v48, 1  ;;  %v729_v0 = vrot.slane %v669_v50, 7  ;;  %v668_v1 = vmul.f32 %v1373_v45, %v646_v58 }
  0xda   : > { %v750_v3 = vrot.slane %v721_v57, 1  ;;  %v720_v4 = vmul.f32 %v1381_v55, %v646_v58  ;;  %v667_v5 = vmul.f32 %v1373_v45, %v645_v60  ;;  %v694_v37 = vmul.f32 %v1377_v49, %v646_v58 }
  0xdb   : > { %v736_v6 = vsel %vm733_vm2, %v729_v0, %v730_v62  ;;  %v672_v7 = vadd.f32 %v668_v1, %v662_v38  ;;  %v719_v8 = vmul.f32 %v1381_v55, %v645_v60  ;;  %v693_v12 = vmul.f32 %v1377_v49, %v645_v60 }
  0xdc   : > { %v743_v9 = vadd.f32 %v736_v6, %v696_v2  ;;  %v757_v10 = vsel %vm754_vm3, %v750_v3, %v751_v63  ;;  %v724_v11 = vadd.f32 %v720_v4, %v714_v39  ;;  %v685_v45 = vadd.f32 %v1379_v53, %v675_v15  ;;  %v767_v15 = vld [vmem:[%s550_s23] sm:$0xff] }
  0xdd   : > { %v732_v16 = vrot.slane %v672_v7, 7  ;;  %v671_v17 = vadd.f32 %v667_v5, %v661_v18  ;;  %v723_v19 = vadd.f32 %v719_v8, %v713_v22  ;;  %v698_v18 = vadd.f32 %v694_v37, %v688_v21 }
  0xde   : > { %v753_v55 = vrot.slane %v724_v11, 1  ;;  %v695_v53 = vadd.f32 %v691_v56, %v685_v45  ;;  %v697_v13 = vadd.f32 %v693_v12, %v687_v20  ;;  %v771_v34 = vmul.f32 0.84779125, %v767_v15 }
  0xdf   : > { %v737_v47 = vsel %vm733_vm2, %v732_v16, %v729_v0  ;;  %v731_v14 = vrot.slane %v671_v17, 7  ;;  %v752_v61 = vrot.slane %v723_v19, 1  ;;  %v772_v39 = vmul.f32 0.84779125, %v768_v25 }
  0xe0   : > { %v738_v22 = vsel %vm1414_vm4, %v737_v47, 0.0  ;;  %v758_v59 = vsel %vm754_vm3, %v753_v55, %v750_v3  ;;  %v773_v46 = vmul.f32 0.84779125, %v769_v29  ;;  %v1236_v1 = vmov (!%p1540_p12), 0.0  }
  0xe1   : > { %v742_v23 = vadd.f32 %v738_v22, %v695_v53  ;;  %v762_v24 = vsel %vm1420_vm5, %v758_v59, 0.0  ;;  %v734_v27 = vsel %vm733_vm2, %v731_v14, %v732_v16  ;;  %v735_v28 = vsel %vm733_vm2, %v730_v62, %v731_v14  ;;  %798 = vst [vmem:[%s1522_s10] sm:$0x1] (!%p1540_p12), %v1236_v1 }
  0xe2   : > { %v740_v30 = vsel %vm1429_vm6, %v735_v28, 0.0  ;;  %v745_v31 = vadd.f32 %v734_v27, %v698_v18  ;;  %v755_v32 = vsel %vm754_vm3, %v752_v61, %v753_v55  ;;  %v756_v33 = vsel %vm754_vm3, %v751_v63, %v752_v61 }
  0xe3   : > { %v763_v35 = vadd.f32 %v757_v10, %v742_v23  ;;  %v744_v36 = vadd.f32 %v740_v30, %v697_v13  ;;  %v760_v38 = vsel %vm1461_vm7, %v756_v33, 0.0 }
  0xe4   : > { %v764_v42 = vadd.f32 %v760_v38, %v743_v9  ;;  %v766_v43 = vadd.f32 %v762_v24, %v745_v31 }
  0xe5   : > { %v775_v44 = vmul.f32 -0.84779125, %v763_v35  ;;  %v765_v48 = vadd.f32 %v755_v32, %v744_v36 }
  0xe6   : > { %v776_v50 = vmul.f32 -0.84779125, %v764_v42  ;;  %v778_v51 = vmul.f32 -0.84779125, %v766_v43 }
  0xe7   : > { %v779_v52 = vadd.f32 %v775_v44, %v771_v34  ;;  %v777_v54 = vmul.f32 -0.84779125, %v765_v48  ;;  %797 = sbr.rel (%p1540_p12) target bundleno = 238 (0xee), region = 60 }
  0xe8   : > { %v780_v56 = vadd.f32 %v776_v50, %v772_v39  ;;  %v782_v57 = vadd.f32 %v778_v51, %v774_v40 }
  0xe9   : > { %v781_v58 = vadd.f32 %v777_v54, %v773_v46  ;;  %v786_v60 = vadd.f32 %v785_v41, %v779_v52 }
  0xea   : > { %v787_v62 = vadd.f32 %v785_v41, %v780_v56  ;;  %v789_v63 = vadd.f32 %v785_v41, %v782_v57 }
  0xeb   : > { %v788_v0 = vadd.f32 %v785_v41, %v781_v58  ;;  %790 = vst [vmem:[%s558_s29] sm:$0xff] %v786_v60 }
  0xec   : > { %791 = vst [vmem:[%s558_s29 + $0x8] sm:$0xff] %v787_v62  ;;  %793 = vst [vmem:[%s558_s29 + $0x18] sm:$0xff] %v789_v63 }
  0xed   : > { %792 = vst [vmem:[%s558_s29 + $0x10] sm:$0xff] %v788_v0 }
  0xee PF: > { %p1083_p0 = scmp.ge.s32.totalorder %s1301_s0, 5 }
  0xef   : > { %s1084_s13 = sld [smem:[#allocation6 + $0x1]] (!%p1083_p0)  ;;  %s1085_s14 = sld [smem:[#allocation6 + $0x2]] (!%p1083_p0) }
  0xf0   : > { %802 = sbr.rel (%p1083_p0) target bundleno = 292 (0x124), region = 64  ;;  %p1086_p1 = scmp.ge.s32.totalorder (!%p1083_p0), %s1301_s0, 4 }
  0xf5   : > { %v804_v2 = vstv (!%p1083_p0), %s1084_s13  ;;  %v814_v7 = vstv (!%p1083_p0), %s1085_s14 }
  0xf6   : > { %v805_v3 = vmul.f32 (!%p1083_p0), %v804_v2, %v786_v60  ;;  %v806_v4 = vmul.f32 (!%p1083_p0), %v804_v2, %v787_v62  ;;  %v807_v5 = vmul.f32 (!%p1083_p0), %v804_v2, %v788_v0  ;;  %v808_v6 = vmul.f32 (!%p1083_p0), %v804_v2, %v789_v63 }
  0xf7   : > { %826 = sbr.rel (%p1086_p1) target bundleno = 292 (0x124), region = 68  ;;  %v827_v36 = vld [vmem:[%s1522_s10] sm:$0x1] (!%p1086_p1) }
  0xf8   : > { %v1126_v37 = vround.rtne.f32 %v805_v3  ;;  %v1127_v8 = vround.rtne.f32 %v806_v4  ;;  %v1128_v9 = vround.rtne.f32 %v807_v5  ;;  %v1129_v10 = vround.rtne.f32 %v808_v6 }
  0xfa   : > { %v815_v11 = vmul.f32 %v1126_v37, %v814_v7  ;;  %v816_v12 = vmul.f32 %v1127_v8, %v814_v7  ;;  %v817_v45 = vmul.f32 %v1128_v9, %v814_v7  ;;  %v818_v16 = vmul.f32 %v1129_v10, %v814_v7 }
  0xfb   : > { %v828_v17 = vand.u32 (!%p1086_p1), 2147483647, %v1126_v37  ;;  %v829_v19 = vand.u32 (!%p1086_p1), 2147483647, %v1127_v8  ;;  %v830_v20 = vand.u32 (!%p1086_p1), 2147483647, %v1128_v9 }
  0xfc   : > { %819 = vst [vmem:[%s1364_s24] sm:$0xff] %v815_v11  ;;  %820 = vst [vmem:[%s1364_s24 + $0x8] sm:$0xff] %v816_v12  ;;  %v831_v21 = vand.u32 (!%p1086_p1), 2147483647, %v1129_v10 }
  0xfd   : > { %821 = vst [vmem:[%s1364_s24 + $0x10] sm:$0xff] %v817_v45  ;;  %822 = vst [vmem:[%s1364_s24 + $0x18] sm:$0xff] %v818_v16  ;;  %v832_v55 = vadd.f32 (!%p1086_p1), 1.0, %v828_v17  ;;  %v833_v49 = vadd.f32 (!%p1086_p1), 1.0, %v829_v19  ;;  %v834_v53 = vadd.f32 (!%p1086_p1), 1.0, %v830_v20 }
  0xfe   : > { %v835_v47 = vadd.f32 1.0, %v831_v21 }
  0xff   : > { %1163 = vlog2.f32 %v832_v55 }
 0x100   : > { %1165 = vlog2.f32 %v833_v49 }
 0x101   : > { %1167 = vlog2.f32 %v834_v53 }
 0x102   : > { %1169 = vlog2.f32 %v835_v47 }
 0x109   : > { %v1164_v14 = vpop.eup %1163 }
 0x10a   : > { %v1166_v61 = vpop.eup %1165  ;;  %v837_v15 = vmul.f32 0.6931472, %v1164_v14 }
 0x10b   : > { %v1168_v18 = vpop.eup %1167  ;;  %v839_v22 = vmul.f32 0.6931472, %v1166_v61 }
 0x10c   : > { %v1170_v59 = vpop.eup %1169  ;;  %v841_v13 = vmul.f32 0.6931472, %v1168_v18  ;;  %v845_v23 = vmul.f32 1.442695, %v837_v15 }
 0x10d   : > { %v843_v24 = vmul.f32 0.6931472, %v1170_v59  ;;  %v846_v25 = vmul.f32 1.442695, %v839_v22 }
 0x10e   : > { %v847_v26 = vmul.f32 1.442695, %v841_v13 }
 0x10f   : > { %v848_v27 = vmul.f32 1.442695, %v843_v24  ;;  %v849_v28 = vadd.f32 %v846_v25, %v845_v23 }
 0x111   : > { %v850_v29 = vadd.f32 %v849_v28, %v847_v26 }
 0x113   : > { %v851_v30 = vadd.f32 %v850_v29, %v848_v27 }
 0x115   : > { %v852_v31 = vrot.slane %v851_v30, 4 }
 0x117   : > { %v853_v32 = vadd.f32 %v852_v31, %v851_v30 }
 0x119   : > { %v854_v33 = vrot.slane %v853_v32, 2 }
 0x11b   : > { %v855_v34 = vadd.f32 %v854_v33, %v853_v32 }
 0x11d   : > { %v856_v35 = vrot.slane %v855_v34, 1 }
 0x11f   : > { %v857_v38 = vadd.f32 %v856_v35, %v855_v34 }
 0x121   : > { %v858_v39 = vadd.f32 %v857_v38, %v827_v36 }
 0x123   : > { %859 = vst [vmem:[%s1522_s10] sm:$0x1] %v858_v39 }
 0x124 PF: > { %s29_s18 = sadd.s32 1, %s1229_s18  }
 0x125   : > { %p26_p2 = scmp.ge.s32.totalorder %s29_s18, 13  }
 0x127   :  { %28 = sbr.rel (!%p26_p2) target bundleno = 17 (0x11), region = 131 }
 0x12e   :  { %912 = vsyncpa [#allocation5], 1 }
 0x12f   :  { %914 = vsyncpa [#allocation5 + $0x1], 1 }
 0x130   :  { %915 = vsyncpa [#allocation7], 1 }

// kernel: _lambda_.12
= control target key start
LH: loop header
LB: loop body
LE: loop exit
PB: predicated region body
PF: predicated region fallthrough
CT: control target
= control target key end

     0   :  { %s1258_s0 = inlined_call_operand.vmem [shape: s32[5,6], index: 0, kind: input, shape index: {}]   ;;  %s1259_s1 = inlined_call_operand.vmem [shape: f32[9], index: 1, kind: input, shape index: {}]   ;;  %s1260_s2 = inlined_call_operand.vmem [shape: f32[3], index: 2, kind: input, shape index: {}]   ;;  %s1261_s3 = inlined_call_operand.vmem [shape: f32[5,32,128], index: 3, kind: input, shape index: {}, may-alias: {3,5}]   ;;  %s1262_s4 = inlined_call_operand.vmem [shape: bf16[72,32,128], index: 4, kind: input, shape index: {}, may-alias: {4,6}]   ;;  %s1263_s5 = inlined_call_operand.vmem [shape: f32[5,32,128], index: 5, kind: input, shape index: {}, may-alias: {3,5}]   ;;  %s1264_s6 = inlined_call_operand.vmem [shape: bf16[72,32,128], index: 6, kind: input, shape index: {}, may-alias: {4,6}]   ;;  %s1265_s7 = inlined_call_operand.vmem [shape: f32[11,32,128], index: 7, kind: input, shape index: {}]   ;;  %s1266_s8 = inlined_call_operand.vmem [shape: f32[5,32,128], index: 8, kind: output, shape index: {}]  }
   0x1   :  { %s13_s29 = sshll.u32 %s1258_s0, 4  ;;  %s14_s29 = int_to_ptr.vmem [resolvable:$true] %s13_s29 }
   0x2   :  { %s952_s30 = scalar_lea.vmem %s14_s29, 128  ;;  %p957_p1 = scmp.lt.s32.totalorder %s14_s29, %s14_s29 }
   0x3   :  { %p953_p0 = scmp.ne.s32.totalorder %s14_s29, %s952_s30  ;;  %p958_p2 = scmp.lt.s32.totalorder %s952_s30, %s952_s30 }
   0x5   :  { %p959_p3 = por %p958_p2, %p957_p1 }
   0x7   :  { %p960_p4 = pnand %p959_p3, %p953_p0 }
   0x9   :  { %963 = shalt.err (!%p960_p4)  }
   0xa   :  { %s1012_s9 = smov [#allocation3]  }
   0xb   :  { %16 = dma.vmem_to_smem %s14_s29, 128, %s1012_s9, [#allocation2] }
   0xc   :  { %998 = dma.done.wait [#allocation2], 128 }
   0xd   :  { %999 = vsyncadd [#allocation2], 4294967168 }
   0xe   :  { %18 = sfence }
   0xf   :  { %19 = vsyncpa [#allocation5], 0 }
  0x10   :  { %20 = vsyncpa [#allocation7], 0  ;;  %s1065_s10 = smov 0  }
  0x11 LB: > { %s1071_s0 = sadd.s32 4294967295, %s1010_s10   ;;  %p852_p5 = scmp.ge.s32.totalorder %s1010_s10, 1  ;;  %s1010_s10 = sphi %s1065_s10, %s26_s10  }
  0x12   : > { %p257_p6 = scmp.lt.s32.totalorder %s1010_s10, 6  ;;  %s270_s13 = sshll.u32 %s1259_s1, 4  ;;  %s271_s13 = int_to_ptr.vmem [resolvable:$true] %s270_s13 }
  0x13   : > { %p1267_p8 = scmp.eq.s32.totalorder %s1071_s0, 0  ;;  %s281_s17 = sshll.u32 %s1260_s2, 4  ;;  %s282_s17 = int_to_ptr.vmem [resolvable:$true] %s281_s17 }
  0x14   : > { %p1078_p7 = pnand %p852_p5, %p257_p6  ;;  %s964_s19 = scalar_lea.vmem %s271_s13, 16 }
  0x15   : > { %p965_p11 = scmp.ne.s32.totalorder %s271_s13, %s964_s19  ;;  %p972_p1 = scmp.lt.s32.totalorder %s271_s13, %s271_s13 }
  0x16   : > { %s1269_s14 = scalar_select %p1078_p7, 1, 0 }
  0x17   : > { %p928_p9 = pneg %p1078_p7  ;;  %p973_p2 = scmp.lt.s32.totalorder %s964_s19, %s964_s19 }
  0x19   : > { %p1090_p10 = pnand %p1267_p8, %p928_p9  ;;  %p974_p3 = por %p973_p2, %p972_p1 }
  0x1b   : > { %p966_p12 = pneg %p1090_p10 }
  0x1d   : > { %p967_p13 = pnand %p966_p12, %p965_p11 }
  0x1f   : > { %p968_p0 = pneg %p967_p13 }
  0x21   : > { %p975_p4 = pnand %p974_p3, %p968_p0 }
  0x23   : > { %978 = shalt.err (!%p975_p4)
}
  0x24   : > { %s1013_s20 = smov [#allocation4]   ;;  %s979_s21 = scalar_lea.vmem %s282_s17, 16 }
  0x25   : > { %931 = dma.vmem_to_smem (!%p1090_p10), %s271_s13, 16, %s1013_s20, [#allocation5]  }
  0x26   : > { %p980_p5 = scmp.ne.s32.totalorder %s282_s17, %s979_s21  ;;  %p987_p8 = scmp.lt.s32.totalorder %s282_s17, %s282_s17 }
  0x27   : > { %p988_p7 = scmp.lt.s32.totalorder %s979_s21, %s979_s21 }
  0x28   : > { %p982_p6 = pnand %p980_p5, %p966_p12 }
  0x29   : > { %p989_p11 = por %p988_p7, %p987_p8 }
  0x2a   : > { %p983_p9 = pneg %p982_p6 }
  0x2c   : > { %p990_p13 = pnand %p989_p11, %p983_p9 }
  0x2e   : > { %993 = shalt.err (!%p990_p13)
}
  0x2f   : > { %s1014_s22 = smov [#allocation6]   ;;  %p1271_p0 = scmp.ne.s32.totalorder %s1269_s14, 0 }
  0x30   : > { %934 = dma.vmem_to_smem (!%p1090_p10), %s282_s17, 16, %s1014_s22, [#allocation7]  }
  0x31   : > { %362 = sbr.rel (%p1271_p0) target bundleno = 238 (0xee), region = 48  ;;  %p1272_p1 = scmp.eq.s32.totalorder (!%p1271_p0), %s1071_s0, 0 }
  0x38   : > { %1001 = dma.done.wait (%p1272_p1), [#allocation5], 16   ;;  %p1273_p2 = pmov %p1272_p1 }
  0x39   : > { %p1274_p12 = pmov %p1272_p1 }
  0x3a   : > { %1003 = vsyncadd (%p1273_p2), [#allocation5], 4294967280 }
  0x3b   : > { %1005 = dma.done.wait (%p1274_p12), [#allocation7], 16   ;;  %p1275_p7 = pmov %p1272_p1 }
  0x3d   : > { %1007 = vsyncadd (%p1275_p7), [#allocation7], 4294967280 }
  0x3e   : > { %372 = sfence }
  0x3f   : > { %s1111_s23 = sshll.u32 %s1071_s0, 7  ;;  %v531_v36 = vlaneseq  ;;  %s878_s11 = sld [smem:[#allocation4 + $0x3]] }
  0x40   : > { %s434_s24 = sld [smem:[#allocation3 + %s1111_s23]]  ;;  %s443_s25 = sadd.s32 1, %s1111_s23 }
  0x41   : > { %s444_s26 = sld [smem:[#allocation3 + %s443_s25]]  ;;  %s454_s27 = sadd.s32 2, %s1111_s23  ;;  %v1129_v37 = vand.u32 127, %v531_v36  ;;  %v1131_v40 = vshrl.u32 %v531_v36, 7 }
  0x42   : > { %s455_s28 = sld [smem:[#allocation3 + %s454_s27]]  ;;  %s465_s29 = sadd.s32 3, %s1111_s23 }
  0x43   : > { %s466_s30 = sld [smem:[#allocation3 + %s465_s29]]  ;;  %s1015_s27 = smov 1   ;;  %vm542_vm0 = vcmp.ge.s32.totalorder %v1129_v37, 1  ;;  %vm555_vm1 = vcmp.le.s32.totalorder %v1129_v37, 126  ;;  %v537_v58 = vadd.s32 24, %v1131_v40  ;;  %v1154_v59 = vadd.s32 8, %v1131_v40 }
  0x44   : > { %s568_s29 = sld [smem:[#allocation4]]  ;;  %s882_s12 = sld [smem:[#allocation4 + $0x7]]  ;;  %v536_v63 = vadd.s32 16, %v1131_v40  ;;  %vm654_vm2 = vcmp.lt.s32.totalorder %v1131_v40, 1  ;;  %vm675_vm3 = vcmp.lt.s32.totalorder %v1131_v40, 7 }
  0x45   : > { %s880_s15 = sld [smem:[#allocation4 + $0x5]]  ;;  %s883_s16 = sld [smem:[#allocation4 + $0x8]]  ;;  %v595_v43 = vstv %s878_s11 }
  0x46   : > { %p435_p8 = scmp.lt.s32.totalorder %s434_s24, 4  ;;  %s1208_s19 = sld [smem:[#allocation6]] }
  0x47   : > { %p445_p10 = scmp.lt.s32.totalorder %s444_s26, 71  ;;  %p486_p6 = scmp.lt.s32.totalorder %s1071_s0, 4 }
  0x48   : > { %s1285_s24 = smov (!%p435_p8, %s434_s24), 4  ;;  %p456_p3 = scmp.lt.s32.totalorder %s455_s28, 4 }
  0x49   : > { %s1287_s26 = smov (!%p445_p10, %s444_s26), 71  ;;  %s896_s9 = sshll.u32 %s1285_s24, 5 }
  0x4a   : > { %s439_s13 = scalar_lea.vmem %s1261_s3, %s896_s9  ;;  %s897_s14 = sshll.u32 %s1287_s26, 4  ;;  %v569_v41 = vstv %s568_s29  ;;  %v627_v42 = vstv %s882_s12 }
  0x4b   : > { %s449_s17 = scalar_lea.vmem %s1262_s4, %s897_s14  ;;  %p467_p4 = scmp.lt.s32.totalorder %s466_s30, 71  ;;  %v509_v3 = vld [vmem:[%s439_s13 + $0x10] sm:$0xff]  ;;  %v507_v7 = vld [vmem:[%s439_s13] sm:$0xff]  ;;  %v510_v8 = vld [vmem:[%s439_s13 + $0x18] sm:$0xff]  ;;  %v1140_v48 = vstv %s880_s15 }
  0x4c   : > { %s1289_s28 = smov (!%p456_p3, %s455_s28), 4  ;;  %v918_v0 = vld [vmem:[%s449_s17 + $0x8] sm:$0xff]   ;;  %v903_v1 = vld [vmem:[%s449_s17] sm:$0xff]   ;;  %s879_s9 = sld [smem:[#allocation4 + $0x4]]  ;;  %v1142_v49 = vstv %s883_s16 }
  0x4d   : > { %s1291_s30 = smov (!%p467_p4, %s466_s30), 71  ;;  %v908_v2 = vunpack.c.l.bf16 %v918_v0  ;;  %v904_v4 = vunpack.c.l.bf16 %v903_v1  ;;  %v909_v5 = vunpack.c.h.bf16 %v918_v0  ;;  %v905_v6 = vunpack.c.h.bf16 %v903_v1  ;;  %s898_s18 = sshll.u32 %s1289_s28, 5  ;;  %v508_v9 = vld [vmem:[%s439_s13 + $0x8] sm:$0xff] }
  0x4e   : > { %s460_s21 = scalar_lea.vmem %s1263_s5, %s898_s18  ;;  %s899_s22 = sshll.u32 %s1291_s30, 4 }
  0x4f   : > { %s471_s26 = scalar_lea.vmem %s1264_s6, %s899_s22  ;;  %v517_v10 = vld [vmem:[%s460_s21 + $0x10] sm:$0xff]  ;;  %v515_v11 = vld [vmem:[%s460_s21] sm:$0xff]  ;;  %v518_v12 = vld [vmem:[%s460_s21 + $0x18] sm:$0xff]  ;;  %v513_v14 = vmul.f32 %v908_v2, %v509_v3  ;;  %v511_v16 = vmul.f32 %v904_v4, %v507_v7  ;;  %v514_v17 = vmul.f32 %v909_v5, %v510_v8  ;;  %v512_v18 = vmul.f32 %v905_v6, %v508_v9  ;;  %s1016_s28 = smov 127  }
  0x50   : > { %v919_v13 = vld [vmem:[%s471_s26 + $0x8] sm:$0xff]   ;;  %v911_v15 = vld [vmem:[%s471_s26] sm:$0xff]   ;;  %s876_s30 = sld [smem:[#allocation4 + $0x1]]  ;;  %s881_s13 = sld [smem:[#allocation4 + $0x6]]  ;;  %v538_v9 = vand.u32 15, %v1131_v40 }
  0x51   : > { %v516_v19 = vld [vmem:[%s460_s21 + $0x8] sm:$0xff]  ;;  %v916_v20 = vunpack.c.l.bf16 %v919_v13  ;;  %v912_v21 = vunpack.c.l.bf16 %v911_v15  ;;  %v917_v22 = vunpack.c.h.bf16 %v919_v13  ;;  %v913_v23 = vunpack.c.h.bf16 %v911_v15  ;;  %s877_s14 = sld [smem:[#allocation4 + $0x2]]  ;;  %s476_s17 = sadd.s32 4, %s1111_s23 }
  0x52   : > { %v601_v39 = vstv %s879_s9  ;;  %s1146_s23 = sld [smem:[#allocation3 + %s476_s17]]  ;;  %v539_v13 = vand.u32 15, %v1154_v59  ;;  %vm1177_vm4 = vcmp.ge.s32.totalorder %v538_v9, 1  ;;  %s1295_s0 = smov (!%p486_p6, %s1071_s0), 4 }
  0x53   : > { %v521_v24 = vmul.f32 %v916_v20, %v517_v10  ;;  %v519_v25 = vmul.f32 %v912_v21, %v515_v11  ;;  %v522_v26 = vmul.f32 %v917_v22, %v518_v12  ;;  %v520_v27 = vmul.f32 %v913_v23, %v516_v19  ;;  %s705_s24 = smul.f32 1.4446303, %s1208_s19  ;;  %s901_s25 = sshll.u32 %s1295_s0, 5 }
  0x54   : > { %v541_v12 = vand.u32 15, %v537_v58  ;;  %vm1224_vm7 = vcmp.le.s32.totalorder %v539_v13, 14 }
  0x55   : > { %v525_v28 = vadd.f32 %v521_v24, %v513_v14  ;;  %v523_v29 = vadd.f32 %v519_v25, %v511_v16  ;;  %v526_v30 = vadd.f32 %v522_v26, %v514_v17  ;;  %v524_v31 = vadd.f32 %v520_v27, %v512_v18 }
  0x56   : > { %v575_v38 = vstv %s876_s30  ;;  %v621_v44 = vstv %s881_s13  ;;  %v540_v17 = vand.u32 15, %v536_v63  ;;  %vm1183_vm5 = vcmp.le.s32.totalorder %v541_v12, 14 }
  0x57   : > { %v529_v32 = vmul.f32 0.5, %v525_v28  ;;  %v527_v33 = vmul.f32 0.5, %v523_v29  ;;  %v530_v34 = vmul.f32 0.5, %v526_v30  ;;  %v528_v35 = vmul.f32 0.5, %v524_v31 }
  0x58   : > { %v1136_v45 = vstv %s877_s14  ;;  %p478_p5 = scmp.lt.s32.totalorder %s1146_s23, 10  ;;  %vm1192_vm6 = vcmp.ge.s32.totalorder %v540_v17, 1  ;;  %v706_v40 = vstv %s705_s24 }
  0x59   : > { %547 = vrot.lane.b32.xlu1 %v529_v32, %s1015_s27  ;;  %543 = vrot.lane.b32.xlu0 %v527_v33, %s1015_s27  ;;  %v578_v46 = vmul.f32 %v575_v38, %v529_v32  ;;  %v1138_v47 = vmul.f32 %v601_v39, %v529_v32  ;;  %v630_v51 = vmul.f32 %v627_v42, %v529_v32 }
  0x5a   : > { %v576_v53 = vmul.f32 %v575_v38, %v527_v33  ;;  %v1144_v54 = vmul.f32 %v601_v39, %v527_v33  ;;  %v628_v55 = vmul.f32 %v627_v42, %v527_v33  ;;  %v579_v60 = vmul.f32 %v575_v38, %v530_v34  ;;  %s1293_s23 = smov (!%p478_p5, %s1146_s23), 10 }
  0x5b   : > { %v1156_v61 = vmul.f32 %v601_v39, %v530_v34  ;;  %v631_v62 = vmul.f32 %v627_v42, %v530_v34  ;;  %v577_v1 = vmul.f32 %v575_v38, %v528_v35  ;;  %v603_v2 = vmul.f32 %v601_v39, %v528_v35  ;;  %s900_s18 = sshll.u32 %s1293_s23, 5 }
  0x5c   : > { %v629_v3 = vmul.f32 %v627_v42, %v528_v35  ;;  %s482_s22 = scalar_lea.vmem %s1265_s7, %s900_s18 }
  0x5d   : > { %549 = vrot.lane.b32.xlu1 %v530_v34, %s1015_s27  ;;  %545 = vrot.lane.b32.xlu0 %v528_v35, %s1015_s27 }
  0x61   : > { %558 = vrot.lane.b32.xlu1 %v528_v35, %s1016_s28  ;;  %556 = vrot.lane.b32.xlu0 %v527_v33, %s1016_s28 }
  0x65   : > { %562 = vrot.lane.b32.xlu1 %v530_v34, %s1016_s28  ;;  %560 = vrot.lane.b32.xlu0 %v529_v32, %s1016_s28  ;;  %s490_s28 = scalar_lea.vmem %s1266_s8, %s901_s25 }
  0xcb   : > { %v548_v50 = vpop.permute.xlu1 %547  ;;  %v544_v52 = vpop.permute.xlu0 %543 }
  0xcc   : > { %v553_v56 = vsel %vm542_vm0, %v548_v50, 0.0  ;;  %v551_v57 = vsel %vm542_vm0, %v544_v52, 0.0 }
  0xcd   : > { %v572_v0 = vmul.f32 %v569_v41, %v553_v56  ;;  %v624_v4 = vmul.f32 %v621_v44, %v553_v56  ;;  %v570_v5 = vmul.f32 %v569_v41, %v551_v57  ;;  %v622_v6 = vmul.f32 %v621_v44, %v551_v57 }
  0xce   : > { %v1166_v14 = vmul.f32 %v595_v43, %v553_v56  ;;  %v596_v15 = vmul.f32 %v595_v43, %v551_v57 }
  0xcf   : > { %v550_v7 = vpop.permute.xlu1 %549  ;;  %v546_v8 = vpop.permute.xlu0 %545  ;;  %v582_v18 = vadd.f32 %v578_v46, %v572_v0  ;;  %v634_v22 = vadd.f32 %v630_v51, %v624_v4  ;;  %v580_v23 = vadd.f32 %v576_v53, %v570_v5  ;;  %v632_v24 = vadd.f32 %v628_v55, %v622_v6 }
  0xd0   : > { %v554_v10 = vsel %vm542_vm0, %v550_v7, 0.0  ;;  %v552_v11 = vsel %vm542_vm0, %v546_v8, 0.0 }
  0xd1   : > { %v571_v16 = vmul.f32 %v569_v41, %v552_v11  ;;  %v573_v19 = vmul.f32 %v569_v41, %v554_v10  ;;  %v625_v20 = vmul.f32 %v621_v44, %v554_v10  ;;  %v623_v21 = vmul.f32 %v621_v44, %v552_v11 }
  0xd2   : > { %v597_v25 = vmul.f32 %v595_v43, %v552_v11  ;;  %v599_v28 = vmul.f32 %v595_v43, %v554_v10 }
  0xd3   : > { %v559_v26 = vpop.permute.xlu1 %558  ;;  %v557_v27 = vpop.permute.xlu0 %556  ;;  %v581_v29 = vadd.f32 %v577_v1, %v571_v16  ;;  %v633_v32 = vadd.f32 %v629_v3, %v623_v21  ;;  %v583_v38 = vadd.f32 %v579_v60, %v573_v19  ;;  %v635_v39 = vadd.f32 %v631_v62, %v625_v20 }
  0xd4   : > { %v565_v30 = vsel %vm555_vm1, %v559_v26, 0.0  ;;  %v564_v31 = vsel %vm555_vm1, %v557_v27, 0.0  ;;  %v607_v44 = vadd.f32 %v603_v2, %v597_v25  ;;  %v608_v20 = vadd.f32 %v1138_v47, %v1166_v14  ;;  %v689_v25 = vld [vmem:[%s482_s22 + $0x8] sm:$0xff]  ;;  %v691_v26 = vld [vmem:[%s482_s22 + $0x18] sm:$0xff] }
  0xd5   : > { %v587_v33 = vmul.f32 %v1136_v45, %v565_v30  ;;  %v639_v34 = vmul.f32 %v1142_v49, %v565_v30  ;;  %v586_v35 = vmul.f32 %v1136_v45, %v564_v31  ;;  %v613_v41 = vmul.f32 %v1140_v48, %v565_v30 }
  0xd6   : > { %v638_v42 = vmul.f32 %v1142_v49, %v564_v31  ;;  %v612_v56 = vmul.f32 %v1140_v48, %v564_v31  ;;  %v609_v21 = vadd.f32 %v1156_v61, %v599_v28 }
  0xd7   : > { %v591_v46 = vadd.f32 %v587_v33, %v581_v29  ;;  %v643_v50 = vadd.f32 %v639_v34, %v633_v32  ;;  %v590_v51 = vadd.f32 %v586_v35, %v580_v23  ;;  %v563_v52 = vpop.permute.xlu1 %562  ;;  %v561_v55 = vpop.permute.xlu0 %560  ;;  %v617_v2 = vadd.f32 %v613_v41, %v607_v44  ;;  %v690_v29 = vld [vmem:[%s482_s22 + $0x10] sm:$0xff] }
  0xd8   : > { %v642_v57 = vadd.f32 %v638_v42, %v632_v24  ;;  %v567_v58 = vsel %vm555_vm1, %v563_v52, 0.0  ;;  %v566_v60 = vsel %vm555_vm1, %v561_v55, 0.0  ;;  %v695_v41 = vmul.f32 1.2247449, %v691_v26 }
  0xd9   : > { %v651_v62 = vrot.slane %v591_v46, 7  ;;  %v672_v63 = vrot.slane %v643_v50, 1  ;;  %v650_v0 = vrot.slane %v590_v51, 7  ;;  %v589_v1 = vmul.f32 %v1136_v45, %v567_v58 }
  0xda   : > { %v671_v3 = vrot.slane %v642_v57, 1  ;;  %v641_v4 = vmul.f32 %v1142_v49, %v567_v58  ;;  %v588_v5 = vmul.f32 %v1136_v45, %v566_v60  ;;  %v615_v37 = vmul.f32 %v1140_v48, %v567_v58 }
  0xdb   : > { %v657_v6 = vsel %vm654_vm2, %v650_v0, %v651_v62  ;;  %v593_v7 = vadd.f32 %v589_v1, %v583_v38  ;;  %v640_v8 = vmul.f32 %v1142_v49, %v566_v60  ;;  %v614_v12 = vmul.f32 %v1140_v48, %v566_v60 }
  0xdc   : > { %v664_v9 = vadd.f32 %v657_v6, %v617_v2  ;;  %v678_v10 = vsel %vm675_vm3, %v671_v3, %v672_v63  ;;  %v645_v11 = vadd.f32 %v641_v4, %v635_v39  ;;  %v606_v45 = vadd.f32 %v1144_v54, %v596_v15  ;;  %v688_v15 = vld [vmem:[%s482_s22] sm:$0xff] }
  0xdd   : > { %v653_v16 = vrot.slane %v593_v7, 7  ;;  %v592_v17 = vadd.f32 %v588_v5, %v582_v18  ;;  %v644_v19 = vadd.f32 %v640_v8, %v634_v22  ;;  %v619_v18 = vadd.f32 %v615_v37, %v609_v21 }
  0xde   : > { %v674_v49 = vrot.slane %v645_v11, 1  ;;  %v616_v54 = vadd.f32 %v612_v56, %v606_v45  ;;  %v618_v13 = vadd.f32 %v614_v12, %v608_v20  ;;  %v692_v34 = vmul.f32 1.2247449, %v688_v15 }
  0xdf   : > { %v658_v47 = vsel %vm654_vm2, %v653_v16, %v650_v0  ;;  %v652_v14 = vrot.slane %v592_v17, 7  ;;  %v673_v61 = vrot.slane %v644_v19, 1  ;;  %v693_v39 = vmul.f32 1.2247449, %v689_v25 }
  0xe0   : > { %v659_v22 = vsel %vm1177_vm4, %v658_v47, 0.0  ;;  %v679_v59 = vsel %vm675_vm3, %v674_v49, %v671_v3  ;;  %v694_v46 = vmul.f32 1.2247449, %v690_v29 }
  0xe1   : > { %v663_v23 = vadd.f32 %v659_v22, %v616_v54  ;;  %v683_v24 = vsel %vm1183_vm5, %v679_v59, 0.0  ;;  %v655_v27 = vsel %vm654_vm2, %v652_v14, %v653_v16  ;;  %v656_v28 = vsel %vm654_vm2, %v651_v62, %v652_v14 }
  0xe2   : > { %v661_v30 = vsel %vm1192_vm6, %v656_v28, 0.0  ;;  %v666_v31 = vadd.f32 %v655_v27, %v619_v18  ;;  %v676_v32 = vsel %vm675_vm3, %v673_v61, %v674_v49  ;;  %v677_v33 = vsel %vm675_vm3, %v672_v63, %v673_v61 }
  0xe3   : > { %v684_v35 = vadd.f32 %v678_v10, %v663_v23  ;;  %v665_v36 = vadd.f32 %v661_v30, %v618_v13  ;;  %v681_v38 = vsel %vm1224_vm7, %v677_v33, 0.0 }
  0xe4   : > { %v685_v42 = vadd.f32 %v681_v38, %v664_v9  ;;  %v687_v43 = vadd.f32 %v683_v24, %v666_v31 }
  0xe5   : > { %v696_v44 = vmul.f32 1.4446303, %v684_v35  ;;  %v686_v50 = vadd.f32 %v676_v32, %v665_v36 }
  0xe6   : > { %v697_v51 = vmul.f32 1.4446303, %v685_v42  ;;  %v699_v52 = vmul.f32 1.4446303, %v687_v43 }
  0xe7   : > { %v700_v53 = vadd.f32 %v696_v44, %v692_v34  ;;  %v698_v55 = vmul.f32 1.4446303, %v686_v50 }
  0xe8   : > { %v701_v56 = vadd.f32 %v697_v51, %v693_v39  ;;  %v703_v57 = vadd.f32 %v699_v52, %v695_v41 }
  0xe9   : > { %v702_v58 = vadd.f32 %v698_v55, %v694_v46  ;;  %v707_v60 = vadd.f32 %v706_v40, %v700_v53 }
  0xea   : > { %v708_v62 = vadd.f32 %v706_v40, %v701_v56  ;;  %v710_v63 = vadd.f32 %v706_v40, %v703_v57 }
  0xeb   : > { %v709_v0 = vadd.f32 %v706_v40, %v702_v58  ;;  %711 = vst [vmem:[%s490_s28] sm:$0xff] %v707_v60 }
  0xec   : > { %712 = vst [vmem:[%s490_s28 + $0x8] sm:$0xff] %v708_v62  ;;  %714 = vst [vmem:[%s490_s28 + $0x18] sm:$0xff] %v710_v63 }
  0xed   : > { %713 = vst [vmem:[%s490_s28 + $0x10] sm:$0xff] %v709_v0 }
  0xee PF: > { %s26_s10 = sadd.s32 1, %s1010_s10  }
  0xef   : > { %p23_p9 = scmp.ge.s32.totalorder %s26_s10, 7  }
  0xf1   :  { %25 = sbr.rel (!%p23_p9) target bundleno = 17 (0x11), region = 99 }
  0xf8   :  { %736 = vsyncpa [#allocation5], 1 }
  0xf9   :  { %738 = vsyncpa [#allocation5 + $0x1], 1 }
  0xfa   :  { %739 = vsyncpa [#allocation7], 1 }

// kernel: _lambda_.13
= control target key start
LH: loop header
LB: loop body
LE: loop exit
PB: predicated region body
PF: predicated region fallthrough
CT: control target
= control target key end

     0   :  { %s1512_s0 = inlined_call_operand.vmem [shape: s32[2,6], index: 0, kind: input, shape index: {}]   ;;  %s1513_s1 = inlined_call_operand.vmem [shape: f32[9], index: 1, kind: input, shape index: {}]   ;;  %s1514_s2 = inlined_call_operand.vmem [shape: f32[3], index: 2, kind: input, shape index: {}]   ;;  %s1515_s3 = inlined_call_operand.vmem [shape: f32[5,32,128], index: 3, kind: input, shape index: {}, may-alias: {3,5,7}]   ;;  %s1516_s4 = inlined_call_operand.vmem [shape: bf16[72,32,128], index: 4, kind: input, shape index: {}, may-alias: {4,6}]   ;;  %s1517_s5 = inlined_call_operand.vmem [shape: f32[5,32,128], index: 5, kind: input, shape index: {}, may-alias: {3,5,7}]   ;;  %s1518_s6 = inlined_call_operand.vmem [shape: bf16[72,32,128], index: 6, kind: input, shape index: {}, may-alias: {4,6}]   ;;  %s1519_s7 = inlined_call_operand.vmem [shape: f32[5,32,128], index: 7, kind: input, shape index: {}, may-alias: {3,5,7}]   ;;  %s1520_s8 = inlined_call_operand.vmem [shape: f32[2,32,128], index: 8, kind: output, shape index: {0}]   ;;  %s1521_s9 = inlined_call_operand.vmem [shape: f32[2,32,128], index: 9, kind: output, shape index: {1}]   ;;  %s1522_s10 = inlined_call_operand.vmem [shape: f32[1,128], index: 10, kind: output, shape index: {2}]  }
   0x1   :  { %s16_s15 = sshll.u32 %s1512_s0, 4  ;;  %s17_s15 = int_to_ptr.vmem [resolvable:$true] %s16_s15 }
   0x2   :  { %s1171_s16 = scalar_lea.vmem %s17_s15, 32  ;;  %p1176_p1 = scmp.lt.s32.totalorder %s17_s15, %s17_s15 }
   0x3   :  { %p1172_p0 = scmp.ne.s32.totalorder %s17_s15, %s1171_s16  ;;  %p1177_p2 = scmp.lt.s32.totalorder %s1171_s16, %s1171_s16 }
   0x5   :  { %p1178_p3 = por %p1177_p2, %p1176_p1 }
   0x7   :  { %p1179_p4 = pnand %p1178_p3, %p1172_p0 }
   0x9   :  { %1182 = shalt.err (!%p1179_p4)  }
   0xa   :  { %s1231_s17 = smov [#allocation3]  }
   0xb   :  { %19 = dma.vmem_to_smem %s17_s15, 32, %s1231_s17, [#allocation2] }
   0xc   :  { %1217 = dma.done.wait [#allocation2], 32 }
   0xd   :  { %1218 = vsyncadd [#allocation2], 4294967264 }
   0xe   :  { %21 = sfence }
   0xf   :  { %22 = vsyncpa [#allocation5], 0 }
  0x10   :  { %23 = vsyncpa [#allocation7], 0  ;;  %s1295_s18 = smov 0  }
  0x11 LB: > { %s1301_s0 = sadd.s32 4294967295, %s1229_s18   ;;  %p1047_p5 = scmp.ge.s32.totalorder %s1229_s18, 1  ;;  %s1229_s18 = sphi %s1295_s18, %s29_s18  }
  0x12   : > { %p313_p6 = scmp.lt.s32.totalorder %s1229_s18, 3  ;;  %s326_s21 = sshll.u32 %s1513_s1, 4  ;;  %s327_s21 = int_to_ptr.vmem [resolvable:$true] %s326_s21 }
  0x13   : > { %p1523_p9 = scmp.eq.s32.totalorder %s1301_s0, 0  ;;  %s337_s25 = sshll.u32 %s1514_s2, 4  ;;  %s338_s25 = int_to_ptr.vmem [resolvable:$true] %s337_s25 }
  0x14   : > { %p1309_p8 = pnand %p1047_p5, %p313_p6  ;;  %s1183_s27 = scalar_lea.vmem %s327_s21, 16 }
  0x15   : > { %p1184_p12 = scmp.ne.s32.totalorder %s327_s21, %s1183_s27  ;;  %p1191_p2 = scmp.lt.s32.totalorder %s327_s21, %s327_s21 }
  0x16   : > { %s1525_s22 = scalar_select %p1309_p8, 1, 0 }
  0x17   : > { %p1138_p10 = pneg %p1309_p8  ;;  %p1192_p3 = scmp.lt.s32.totalorder %s1183_s27, %s1183_s27 }
  0x19   : > { %p1321_p11 = pnand %p1523_p9, %p1138_p10  ;;  %p1193_p4 = por %p1192_p3, %p1191_p2 }
  0x1b   : > { %p1185_p13 = pneg %p1321_p11 }
  0x1d   : > { %p1186_p0 = pnand %p1185_p13, %p1184_p12 }
  0x1f   : > { %p1187_p1 = pneg %p1186_p0 }
  0x21   : > { %p1194_p5 = pnand %p1193_p4, %p1187_p1 }
  0x23   : > { %1197 = shalt.err (!%p1194_p5)
}
  0x24   : > { %s1232_s28 = smov [#allocation4]   ;;  %s1198_s29 = scalar_lea.vmem %s338_s25, 16 }
  0x25   : > { %1141 = dma.vmem_to_smem (!%p1321_p11), %s327_s21, 16, %s1232_s28, [#allocation5]  }
  0x26   : > { %p1199_p6 = scmp.ne.s32.totalorder %s338_s25, %s1198_s29  ;;  %p1206_p9 = scmp.lt.s32.totalorder %s338_s25, %s338_s25 }
  0x27   : > { %p1207_p8 = scmp.lt.s32.totalorder %s1198_s29, %s1198_s29 }
  0x28   : > { %p1201_p10 = pnand %p1199_p6, %p1185_p13 }
  0x29   : > { %p1208_p12 = por %p1207_p8, %p1206_p9 }
  0x2a   : > { %p1202_p7 = pneg %p1201_p10 }
  0x2c   : > { %p1209_p0 = pnand %p1208_p12, %p1202_p7 }
  0x2e   : > { %1212 = shalt.err (!%p1209_p0)
}
  0x2f   : > { %s1233_s30 = smov [#allocation6]   ;;  %p1527_p1 = scmp.ne.s32.totalorder %s1525_s22, 0 }
  0x30   : > { %1144 = dma.vmem_to_smem (!%p1321_p11), %s338_s25, 16, %s1233_s30, [#allocation7]  }
  0x31   : > { %418 = sbr.rel (%p1527_p1) target bundleno = 292 (0x124), region = 48  ;;  %p1528_p2 = scmp.eq.s32.totalorder (!%p1527_p1), %s1301_s0, 0 }
  0x38   : > { %1220 = dma.done.wait (%p1528_p2), [#allocation5], 16   ;;  %p1529_p3 = pmov %p1528_p2 }
  0x39   : > { %p1530_p13 = pmov %p1528_p2 }
  0x3a   : > { %1222 = vsyncadd (%p1529_p3), [#allocation5], 4294967280 }
  0x3b   : > { %1224 = dma.done.wait (%p1530_p13), [#allocation7], 16   ;;  %p1531_p8 = pmov %p1528_p2 }
  0x3d   : > { %1226 = vsyncadd (%p1531_p8), [#allocation7], 4294967280 }
  0x3e   : > { %428 = sfence }
  0x3f   : > { %s1342_s11 = sshll.u32 %s1301_s0, 7  ;;  %s1077_s27 = sld [smem:[#allocation4 + $0x4]]  ;;  %v610_v36 = vlaneseq }
  0x40   : > { %s502_s12 = sld [smem:[#allocation3 + %s1342_s11]]  ;;  %s511_s13 = sadd.s32 1, %s1342_s11 }
  0x41   : > { %s512_s14 = sld [smem:[#allocation3 + %s511_s13]]  ;;  %s522_s15 = sadd.s32 2, %s1342_s11  ;;  %v1366_v37 = vand.u32 127, %v610_v36  ;;  %v1368_v41 = vshrl.u32 %v610_v36, 7 }
  0x42   : > { %s523_s16 = sld [smem:[#allocation3 + %s522_s15]]  ;;  %s533_s17 = sadd.s32 3, %s1342_s11 }
  0x43   : > { %s534_s19 = sld [smem:[#allocation3 + %s533_s17]]  ;;  %s560_s20 = sadd.s32 5, %s1342_s11  ;;  %vm621_vm0 = vcmp.ge.s32.totalorder %v1366_v37, 1  ;;  %vm634_vm1 = vcmp.le.s32.totalorder %v1366_v37, 126  ;;  %v616_v58 = vadd.s32 24, %v1368_v41  ;;  %v1391_v59 = vadd.s32 8, %v1368_v41 }
  0x44   : > { %s561_s21 = sld [smem:[#allocation3 + %s560_s20]]  ;;  %s544_s17 = sadd.s32 4, %s1342_s11  ;;  %v615_v63 = vadd.s32 16, %v1368_v41  ;;  %vm733_vm2 = vcmp.lt.s32.totalorder %v1368_v41, 1  ;;  %vm754_vm3 = vcmp.lt.s32.totalorder %v1368_v41, 7 }
  0x45   : > { %s1080_s28 = sld [smem:[#allocation4 + $0x7]]  ;;  %s1075_s13 = sld [smem:[#allocation4 + $0x2]]  ;;  %v680_v39 = vstv %s1077_s27 }
  0x46   : > { %p503_p7 = scmp.lt.s32.totalorder %s502_s12, 4  ;;  %s1383_s11 = sld [smem:[#allocation3 + %s544_s17]] }
  0x47   : > { %p513_p9 = scmp.lt.s32.totalorder %s512_s14, 71  ;;  %p554_p10 = scmp.lt.s32.totalorder %s1301_s0, 1 }
  0x48   : > { %s1542_s12 = smov (!%p503_p7, %s502_s12), 4  ;;  %p524_p11 = scmp.lt.s32.totalorder %s523_s16, 4 }
  0x49   : > { %s1544_s14 = smov (!%p513_p9, %s512_s14), 71  ;;  %s1101_s22 = sshll.u32 %s1542_s12, 5 }
  0x4a   : > { %s507_s25 = scalar_lea.vmem %s1515_s3, %s1101_s22  ;;  %s1102_s26 = sshll.u32 %s1544_s14, 4 }
  0x4b   : > { %s517_s29 = scalar_lea.vmem %s1516_s4, %s1102_s26  ;;  %p535_p4 = scmp.lt.s32.totalorder %s534_s19, 71  ;;  %v588_v3 = vld [vmem:[%s507_s25 + $0x10] sm:$0xff]  ;;  %v586_v7 = vld [vmem:[%s507_s25] sm:$0xff]  ;;  %v589_v8 = vld [vmem:[%s507_s25 + $0x18] sm:$0xff]  ;;  %v706_v40 = vstv %s1080_s28 }
  0x4c   : > { %s1546_s16 = smov (!%p524_p11, %s523_s16), 4  ;;  %v1124_v0 = vld [vmem:[%s517_s29 + $0x8] sm:$0xff]   ;;  %v1109_v1 = vld [vmem:[%s517_s29] sm:$0xff]   ;;  %p562_p5 = scmp.lt.s32.totalorder %s561_s21, 1  ;;  %v1373_v45 = vstv %s1075_s13 }
  0x4d   : > { %s1548_s19 = smov (!%p535_p4, %s534_s19), 71  ;;  %v1114_v2 = vunpack.c.l.bf16 %v1124_v0  ;;  %v1110_v4 = vunpack.c.l.bf16 %v1109_v1  ;;  %v1115_v5 = vunpack.c.h.bf16 %v1124_v0  ;;  %v1111_v6 = vunpack.c.h.bf16 %v1109_v1  ;;  %s1103_s30 = sshll.u32 %s1546_s16, 5  ;;  %v587_v9 = vld [vmem:[%s507_s25 + $0x8] sm:$0xff] }
  0x4e   : > { %s528_s14 = scalar_lea.vmem %s1517_s5, %s1103_s30  ;;  %s1104_s15 = sshll.u32 %s1548_s19, 4 }
  0x4f   : > { %s539_s22 = scalar_lea.vmem %s1518_s6, %s1104_s15  ;;  %v596_v10 = vld [vmem:[%s528_s14 + $0x10] sm:$0xff]  ;;  %v594_v11 = vld [vmem:[%s528_s14] sm:$0xff]  ;;  %v597_v12 = vld [vmem:[%s528_s14 + $0x18] sm:$0xff]  ;;  %s1550_s21 = smov (!%p562_p5, %s561_s21), 1  ;;  %v592_v14 = vmul.f32 %v1114_v2, %v588_v3  ;;  %v590_v16 = vmul.f32 %v1110_v4, %v586_v7  ;;  %v593_v17 = vmul.f32 %v1115_v5, %v589_v8  ;;  %v591_v18 = vmul.f32 %v1111_v6, %v587_v9 }
  0x50   : > { %v1125_v13 = vld [vmem:[%s539_s22 + $0x8] sm:$0xff]   ;;  %v1117_v15 = vld [vmem:[%s539_s22] sm:$0xff]   ;;  %s1107_s16 = sshll.u32 %s1550_s21, 5  ;;  %s1234_s25 = smov 1   ;;  %v617_v9 = vand.u32 15, %v1368_v41 }
  0x51   : > { %v595_v19 = vld [vmem:[%s528_s14 + $0x8] sm:$0xff]  ;;  %v1122_v20 = vunpack.c.l.bf16 %v1125_v13  ;;  %v1118_v21 = vunpack.c.l.bf16 %v1117_v15  ;;  %v1123_v22 = vunpack.c.h.bf16 %v1125_v13  ;;  %v1119_v23 = vunpack.c.h.bf16 %v1117_v15  ;;  %s1364_s24 = scalar_lea.vmem %s1521_s9, %s1107_s16  ;;  %s1235_s21 = smov 127  }
  0x52   : > { %s1074_s26 = sld [smem:[#allocation4 + $0x1]]  ;;  %s647_s29 = sld [smem:[#allocation4]]  ;;  %v618_v13 = vand.u32 15, %v1391_v59  ;;  %vm1414_vm4 = vcmp.ge.s32.totalorder %v617_v9, 1 }
  0x53   : > { %v600_v24 = vmul.f32 %v1122_v20, %v596_v10  ;;  %v598_v25 = vmul.f32 %v1118_v21, %v594_v11  ;;  %v601_v26 = vmul.f32 %v1123_v22, %v597_v12  ;;  %v599_v27 = vmul.f32 %v1119_v23, %v595_v19  ;;  %s1076_s30 = sld [smem:[#allocation4 + $0x3]]  ;;  %s1079_s12 = sld [smem:[#allocation4 + $0x6]] }
  0x54   : > { %s1078_s14 = sld [smem:[#allocation4 + $0x5]]  ;;  %s1081_s15 = sld [smem:[#allocation4 + $0x8]]  ;;  %v620_v12 = vand.u32 15, %v616_v58  ;;  %vm1461_vm7 = vcmp.le.s32.totalorder %v618_v13, 14 }
  0x55   : > { %v604_v28 = vadd.f32 %v600_v24, %v592_v14  ;;  %v602_v29 = vadd.f32 %v598_v25, %v590_v16  ;;  %v605_v30 = vadd.f32 %v601_v26, %v593_v17  ;;  %v603_v31 = vadd.f32 %v599_v27, %v591_v18  ;;  %p546_p6 = scmp.lt.s32.totalorder %s1383_s11, 4  ;;  %s1445_s22 = sld [smem:[#allocation6]] }
  0x56   : > { %v619_v17 = vand.u32 15, %v615_v63  ;;  %vm1420_vm5 = vcmp.le.s32.totalorder %v620_v12, 14  ;;  %p1540_p12 = scmp.ne.s32.totalorder %s1301_s0, 0 }
  0x57   : > { %v608_v32 = vmul.f32 0.5, %v604_v28  ;;  %v606_v33 = vmul.f32 0.5, %v602_v29  ;;  %v609_v34 = vmul.f32 0.5, %v605_v30  ;;  %v607_v35 = vmul.f32 0.5, %v603_v31  ;;  %s1552_s11 = smov (!%p546_p6, %s1383_s11), 4 }
  0x58   : > { %v654_v38 = vstv %s1074_s26  ;;  %v648_v42 = vstv %s647_s29  ;;  %vm1429_vm6 = vcmp.ge.s32.totalorder %v619_v17, 1  ;;  %s1105_s20 = sshll.u32 %s1552_s11, 5 }
  0x59   : > { %626 = vrot.lane.b32.xlu1 %v608_v32, %s1234_s25  ;;  %622 = vrot.lane.b32.xlu0 %v606_v33, %s1234_s25  ;;  %v674_v43 = vstv %s1076_s30  ;;  %v700_v44 = vstv %s1079_s12  ;;  %v657_v46 = vmul.f32 %v654_v38, %v608_v32  ;;  %v1375_v47 = vmul.f32 %v680_v39, %v608_v32  ;;  %s550_s23 = scalar_lea.vmem %s1519_s7, %s1105_s20 }
  0x5a   : > { %v709_v48 = vmul.f32 %v706_v40, %v608_v32  ;;  %v1377_v49 = vstv %s1078_s14  ;;  %v655_v52 = vmul.f32 %v654_v38, %v606_v33  ;;  %v1379_v53 = vmul.f32 %v680_v39, %v606_v33 }
  0x5b   : > { %v707_v54 = vmul.f32 %v706_v40, %v606_v33  ;;  %v1381_v55 = vstv %s1081_s15  ;;  %v658_v60 = vmul.f32 %v654_v38, %v609_v34  ;;  %v1393_v61 = vmul.f32 %v680_v39, %v609_v34 }
  0x5c   : > { %v710_v62 = vmul.f32 %v706_v40, %v609_v34  ;;  %v656_v1 = vmul.f32 %v654_v38, %v607_v35  ;;  %v682_v2 = vmul.f32 %v680_v39, %v607_v35  ;;  %v708_v3 = vmul.f32 %v706_v40, %v607_v35 }
  0x5d   : > { %628 = vrot.lane.b32.xlu1 %v609_v34, %s1234_s25  ;;  %624 = vrot.lane.b32.xlu0 %v607_v35, %s1234_s25  ;;  %s555_s25 = scalar_select %p554_p10, %s1301_s0, 1 }
  0x5f   : > { %s1106_s26 = sshll.u32 %s555_s25, 5 }
  0x60   : > { %s558_s29 = scalar_lea.vmem %s1520_s8, %s1106_s26 }
  0x61   : > { %637 = vrot.lane.b32.xlu1 %v607_v35, %s1235_s21  ;;  %635 = vrot.lane.b32.xlu0 %v606_v33, %s1235_s21 }
  0x65   : > { %641 = vrot.lane.b32.xlu1 %v609_v34, %s1235_s21  ;;  %639 = vrot.lane.b32.xlu0 %v608_v32, %s1235_s21  ;;  %s784_s21 = smul.f32 -0.84779125, %s1445_s22 }
  0x67   : > { %v785_v41 = vstv %s784_s21 }
  0xcb   : > { %v627_v50 = vpop.permute.xlu1 %626  ;;  %v623_v51 = vpop.permute.xlu0 %622 }
  0xcc   : > { %v632_v56 = vsel %vm621_vm0, %v627_v50, 0.0  ;;  %v630_v57 = vsel %vm621_vm0, %v623_v51, 0.0 }
  0xcd   : > { %v651_v0 = vmul.f32 %v648_v42, %v632_v56  ;;  %v703_v4 = vmul.f32 %v700_v44, %v632_v56  ;;  %v649_v5 = vmul.f32 %v648_v42, %v630_v57  ;;  %v701_v6 = vmul.f32 %v700_v44, %v630_v57 }
  0xce   : > { %v1403_v14 = vmul.f32 %v674_v43, %v632_v56  ;;  %v675_v15 = vmul.f32 %v674_v43, %v630_v57 }
  0xcf   : > { %v629_v7 = vpop.permute.xlu1 %628  ;;  %v625_v8 = vpop.permute.xlu0 %624  ;;  %v661_v18 = vadd.f32 %v657_v46, %v651_v0  ;;  %v713_v22 = vadd.f32 %v709_v48, %v703_v4  ;;  %v659_v23 = vadd.f32 %v655_v52, %v649_v5  ;;  %v711_v24 = vadd.f32 %v707_v54, %v701_v6 }
  0xd0   : > { %v633_v10 = vsel %vm621_vm0, %v629_v7, 0.0  ;;  %v631_v11 = vsel %vm621_vm0, %v625_v8, 0.0 }
  0xd1   : > { %v650_v16 = vmul.f32 %v648_v42, %v631_v11  ;;  %v652_v19 = vmul.f32 %v648_v42, %v633_v10  ;;  %v704_v20 = vmul.f32 %v700_v44, %v633_v10  ;;  %v702_v21 = vmul.f32 %v700_v44, %v631_v11 }
  0xd2   : > { %v676_v25 = vmul.f32 %v674_v43, %v631_v11  ;;  %v678_v28 = vmul.f32 %v674_v43, %v633_v10 }
  0xd3   : > { %v638_v26 = vpop.permute.xlu1 %637  ;;  %v636_v27 = vpop.permute.xlu0 %635  ;;  %v660_v29 = vadd.f32 %v656_v1, %v650_v16  ;;  %v712_v32 = vadd.f32 %v708_v3, %v702_v21  ;;  %v662_v38 = vadd.f32 %v658_v60, %v652_v19  ;;  %v714_v39 = vadd.f32 %v710_v62, %v704_v20 }
  0xd4   : > { %v644_v30 = vsel %vm634_vm1, %v638_v26, 0.0  ;;  %v643_v31 = vsel %vm634_vm1, %v636_v27, 0.0  ;;  %v686_v44 = vadd.f32 %v682_v2, %v676_v25  ;;  %v687_v20 = vadd.f32 %v1375_v47, %v1403_v14  ;;  %v768_v25 = vld [vmem:[%s550_s23 + $0x8] sm:$0xff]  ;;  %v770_v26 = vld [vmem:[%s550_s23 + $0x18] sm:$0xff] }
  0xd5   : > { %v666_v33 = vmul.f32 %v1373_v45, %v644_v30  ;;  %v718_v34 = vmul.f32 %v1381_v55, %v644_v30  ;;  %v665_v35 = vmul.f32 %v1373_v45, %v643_v31  ;;  %v692_v40 = vmul.f32 %v1377_v49, %v644_v30 }
  0xd6   : > { %v717_v42 = vmul.f32 %v1381_v55, %v643_v31  ;;  %v691_v56 = vmul.f32 %v1377_v49, %v643_v31  ;;  %v688_v21 = vadd.f32 %v1393_v61, %v678_v28 }
  0xd7   : > { %v670_v46 = vadd.f32 %v666_v33, %v660_v29  ;;  %v722_v48 = vadd.f32 %v718_v34, %v712_v32  ;;  %v669_v50 = vadd.f32 %v665_v35, %v659_v23  ;;  %v642_v51 = vpop.permute.xlu1 %641  ;;  %v640_v54 = vpop.permute.xlu0 %639  ;;  %v696_v2 = vadd.f32 %v692_v40, %v686_v44  ;;  %v769_v29 = vld [vmem:[%s550_s23 + $0x10] sm:$0xff] }
  0xd8   : > { %v721_v57 = vadd.f32 %v717_v42, %v711_v24  ;;  %v646_v58 = vsel %vm634_vm1, %v642_v51, 0.0  ;;  %v645_v60 = vsel %vm634_vm1, %v640_v54, 0.0  ;;  %v774_v40 = vmul.f32 0.84779125, %v770_v26 }
  0xd9   : > { %v730_v62 = vrot.slane %v670_v46, 7  ;;  %v751_v63 = vrot.slane %v722_v48, 1  ;;  %v729_v0 = vrot.slane %v669_v50, 7  ;;  %v668_v1 = vmul.f32 %v1373_v45, %v646_v58 }
  0xda   : > { %v750_v3 = vrot.slane %v721_v57, 1  ;;  %v720_v4 = vmul.f32 %v1381_v55, %v646_v58  ;;  %v667_v5 = vmul.f32 %v1373_v45, %v645_v60  ;;  %v694_v37 = vmul.f32 %v1377_v49, %v646_v58 }
  0xdb   : > { %v736_v6 = vsel %vm733_vm2, %v729_v0, %v730_v62  ;;  %v672_v7 = vadd.f32 %v668_v1, %v662_v38  ;;  %v719_v8 = vmul.f32 %v1381_v55, %v645_v60  ;;  %v693_v12 = vmul.f32 %v1377_v49, %v645_v60 }
  0xdc   : > { %v743_v9 = vadd.f32 %v736_v6, %v696_v2  ;;  %v757_v10 = vsel %vm754_vm3, %v750_v3, %v751_v63  ;;  %v724_v11 = vadd.f32 %v720_v4, %v714_v39  ;;  %v685_v45 = vadd.f32 %v1379_v53, %v675_v15  ;;  %v767_v15 = vld [vmem:[%s550_s23] sm:$0xff] }
  0xdd   : > { %v732_v16 = vrot.slane %v672_v7, 7  ;;  %v671_v17 = vadd.f32 %v667_v5, %v661_v18  ;;  %v723_v19 = vadd.f32 %v719_v8, %v713_v22  ;;  %v698_v18 = vadd.f32 %v694_v37, %v688_v21 }
  0xde   : > { %v753_v55 = vrot.slane %v724_v11, 1  ;;  %v695_v53 = vadd.f32 %v691_v56, %v685_v45  ;;  %v697_v13 = vadd.f32 %v693_v12, %v687_v20  ;;  %v771_v34 = vmul.f32 0.84779125, %v767_v15 }
  0xdf   : > { %v737_v47 = vsel %vm733_vm2, %v732_v16, %v729_v0  ;;  %v731_v14 = vrot.slane %v671_v17, 7  ;;  %v752_v61 = vrot.slane %v723_v19, 1  ;;  %v772_v39 = vmul.f32 0.84779125, %v768_v25 }
  0xe0   : > { %v738_v22 = vsel %vm1414_vm4, %v737_v47, 0.0  ;;  %v758_v59 = vsel %vm754_vm3, %v753_v55, %v750_v3  ;;  %v773_v46 = vmul.f32 0.84779125, %v769_v29  ;;  %v1236_v1 = vmov (!%p1540_p12), 0.0  }
  0xe1   : > { %v742_v23 = vadd.f32 %v738_v22, %v695_v53  ;;  %v762_v24 = vsel %vm1420_vm5, %v758_v59, 0.0  ;;  %v734_v27 = vsel %vm733_vm2, %v731_v14, %v732_v16  ;;  %v735_v28 = vsel %vm733_vm2, %v730_v62, %v731_v14  ;;  %798 = vst [vmem:[%s1522_s10] sm:$0x1] (!%p1540_p12), %v1236_v1 }
  0xe2   : > { %v740_v30 = vsel %vm1429_vm6, %v735_v28, 0.0  ;;  %v745_v31 = vadd.f32 %v734_v27, %v698_v18  ;;  %v755_v32 = vsel %vm754_vm3, %v752_v61, %v753_v55  ;;  %v756_v33 = vsel %vm754_vm3, %v751_v63, %v752_v61 }
  0xe3   : > { %v763_v35 = vadd.f32 %v757_v10, %v742_v23  ;;  %v744_v36 = vadd.f32 %v740_v30, %v697_v13  ;;  %v760_v38 = vsel %vm1461_vm7, %v756_v33, 0.0 }
  0xe4   : > { %v764_v42 = vadd.f32 %v760_v38, %v743_v9  ;;  %v766_v43 = vadd.f32 %v762_v24, %v745_v31 }
  0xe5   : > { %v775_v44 = vmul.f32 -0.84779125, %v763_v35  ;;  %v765_v48 = vadd.f32 %v755_v32, %v744_v36 }
  0xe6   : > { %v776_v50 = vmul.f32 -0.84779125, %v764_v42  ;;  %v778_v51 = vmul.f32 -0.84779125, %v766_v43 }
  0xe7   : > { %v779_v52 = vadd.f32 %v775_v44, %v771_v34  ;;  %v777_v54 = vmul.f32 -0.84779125, %v765_v48  ;;  %797 = sbr.rel (%p1540_p12) target bundleno = 238 (0xee), region = 60 }
  0xe8   : > { %v780_v56 = vadd.f32 %v776_v50, %v772_v39  ;;  %v782_v57 = vadd.f32 %v778_v51, %v774_v40 }
  0xe9   : > { %v781_v58 = vadd.f32 %v777_v54, %v773_v46  ;;  %v786_v60 = vadd.f32 %v785_v41, %v779_v52 }
  0xea   : > { %v787_v62 = vadd.f32 %v785_v41, %v780_v56  ;;  %v789_v63 = vadd.f32 %v785_v41, %v782_v57 }
  0xeb   : > { %v788_v0 = vadd.f32 %v785_v41, %v781_v58  ;;  %790 = vst [vmem:[%s558_s29] sm:$0xff] %v786_v60 }
  0xec   : > { %791 = vst [vmem:[%s558_s29 + $0x8] sm:$0xff] %v787_v62  ;;  %793 = vst [vmem:[%s558_s29 + $0x18] sm:$0xff] %v789_v63 }
  0xed   : > { %792 = vst [vmem:[%s558_s29 + $0x10] sm:$0xff] %v788_v0 }
  0xee PF: > { %p1083_p0 = scmp.ge.s32.totalorder %s1301_s0, 2 }
  0xef   : > { %s1084_s13 = sld [smem:[#allocation6 + $0x1]] (!%p1083_p0)  ;;  %s1085_s14 = sld [smem:[#allocation6 + $0x2]] (!%p1083_p0) }
  0xf0   : > { %802 = sbr.rel (%p1083_p0) target bundleno = 292 (0x124), region = 64  ;;  %p1086_p1 = scmp.ge.s32.totalorder (!%p1083_p0), %s1301_s0, 1 }
  0xf5   : > { %v804_v2 = vstv (!%p1083_p0), %s1084_s13  ;;  %v814_v7 = vstv (!%p1083_p0), %s1085_s14 }
  0xf6   : > { %v805_v3 = vmul.f32 (!%p1083_p0), %v804_v2, %v786_v60  ;;  %v806_v4 = vmul.f32 (!%p1083_p0), %v804_v2, %v787_v62  ;;  %v807_v5 = vmul.f32 (!%p1083_p0), %v804_v2, %v788_v0  ;;  %v808_v6 = vmul.f32 (!%p1083_p0), %v804_v2, %v789_v63 }
  0xf7   : > { %826 = sbr.rel (%p1086_p1) target bundleno = 292 (0x124), region = 68  ;;  %v827_v36 = vld [vmem:[%s1522_s10] sm:$0x1] (!%p1086_p1) }
  0xf8   : > { %v1126_v37 = vround.rtne.f32 %v805_v3  ;;  %v1127_v8 = vround.rtne.f32 %v806_v4  ;;  %v1128_v9 = vround.rtne.f32 %v807_v5  ;;  %v1129_v10 = vround.rtne.f32 %v808_v6 }
  0xfa   : > { %v815_v11 = vmul.f32 %v1126_v37, %v814_v7  ;;  %v816_v12 = vmul.f32 %v1127_v8, %v814_v7  ;;  %v817_v45 = vmul.f32 %v1128_v9, %v814_v7  ;;  %v818_v16 = vmul.f32 %v1129_v10, %v814_v7 }
  0xfb   : > { %v828_v17 = vand.u32 (!%p1086_p1), 2147483647, %v1126_v37  ;;  %v829_v19 = vand.u32 (!%p1086_p1), 2147483647, %v1127_v8  ;;  %v830_v20 = vand.u32 (!%p1086_p1), 2147483647, %v1128_v9 }
  0xfc   : > { %819 = vst [vmem:[%s1364_s24] sm:$0xff] %v815_v11  ;;  %820 = vst [vmem:[%s1364_s24 + $0x8] sm:$0xff] %v816_v12  ;;  %v831_v21 = vand.u32 (!%p1086_p1), 2147483647, %v1129_v10 }
  0xfd   : > { %821 = vst [vmem:[%s1364_s24 + $0x10] sm:$0xff] %v817_v45  ;;  %822 = vst [vmem:[%s1364_s24 + $0x18] sm:$0xff] %v818_v16  ;;  %v832_v55 = vadd.f32 (!%p1086_p1), 1.0, %v828_v17  ;;  %v833_v49 = vadd.f32 (!%p1086_p1), 1.0, %v829_v19  ;;  %v834_v53 = vadd.f32 (!%p1086_p1), 1.0, %v830_v20 }
  0xfe   : > { %v835_v47 = vadd.f32 1.0, %v831_v21 }
  0xff   : > { %1163 = vlog2.f32 %v832_v55 }
 0x100   : > { %1165 = vlog2.f32 %v833_v49 }
 0x101   : > { %1167 = vlog2.f32 %v834_v53 }
 0x102   : > { %1169 = vlog2.f32 %v835_v47 }
 0x109   : > { %v1164_v14 = vpop.eup %1163 }
 0x10a   : > { %v1166_v61 = vpop.eup %1165  ;;  %v837_v15 = vmul.f32 0.6931472, %v1164_v14 }
 0x10b   : > { %v1168_v18 = vpop.eup %1167  ;;  %v839_v22 = vmul.f32 0.6931472, %v1166_v61 }
 0x10c   : > { %v1170_v59 = vpop.eup %1169  ;;  %v841_v13 = vmul.f32 0.6931472, %v1168_v18  ;;  %v845_v23 = vmul.f32 1.442695, %v837_v15 }
 0x10d   : > { %v843_v24 = vmul.f32 0.6931472, %v1170_v59  ;;  %v846_v25 = vmul.f32 1.442695, %v839_v22 }
 0x10e   : > { %v847_v26 = vmul.f32 1.442695, %v841_v13 }
 0x10f   : > { %v848_v27 = vmul.f32 1.442695, %v843_v24  ;;  %v849_v28 = vadd.f32 %v846_v25, %v845_v23 }
 0x111   : > { %v850_v29 = vadd.f32 %v849_v28, %v847_v26 }
 0x113   : > { %v851_v30 = vadd.f32 %v850_v29, %v848_v27 }
 0x115   : > { %v852_v31 = vrot.slane %v851_v30, 4 }
 0x117   : > { %v853_v32 = vadd.f32 %v852_v31, %v851_v30 }
 0x119   : > { %v854_v33 = vrot.slane %v853_v32, 2 }
 0x11b   : > { %v855_v34 = vadd.f32 %v854_v33, %v853_v32 }
 0x11d   : > { %v856_v35 = vrot.slane %v855_v34, 1 }
 0x11f   : > { %v857_v38 = vadd.f32 %v856_v35, %v855_v34 }
 0x121   : > { %v858_v39 = vadd.f32 %v857_v38, %v827_v36 }
 0x123   : > { %859 = vst [vmem:[%s1522_s10] sm:$0x1] %v858_v39 }
 0x124 PF: > { %s29_s18 = sadd.s32 1, %s1229_s18  }
 0x125   : > { %p26_p2 = scmp.ge.s32.totalorder %s29_s18, 4  }
 0x127   :  { %28 = sbr.rel (!%p26_p2) target bundleno = 17 (0x11), region = 131 }
 0x12e   :  { %912 = vsyncpa [#allocation5], 1 }
 0x12f   :  { %914 = vsyncpa [#allocation5 + $0x1], 1 }
 0x130   :  { %915 = vsyncpa [#allocation7], 1 }

// kernel: _lambda_.14
= control target key start
LH: loop header
LB: loop body
LE: loop exit
PB: predicated region body
PF: predicated region fallthrough
CT: control target
= control target key end

     0   :  { %s1713_s0 = inlined_call_operand.vmem [shape: s32[2,6], index: 0, kind: input, shape index: {}]   ;;  %s1714_s1 = inlined_call_operand.vmem [shape: f32[9], index: 1, kind: input, shape index: {}]   ;;  %s1715_s2 = inlined_call_operand.vmem [shape: f32[3], index: 2, kind: input, shape index: {}]   ;;  %s1716_s3 = inlined_call_operand.vmem [shape: f32[2,32,128], index: 3, kind: input, shape index: {}, may-alias: {3,5}]   ;;  %s1717_s4 = inlined_call_operand.vmem [shape: bf16[72,32,128], index: 4, kind: input, shape index: {}, may-alias: {4,6}]   ;;  %s1718_s5 = inlined_call_operand.vmem [shape: f32[2,32,128], index: 5, kind: input, shape index: {}, may-alias: {3,5}]   ;;  %s1719_s6 = inlined_call_operand.vmem [shape: bf16[72,32,128], index: 6, kind: input, shape index: {}, may-alias: {4,6}]   ;;  %s1720_s7 = inlined_call_operand.vmem [shape: f32[5,32,128], index: 7, kind: input, shape index: {}]   ;;  %s1721_s8 = inlined_call_operand.hbm [shape: f32[2,32,128], index: 8, kind: output, shape index: {0}]   ;;  %s1722_s9 = inlined_call_operand.vmem [shape: f32[2,32,128], index: 9, kind: output, shape index: {1}]   ;;  %s1723_s10 = inlined_call_operand.vmem [shape: f32[1,128], index: 10, kind: output, shape index: {2}]  }
   0x1   :  { %1730 = sst [smem:[#allocation17_spill]] %s1714_s1  ;;  %s16_s15 = sshll.u32 %s1713_s0, 4  ;;  %s17_s15 = int_to_ptr.vmem [resolvable:$true] %s16_s15 }
   0x2   :  { %1731 = sst [smem:[#allocation18_spill]] %s1715_s2  ;;  %s1224_s16 = scalar_lea.vmem %s17_s15, 32 }
   0x3   :  { %p1225_p0 = scmp.ne.s32.totalorder %s17_s15, %s1224_s16  ;;  %p1229_p1 = scmp.lt.s32.totalorder %s17_s15, %s17_s15 }
   0x4   :  { %p1230_p2 = scmp.lt.s32.totalorder %s1224_s16, %s1224_s16 }
   0x6   :  { %p1231_p3 = por %p1230_p2, %p1229_p1 }
   0x8   :  { %p1232_p4 = pnand %p1231_p3, %p1225_p0 }
   0xa   :  { %1235 = shalt.err (!%p1232_p4)  }
   0xb   :  { %s1340_s17 = smov [#allocation3]  }
   0xc   :  { %19 = dma.vmem_to_smem %s17_s15, 32, %s1340_s17, [#allocation2] }
   0xd   :  { %1310 = dma.done.wait [#allocation2], 32 }
   0xe   :  { %1311 = vsyncadd [#allocation2], 4294967264 }
   0xf   :  { %21 = sfence }
  0x10   :  { %22 = vsyncpa [#allocation6], 0 }
  0x11   :  { %23 = vsyncpa [#allocation8], 0 }
  0x12   :  { %24 = vsyncpa [#allocation5], 0 }
  0x13   :  { %26 = vsyncpa [#allocation5 + $0x1], 0  ;;  %s1407_s18 = smov 0   ;;  %s1409_s0 = smov 0  }
  0x14   :  { %s1411_s19 = smov 0   ;;  %s1413_s20 = smov 0  }
  0x15 LB: > { %1732 = sst [smem:[#allocation14_spill]] %s1334_s19  ;;  %s1428_s21 = sadd.s32 4294967295, %s1338_s20   ;;  %s1338_s20 = sphi %s1413_s20, %s1757_s20   ;;  %s1334_s19 = sphi %s1411_s19, %s1759_s19   ;;  %s1330_s0 = sphi %s1409_s0, %s1761_s0   ;;  %s1326_s18 = sphi %s1407_s18, %s1760_s18  }
  0x16   : > { %s1052_s22 = sadd.s32 4294967294, %s1338_s20   ;;  %s1432_s23 = sadd.s32 1, %s1338_s20  }
  0x17   : > { %1733 = sst [smem:[#allocation15_spill]] %s1432_s23  ;;  %s239_s24 = sadd.s32 1, %s1334_s19 }
  0x18   : > { %s236_s25 = ssub.s32 %s1338_s20, %s1432_s23  ;;  %p249_p5 = scmp.ne.s32.totalorder %s1334_s19, %s1330_s0 }
  0x19   : > { %p237_p6 = scmp.eq.s32.totalorder %s236_s25, 0  ;;  %p250_p7 = scmp.eq.s32.totalorder %s1428_s21, 1 }
  0x1a   : > { %p255_p8 = scmp.ne.s32.totalorder %s1330_s0, %s1326_s18  ;;  %p256_p9 = scmp.eq.s32.totalorder %s1052_s22, 1 }
  0x1b   : > { %s1443_s26 = scalar_select %p237_p6, %s1334_s19, %s239_s24  }
  0x1c   : > { %p1445_p10 = por %p250_p7, %p249_p5  ;;  %p1449_p11 = por %p256_p9, %p255_p8 }
  0x1d   : > { %1734 = sst [smem:[#allocation16_spill]] %s1443_s26  ;;  %p1065_p12 = scmp.ge.s32.totalorder %s1338_s20, 1 }
  0x1e   : > { %s1735_s27 = scalar_select %p1445_p10, 1, 0 }
  0x1f   : > { %s1736_s28 = scalar_select %p1449_p11, 1, 0 }
  0x20   : > { %p316_p13 = scmp.lt.s32.totalorder %s1338_s20, 3  ;;  %p1724_p1 = scmp.eq.s32.totalorder %s1428_s21, 0 }
  0x21   : > { %s1738_s1 = sld [smem:[#allocation17_spill]]  ;;  %s1739_s2 = sld [smem:[#allocation18_spill]] }
  0x22   : > { %p1457_p2 = pnand %p1065_p12, %p316_p13 }
  0x24   : > { %s1737_s29 = scalar_select %p1457_p2, 1, 0 }
  0x25   : > { %p1160_p3 = pneg %p1457_p2 }
  0x27   : > { %s329_s12 = sshll.u32 %s1738_s1, 4  ;;  %s340_s15 = sshll.u32 %s1739_s2, 4  ;;  %s330_s12 = int_to_ptr.vmem [resolvable:$true] %s329_s12  ;;  %s341_s15 = int_to_ptr.vmem [resolvable:$true] %s340_s15 }
  0x28   : > { %p1471_p4 = pnand %p1724_p1, %p1160_p3  ;;  %s1236_s17 = scalar_lea.vmem %s330_s12, 16 }
  0x29   : > { %p1237_p5 = scmp.ne.s32.totalorder %s330_s12, %s1236_s17  ;;  %p1244_p9 = scmp.lt.s32.totalorder %s330_s12, %s330_s12 }
  0x2a   : > { %p1238_p6 = pneg %p1471_p4  ;;  %p1245_p12 = scmp.lt.s32.totalorder %s1236_s17, %s1236_s17 }
  0x2c   : > { %p1239_p7 = pnand %p1238_p6, %p1237_p5  ;;  %p1246_p13 = por %p1245_p12, %p1244_p9 }
  0x2e   : > { %p1240_p8 = pneg %p1239_p7 }
  0x30   : > { %p1247_p0 = pnand %p1246_p13, %p1240_p8 }
  0x32   : > { %1250 = shalt.err (!%p1247_p0)
}
  0x33   : > { %s1341_s22 = smov [#allocation4]   ;;  %s1251_s24 = scalar_lea.vmem %s341_s15, 16 }
  0x34   : > { %1163 = dma.vmem_to_smem (!%p1471_p4), %s330_s12, 16, %s1341_s22, [#allocation6]  }
  0x35   : > { %p1252_p3 = scmp.ne.s32.totalorder %s341_s15, %s1251_s24  ;;  %p1259_p10 = scmp.lt.s32.totalorder %s341_s15, %s341_s15 }
  0x36   : > { %p1260_p2 = scmp.lt.s32.totalorder %s1251_s24, %s1251_s24 }
  0x37   : > { %p1254_p1 = pnand %p1252_p3, %p1238_p6 }
  0x38   : > { %p1261_p5 = por %p1260_p2, %p1259_p10 }
  0x39   : > { %p1255_p11 = pneg %p1254_p1 }
  0x3b   : > { %p1262_p7 = pnand %p1261_p5, %p1255_p11 }
  0x3d   : > { %1265 = shalt.err (!%p1262_p7)
}
  0x3e   : > { %s1342_s25 = smov [#allocation7]   ;;  %p1741_p8 = scmp.ne.s32.totalorder %s1737_s29, 0 }
  0x3f   : > { %1166 = dma.vmem_to_smem (!%p1471_p4), %s341_s15, 16, %s1342_s25, [#allocation8]  }
  0x40   : > { %421 = sbr.rel (%p1741_p8) target bundleno = 333 (0x14d), region = 48  ;;  %p1742_p0 = scmp.eq.s32.totalorder (!%p1741_p8), %s1428_s21, 0 }
  0x47   : > { %1313 = dma.done.wait (%p1742_p0), [#allocation6], 16   ;;  %p1743_p9 = pmov %p1742_p0 }
  0x48   : > { %p1744_p1 = pmov %p1742_p0 }
  0x49   : > { %1315 = vsyncadd (%p1743_p9), [#allocation6], 4294967280 }
  0x4a   : > { %1317 = dma.done.wait (%p1744_p1), [#allocation8], 16   ;;  %p1745_p10 = pmov %p1742_p0 }
  0x4c   : > { %1319 = vsyncadd (%p1745_p10), [#allocation8], 4294967280 }
  0x4d   : > { %431 = sfence }
  0x4e   : > { %s1492_s30 = sshll.u32 %s1428_s21, 7  ;;  %s1091_s25 = sld [smem:[#allocation4 + $0x1]]  ;;  %v608_v36 = vlaneseq }
  0x4f   : > { %s505_s29 = sld [smem:[#allocation3 + %s1492_s30]]  ;;  %s514_s11 = sadd.s32 1, %s1492_s30 }
  0x50   : > { %s515_s12 = sld [smem:[#allocation3 + %s514_s11]]  ;;  %s525_s13 = sadd.s32 2, %s1492_s30  ;;  %v1516_v37 = vand.u32 127, %v608_v36  ;;  %v1518_v41 = vshrl.u32 %v608_v36, 7 }
  0x51   : > { %s526_s14 = sld [smem:[#allocation3 + %s525_s13]]  ;;  %s536_s15 = sadd.s32 3, %s1492_s30 }
  0x52   : > { %s537_s16 = sld [smem:[#allocation3 + %s536_s15]]  ;;  %s558_s17 = sadd.s32 5, %s1492_s30  ;;  %vm619_vm0 = vcmp.ge.s32.totalorder %v1516_v37, 1  ;;  %vm632_vm1 = vcmp.le.s32.totalorder %v1516_v37, 126  ;;  %v614_v58 = vadd.s32 24, %v1518_v41  ;;  %v1541_v59 = vadd.s32 8, %v1518_v41 }
  0x53   : > { %s559_s22 = sld [smem:[#allocation3 + %s558_s17]]  ;;  %v613_v63 = vadd.s32 16, %v1518_v41  ;;  %vm731_vm2 = vcmp.lt.s32.totalorder %v1518_v41, 1  ;;  %vm752_vm3 = vcmp.lt.s32.totalorder %v1518_v41, 7  ;;  %p1754_p3 = scmp.ne.s32.totalorder %s1428_s21, 0 }
  0x54   : > { %s645_s1 = sld [smem:[#allocation4]]  ;;  %v652_v38 = vstv %s1091_s25 }
  0x55   : > { %p506_p11 = scmp.lt.s32.totalorder %s505_s29, 1  ;;  %s1098_s13 = sld [smem:[#allocation4 + $0x8]] }
  0x56   : > { %p516_p2 = scmp.lt.s32.totalorder %s515_s12, 71 }
  0x57   : > { %s1763_s29 = smov (!%p506_p11, %s505_s29), 1  ;;  %p527_p4 = scmp.lt.s32.totalorder %s526_s14, 1 }
  0x58   : > { %s1765_s12 = smov (!%p516_p2, %s515_s12), 71  ;;  %s1121_s24 = sshll.u32 %s1763_s29, 5 }
  0x59   : > { %s510_s2 = scalar_lea.vmem %s1716_s3, %s1121_s24  ;;  %s1122_s26 = sshll.u32 %s1765_s12, 4 }
  0x5a   : > { %s520_s11 = scalar_lea.vmem %s1717_s4, %s1122_s26  ;;  %p538_p6 = scmp.lt.s32.totalorder %s537_s16, 71  ;;  %v586_v3 = vld [vmem:[%s510_s2 + $0x10] sm:$0xff]  ;;  %v584_v7 = vld [vmem:[%s510_s2] sm:$0xff]  ;;  %v587_v8 = vld [vmem:[%s510_s2 + $0x18] sm:$0xff]  ;;  %v646_v42 = vstv %s645_s1 }
  0x5b   : > { %s1767_s14 = smov (!%p527_p4, %s526_s14), 1  ;;  %v1144_v0 = vld [vmem:[%s520_s11 + $0x8] sm:$0xff]   ;;  %v1129_v1 = vld [vmem:[%s520_s11] sm:$0xff]   ;;  %p560_p12 = scmp.lt.s32.totalorder %s559_s22, 1  ;;  %v1531_v55 = vstv %s1098_s13 }
  0x5c   : > { %s1769_s16 = smov (!%p538_p6, %s537_s16), 71  ;;  %v1134_v2 = vunpack.c.l.bf16 %v1144_v0  ;;  %v1130_v4 = vunpack.c.l.bf16 %v1129_v1  ;;  %v1135_v5 = vunpack.c.h.bf16 %v1144_v0  ;;  %v1131_v6 = vunpack.c.h.bf16 %v1129_v1  ;;  %s1123_s29 = sshll.u32 %s1767_s14, 5  ;;  %v585_v9 = vld [vmem:[%s510_s2 + $0x8] sm:$0xff] }
  0x5d   : > { %s531_s19 = scalar_lea.vmem %s1718_s5, %s1123_s29  ;;  %s1124_s23 = sshll.u32 %s1769_s16, 4 }
  0x5e   : > { %s542_s15 = scalar_lea.vmem %s1719_s6, %s1124_s23  ;;  %v594_v10 = vld [vmem:[%s531_s19 + $0x10] sm:$0xff]  ;;  %v592_v11 = vld [vmem:[%s531_s19] sm:$0xff]  ;;  %v595_v12 = vld [vmem:[%s531_s19 + $0x18] sm:$0xff]  ;;  %s1771_s22 = smov (!%p560_p12, %s559_s22), 1  ;;  %v590_v14 = vmul.f32 %v1134_v2, %v586_v3  ;;  %v588_v16 = vmul.f32 %v1130_v4, %v584_v7  ;;  %v591_v17 = vmul.f32 %v1135_v5, %v587_v8  ;;  %v589_v18 = vmul.f32 %v1131_v6, %v585_v9 }
  0x5f   : > { %v1145_v13 = vld [vmem:[%s542_s15 + $0x8] sm:$0xff]   ;;  %v1137_v15 = vld [vmem:[%s542_s15] sm:$0xff]   ;;  %s1126_s2 = sshll.u32 %s1771_s22, 5  ;;  %s1343_s24 = smov 1   ;;  %v615_v9 = vand.u32 15, %v1518_v41 }
  0x60   : > { %v593_v19 = vld [vmem:[%s531_s19 + $0x8] sm:$0xff]  ;;  %v1142_v20 = vunpack.c.l.bf16 %v1145_v13  ;;  %v1138_v21 = vunpack.c.l.bf16 %v1137_v15  ;;  %v1143_v22 = vunpack.c.h.bf16 %v1145_v13  ;;  %v1139_v23 = vunpack.c.h.bf16 %v1137_v15  ;;  %s1514_s17 = scalar_lea.vmem %s1722_s9, %s1126_s2  ;;  %s1344_s22 = smov 127  }
  0x61   : > { %s1094_s11 = sld [smem:[#allocation4 + $0x4]]  ;;  %s1097_s29 = sld [smem:[#allocation4 + $0x7]]  ;;  %v616_v13 = vand.u32 15, %v1541_v59  ;;  %vm1564_vm4 = vcmp.ge.s32.totalorder %v615_v9, 1 }
  0x62   : > { %v598_v24 = vmul.f32 %v1142_v20, %v594_v10  ;;  %v596_v25 = vmul.f32 %v1138_v21, %v592_v11  ;;  %v599_v26 = vmul.f32 %v1143_v22, %v595_v12  ;;  %v597_v27 = vmul.f32 %v1139_v23, %v593_v19  ;;  %s1093_s12 = sld [smem:[#allocation4 + $0x3]]  ;;  %s1096_s19 = sld [smem:[#allocation4 + $0x6]] }
  0x63   : > { %s1092_s23 = sld [smem:[#allocation4 + $0x2]]  ;;  %s1095_s26 = sld [smem:[#allocation4 + $0x5]]  ;;  %v618_v12 = vand.u32 15, %v614_v58  ;;  %vm1610_vm7 = vcmp.le.s32.totalorder %v616_v13, 14 }
  0x64   : > { %v602_v28 = vadd.f32 %v598_v24, %v590_v14  ;;  %v600_v29 = vadd.f32 %v596_v25, %v588_v16  ;;  %v603_v30 = vadd.f32 %v599_v26, %v591_v17  ;;  %v601_v31 = vadd.f32 %v597_v27, %v589_v18  ;;  %s547_s15 = sadd.s32 4, %s1492_s30  ;;  %s1595_s14 = sld [smem:[#allocation7]] }
  0x65   : > { %s1533_s30 = sld [smem:[#allocation3 + %s547_s15]]  ;;  %v617_v17 = vand.u32 15, %v613_v63  ;;  %vm1570_vm5 = vcmp.le.s32.totalorder %v618_v12, 14 }
  0x66   : > { %v606_v32 = vmul.f32 0.5, %v602_v28  ;;  %v604_v33 = vmul.f32 0.5, %v600_v29  ;;  %v607_v34 = vmul.f32 0.5, %v603_v30  ;;  %v605_v35 = vmul.f32 0.5, %v601_v31 }
  0x67   : > { %v678_v39 = vstv %s1094_s11  ;;  %v704_v40 = vstv %s1097_s29  ;;  %vm1579_vm6 = vcmp.ge.s32.totalorder %v617_v17, 1  ;;  %s489_s11 = sand.u32 1, %s1330_s0  }
  0x68   : > { %624 = vrot.lane.b32.xlu1 %v606_v32, %s1343_s24  ;;  %620 = vrot.lane.b32.xlu0 %v604_v33, %s1343_s24  ;;  %v672_v43 = vstv %s1093_s12  ;;  %v698_v44 = vstv %s1096_s19  ;;  %v655_v46 = vmul.f32 %v652_v38, %v606_v32  ;;  %v1525_v47 = vmul.f32 %v678_v39, %v606_v32  ;;  %s1072_s29 = sshll.u32 %s489_s11, 5 }
  0x69   : > { %v1523_v45 = vstv %s1092_s23  ;;  %v707_v48 = vmul.f32 %v704_v40, %v606_v32  ;;  %v1527_v49 = vstv %s1095_s26  ;;  %v653_v52 = vmul.f32 %v652_v38, %v604_v33  ;;  %s1638_s1 = scalar_lea.vmem [#allocation9], %s1072_s29 }
  0x6a   : > { %v1529_v53 = vmul.f32 %v678_v39, %v604_v33  ;;  %v705_v54 = vmul.f32 %v704_v40, %v604_v33  ;;  %v656_v60 = vmul.f32 %v652_v38, %v607_v34  ;;  %v1543_v61 = vmul.f32 %v678_v39, %v607_v34  ;;  %s782_s25 = smul.f32 1.4446303, %s1595_s14 }
  0x6b   : > { %v708_v62 = vmul.f32 %v704_v40, %v607_v34  ;;  %v654_v1 = vmul.f32 %v652_v38, %v605_v35  ;;  %v680_v2 = vmul.f32 %v678_v39, %v605_v35  ;;  %v706_v3 = vmul.f32 %v704_v40, %v605_v35  ;;  %p549_p13 = scmp.lt.s32.totalorder %s1533_s30, 4 }
  0x6c   : > { %626 = vrot.lane.b32.xlu1 %v607_v34, %s1343_s24  ;;  %622 = vrot.lane.b32.xlu0 %v605_v35, %s1343_s24 }
  0x6d   : > { %s1773_s30 = smov (!%p549_p13, %s1533_s30), 4 }
  0x6e   : > { %s1125_s2 = sshll.u32 %s1773_s30, 5 }
  0x70   : > { %635 = vrot.lane.b32.xlu1 %v605_v35, %s1344_s22  ;;  %633 = vrot.lane.b32.xlu0 %v604_v33, %s1344_s22 }
  0x74   : > { %639 = vrot.lane.b32.xlu1 %v607_v34, %s1344_s22  ;;  %637 = vrot.lane.b32.xlu0 %v606_v32, %s1344_s22  ;;  %s553_s22 = scalar_lea.vmem %s1720_s7, %s1125_s2 }
  0xda   : > { %v625_v50 = vpop.permute.xlu1 %624  ;;  %v621_v51 = vpop.permute.xlu0 %620 }
  0xdb   : > { %v630_v56 = vsel %vm619_vm0, %v625_v50, 0.0  ;;  %v628_v57 = vsel %vm619_vm0, %v621_v51, 0.0 }
  0xdc   : > { %v649_v0 = vmul.f32 %v646_v42, %v630_v56  ;;  %v701_v4 = vmul.f32 %v698_v44, %v630_v56  ;;  %v647_v5 = vmul.f32 %v646_v42, %v628_v57  ;;  %v699_v6 = vmul.f32 %v698_v44, %v628_v57 }
  0xdd   : > { %v1553_v14 = vmul.f32 %v672_v43, %v630_v56  ;;  %v673_v15 = vmul.f32 %v672_v43, %v628_v57 }
  0xde   : > { %v627_v7 = vpop.permute.xlu1 %626  ;;  %v623_v8 = vpop.permute.xlu0 %622  ;;  %v659_v18 = vadd.f32 %v655_v46, %v649_v0  ;;  %v711_v22 = vadd.f32 %v707_v48, %v701_v4  ;;  %v657_v23 = vadd.f32 %v653_v52, %v647_v5  ;;  %v709_v24 = vadd.f32 %v705_v54, %v699_v6 }
  0xdf   : > { %v631_v10 = vsel %vm619_vm0, %v627_v7, 0.0  ;;  %v629_v11 = vsel %vm619_vm0, %v623_v8, 0.0  ;;  %v783_v52 = vstv %s782_s25 }
  0xe0   : > { %v648_v16 = vmul.f32 %v646_v42, %v629_v11  ;;  %v650_v19 = vmul.f32 %v646_v42, %v631_v10  ;;  %v702_v20 = vmul.f32 %v698_v44, %v631_v10  ;;  %v700_v21 = vmul.f32 %v698_v44, %v629_v11 }
  0xe1   : > { %v674_v25 = vmul.f32 %v672_v43, %v629_v11  ;;  %v676_v28 = vmul.f32 %v672_v43, %v631_v10 }
  0xe2   : > { %v636_v26 = vpop.permute.xlu1 %635  ;;  %v634_v27 = vpop.permute.xlu0 %633  ;;  %v658_v29 = vadd.f32 %v654_v1, %v648_v16  ;;  %v710_v32 = vadd.f32 %v706_v3, %v700_v21  ;;  %v660_v38 = vadd.f32 %v656_v60, %v650_v19  ;;  %v712_v39 = vadd.f32 %v708_v62, %v702_v20 }
  0xe3   : > { %v642_v30 = vsel %vm632_vm1, %v636_v26, 0.0  ;;  %v641_v31 = vsel %vm632_vm1, %v634_v27, 0.0  ;;  %v684_v44 = vadd.f32 %v680_v2, %v674_v25  ;;  %v685_v20 = vadd.f32 %v1525_v47, %v1553_v14  ;;  %v765_v47 = vld [vmem:[%s553_s22] sm:$0xff]  ;;  %v766_v25 = vld [vmem:[%s553_s22 + $0x8] sm:$0xff]  ;;  %v768_v26 = vld [vmem:[%s553_s22 + $0x18] sm:$0xff] }
  0xe4   : > { %v664_v33 = vmul.f32 %v1523_v45, %v642_v30  ;;  %v716_v34 = vmul.f32 %v1531_v55, %v642_v30  ;;  %v663_v35 = vmul.f32 %v1523_v45, %v641_v31  ;;  %v690_v40 = vmul.f32 %v1527_v49, %v642_v30 }
  0xe5   : > { %v715_v42 = vmul.f32 %v1531_v55, %v641_v31  ;;  %v689_v56 = vmul.f32 %v1527_v49, %v641_v31  ;;  %v686_v21 = vadd.f32 %v1543_v61, %v676_v28 }
  0xe6   : > { %v668_v46 = vadd.f32 %v664_v33, %v658_v29  ;;  %v720_v48 = vadd.f32 %v716_v34, %v710_v32  ;;  %v667_v50 = vadd.f32 %v663_v35, %v657_v23  ;;  %v640_v51 = vpop.permute.xlu1 %639  ;;  %v638_v54 = vpop.permute.xlu0 %637  ;;  %v694_v2 = vadd.f32 %v690_v40, %v684_v44  ;;  %v767_v29 = vld [vmem:[%s553_s22 + $0x10] sm:$0xff] }
  0xe7   : > { %v719_v57 = vadd.f32 %v715_v42, %v709_v24  ;;  %v644_v58 = vsel %vm632_vm1, %v640_v51, 0.0  ;;  %v643_v60 = vsel %vm632_vm1, %v638_v54, 0.0  ;;  %v769_v34 = vmul.f32 1.2247449, %v765_v47 }
  0xe8   : > { %v728_v62 = vrot.slane %v668_v46, 7  ;;  %v749_v63 = vrot.slane %v720_v48, 1  ;;  %v727_v0 = vrot.slane %v667_v50, 7  ;;  %v666_v1 = vmul.f32 %v1523_v45, %v644_v58 }
  0xe9   : > { %v748_v3 = vrot.slane %v719_v57, 1  ;;  %v718_v4 = vmul.f32 %v1531_v55, %v644_v58  ;;  %v665_v5 = vmul.f32 %v1523_v45, %v643_v60  ;;  %v692_v8 = vmul.f32 %v1527_v49, %v644_v58 }
  0xea   : > { %v734_v6 = vsel %vm731_vm2, %v727_v0, %v728_v62  ;;  %v670_v7 = vadd.f32 %v666_v1, %v660_v38  ;;  %v717_v37 = vmul.f32 %v1531_v55, %v643_v60  ;;  %v691_v12 = vmul.f32 %v1527_v49, %v643_v60 }
  0xeb   : > { %v741_v9 = vadd.f32 %v734_v6, %v694_v2  ;;  %v755_v10 = vsel %vm752_vm3, %v748_v3, %v749_v63  ;;  %v722_v11 = vadd.f32 %v718_v4, %v712_v39  ;;  %v683_v45 = vadd.f32 %v1529_v53, %v673_v15 }
  0xec   : > { %v730_v16 = vrot.slane %v670_v7, 7  ;;  %v669_v17 = vadd.f32 %v665_v5, %v659_v18  ;;  %v721_v19 = vadd.f32 %v717_v37, %v711_v22  ;;  %v696_v14 = vadd.f32 %v692_v8, %v686_v21 }
  0xed   : > { %v751_v55 = vrot.slane %v722_v11, 1  ;;  %v693_v49 = vadd.f32 %v689_v56, %v683_v45  ;;  %v695_v59 = vadd.f32 %v691_v12, %v685_v20  ;;  %v770_v39 = vmul.f32 1.2247449, %v766_v25 }
  0xee   : > { %v735_v53 = vsel %vm731_vm2, %v730_v16, %v727_v0  ;;  %v729_v15 = vrot.slane %v669_v17, 7  ;;  %v750_v18 = vrot.slane %v721_v19, 1  ;;  %v772_v40 = vmul.f32 1.2247449, %v768_v26 }
  0xef   : > { %v736_v61 = vsel %vm1564_vm4, %v735_v53, 0.0  ;;  %v756_v22 = vsel %vm752_vm3, %v751_v55, %v748_v3  ;;  %v771_v46 = vmul.f32 1.2247449, %v767_v29  ;;  %v1345_v1 = vmov (!%p1754_p3), 0.0  }
  0xf0   : > { %v740_v13 = vadd.f32 %v736_v61, %v693_v49  ;;  %v760_v24 = vsel %vm1570_vm5, %v756_v22, 0.0  ;;  %v732_v27 = vsel %vm731_vm2, %v729_v15, %v730_v16  ;;  %v733_v28 = vsel %vm731_vm2, %v728_v62, %v729_v15  ;;  %796 = vst [vmem:[%s1723_s10] sm:$0x1] (!%p1754_p3), %v1345_v1 }
  0xf1   : > { %v738_v30 = vsel %vm1579_vm6, %v733_v28, 0.0  ;;  %v743_v31 = vadd.f32 %v732_v27, %v696_v14  ;;  %v753_v32 = vsel %vm752_vm3, %v750_v18, %v751_v55  ;;  %v754_v33 = vsel %vm752_vm3, %v749_v63, %v750_v18 }
  0xf2   : > { %v761_v35 = vadd.f32 %v755_v10, %v740_v13  ;;  %v742_v36 = vadd.f32 %v738_v30, %v695_v59  ;;  %v758_v38 = vsel %vm1610_vm7, %v754_v33, 0.0 }
  0xf3   : > { %v762_v42 = vadd.f32 %v758_v38, %v741_v9  ;;  %v764_v43 = vadd.f32 %v760_v24, %v743_v31 }
  0xf4   : > { %v773_v44 = vmul.f32 1.4446303, %v761_v35  ;;  %v763_v48 = vadd.f32 %v753_v32, %v742_v36 }
  0xf5   : > { %v774_v50 = vmul.f32 1.4446303, %v762_v42  ;;  %v776_v41 = vmul.f32 1.4446303, %v764_v43 }
  0xf6   : > { %v777_v51 = vadd.f32 %v773_v44, %v769_v34  ;;  %v775_v54 = vmul.f32 1.4446303, %v763_v48  ;;  %795 = sbr.rel (%p1754_p3) target bundleno = 253 (0xfd), region = 60 }
  0xf7   : > { %v778_v56 = vadd.f32 %v774_v50, %v770_v39  ;;  %v780_v57 = vadd.f32 %v776_v41, %v772_v40 }
  0xf8   : > { %v779_v58 = vadd.f32 %v775_v54, %v771_v46  ;;  %v784_v60 = vadd.f32 %v783_v52, %v777_v51 }
  0xf9   : > { %v785_v62 = vadd.f32 %v783_v52, %v778_v56  ;;  %v787_v63 = vadd.f32 %v783_v52, %v780_v57 }
  0xfa   : > { %v786_v0 = vadd.f32 %v783_v52, %v779_v58  ;;  %788 = vst [vmem:[%s1638_s1] sm:$0xff] %v784_v60 }
  0xfb   : > { %789 = vst [vmem:[%s1638_s1 + $0x8] sm:$0xff] %v785_v62  ;;  %791 = vst [vmem:[%s1638_s1 + $0x18] sm:$0xff] %v787_v63 }
  0xfc   : > { %790 = vst [vmem:[%s1638_s1 + $0x10] sm:$0xff] %v786_v0 }
  0xfd PF: > { %p1100_p5 = scmp.ge.s32.totalorder %s1428_s21, 2 }
  0xfe   : > { %s1101_s23 = sld [smem:[#allocation7 + $0x1]] (!%p1100_p5)  ;;  %s1102_s26 = sld [smem:[#allocation7 + $0x2]] (!%p1100_p5) }
  0xff   : > { %800 = sbr.rel (%p1100_p5) target bundleno = 307 (0x133), region = 64  ;;  %p1103_p7 = scmp.ge.s32.totalorder (!%p1100_p5), %s1428_s21, 1 }
 0x104   : > { %v802_v2 = vstv (!%p1100_p5), %s1101_s23  ;;  %v812_v7 = vstv (!%p1100_p5), %s1102_s26 }
 0x105   : > { %v803_v3 = vmul.f32 (!%p1100_p5), %v802_v2, %v784_v60  ;;  %v804_v4 = vmul.f32 (!%p1100_p5), %v802_v2, %v785_v62  ;;  %v805_v5 = vmul.f32 (!%p1100_p5), %v802_v2, %v786_v0  ;;  %v806_v6 = vmul.f32 (!%p1100_p5), %v802_v2, %v787_v63 }
 0x106   : > { %824 = sbr.rel (%p1103_p7) target bundleno = 307 (0x133), region = 68  ;;  %v825_v36 = vld [vmem:[%s1723_s10] sm:$0x1] (!%p1103_p7) }
 0x107   : > { %v1146_v8 = vround.rtne.f32 %v803_v3  ;;  %v1147_v37 = vround.rtne.f32 %v804_v4  ;;  %v1148_v9 = vround.rtne.f32 %v805_v5  ;;  %v1149_v10 = vround.rtne.f32 %v806_v6 }
 0x109   : > { %v813_v11 = vmul.f32 %v1146_v8, %v812_v7  ;;  %v814_v12 = vmul.f32 %v1147_v37, %v812_v7  ;;  %v815_v45 = vmul.f32 %v1148_v9, %v812_v7  ;;  %v816_v16 = vmul.f32 %v1149_v10, %v812_v7 }
 0x10a   : > { %v826_v17 = vand.u32 (!%p1103_p7), 2147483647, %v1146_v8  ;;  %v827_v19 = vand.u32 (!%p1103_p7), 2147483647, %v1147_v37  ;;  %v828_v20 = vand.u32 (!%p1103_p7), 2147483647, %v1148_v9 }
 0x10b   : > { %817 = vst [vmem:[%s1514_s17] sm:$0xff] %v813_v11  ;;  %818 = vst [vmem:[%s1514_s17 + $0x8] sm:$0xff] %v814_v12  ;;  %v829_v21 = vand.u32 (!%p1103_p7), 2147483647, %v1149_v10 }
 0x10c   : > { %819 = vst [vmem:[%s1514_s17 + $0x10] sm:$0xff] %v815_v45  ;;  %820 = vst [vmem:[%s1514_s17 + $0x18] sm:$0xff] %v816_v16  ;;  %v830_v55 = vadd.f32 (!%p1103_p7), 1.0, %v826_v17  ;;  %v831_v23 = vadd.f32 (!%p1103_p7), 1.0, %v827_v19  ;;  %v832_v49 = vadd.f32 (!%p1103_p7), 1.0, %v828_v20 }
 0x10d   : > { %v833_v53 = vadd.f32 1.0, %v829_v21 }
 0x10e   : > { %1216 = vlog2.f32 %v830_v55 }
 0x10f   : > { %1218 = vlog2.f32 %v831_v23 }
 0x110   : > { %1220 = vlog2.f32 %v832_v49 }
 0x111   : > { %1222 = vlog2.f32 %v833_v53 }
 0x118   : > { %v1217_v15 = vpop.eup %1216 }
 0x119   : > { %v1219_v18 = vpop.eup %1218  ;;  %v835_v47 = vmul.f32 0.6931472, %v1217_v15 }
 0x11a   : > { %v1221_v14 = vpop.eup %1220  ;;  %v837_v61 = vmul.f32 0.6931472, %v1219_v18 }
 0x11b   : > { %v1223_v22 = vpop.eup %1222  ;;  %v839_v59 = vmul.f32 0.6931472, %v1221_v14  ;;  %v843_v13 = vmul.f32 1.442695, %v835_v47 }
 0x11c   : > { %v841_v24 = vmul.f32 0.6931472, %v1223_v22  ;;  %v844_v25 = vmul.f32 1.442695, %v837_v61 }
 0x11d   : > { %v845_v26 = vmul.f32 1.442695, %v839_v59 }
 0x11e   : > { %v846_v27 = vmul.f32 1.442695, %v841_v24  ;;  %v847_v28 = vadd.f32 %v844_v25, %v843_v13 }
 0x120   : > { %v848_v29 = vadd.f32 %v847_v28, %v845_v26 }
 0x122   : > { %v849_v30 = vadd.f32 %v848_v29, %v846_v27 }
 0x124   : > { %v850_v31 = vrot.slane %v849_v30, 4 }
 0x126   : > { %v851_v32 = vadd.f32 %v850_v31, %v849_v30 }
 0x128   : > { %v852_v33 = vrot.slane %v851_v32, 2 }
 0x12a   : > { %v853_v34 = vadd.f32 %v852_v33, %v851_v32 }
 0x12c   : > { %v854_v35 = vrot.slane %v853_v34, 1 }
 0x12e   : > { %v855_v38 = vadd.f32 %v854_v35, %v853_v34 }
 0x130   : > { %v856_v39 = vadd.f32 %v855_v38, %v825_v36 }
 0x132   : > { %857 = vst [vmem:[%s1723_s10] sm:$0x1] %v856_v39 }
 0x133 PF: > { %s1127_s2 = sshll.u32 %s1428_s21, 9  ;;  %s880_s22 = sshll.u32 %s1638_s1, 4  ;;  %s1668_s22 = int_to_ptr.vmem [resolvable:$true] %s880_s22 }
 0x134   : > { %s1665_s24 = scalar_lea.hbm %s1721_s8, %s1127_s2  ;;  %s1672_s25 = scalar_lea.sflag [#allocation5], %s489_s11 }
 0x135   : > { %s1266_s29 = scalar_lea.vmem %s1668_s22, 512  ;;  %p1755_p0 = scmp.ne.s32.totalorder %s1735_s27, 0 }
 0x136   : > { %p1267_p8 = scmp.ne.s32.totalorder %s1668_s22, %s1266_s29  ;;  %s1346_s21 = smov [#allocation9]  }
 0x137   : > { %s1270_s12 = sshll.u32 %s1346_s21, 4  ;;  %s1271_s12 = int_to_ptr.vmem [resolvable:$false] %s1270_s12 }
 0x138   : > { %p1268_p9 = pnand %p1267_p8, %p1755_p0  ;;  %s1272_s19 = scalar_lea.vmem %s1271_s12, 1024 }
 0x139   : > { %p1273_p10 = scmp.lt.s32.totalorder %s1668_s22, %s1271_s12  ;;  %p1274_p11 = scmp.lt.s32.totalorder %s1272_s19, %s1266_s29 }
 0x13a   : > { %p1269_p1 = pneg %p1268_p9 }
 0x13b   : > { %p1275_p2 = por %p1274_p11, %p1273_p10 }
 0x13d   : > { %p1276_p4 = pnand %p1275_p2, %p1269_p1 }
 0x13f   : > { %1279 = shalt.err (!%p1276_p4)
}
 0x140   : > { %s1280_s11 = scalar_lea.hbm %s1665_s24, 512  ;;  %s1284_s26 = scalar_lea.hbm %s1721_s8, 1024 }
 0x141   : > { %p1281_p6 = scmp.ne.s32.totalorder %s1665_s24, %s1280_s11  ;;  %p1285_p3 = scmp.lt.u32.totalorder %s1665_s24, %s1721_s8 }
 0x142   : > { %p1286_p5 = scmp.lt.u32.totalorder %s1284_s26, %s1280_s11  ;;  %p1288_p8 = scmp.lt.u32.totalorder %s1280_s11, %s1665_s24 }
 0x143   : > { %p1282_p12 = pnand %p1281_p6, %p1755_p0 }
 0x144   : > { %p1287_p7 = por %p1286_p5, %p1285_p3 }
 0x145   : > { %p1283_p13 = pneg %p1282_p12 }
 0x146   : > { %p1289_p9 = por %p1288_p8, %p1287_p7 }
 0x148   : > { %p1290_p1 = pnand %p1289_p9, %p1283_p13 }
 0x14a   : > { %1293 = shalt.err (!%p1290_p1)
}
 0x14b   : > { %s1347_s15 = smov 128   ;;  %s1348_s30 = smov 8  }
 0x14c   : > { %1158 = dma.vmem_to_hbm [thread:$0]  (%p1755_p0), %s1668_s22, 512, %s1665_s24, %s1672_s25, %s1347_s15, %s1347_s15, %s1348_s30  }
 0x14d PF: > { %p1175_p10 = scmp.ge.s32.totalorder %s1338_s20, 2  ;;  %s907_s2 = sand.u32 1, %s1326_s18  }
 0x14e   : > { %p1756_p11 = scmp.ne.s32.totalorder %s1736_s28, 0  ;;  %s908_s14 = scalar_lea.sflag [#allocation5], %s907_s2 }
 0x150   : > { %p1168_p2 = pnand %p1175_p10, %p1756_p11 }
 0x152   : > { %1321 = dma.done.wait (!%p1168_p2), %s908_s14, 512  }
 0x153   : > { %1323 = vsyncadd (!%p1168_p2), %s908_s14, 4294966784  ;;  %s1757_s20 = sld [smem:[#allocation15_spill]]  ;;  %s1758_s16 = sld [smem:[#allocation14_spill]] }
 0x154   : > { %s1759_s19 = sld [smem:[#allocation16_spill]]  ;;  %s1760_s18 = smov %s1330_s0 }
 0x159   : > { %p29_p4 = scmp.ge.s32.totalorder %s1757_s20, 4   ;;  %s1761_s0 = smov %s1758_s16 }
 0x15b   :  { %31 = sbr.rel (!%p29_p4) target bundleno = 21 (0x15), region = 136 }
 0x162   :  { %924 = vsyncpa [#allocation5], 1 }
 0x163   :  { %926 = vsyncpa [#allocation5 + $0x1], 1 }
 0x164   :  { %927 = vsyncpa [#allocation6], 1 }
 0x165   :  { %929 = vsyncpa [#allocation6 + $0x1], 1 }
 0x166   :  { %930 = vsyncpa [#allocation8], 1 }

// kernel: _lambda_.15
= control target key start
LH: loop header
LB: loop body
LE: loop exit
PB: predicated region body
PF: predicated region fallthrough
CT: control target
= control target key end

     0   :  { %s1828_s0 = inlined_call_operand.vmem [shape: s32[3,6], index: 0, kind: input, shape index: {}]   ;;  %s1829_s1 = inlined_call_operand.vmem [shape: f32[9], index: 1, kind: input, shape index: {}]   ;;  %s1830_s2 = inlined_call_operand.vmem [shape: f32[9], index: 2, kind: input, shape index: {}]   ;;  %s1831_s3 = inlined_call_operand.vmem [shape: f32[2], index: 3, kind: input, shape index: {}]   ;;  %s1832_s4 = inlined_call_operand.vmem [shape: f32[2,32,128], index: 4, kind: input, shape index: {}, may-alias: {4,5}]   ;;  %s1833_s5 = inlined_call_operand.vmem [shape: f32[2,32,128], index: 5, kind: input, shape index: {}, may-alias: {4,5}]   ;;  %s1834_s6 = inlined_call_operand.vmem [shape: bf16[72,32,128], index: 6, kind: input, shape index: {}, may-alias: {6,7}]   ;;  %s1835_s7 = inlined_call_operand.vmem [shape: bf16[72,32,128], index: 7, kind: input, shape index: {}, may-alias: {6,7}]   ;;  %s1836_s8 = inlined_call_operand.vmem [shape: f32[2,32,128], index: 8, kind: input, shape index: {}]   ;;  %s1837_s9 = inlined_call_operand.vmem [shape: f32[3,32,128], index: 9, kind: output, shape index: {}]  }
   0x1   :  { %s14_s11 = sshll.u32 %s1828_s0, 4  ;;  %s15_s11 = int_to_ptr.vmem [resolvable:$true] %s14_s11 }
   0x2   :  { %s1292_s12 = scalar_lea.vmem %s15_s11, 64  ;;  %p1297_p1 = scmp.lt.s32.totalorder %s15_s11, %s15_s11 }
   0x3   :  { %p1293_p0 = scmp.ne.s32.totalorder %s15_s11, %s1292_s12  ;;  %p1298_p2 = scmp.lt.s32.totalorder %s1292_s12, %s1292_s12 }
   0x5   :  { %p1299_p3 = por %p1298_p2, %p1297_p1 }
   0x7   :  { %p1300_p4 = pnand %p1299_p3, %p1293_p0 }
   0x9   :  { %1303 = shalt.err (!%p1300_p4)  }
   0xa   :  { %s1367_s13 = smov [#allocation4]  }
   0xb   :  { %17 = dma.vmem_to_smem %s15_s11, 64, %s1367_s13, [#allocation3] }
   0xc   :  { %1353 = dma.done.wait [#allocation3], 64 }
   0xd   :  { %1354 = vsyncadd [#allocation3], 4294967232 }
   0xe   :  { %19 = sfence }
   0xf   :  { %20 = vsyncpa [#allocation6], 0 }
  0x10   :  { %21 = vsyncpa [#allocation8], 0  ;;  %s1428_s14 = smov 0  }
  0x11 LB: > { %s1434_s0 = sadd.s32 4294967295, %s1365_s14   ;;  %p1156_p5 = scmp.ge.s32.totalorder %s1365_s14, 1  ;;  %s1365_s14 = sphi %s1428_s14, %s27_s14  }
  0x12   : > { %p285_p6 = scmp.lt.s32.totalorder %s1365_s14, 4  ;;  %s309_s17 = sshll.u32 %s1830_s2, 4  ;;  %s310_s17 = int_to_ptr.vmem [resolvable:$true] %s309_s17 }
  0x13   : > { %p1838_p8 = scmp.eq.s32.totalorder %s1434_s0, 0  ;;  %s298_s21 = sshll.u32 %s1829_s1, 4  ;;  %s299_s21 = int_to_ptr.vmem [resolvable:$true] %s298_s21 }
  0x14   : > { %p1441_p7 = pnand %p1156_p5, %p285_p6  ;;  %s320_s24 = sshll.u32 %s1831_s3, 4  ;;  %s1460_s24 = int_to_ptr.vmem [resolvable:$true] %s320_s24 }
  0x15   : > { %s1304_s26 = scalar_lea.vmem %s310_s17, 16  ;;  %p1312_p1 = scmp.lt.s32.totalorder %s310_s17, %s310_s17 }
  0x16   : > { %s1840_s18 = scalar_select %p1441_p7, 1, 0 }
  0x17   : > { %p1260_p9 = pneg %p1441_p7  ;;  %p1305_p11 = scmp.ne.s32.totalorder %s310_s17, %s1304_s26 }
  0x18   : > { %p1313_p2 = scmp.lt.s32.totalorder %s1304_s26, %s1304_s26 }
  0x19   : > { %p1456_p10 = pnand %p1838_p8, %p1260_p9 }
  0x1a   : > { %p1314_p3 = por %p1313_p2, %p1312_p1 }
  0x1b   : > { %p1306_p12 = pneg %p1456_p10 }
  0x1d   : > { %p1307_p13 = pnand %p1306_p12, %p1305_p11 }
  0x1f   : > { %p1308_p0 = pneg %p1307_p13 }
  0x21   : > { %p1315_p4 = pnand %p1314_p3, %p1308_p0 }
  0x23   : > { %1318 = shalt.err (!%p1315_p4)
}
  0x24   : > { %s1368_s27 = smov [#allocation7]   ;;  %s1319_s28 = scalar_lea.vmem %s299_s21, 16 }
  0x25   : > { %1266 = dma.vmem_to_smem (!%p1456_p10), %s310_s17, 16, %s1368_s27, [#allocation8]  }
  0x26   : > { %p1320_p5 = scmp.ne.s32.totalorder %s299_s21, %s1319_s28  ;;  %p1327_p8 = scmp.lt.s32.totalorder %s299_s21, %s299_s21 }
  0x27   : > { %p1328_p7 = scmp.lt.s32.totalorder %s1319_s28, %s1319_s28 }
  0x28   : > { %p1322_p6 = pnand %p1320_p5, %p1306_p12 }
  0x29   : > { %p1329_p11 = por %p1328_p7, %p1327_p8 }
  0x2a   : > { %p1323_p9 = pneg %p1322_p6 }
  0x2c   : > { %p1330_p13 = pnand %p1329_p11, %p1323_p9 }
  0x2e   : > { %1333 = shalt.err (!%p1330_p13)
}
  0x2f   : > { %s1369_s29 = smov [#allocation5]   ;;  %s1334_s30 = scalar_lea.vmem %s1460_s24, 16 }
  0x30   : > { %1263 = dma.vmem_to_smem (!%p1456_p10), %s299_s21, 16, %s1369_s29, [#allocation6]  }
  0x31   : > { %p1335_p0 = scmp.ne.s32.totalorder %s1460_s24, %s1334_s30  ;;  %p1342_p3 = scmp.lt.s32.totalorder %s1460_s24, %s1460_s24 }
  0x32   : > { %p1343_p4 = scmp.lt.s32.totalorder %s1334_s30, %s1334_s30 }
  0x33   : > { %p1337_p1 = pnand %p1335_p0, %p1306_p12 }
  0x34   : > { %p1344_p7 = por %p1343_p4, %p1342_p3 }
  0x35   : > { %p1338_p2 = pneg %p1337_p1 }
  0x37   : > { %p1345_p8 = pnand %p1344_p7, %p1338_p2 }
  0x39   : > { %1348 = shalt.err (!%p1345_p8)
}
  0x3a   : > { %s1370_s10 = smov [#allocation9]   ;;  %p1842_p5 = scmp.ne.s32.totalorder %s1840_s18, 0 }
  0x3b   : > { %1269 = dma.vmem_to_smem (!%p1456_p10), %s1460_s24, 16, %s1370_s10, [#allocation8]  }
  0x3c   : > { %401 = sbr.rel (%p1842_p5) target bundleno = 410 (0x19a), region = 52  ;;  %p1843_p6 = scmp.eq.s32.totalorder (!%p1842_p5), %s1434_s0, 0 }
  0x43   : > { %1356 = dma.done.wait (%p1843_p6), [#allocation6], 16   ;;  %p1844_p12 = pmov %p1843_p6 }
  0x44   : > { %p1845_p9 = pmov %p1843_p6 }
  0x45   : > { %1358 = vsyncadd (%p1844_p12), [#allocation6], 4294967280 }
  0x46   : > { %1360 = dma.done.wait (%p1845_p9), [#allocation8], 32   ;;  %p1846_p11 = pmov %p1843_p6 }
  0x48   : > { %1362 = vsyncadd (%p1846_p11), [#allocation8], 4294967264 }
  0x49   : > { %415 = sfence }
  0x4a   : > { %s1165_s11 = sshll.u32 %s1434_s0, 7  ;;  %p1183_p4 = scmp.ge.s32.totalorder %s1434_s0, 2 }
  0x4b   : > { %s482_s12 = sld [smem:[#allocation4 + %s1165_s11]]  ;;  %s491_s13 = sadd.s32 1, %s1165_s11  ;;  %v589_v36 = vlaneseq (!%p1183_p4) }
  0x4c   : > { %s492_s15 = sld [smem:[#allocation4 + %s491_s13]]  ;;  %s502_s16 = sadd.s32 2, %s1165_s11 }
  0x4d   : > { %s503_s17 = sld [smem:[#allocation4 + %s502_s16]]  ;;  %s513_s18 = sadd.s32 3, %s1165_s11  ;;  %v1562_v37 = vand.u32 (!%p1183_p4), 127, %v589_v36  ;;  %v1570_v41 = vshrl.u32 (!%p1183_p4), %v589_v36, 7 }
  0x4e   : > { %s524_s19 = sadd.s32 4, %s1165_s11  ;;  %s514_s20 = sld [smem:[#allocation4 + %s513_s18]] }
  0x4f   : > { %s535_s21 = sadd.s32 5, %s1165_s11  ;;  %s525_s22 = sld [smem:[#allocation4 + %s524_s19]]  ;;  %vm600_vm0 = vcmp.ge.s32.totalorder (!%p1183_p4), %v1562_v37, 1  ;;  %vm613_vm1 = vcmp.le.s32.totalorder (!%p1183_p4), %v1562_v37, 126  ;;  %v595_v58 = vadd.s32 (!%p1183_p4), 24, %v1570_v41  ;;  %v1582_v59 = vadd.s32 (!%p1183_p4), 8, %v1570_v41 }
  0x50   : > { %s536_s23 = sld [smem:[#allocation4 + %s535_s21]]  ;;  %v594_v63 = vadd.s32 (!%p1183_p4), 16, %v1570_v41  ;;  %vm712_vm2 = vcmp.lt.s32.totalorder (!%p1183_p4), %v1570_v41, 1  ;;  %vm733_vm3 = vcmp.lt.s32.totalorder (!%p1183_p4), %v1570_v41, 7 }
  0x51   : > { %p483_p10 = scmp.lt.s32.totalorder %s482_s12, 1  ;;  %s1190_s13 = sld [smem:[#allocation5 + $0x7]] (!%p1183_p4) }
  0x52   : > { %p493_p13 = scmp.lt.s32.totalorder %s492_s15, 1  ;;  %s626_s16 = sld [smem:[#allocation5]] (!%p1183_p4) }
  0x53   : > { %s1864_s12 = smov (!%p483_p10, %s482_s12), 1  ;;  %p504_p0 = scmp.lt.s32.totalorder %s503_s17, 71 }
  0x54   : > { %s1866_s15 = smov (!%p493_p13, %s492_s15), 1  ;;  %s1224_s24 = sshll.u32 %s1864_s12, 5 }
  0x55   : > { %s1498_s27 = scalar_lea.vmem %s1832_s4, %s1224_s24  ;;  %s1225_s28 = sshll.u32 %s1866_s15, 5 }
  0x56   : > { %s1503_s10 = scalar_lea.vmem %s1833_s5, %s1225_s28  ;;  %p515_p1 = scmp.lt.s32.totalorder %s514_s20, 71  ;;  %v567_v12 = vld [vmem:[%s1498_s27 + $0x10] sm:$0xff] (!%p1183_p4)  ;;  %v565_v14 = vld [vmem:[%s1498_s27] sm:$0xff] (!%p1183_p4)  ;;  %v568_v19 = vld [vmem:[%s1498_s27 + $0x18] sm:$0xff] (!%p1183_p4) }
  0x57   : > { %s1868_s17 = smov (!%p504_p0, %s503_s17), 71  ;;  %p526_p2 = scmp.lt.s32.totalorder %s525_s22, 1  ;;  %v575_v13 = vld [vmem:[%s1503_s10 + $0x10] sm:$0xff] (!%p1183_p4)  ;;  %v573_v18 = vld [vmem:[%s1503_s10] sm:$0xff] (!%p1183_p4)  ;;  %v576_v20 = vld [vmem:[%s1503_s10 + $0x18] sm:$0xff] (!%p1183_p4)  ;;  %v685_v40 = vstv (!%p1183_p4), %s1190_s13 }
  0x58   : > { %s1870_s20 = smov (!%p515_p1, %s514_s20), 71  ;;  %s1226_s11 = sshll.u32 %s1868_s17, 4  ;;  %v566_v24 = vld [vmem:[%s1498_s27 + $0x8] sm:$0xff] (!%p1183_p4)  ;;  %v627_v42 = vstv (!%p1183_p4), %s626_s16 }
  0x59   : > { %s508_s12 = scalar_lea.vmem %s1834_s6, %s1226_s11  ;;  %s1227_s18 = sshll.u32 %s1870_s20, 4  ;;  %v574_v25 = vld [vmem:[%s1503_s10 + $0x8] sm:$0xff] (!%p1183_p4) }
  0x5a   : > { %s519_s24 = scalar_lea.vmem %s1835_s7, %s1227_s18  ;;  %p537_p3 = scmp.lt.s32.totalorder %s536_s23, 2  ;;  %v1511_v0 = vld [vmem:[%s508_s12] sm:$0xff]   ;;  %v1513_v1 = vld [vmem:[%s508_s12 + $0x8] sm:$0xff]  }
  0x5b   : > { %s1872_s22 = smov (!%p526_p2, %s525_s22), 1  ;;  %v1232_v2 = vunpack.c.l.bf16 %v1511_v0  ;;  %v1233_v3 = vunpack.c.h.bf16 %v1511_v0  ;;  %v1236_v4 = vunpack.c.l.bf16 %v1513_v1  ;;  %v1237_v5 = vunpack.c.h.bf16 %v1513_v1  ;;  %v1519_v6 = vld [vmem:[%s519_s24] sm:$0xff]   ;;  %v1521_v7 = vld [vmem:[%s519_s24 + $0x8] sm:$0xff]   ;;  %564 = sbr.rel (%p1183_p4) target bundleno = 250 (0xfa), region = 68 }
  0x5c   : > { %s1874_s23 = smov (!%p537_p3, %s536_s23), 2  ;;  %v1240_v8 = vunpack.c.l.bf16 %v1519_v6  ;;  %v1241_v9 = vunpack.c.h.bf16 %v1519_v6  ;;  %v1244_v10 = vunpack.c.l.bf16 %v1521_v7  ;;  %v1245_v11 = vunpack.c.h.bf16 %v1521_v7  ;;  %s1228_s15 = sshll.u32 %s1872_s22, 5 }
  0x5d   : > { %s1530_s25 = scalar_lea.vmem %s1836_s8, %s1228_s15  ;;  %s1229_s26 = sshll.u32 %s1874_s23, 5  ;;  %v571_v15 = vmul.f32 (!%p1183_p4), %v1236_v4, %v567_v12  ;;  %v569_v17 = vmul.f32 (!%p1183_p4), %v1232_v2, %v565_v14  ;;  %v572_v22 = vmul.f32 (!%p1183_p4), %v1237_v5, %v568_v19  ;;  %v570_v27 = vmul.f32 (!%p1183_p4), %v1233_v3, %v566_v24 }
  0x5e   : > { %s1535_s30 = scalar_lea.vmem %s1837_s9, %s1229_s26  ;;  %v579_v16 = vmul.f32 (!%p1183_p4), %v1244_v10, %v575_v13  ;;  %v577_v21 = vmul.f32 (!%p1183_p4), %v1240_v8, %v573_v18  ;;  %v580_v23 = vmul.f32 (!%p1183_p4), %v1245_v11, %v576_v20  ;;  %v578_v28 = vmul.f32 (!%p1183_p4), %v1241_v9, %v574_v25  ;;  %s1371_s22 = smov (!%p1183_p4), 1  }
  0x5f   : > { %s1372_s23 = smov (!%p1183_p4), 127   ;;  %s1184_s27 = sld [smem:[#allocation5 + $0x1]] (!%p1183_p4)  ;;  %v596_v20 = vand.u32 (!%p1183_p4), 15, %v1570_v41  ;;  %v599_v24 = vand.u32 (!%p1183_p4), 15, %v595_v58  ;;  %v597_v25 = vand.u32 (!%p1183_p4), 15, %v1582_v59 }
  0x60   : > { %v583_v26 = vadd.f32 (!%p1183_p4), %v579_v16, %v571_v15  ;;  %v581_v29 = vadd.f32 (!%p1183_p4), %v577_v21, %v569_v17  ;;  %v584_v30 = vadd.f32 (!%p1183_p4), %v580_v23, %v572_v22  ;;  %v582_v32 = vadd.f32 (!%p1183_p4), %v578_v28, %v570_v27  ;;  %s1187_s11 = sld [smem:[#allocation5 + $0x4]] (!%p1183_p4)  ;;  %s1186_s12 = sld [smem:[#allocation5 + $0x3]] (!%p1183_p4) }
  0x61   : > { %s1189_s18 = sld [smem:[#allocation5 + $0x6]] (!%p1183_p4)  ;;  %s1564_s19 = sld [smem:[#allocation5 + $0x2]] (!%p1183_p4)  ;;  %vm1611_vm4 = vcmp.ge.s32.totalorder (!%p1183_p4), %v596_v20, 1  ;;  %vm1617_vm5 = vcmp.le.s32.totalorder (!%p1183_p4), %v599_v24, 14  ;;  %vm1646_vm7 = vcmp.le.s32.totalorder (!%p1183_p4), %v597_v25, 14 }
  0x62   : > { %v587_v31 = vmul.f32 0.5, %v583_v26  ;;  %v585_v33 = vmul.f32 0.5, %v581_v29  ;;  %v588_v34 = vmul.f32 0.5, %v584_v30  ;;  %v586_v35 = vmul.f32 0.5, %v582_v32  ;;  %s1566_s21 = sld [smem:[#allocation5 + $0x5]]  ;;  %s1568_s24 = sld [smem:[#allocation5 + $0x8]] }
  0x63   : > { %v598_v29 = vand.u32 15, %v594_v63  ;;  %s1633_s15 = sld [smem:[#allocation9]]  ;;  %s1192_s20 = sshll.u32 %s1434_s0, 5 }
  0x64   : > { %605 = vrot.lane.b32.xlu1 %v587_v31, %s1371_s22  ;;  %601 = vrot.lane.b32.xlu0 %v585_v33, %s1371_s22  ;;  %v688_v48 = vmul.f32 %v685_v40, %v587_v31  ;;  %v686_v51 = vmul.f32 %v685_v40, %v585_v33  ;;  %v689_v54 = vmul.f32 %v685_v40, %v588_v34 }
  0x65   : > { %v633_v38 = vstv %s1184_s27  ;;  %v687_v13 = vmul.f32 %v685_v40, %v586_v35  ;;  %vm1621_vm6 = vcmp.ge.s32.totalorder %v598_v29, 1 }
  0x66   : > { %v659_v39 = vstv %s1187_s11  ;;  %v653_v43 = vstv %s1186_s12  ;;  %v636_v44 = vmul.f32 %v633_v38, %v587_v31  ;;  %v634_v45 = vmul.f32 %v633_v38, %v585_v33 }
  0x67   : > { %v679_v46 = vstv %s1189_s18  ;;  %v1574_v47 = vmul.f32 %v659_v39, %v587_v31  ;;  %v660_v49 = vmul.f32 %v659_v39, %v585_v33  ;;  %v637_v52 = vmul.f32 %v633_v38, %v588_v34 }
  0x68   : > { %607 = vrot.lane.b32.xlu1 %v588_v34, %s1371_s22  ;;  %603 = vrot.lane.b32.xlu0 %v586_v35, %s1371_s22  ;;  %v1576_v53 = vmul.f32 %v659_v39, %v588_v34  ;;  %v635_v57 = vmul.f32 %v633_v38, %v586_v35  ;;  %v661_v62 = vmul.f32 %v659_v39, %v586_v35  ;;  %v1588_v14 = vstv %s1564_s19 }
  0x69   : > { %v1591_v15 = vstv %s1566_s21  ;;  %v1594_v19 = vstv %s1568_s24  ;;  %s763_s17 = smul.f32 -1.1795356, %s1633_s15 }
  0x6c   : > { %616 = vrot.lane.b32.xlu1 %v586_v35, %s1372_s23  ;;  %614 = vrot.lane.b32.xlu0 %v585_v33, %s1372_s23 }
  0x70   : > { %620 = vrot.lane.b32.xlu1 %v588_v34, %s1372_s23  ;;  %618 = vrot.lane.b32.xlu0 %v587_v31, %s1372_s23 }
  0xd6   : > { %v606_v50 = vpop.permute.xlu1 %605  ;;  %v602_v56 = vpop.permute.xlu0 %601 }
  0xd7   : > { %v611_v55 = vsel %vm600_vm0, %v606_v50, 0.0  ;;  %v609_v61 = vsel %vm600_vm0, %v602_v56, 0.0 }
  0xd8   : > { %v630_v60 = vmul.f32 %v627_v42, %v611_v55  ;;  %v682_v12 = vmul.f32 %v679_v46, %v611_v55  ;;  %v628_v16 = vmul.f32 %v627_v42, %v609_v61  ;;  %v654_v17 = vmul.f32 %v653_v43, %v609_v61 }
  0xd9   : > { %v680_v21 = vmul.f32 %v679_v46, %v609_v61  ;;  %v656_v27 = vmul.f32 %v653_v43, %v611_v55 }
  0xda   : > { %v608_v18 = vpop.permute.xlu1 %607  ;;  %v604_v23 = vpop.permute.xlu0 %603  ;;  %v640_v26 = vadd.f32 %v636_v44, %v630_v60  ;;  %v692_v30 = vadd.f32 %v688_v48, %v682_v12  ;;  %v638_v34 = vadd.f32 %v634_v45, %v628_v16  ;;  %v664_v35 = vadd.f32 %v660_v49, %v654_v17  ;;  %v748_v45 = vld [vmem:[%s1530_s25 + $0x10] sm:$0xff] }
  0xdb   : > { %v612_v22 = vsel %vm600_vm0, %v608_v18, 0.0  ;;  %v610_v28 = vsel %vm600_vm0, %v604_v23, 0.0  ;;  %v690_v40 = vadd.f32 %v686_v51, %v680_v21 }
  0xdc   : > { %v631_v31 = vmul.f32 %v627_v42, %v612_v22  ;;  %v629_v32 = vmul.f32 %v627_v42, %v610_v28  ;;  %v681_v33 = vmul.f32 %v679_v46, %v610_v28  ;;  %v683_v36 = vmul.f32 %v679_v46, %v612_v22 }
  0xdd   : > { %v655_v38 = vmul.f32 %v653_v43, %v610_v28  ;;  %v657_v49 = vmul.f32 %v653_v43, %v612_v22 }
  0xde   : > { %v617_v39 = vpop.permute.xlu1 %616  ;;  %v639_v44 = vadd.f32 %v635_v57, %v629_v32  ;;  %v691_v50 = vadd.f32 %v687_v13, %v681_v33  ;;  %v615_v56 = vpop.permute.xlu0 %614  ;;  %v641_v46 = vadd.f32 %v637_v52, %v631_v31  ;;  %v693_v63 = vadd.f32 %v689_v54, %v683_v36 }
  0xdf   : > { %v623_v55 = vsel %vm613_vm1, %v617_v39, 0.0  ;;  %v622_v42 = vsel %vm613_vm1, %v615_v56, 0.0  ;;  %v665_v12 = vadd.f32 %v661_v62, %v655_v38 }
  0xe0   : > { %v645_v58 = vmul.f32 %v1588_v14, %v623_v55  ;;  %v671_v60 = vmul.f32 %v1591_v15, %v623_v55  ;;  %v697_v48 = vmul.f32 %v1594_v19, %v623_v55  ;;  %v644_v51 = vmul.f32 %v1588_v14, %v622_v42 }
  0xe1   : > { %v696_v57 = vmul.f32 %v1594_v19, %v622_v42  ;;  %v670_v43 = vmul.f32 %v1591_v15, %v622_v42 }
  0xe2   : > { %v649_v13 = vadd.f32 %v645_v58, %v639_v44  ;;  %v701_v16 = vadd.f32 %v697_v48, %v691_v50  ;;  %v621_v17 = vpop.permute.xlu1 %620  ;;  %v648_v20 = vadd.f32 %v644_v51, %v638_v34  ;;  %v619_v22 = vpop.permute.xlu0 %618  ;;  %v675_v23 = vadd.f32 %v671_v60, %v665_v12  ;;  %v749_v51 = vld [vmem:[%s1530_s25 + $0x18] sm:$0xff] }
  0xe3   : > { %v700_v52 = vadd.f32 %v696_v57, %v690_v40  ;;  %v625_v21 = vsel %vm613_vm1, %v621_v17, 0.0  ;;  %v624_v32 = vsel %vm613_vm1, %v619_v22, 0.0  ;;  %v667_v50 = vadd.f32 %v1576_v53, %v657_v49 }
  0xe4   : > { %v709_v24 = vrot.slane %v649_v13, 7  ;;  %v730_v28 = vrot.slane %v701_v16, 1  ;;  %v647_v54 = vmul.f32 %v1588_v14, %v625_v21  ;;  %v708_v62 = vrot.slane %v648_v20, 7 }
  0xe5   : > { %v729_v31 = vrot.slane %v700_v52, 1  ;;  %v699_v29 = vmul.f32 %v1594_v19, %v625_v21  ;;  %v673_v34 = vmul.f32 %v1591_v15, %v625_v21  ;;  %v646_v36 = vmul.f32 %v1588_v14, %v624_v32 }
  0xe6   : > { %v651_v33 = vadd.f32 %v647_v54, %v641_v46  ;;  %v672_v38 = vmul.f32 %v1591_v15, %v624_v32  ;;  %v715_v39 = vsel %vm712_vm2, %v708_v62, %v709_v24  ;;  %v698_v37 = vmul.f32 %v1594_v19, %v624_v32 }
  0xe7   : > { %v736_v40 = vsel %vm733_vm3, %v729_v31, %v730_v28  ;;  %v703_v44 = vadd.f32 %v699_v29, %v693_v63  ;;  %v722_v55 = vadd.f32 %v715_v39, %v675_v23  ;;  %v650_v58 = vadd.f32 %v646_v36, %v640_v26  ;;  %v746_v26 = vld [vmem:[%s1530_s25] sm:$0xff] }
  0xe8   : > { %v711_v56 = vrot.slane %v651_v33, 7  ;;  %v666_v14 = vadd.f32 %v1574_v47, %v656_v27  ;;  %v702_v48 = vadd.f32 %v698_v37, %v692_v30  ;;  %v674_v42 = vadd.f32 %v670_v43, %v664_v35  ;;  %v747_v35 = vld [vmem:[%s1530_s25 + $0x8] sm:$0xff]  ;;  %s774_s25 = scalar_lea.vmem [#allocation2], %s1192_s20 }
  0xe9   : > { %v732_v15 = vrot.slane %v703_v44, 1  ;;  %v677_v19 = vadd.f32 %v673_v34, %v667_v50  ;;  %v710_v46 = vrot.slane %v650_v58, 7  ;;  %v750_v17 = vmul.f32 0.8164966, %v746_v26 }
  0xea   : > { %v716_v53 = vsel %vm712_vm2, %v711_v56, %v708_v62  ;;  %v676_v59 = vadd.f32 %v672_v38, %v666_v14  ;;  %v731_v25 = vrot.slane %v702_v48, 1  ;;  %v751_v21 = vmul.f32 0.8164966, %v747_v35 }
  0xeb   : > { %v717_v47 = vsel %vm1611_vm4, %v716_v53, 0.0  ;;  %v737_v27 = vsel %vm733_vm3, %v732_v15, %v729_v31  ;;  %v713_v57 = vsel %vm712_vm2, %v710_v46, %v711_v56  ;;  %v714_v63 = vsel %vm712_vm2, %v709_v24, %v710_v46 }
  0xec   : > { %v721_v49 = vadd.f32 %v717_v47, %v674_v42  ;;  %v741_v30 = vsel %vm1617_vm5, %v737_v27, 0.0  ;;  %v719_v12 = vsel %vm1621_vm6, %v714_v63, 0.0  ;;  %v724_v13 = vadd.f32 %v713_v57, %v677_v19 }
  0xed   : > { %v734_v16 = vsel %vm733_vm3, %v731_v25, %v732_v15  ;;  %v735_v61 = vsel %vm733_vm3, %v730_v28, %v731_v25  ;;  %v723_v43 = vadd.f32 %v719_v12, %v676_v59  ;;  %v753_v22 = vmul.f32 0.8164966, %v749_v51 }
  0xee   : > { %v742_v20 = vadd.f32 %v736_v40, %v721_v49  ;;  %v739_v52 = vsel %vm1646_vm7, %v735_v61, 0.0  ;;  %v745_v18 = vadd.f32 %v741_v30, %v724_v13  ;;  %v752_v54 = vmul.f32 0.8164966, %v748_v45 }
  0xef   : > { %v743_v23 = vadd.f32 %v739_v52, %v722_v55  ;;  %v744_v62 = vadd.f32 %v734_v16, %v723_v43  ;;  %v764_v29 = vstv %s763_s17 }
  0xf0   : > { %v754_v24 = vmul.f32 -1.1795356, %v742_v20  ;;  %v757_v41 = vmul.f32 -1.1795356, %v745_v18 }
  0xf1   : > { %v755_v31 = vmul.f32 -1.1795356, %v743_v23  ;;  %v756_v32 = vmul.f32 -1.1795356, %v744_v62 }
  0xf2   : > { %v758_v28 = vadd.f32 %v754_v24, %v750_v17  ;;  %v761_v34 = vadd.f32 %v757_v41, %v753_v22 }
  0xf3   : > { %v759_v33 = vadd.f32 %v755_v31, %v751_v21  ;;  %v760_v36 = vadd.f32 %v756_v32, %v752_v54 }
  0xf4   : > { %v765_v38 = vadd.f32 %v764_v29, %v758_v28  ;;  %v768_v40 = vadd.f32 %v764_v29, %v761_v34 }
  0xf5   : > { %v766_v39 = vadd.f32 %v764_v29, %v759_v33  ;;  %v767_v44 = vadd.f32 %v764_v29, %v760_v36 }
  0xf6   : > { %769 = vst [vmem:[%s1535_s30] sm:$0xff] %v765_v38  ;;  %775 = vst [vmem:[%s774_s25] sm:$0xff] %v765_v38 }
  0xf7   : > { %770 = vst [vmem:[%s1535_s30 + $0x8] sm:$0xff] %v766_v39  ;;  %772 = vst [vmem:[%s1535_s30 + $0x18] sm:$0xff] %v768_v40 }
  0xf8   : > { %776 = vst [vmem:[%s774_s25 + $0x8] sm:$0xff] %v766_v39  ;;  %778 = vst [vmem:[%s774_s25 + $0x18] sm:$0xff] %v768_v40 }
  0xf9   : > { %771 = vst [vmem:[%s1535_s30 + $0x10] sm:$0xff] %v767_v44  ;;  %777 = vst [vmem:[%s774_s25 + $0x10] sm:$0xff] %v767_v44 }
  0xfa PF: > { %p1193_p7 = scmp.lt.s32.totalorder %s1434_s0, 2 }
  0xfb   : > { %s1194_s26 = sadd.s32 (!%p1193_p7), 4294967294, %s1434_s0  ;;  %s1196_s28 = sshll.u32 (!%p1193_p7), %s1434_s0, 5  ;;  %v813_v0 = vlaneseq (!%p1193_p7)  ;;  %v970_v22 = vld [vmem:[%s1503_s10] sm:$0xff] (!%p1193_p7)  ;;  %v971_v32 = vld [vmem:[%s1503_s10 + $0x8] sm:$0xff] (!%p1193_p7)  ;;  %v973_v39 = vld [vmem:[%s1503_s10 + $0x18] sm:$0xff] (!%p1193_p7) }
  0xfc   : > { %782 = sbr.rel (%p1193_p7) target bundleno = 410 (0x19a), region = 72  ;;  %s1195_s29 = sshll.u32 (!%p1193_p7), %s1194_s26, 5  ;;  %v1735_v38 = vmul.f32 (!%p1193_p7), 1.1795356, %v970_v22 }
  0xfd   : > { %s1065_s22 = scalar_lea.vmem (!%p1193_p7), [#allocation2], %s1196_s28  ;;  %s785_s23 = scalar_lea.vmem (!%p1193_p7), [#allocation2], %s1195_s29 }
  0xfe   : > { %s1373_s0 = smov (!%p1193_p7), 1   ;;  %s1374_s27 = smov (!%p1193_p7), 127  }
  0xff   : > { %s1201_s11 = sld [smem:[#allocation7 + $0x1]] (!%p1193_p7)  ;;  %s1204_s13 = sld [smem:[#allocation7 + $0x4]] (!%p1193_p7) }
 0x100   : > { %v1199_v37 = vld [vmem:[%s1065_s22 - $0x10] sm:$0xff] (!%p1193_p7)  ;;  %v1197_v50 = vld [vmem:[%s1065_s22 - $0x20] sm:$0xff] (!%p1193_p7)  ;;  %v1200_v55 = vld [vmem:[%s1065_s22 - $0x8] sm:$0xff] (!%p1193_p7)  ;;  %s850_s16 = sld [smem:[#allocation7]] (!%p1193_p7)  ;;  %s1207_s12 = sld [smem:[#allocation7 + $0x7]] (!%p1193_p7) }
 0x101   : > { %v788_v56 = vld [vmem:[%s785_s23 + $0x10] sm:$0xff] (!%p1193_p7)  ;;  %v803_v58 = vmul.f32 (!%p1193_p7), %v1244_v10, %v1199_v37  ;;  %v786_v14 = vld [vmem:[%s785_s23] sm:$0xff] (!%p1193_p7)  ;;  %v801_v15 = vmul.f32 (!%p1193_p7), %v1240_v8, %v1197_v50  ;;  %v789_v60 = vld [vmem:[%s785_s23 + $0x18] sm:$0xff] (!%p1193_p7)  ;;  %v804_v48 = vmul.f32 (!%p1193_p7), %v1245_v11, %v1200_v55  ;;  %s1203_s18 = sld [smem:[#allocation7 + $0x3]] (!%p1193_p7)  ;;  %s1206_s19 = sld [smem:[#allocation7 + $0x6]] (!%p1193_p7) }
 0x102   : > { %v792_v42 = vmul.f32 (!%p1193_p7), %v1236_v4, %v788_v56  ;;  %v790_v19 = vmul.f32 (!%p1193_p7), %v1232_v2, %v786_v14  ;;  %v793_v53 = vmul.f32 (!%p1193_p7), %v1237_v5, %v789_v60  ;;  %v787_v46 = vld [vmem:[%s785_s23 + $0x8] sm:$0xff] (!%p1193_p7)  ;;  %s1202_s21 = sld [smem:[#allocation7 + $0x2]] (!%p1193_p7)  ;;  %s1701_s24 = sld [smem:[#allocation7 + $0x5]] (!%p1193_p7)  ;;  %v1705_v5 = vshrl.u32 (!%p1193_p7), %v813_v0, 7 }
 0x103   : > { %v1198_v26 = vld [vmem:[%s1065_s22 - $0x18] sm:$0xff]  ;;  %v791_v10 = vmul.f32 %v1233_v3, %v787_v46  ;;  %v1699_v3 = vand.u32 127, %v813_v0  ;;  %s1703_s15 = sld [smem:[#allocation7 + $0x8]]  ;;  %v1744_v60 = vmul.f32 1.1795356, %v971_v32  ;;  %s1786_s17 = sld [smem:[#allocation9 + $0x1]] }
 0x104   : > { %v802_v8 = vmul.f32 %v1241_v9, %v1198_v26  ;;  %v807_v47 = vadd.f32 %v803_v58, %v792_v42  ;;  %v805_v7 = vadd.f32 %v801_v15, %v790_v19  ;;  %v808_v11 = vadd.f32 %v804_v48, %v793_v53 }
 0x105   : > { %v857_v6 = vstv %s1201_s11  ;;  %v883_v9 = vstv %s1204_s13  ;;  %vm824_vm8 = vcmp.ge.s32.totalorder %v1699_v3, 1  ;;  %vm837_vm9 = vcmp.le.s32.totalorder %v1699_v3, 126 }
 0x106   : > { %v806_v27 = vadd.f32 %v802_v8, %v791_v10  ;;  %v811_v59 = vmul.f32 0.5, %v807_v47  ;;  %v809_v4 = vmul.f32 0.5, %v805_v7  ;;  %v812_v2 = vmul.f32 0.5, %v808_v11 }
 0x107   : > { %v909_v25 = vstv %s1207_s12  ;;  %v851_v49 = vstv %s850_s16  ;;  %v877_v30 = vstv %s1203_s18  ;;  %v903_v35 = vstv %s1206_s19 }
 0x108   : > { %829 = vrot.lane.b32.xlu1 %v811_v59, %s1373_s0  ;;  %825 = vrot.lane.b32.xlu0 %v809_v4, %s1373_s0  ;;  %v810_v1 = vmul.f32 0.5, %v806_v27  ;;  %v860_v51 = vmul.f32 %v857_v6, %v811_v59  ;;  %v1708_v57 = vmul.f32 %v883_v9, %v811_v59  ;;  %v858_v63 = vmul.f32 %v857_v6, %v809_v4 }
 0x109   : > { %v1710_v45 = vmul.f32 %v883_v9, %v809_v4  ;;  %v912_v12 = vmul.f32 %v909_v25, %v811_v59  ;;  %v910_v13 = vmul.f32 %v909_v25, %v809_v4  ;;  %v861_v16 = vmul.f32 %v857_v6, %v812_v2 }
 0x10a   : > { %v819_v61 = vadd.s32 24, %v1705_v5  ;;  %v1714_v43 = vmul.f32 %v883_v9, %v812_v2  ;;  %v913_v52 = vmul.f32 %v909_v25, %v812_v2  ;;  %v1716_v21 = vstv %s1202_s21 }
 0x10b   : > { %v1720_v23 = vadd.s32 8, %v1705_v5  ;;  %v859_v54 = vmul.f32 %v857_v6, %v810_v1  ;;  %v818_v62 = vadd.s32 16, %v1705_v5  ;;  %v885_v31 = vmul.f32 %v883_v9, %v810_v1 }
 0x10c   : > { %831 = vrot.lane.b32.xlu1 %v812_v2, %s1373_s0  ;;  %827 = vrot.lane.b32.xlu0 %v810_v1, %s1373_s0  ;;  %v911_v41 = vmul.f32 %v909_v25, %v810_v1  ;;  %v1728_v28 = vstv %s1701_s24  ;;  %v1731_v29 = vstv %s1703_s15  ;;  %v820_v34 = vand.u32 15, %v1705_v5 }
 0x10d   : > { %v823_v36 = vand.u32 15, %v819_v61  ;;  %v821_v56 = vand.u32 15, %v1720_v23  ;;  %vm936_vm10 = vcmp.lt.s32.totalorder %v1705_v5, 1  ;;  %v822_v15 = vand.u32 15, %v818_v62 }
 0x10e   : > { %vm957_vm11 = vcmp.lt.s32.totalorder %v1705_v5, 7  ;;  %v1747_v53 = vmul.f32 1.1795356, %v973_v39  ;;  %vm1756_vm12 = vcmp.ge.s32.totalorder %v820_v34, 1  ;;  %v983_v61 = vstv %s1786_s17 }
 0x10f   : > { %vm1762_vm13 = vcmp.le.s32.totalorder %v823_v36, 14  ;;  %vm1766_vm14 = vcmp.ge.s32.totalorder %v822_v15, 1  ;;  %vm1792_vm15 = vcmp.le.s32.totalorder %v821_v56, 14 }
 0x110   : > { %840 = vrot.lane.b32.xlu1 %v810_v1, %s1374_s27  ;;  %838 = vrot.lane.b32.xlu0 %v809_v4, %s1374_s27 }
 0x114   : > { %844 = vrot.lane.b32.xlu1 %v812_v2, %s1374_s27  ;;  %842 = vrot.lane.b32.xlu0 %v811_v59, %s1374_s27 }
 0x17a   : > { %v830_v17 = vpop.permute.xlu1 %829  ;;  %v826_v20 = vpop.permute.xlu0 %825 }
 0x17b   : > { %v835_v18 = vsel %vm824_vm8, %v830_v17, 0.0  ;;  %v833_v24 = vsel %vm824_vm8, %v826_v20, 0.0 }
 0x17c   : > { %v854_v33 = vmul.f32 %v851_v49, %v835_v18  ;;  %v906_v40 = vmul.f32 %v903_v35, %v835_v18  ;;  %v852_v44 = vmul.f32 %v851_v49, %v833_v24  ;;  %v904_v37 = vmul.f32 %v903_v35, %v833_v24 }
 0x17d   : > { %v880_v48 = vmul.f32 %v877_v30, %v835_v18  ;;  %v878_v42 = vmul.f32 %v877_v30, %v833_v24 }
 0x17e   : > { %v832_v50 = vpop.permute.xlu1 %831  ;;  %v828_v55 = vpop.permute.xlu0 %827  ;;  %v864_v46 = vadd.f32 %v860_v51, %v854_v33  ;;  %v916_v47 = vadd.f32 %v912_v12, %v906_v40  ;;  %v862_v7 = vadd.f32 %v858_v63, %v852_v44  ;;  %v914_v11 = vadd.f32 %v910_v13, %v904_v37 }
 0x17f   : > { %v836_v58 = vsel %vm824_vm8, %v832_v50, 0.0  ;;  %v834_v14 = vsel %vm824_vm8, %v828_v55, 0.0 }
 0x180   : > { %v853_v19 = vmul.f32 %v851_v49, %v834_v14  ;;  %v855_v26 = vmul.f32 %v851_v49, %v836_v58  ;;  %v907_v10 = vmul.f32 %v903_v35, %v836_v58  ;;  %v905_v8 = vmul.f32 %v903_v35, %v834_v14 }
 0x181   : > { %v879_v27 = vmul.f32 %v877_v30, %v834_v14  ;;  %v881_v2 = vmul.f32 %v877_v30, %v836_v58 }
 0x182   : > { %v841_v59 = vpop.permute.xlu1 %840  ;;  %v839_v4 = vpop.permute.xlu0 %838  ;;  %v863_v1 = vadd.f32 %v859_v54, %v853_v19  ;;  %v915_v9 = vadd.f32 %v911_v41, %v905_v8  ;;  %v865_v63 = vadd.f32 %v861_v16, %v855_v26  ;;  %v917_v30 = vadd.f32 %v913_v52, %v907_v10 }
 0x183   : > { %v847_v0 = vsel %vm837_vm9, %v841_v59, 0.0  ;;  %v846_v6 = vsel %vm837_vm9, %v839_v4, 0.0  ;;  %v889_v17 = vadd.f32 %v885_v31, %v879_v27  ;;  %v888_v10 = vadd.f32 %v1710_v45, %v878_v42 }
 0x184   : > { %v869_v25 = vmul.f32 %v1716_v21, %v847_v0  ;;  %v921_v49 = vmul.f32 %v1731_v29, %v847_v0  ;;  %v868_v35 = vmul.f32 %v1716_v21, %v846_v6  ;;  %v895_v12 = vmul.f32 %v1728_v28, %v847_v0 }
 0x185   : > { %v920_v13 = vmul.f32 %v1731_v29, %v846_v6  ;;  %v894_v16 = vmul.f32 %v1728_v28, %v846_v6  ;;  %v891_v27 = vadd.f32 %v1714_v43, %v881_v2  ;;  %v972_v43 = vld [vmem:[%s1503_s10 + $0x10] sm:$0xff] }
 0x186   : > { %v873_v20 = vadd.f32 %v869_v25, %v863_v1  ;;  %v925_v22 = vadd.f32 %v921_v49, %v915_v9  ;;  %v872_v18 = vadd.f32 %v868_v35, %v862_v7  ;;  %v845_v24 = vpop.permute.xlu1 %844  ;;  %v843_v62 = vpop.permute.xlu0 %842  ;;  %v899_v39 = vadd.f32 %v895_v12, %v889_v17 }
 0x187   : > { %v924_v52 = vadd.f32 %v920_v13, %v914_v11  ;;  %v849_v41 = vsel %vm837_vm9, %v845_v24, 0.0  ;;  %v848_v32 = vsel %vm837_vm9, %v843_v62, 0.0  ;;  %v890_v11 = vadd.f32 %v1708_v57, %v880_v48 }
 0x188   : > { %v933_v33 = vrot.slane %v873_v20, 7  ;;  %v954_v31 = vrot.slane %v925_v22, 1  ;;  %v932_v34 = vrot.slane %v872_v18, 7  ;;  %v871_v36 = vmul.f32 %v1716_v21, %v849_v41 }
 0x189   : > { %v953_v40 = vrot.slane %v924_v52, 1  ;;  %v923_v44 = vmul.f32 %v1731_v29, %v849_v41  ;;  %v870_v37 = vmul.f32 %v1716_v21, %v848_v32  ;;  %v897_v58 = vmul.f32 %v1728_v28, %v849_v41 }
 0x18a   : > { %v939_v50 = vsel %vm936_vm10, %v932_v34, %v933_v33  ;;  %v875_v55 = vadd.f32 %v871_v36, %v865_v63  ;;  %v922_v3 = vmul.f32 %v1731_v29, %v848_v32  ;;  %v896_v26 = vmul.f32 %v1728_v28, %v848_v32 }
 0x18b   : > { %v946_v14 = vadd.f32 %v939_v50, %v899_v39  ;;  %v960_v15 = vsel %vm957_vm11, %v953_v40, %v954_v31  ;;  %v927_v19 = vadd.f32 %v923_v44, %v917_v30  ;;  %v874_v21 = vadd.f32 %v870_v37, %v864_v46 }
 0x18c   : > { %v935_v8 = vrot.slane %v875_v55, 7  ;;  %v926_v7 = vadd.f32 %v922_v3, %v916_v47  ;;  %v898_v28 = vadd.f32 %v894_v16, %v888_v10  ;;  %v901_v1 = vadd.f32 %v897_v58, %v891_v27 }
 0x18d   : > { %v956_v29 = vrot.slane %v927_v19, 1  ;;  %v934_v42 = vrot.slane %v874_v21, 7  ;;  %v900_v48 = vadd.f32 %v896_v26, %v890_v11  ;;  %v976_v35 = vmul.f32 1.1795356, %v972_v43 }
 0x18e   : > { %v940_v45 = vsel %vm936_vm10, %v935_v8, %v932_v34  ;;  %v955_v4 = vrot.slane %v926_v7, 1 }
 0x18f   : > { %v941_v46 = vsel %vm1756_vm12, %v940_v45, 0.0  ;;  %v961_v57 = vsel %vm957_vm11, %v956_v29, %v953_v40  ;;  %v937_v47 = vsel %vm936_vm10, %v934_v42, %v935_v8  ;;  %v938_v2 = vsel %vm936_vm10, %v933_v33, %v934_v42 }
 0x190   : > { %v945_v23 = vadd.f32 %v941_v46, %v898_v28  ;;  %v965_v56 = vsel %vm1762_vm13, %v961_v57, 0.0  ;;  %v943_v0 = vsel %vm1766_vm14, %v938_v2, 0.0  ;;  %v948_v6 = vadd.f32 %v937_v47, %v901_v1 }
 0x191   : > { %v958_v9 = vsel %vm957_vm11, %v955_v4, %v956_v29  ;;  %v959_v25 = vsel %vm957_vm11, %v954_v31, %v955_v4  ;;  %v947_v51 = vadd.f32 %v943_v0, %v900_v48 }
 0x192   : > { %v966_v49 = vadd.f32 %v960_v15, %v945_v23  ;;  %v963_v63 = vsel %vm1792_vm15, %v959_v25, 0.0  ;;  %v969_v12 = vadd.f32 %v965_v56, %v948_v6 }
 0x193   : > { %v967_v30 = vadd.f32 %v963_v63, %v946_v14  ;;  %v968_v17 = vadd.f32 %v958_v9, %v947_v51 }
 0x194   : > { %v978_v13 = vadd.f32 %v1735_v38, %v966_v49  ;;  %v981_v5 = vadd.f32 %v1747_v53, %v969_v12 }
 0x195   : > { %v979_v20 = vadd.f32 %v1744_v60, %v967_v30  ;;  %v980_v22 = vadd.f32 %v976_v35, %v968_v17 }
 0x196   : > { %v984_v18 = vadd.f32 %v983_v61, %v978_v13  ;;  %v987_v54 = vadd.f32 %v983_v61, %v981_v5 }
 0x197   : > { %v985_v24 = vadd.f32 %v983_v61, %v979_v20  ;;  %v986_v62 = vadd.f32 %v983_v61, %v980_v22 }
 0x198   : > { %988 = vst [vmem:[%s1535_s30] sm:$0xff] %v984_v18  ;;  %991 = vst [vmem:[%s1535_s30 + $0x18] sm:$0xff] %v987_v54 }
 0x199   : > { %989 = vst [vmem:[%s1535_s30 + $0x8] sm:$0xff] %v985_v24  ;;  %990 = vst [vmem:[%s1535_s30 + $0x10] sm:$0xff] %v986_v62 }
 0x19a PF: > { %s27_s14 = sadd.s32 1, %s1365_s14  }
 0x19b   : > { %p24_p8 = scmp.ge.s32.totalorder %s27_s14, 5  }
 0x19d   :  { %26 = sbr.rel (!%p24_p8) target bundleno = 17 (0x11), region = 118 }
 0x1a4   :  { %1022 = vsyncpa [#allocation6], 1 }
 0x1a5   :  { %1024 = vsyncpa [#allocation6 + $0x1], 1 }
 0x1a6   :  { %1025 = vsyncpa [#allocation8], 1 }

// kernel: _lambda_.16
= control target key start
LH: loop header
LB: loop body
LE: loop exit
PB: predicated region body
PF: predicated region fallthrough
CT: control target
= control target key end

     0   :  { %s1828_s0 = inlined_call_operand.vmem [shape: s32[5,6], index: 0, kind: input, shape index: {}]   ;;  %s1829_s1 = inlined_call_operand.vmem [shape: f32[9], index: 1, kind: input, shape index: {}]   ;;  %s1830_s2 = inlined_call_operand.vmem [shape: f32[9], index: 2, kind: input, shape index: {}]   ;;  %s1831_s3 = inlined_call_operand.vmem [shape: f32[2], index: 3, kind: input, shape index: {}]   ;;  %s1832_s4 = inlined_call_operand.vmem [shape: f32[3,32,128], index: 4, kind: input, shape index: {}, may-alias: {4,5}]   ;;  %s1833_s5 = inlined_call_operand.vmem [shape: f32[3,32,128], index: 5, kind: input, shape index: {}, may-alias: {4,5}]   ;;  %s1834_s6 = inlined_call_operand.vmem [shape: bf16[72,32,128], index: 6, kind: input, shape index: {}, may-alias: {6,7}]   ;;  %s1835_s7 = inlined_call_operand.vmem [shape: bf16[72,32,128], index: 7, kind: input, shape index: {}, may-alias: {6,7}]   ;;  %s1836_s8 = inlined_call_operand.vmem [shape: f32[3,32,128], index: 8, kind: input, shape index: {}]   ;;  %s1837_s9 = inlined_call_operand.vmem [shape: f32[5,32,128], index: 9, kind: output, shape index: {}]  }
   0x1   :  { %s14_s11 = sshll.u32 %s1828_s0, 4  ;;  %s15_s11 = int_to_ptr.vmem [resolvable:$true] %s14_s11 }
   0x2   :  { %s1292_s12 = scalar_lea.vmem %s15_s11, 128  ;;  %p1297_p1 = scmp.lt.s32.totalorder %s15_s11, %s15_s11 }
   0x3   :  { %p1293_p0 = scmp.ne.s32.totalorder %s15_s11, %s1292_s12  ;;  %p1298_p2 = scmp.lt.s32.totalorder %s1292_s12, %s1292_s12 }
   0x5   :  { %p1299_p3 = por %p1298_p2, %p1297_p1 }
   0x7   :  { %p1300_p4 = pnand %p1299_p3, %p1293_p0 }
   0x9   :  { %1303 = shalt.err (!%p1300_p4)  }
   0xa   :  { %s1367_s13 = smov [#allocation4]  }
   0xb   :  { %17 = dma.vmem_to_smem %s15_s11, 128, %s1367_s13, [#allocation3] }
   0xc   :  { %1353 = dma.done.wait [#allocation3], 128 }
   0xd   :  { %1354 = vsyncadd [#allocation3], 4294967168 }
   0xe   :  { %19 = sfence }
   0xf   :  { %20 = vsyncpa [#allocation6], 0 }
  0x10   :  { %21 = vsyncpa [#allocation8], 0  ;;  %s1428_s14 = smov 0  }
  0x11 LB: > { %s1434_s0 = sadd.s32 4294967295, %s1365_s14   ;;  %p1156_p5 = scmp.ge.s32.totalorder %s1365_s14, 1  ;;  %s1365_s14 = sphi %s1428_s14, %s27_s14  }
  0x12   : > { %p285_p6 = scmp.lt.s32.totalorder %s1365_s14, 6  ;;  %s309_s17 = sshll.u32 %s1830_s2, 4  ;;  %s310_s17 = int_to_ptr.vmem [resolvable:$true] %s309_s17 }
  0x13   : > { %p1838_p8 = scmp.eq.s32.totalorder %s1434_s0, 0  ;;  %s298_s21 = sshll.u32 %s1829_s1, 4  ;;  %s299_s21 = int_to_ptr.vmem [resolvable:$true] %s298_s21 }
  0x14   : > { %p1441_p7 = pnand %p1156_p5, %p285_p6  ;;  %s320_s24 = sshll.u32 %s1831_s3, 4  ;;  %s1460_s24 = int_to_ptr.vmem [resolvable:$true] %s320_s24 }
  0x15   : > { %s1304_s26 = scalar_lea.vmem %s310_s17, 16  ;;  %p1312_p1 = scmp.lt.s32.totalorder %s310_s17, %s310_s17 }
  0x16   : > { %s1840_s18 = scalar_select %p1441_p7, 1, 0 }
  0x17   : > { %p1260_p9 = pneg %p1441_p7  ;;  %p1305_p11 = scmp.ne.s32.totalorder %s310_s17, %s1304_s26 }
  0x18   : > { %p1313_p2 = scmp.lt.s32.totalorder %s1304_s26, %s1304_s26 }
  0x19   : > { %p1456_p10 = pnand %p1838_p8, %p1260_p9 }
  0x1a   : > { %p1314_p3 = por %p1313_p2, %p1312_p1 }
  0x1b   : > { %p1306_p12 = pneg %p1456_p10 }
  0x1d   : > { %p1307_p13 = pnand %p1306_p12, %p1305_p11 }
  0x1f   : > { %p1308_p0 = pneg %p1307_p13 }
  0x21   : > { %p1315_p4 = pnand %p1314_p3, %p1308_p0 }
  0x23   : > { %1318 = shalt.err (!%p1315_p4)
}
  0x24   : > { %s1368_s27 = smov [#allocation7]   ;;  %s1319_s28 = scalar_lea.vmem %s299_s21, 16 }
  0x25   : > { %1266 = dma.vmem_to_smem (!%p1456_p10), %s310_s17, 16, %s1368_s27, [#allocation8]  }
  0x26   : > { %p1320_p5 = scmp.ne.s32.totalorder %s299_s21, %s1319_s28  ;;  %p1327_p8 = scmp.lt.s32.totalorder %s299_s21, %s299_s21 }
  0x27   : > { %p1328_p7 = scmp.lt.s32.totalorder %s1319_s28, %s1319_s28 }
  0x28   : > { %p1322_p6 = pnand %p1320_p5, %p1306_p12 }
  0x29   : > { %p1329_p11 = por %p1328_p7, %p1327_p8 }
  0x2a   : > { %p1323_p9 = pneg %p1322_p6 }
  0x2c   : > { %p1330_p13 = pnand %p1329_p11, %p1323_p9 }
  0x2e   : > { %1333 = shalt.err (!%p1330_p13)
}
  0x2f   : > { %s1369_s29 = smov [#allocation5]   ;;  %s1334_s30 = scalar_lea.vmem %s1460_s24, 16 }
  0x30   : > { %1263 = dma.vmem_to_smem (!%p1456_p10), %s299_s21, 16, %s1369_s29, [#allocation6]  }
  0x31   : > { %p1335_p0 = scmp.ne.s32.totalorder %s1460_s24, %s1334_s30  ;;  %p1342_p3 = scmp.lt.s32.totalorder %s1460_s24, %s1460_s24 }
  0x32   : > { %p1343_p4 = scmp.lt.s32.totalorder %s1334_s30, %s1334_s30 }
  0x33   : > { %p1337_p1 = pnand %p1335_p0, %p1306_p12 }
  0x34   : > { %p1344_p7 = por %p1343_p4, %p1342_p3 }
  0x35   : > { %p1338_p2 = pneg %p1337_p1 }
  0x37   : > { %p1345_p8 = pnand %p1344_p7, %p1338_p2 }
  0x39   : > { %1348 = shalt.err (!%p1345_p8)
}
  0x3a   : > { %s1370_s10 = smov [#allocation9]   ;;  %p1842_p5 = scmp.ne.s32.totalorder %s1840_s18, 0 }
  0x3b   : > { %1269 = dma.vmem_to_smem (!%p1456_p10), %s1460_s24, 16, %s1370_s10, [#allocation8]  }
  0x3c   : > { %401 = sbr.rel (%p1842_p5) target bundleno = 410 (0x19a), region = 52  ;;  %p1843_p6 = scmp.eq.s32.totalorder (!%p1842_p5), %s1434_s0, 0 }
  0x43   : > { %1356 = dma.done.wait (%p1843_p6), [#allocation6], 16   ;;  %p1844_p12 = pmov %p1843_p6 }
  0x44   : > { %p1845_p9 = pmov %p1843_p6 }
  0x45   : > { %1358 = vsyncadd (%p1844_p12), [#allocation6], 4294967280 }
  0x46   : > { %1360 = dma.done.wait (%p1845_p9), [#allocation8], 32   ;;  %p1846_p11 = pmov %p1843_p6 }
  0x48   : > { %1362 = vsyncadd (%p1846_p11), [#allocation8], 4294967264 }
  0x49   : > { %415 = sfence }
  0x4a   : > { %s1165_s11 = sshll.u32 %s1434_s0, 7  ;;  %p1183_p4 = scmp.ge.s32.totalorder %s1434_s0, 3 }
  0x4b   : > { %s482_s12 = sld [smem:[#allocation4 + %s1165_s11]]  ;;  %s491_s13 = sadd.s32 1, %s1165_s11  ;;  %v589_v36 = vlaneseq (!%p1183_p4) }
  0x4c   : > { %s492_s15 = sld [smem:[#allocation4 + %s491_s13]]  ;;  %s502_s16 = sadd.s32 2, %s1165_s11 }
  0x4d   : > { %s503_s17 = sld [smem:[#allocation4 + %s502_s16]]  ;;  %s513_s18 = sadd.s32 3, %s1165_s11  ;;  %v1562_v37 = vand.u32 (!%p1183_p4), 127, %v589_v36  ;;  %v1570_v41 = vshrl.u32 (!%p1183_p4), %v589_v36, 7 }
  0x4e   : > { %s524_s19 = sadd.s32 4, %s1165_s11  ;;  %s514_s20 = sld [smem:[#allocation4 + %s513_s18]] }
  0x4f   : > { %s535_s21 = sadd.s32 5, %s1165_s11  ;;  %s525_s22 = sld [smem:[#allocation4 + %s524_s19]]  ;;  %vm600_vm0 = vcmp.ge.s32.totalorder (!%p1183_p4), %v1562_v37, 1  ;;  %vm613_vm1 = vcmp.le.s32.totalorder (!%p1183_p4), %v1562_v37, 126  ;;  %v595_v58 = vadd.s32 (!%p1183_p4), 24, %v1570_v41  ;;  %v1582_v59 = vadd.s32 (!%p1183_p4), 8, %v1570_v41 }
  0x50   : > { %s536_s23 = sld [smem:[#allocation4 + %s535_s21]]  ;;  %v594_v63 = vadd.s32 (!%p1183_p4), 16, %v1570_v41  ;;  %vm712_vm2 = vcmp.lt.s32.totalorder (!%p1183_p4), %v1570_v41, 1  ;;  %vm733_vm3 = vcmp.lt.s32.totalorder (!%p1183_p4), %v1570_v41, 7 }
  0x51   : > { %p483_p10 = scmp.lt.s32.totalorder %s482_s12, 2  ;;  %s1190_s13 = sld [smem:[#allocation5 + $0x7]] (!%p1183_p4) }
  0x52   : > { %p493_p13 = scmp.lt.s32.totalorder %s492_s15, 2  ;;  %s626_s16 = sld [smem:[#allocation5]] (!%p1183_p4) }
  0x53   : > { %s1864_s12 = smov (!%p483_p10, %s482_s12), 2  ;;  %p504_p0 = scmp.lt.s32.totalorder %s503_s17, 71 }
  0x54   : > { %s1866_s15 = smov (!%p493_p13, %s492_s15), 2  ;;  %s1224_s24 = sshll.u32 %s1864_s12, 5 }
  0x55   : > { %s1498_s27 = scalar_lea.vmem %s1832_s4, %s1224_s24  ;;  %s1225_s28 = sshll.u32 %s1866_s15, 5 }
  0x56   : > { %s1503_s10 = scalar_lea.vmem %s1833_s5, %s1225_s28  ;;  %p515_p1 = scmp.lt.s32.totalorder %s514_s20, 71  ;;  %v567_v12 = vld [vmem:[%s1498_s27 + $0x10] sm:$0xff] (!%p1183_p4)  ;;  %v565_v14 = vld [vmem:[%s1498_s27] sm:$0xff] (!%p1183_p4)  ;;  %v568_v19 = vld [vmem:[%s1498_s27 + $0x18] sm:$0xff] (!%p1183_p4) }
  0x57   : > { %s1868_s17 = smov (!%p504_p0, %s503_s17), 71  ;;  %p526_p2 = scmp.lt.s32.totalorder %s525_s22, 2  ;;  %v575_v13 = vld [vmem:[%s1503_s10 + $0x10] sm:$0xff] (!%p1183_p4)  ;;  %v573_v18 = vld [vmem:[%s1503_s10] sm:$0xff] (!%p1183_p4)  ;;  %v576_v20 = vld [vmem:[%s1503_s10 + $0x18] sm:$0xff] (!%p1183_p4)  ;;  %v685_v40 = vstv (!%p1183_p4), %s1190_s13 }
  0x58   : > { %s1870_s20 = smov (!%p515_p1, %s514_s20), 71  ;;  %s1226_s11 = sshll.u32 %s1868_s17, 4  ;;  %v566_v24 = vld [vmem:[%s1498_s27 + $0x8] sm:$0xff] (!%p1183_p4)  ;;  %v627_v42 = vstv (!%p1183_p4), %s626_s16 }
  0x59   : > { %s508_s12 = scalar_lea.vmem %s1834_s6, %s1226_s11  ;;  %s1227_s18 = sshll.u32 %s1870_s20, 4  ;;  %v574_v25 = vld [vmem:[%s1503_s10 + $0x8] sm:$0xff] (!%p1183_p4) }
  0x5a   : > { %s519_s24 = scalar_lea.vmem %s1835_s7, %s1227_s18  ;;  %p537_p3 = scmp.lt.s32.totalorder %s536_s23, 4  ;;  %v1511_v0 = vld [vmem:[%s508_s12] sm:$0xff]   ;;  %v1513_v1 = vld [vmem:[%s508_s12 + $0x8] sm:$0xff]  }
  0x5b   : > { %s1872_s22 = smov (!%p526_p2, %s525_s22), 2  ;;  %v1232_v2 = vunpack.c.l.bf16 %v1511_v0  ;;  %v1233_v3 = vunpack.c.h.bf16 %v1511_v0  ;;  %v1236_v4 = vunpack.c.l.bf16 %v1513_v1  ;;  %v1237_v5 = vunpack.c.h.bf16 %v1513_v1  ;;  %v1519_v6 = vld [vmem:[%s519_s24] sm:$0xff]   ;;  %v1521_v7 = vld [vmem:[%s519_s24 + $0x8] sm:$0xff]   ;;  %564 = sbr.rel (%p1183_p4) target bundleno = 250 (0xfa), region = 68 }
  0x5c   : > { %s1874_s23 = smov (!%p537_p3, %s536_s23), 4  ;;  %v1240_v8 = vunpack.c.l.bf16 %v1519_v6  ;;  %v1241_v9 = vunpack.c.h.bf16 %v1519_v6  ;;  %v1244_v10 = vunpack.c.l.bf16 %v1521_v7  ;;  %v1245_v11 = vunpack.c.h.bf16 %v1521_v7  ;;  %s1228_s15 = sshll.u32 %s1872_s22, 5 }
  0x5d   : > { %s1530_s25 = scalar_lea.vmem %s1836_s8, %s1228_s15  ;;  %s1229_s26 = sshll.u32 %s1874_s23, 5  ;;  %v571_v15 = vmul.f32 (!%p1183_p4), %v1236_v4, %v567_v12  ;;  %v569_v17 = vmul.f32 (!%p1183_p4), %v1232_v2, %v565_v14  ;;  %v572_v22 = vmul.f32 (!%p1183_p4), %v1237_v5, %v568_v19  ;;  %v570_v27 = vmul.f32 (!%p1183_p4), %v1233_v3, %v566_v24 }
  0x5e   : > { %s1535_s30 = scalar_lea.vmem %s1837_s9, %s1229_s26  ;;  %v579_v16 = vmul.f32 (!%p1183_p4), %v1244_v10, %v575_v13  ;;  %v577_v21 = vmul.f32 (!%p1183_p4), %v1240_v8, %v573_v18  ;;  %v580_v23 = vmul.f32 (!%p1183_p4), %v1245_v11, %v576_v20  ;;  %v578_v28 = vmul.f32 (!%p1183_p4), %v1241_v9, %v574_v25  ;;  %s1371_s22 = smov (!%p1183_p4), 1  }
  0x5f   : > { %s1372_s23 = smov (!%p1183_p4), 127   ;;  %s1184_s27 = sld [smem:[#allocation5 + $0x1]] (!%p1183_p4)  ;;  %v596_v20 = vand.u32 (!%p1183_p4), 15, %v1570_v41  ;;  %v599_v24 = vand.u32 (!%p1183_p4), 15, %v595_v58  ;;  %v597_v25 = vand.u32 (!%p1183_p4), 15, %v1582_v59 }
  0x60   : > { %v583_v26 = vadd.f32 (!%p1183_p4), %v579_v16, %v571_v15  ;;  %v581_v29 = vadd.f32 (!%p1183_p4), %v577_v21, %v569_v17  ;;  %v584_v30 = vadd.f32 (!%p1183_p4), %v580_v23, %v572_v22  ;;  %v582_v32 = vadd.f32 (!%p1183_p4), %v578_v28, %v570_v27  ;;  %s1187_s11 = sld [smem:[#allocation5 + $0x4]] (!%p1183_p4)  ;;  %s1186_s12 = sld [smem:[#allocation5 + $0x3]] (!%p1183_p4) }
  0x61   : > { %s1189_s18 = sld [smem:[#allocation5 + $0x6]] (!%p1183_p4)  ;;  %s1564_s19 = sld [smem:[#allocation5 + $0x2]] (!%p1183_p4)  ;;  %vm1611_vm4 = vcmp.ge.s32.totalorder (!%p1183_p4), %v596_v20, 1  ;;  %vm1617_vm5 = vcmp.le.s32.totalorder (!%p1183_p4), %v599_v24, 14  ;;  %vm1646_vm7 = vcmp.le.s32.totalorder (!%p1183_p4), %v597_v25, 14 }
  0x62   : > { %v587_v31 = vmul.f32 0.5, %v583_v26  ;;  %v585_v33 = vmul.f32 0.5, %v581_v29  ;;  %v588_v34 = vmul.f32 0.5, %v584_v30  ;;  %v586_v35 = vmul.f32 0.5, %v582_v32  ;;  %s1566_s21 = sld [smem:[#allocation5 + $0x5]]  ;;  %s1568_s24 = sld [smem:[#allocation5 + $0x8]] }
  0x63   : > { %v598_v29 = vand.u32 15, %v594_v63  ;;  %s1633_s15 = sld [smem:[#allocation9]]  ;;  %s1192_s20 = sshll.u32 %s1434_s0, 5 }
  0x64   : > { %605 = vrot.lane.b32.xlu1 %v587_v31, %s1371_s22  ;;  %601 = vrot.lane.b32.xlu0 %v585_v33, %s1371_s22  ;;  %v688_v48 = vmul.f32 %v685_v40, %v587_v31  ;;  %v686_v51 = vmul.f32 %v685_v40, %v585_v33  ;;  %v689_v54 = vmul.f32 %v685_v40, %v588_v34 }
  0x65   : > { %v633_v38 = vstv %s1184_s27  ;;  %v687_v13 = vmul.f32 %v685_v40, %v586_v35  ;;  %vm1621_vm6 = vcmp.ge.s32.totalorder %v598_v29, 1 }
  0x66   : > { %v659_v39 = vstv %s1187_s11  ;;  %v653_v43 = vstv %s1186_s12  ;;  %v636_v44 = vmul.f32 %v633_v38, %v587_v31  ;;  %v634_v45 = vmul.f32 %v633_v38, %v585_v33 }
  0x67   : > { %v679_v46 = vstv %s1189_s18  ;;  %v1574_v47 = vmul.f32 %v659_v39, %v587_v31  ;;  %v660_v49 = vmul.f32 %v659_v39, %v585_v33  ;;  %v637_v52 = vmul.f32 %v633_v38, %v588_v34 }
  0x68   : > { %607 = vrot.lane.b32.xlu1 %v588_v34, %s1371_s22  ;;  %603 = vrot.lane.b32.xlu0 %v586_v35, %s1371_s22  ;;  %v1576_v53 = vmul.f32 %v659_v39, %v588_v34  ;;  %v635_v57 = vmul.f32 %v633_v38, %v586_v35  ;;  %v661_v62 = vmul.f32 %v659_v39, %v586_v35  ;;  %v1588_v14 = vstv %s1564_s19 }
  0x69   : > { %v1591_v15 = vstv %s1566_s21  ;;  %v1594_v19 = vstv %s1568_s24  ;;  %s763_s17 = smul.f32 -1.1795356, %s1633_s15 }
  0x6c   : > { %616 = vrot.lane.b32.xlu1 %v586_v35, %s1372_s23  ;;  %614 = vrot.lane.b32.xlu0 %v585_v33, %s1372_s23 }
  0x70   : > { %620 = vrot.lane.b32.xlu1 %v588_v34, %s1372_s23  ;;  %618 = vrot.lane.b32.xlu0 %v587_v31, %s1372_s23 }
  0xd6   : > { %v606_v50 = vpop.permute.xlu1 %605  ;;  %v602_v56 = vpop.permute.xlu0 %601 }
  0xd7   : > { %v611_v55 = vsel %vm600_vm0, %v606_v50, 0.0  ;;  %v609_v61 = vsel %vm600_vm0, %v602_v56, 0.0 }
  0xd8   : > { %v630_v60 = vmul.f32 %v627_v42, %v611_v55  ;;  %v682_v12 = vmul.f32 %v679_v46, %v611_v55  ;;  %v628_v16 = vmul.f32 %v627_v42, %v609_v61  ;;  %v654_v17 = vmul.f32 %v653_v43, %v609_v61 }
  0xd9   : > { %v680_v21 = vmul.f32 %v679_v46, %v609_v61  ;;  %v656_v27 = vmul.f32 %v653_v43, %v611_v55 }
  0xda   : > { %v608_v18 = vpop.permute.xlu1 %607  ;;  %v604_v23 = vpop.permute.xlu0 %603  ;;  %v640_v26 = vadd.f32 %v636_v44, %v630_v60  ;;  %v692_v30 = vadd.f32 %v688_v48, %v682_v12  ;;  %v638_v34 = vadd.f32 %v634_v45, %v628_v16  ;;  %v664_v35 = vadd.f32 %v660_v49, %v654_v17  ;;  %v748_v45 = vld [vmem:[%s1530_s25 + $0x10] sm:$0xff] }
  0xdb   : > { %v612_v22 = vsel %vm600_vm0, %v608_v18, 0.0  ;;  %v610_v28 = vsel %vm600_vm0, %v604_v23, 0.0  ;;  %v690_v40 = vadd.f32 %v686_v51, %v680_v21 }
  0xdc   : > { %v631_v31 = vmul.f32 %v627_v42, %v612_v22  ;;  %v629_v32 = vmul.f32 %v627_v42, %v610_v28  ;;  %v681_v33 = vmul.f32 %v679_v46, %v610_v28  ;;  %v683_v36 = vmul.f32 %v679_v46, %v612_v22 }
  0xdd   : > { %v655_v38 = vmul.f32 %v653_v43, %v610_v28  ;;  %v657_v49 = vmul.f32 %v653_v43, %v612_v22 }
  0xde   : > { %v617_v39 = vpop.permute.xlu1 %616  ;;  %v639_v44 = vadd.f32 %v635_v57, %v629_v32  ;;  %v691_v50 = vadd.f32 %v687_v13, %v681_v33  ;;  %v615_v56 = vpop.permute.xlu0 %614  ;;  %v641_v46 = vadd.f32 %v637_v52, %v631_v31  ;;  %v693_v63 = vadd.f32 %v689_v54, %v683_v36 }
  0xdf   : > { %v623_v55 = vsel %vm613_vm1, %v617_v39, 0.0  ;;  %v622_v42 = vsel %vm613_vm1, %v615_v56, 0.0  ;;  %v665_v12 = vadd.f32 %v661_v62, %v655_v38 }
  0xe0   : > { %v645_v58 = vmul.f32 %v1588_v14, %v623_v55  ;;  %v671_v60 = vmul.f32 %v1591_v15, %v623_v55  ;;  %v697_v48 = vmul.f32 %v1594_v19, %v623_v55  ;;  %v644_v51 = vmul.f32 %v1588_v14, %v622_v42 }
  0xe1   : > { %v696_v57 = vmul.f32 %v1594_v19, %v622_v42  ;;  %v670_v43 = vmul.f32 %v1591_v15, %v622_v42 }
  0xe2   : > { %v649_v13 = vadd.f32 %v645_v58, %v639_v44  ;;  %v701_v16 = vadd.f32 %v697_v48, %v691_v50  ;;  %v621_v17 = vpop.permute.xlu1 %620  ;;  %v648_v20 = vadd.f32 %v644_v51, %v638_v34  ;;  %v619_v22 = vpop.permute.xlu0 %618  ;;  %v675_v23 = vadd.f32 %v671_v60, %v665_v12  ;;  %v749_v51 = vld [vmem:[%s1530_s25 + $0x18] sm:$0xff] }
  0xe3   : > { %v700_v52 = vadd.f32 %v696_v57, %v690_v40  ;;  %v625_v21 = vsel %vm613_vm1, %v621_v17, 0.0  ;;  %v624_v32 = vsel %vm613_vm1, %v619_v22, 0.0  ;;  %v667_v50 = vadd.f32 %v1576_v53, %v657_v49 }
  0xe4   : > { %v709_v24 = vrot.slane %v649_v13, 7  ;;  %v730_v28 = vrot.slane %v701_v16, 1  ;;  %v647_v54 = vmul.f32 %v1588_v14, %v625_v21  ;;  %v708_v62 = vrot.slane %v648_v20, 7 }
  0xe5   : > { %v729_v31 = vrot.slane %v700_v52, 1  ;;  %v699_v29 = vmul.f32 %v1594_v19, %v625_v21  ;;  %v673_v34 = vmul.f32 %v1591_v15, %v625_v21  ;;  %v646_v36 = vmul.f32 %v1588_v14, %v624_v32 }
  0xe6   : > { %v651_v33 = vadd.f32 %v647_v54, %v641_v46  ;;  %v672_v38 = vmul.f32 %v1591_v15, %v624_v32  ;;  %v715_v39 = vsel %vm712_vm2, %v708_v62, %v709_v24  ;;  %v698_v37 = vmul.f32 %v1594_v19, %v624_v32 }
  0xe7   : > { %v736_v40 = vsel %vm733_vm3, %v729_v31, %v730_v28  ;;  %v703_v44 = vadd.f32 %v699_v29, %v693_v63  ;;  %v722_v55 = vadd.f32 %v715_v39, %v675_v23  ;;  %v650_v58 = vadd.f32 %v646_v36, %v640_v26  ;;  %v746_v26 = vld [vmem:[%s1530_s25] sm:$0xff] }
  0xe8   : > { %v711_v56 = vrot.slane %v651_v33, 7  ;;  %v666_v14 = vadd.f32 %v1574_v47, %v656_v27  ;;  %v702_v48 = vadd.f32 %v698_v37, %v692_v30  ;;  %v674_v42 = vadd.f32 %v670_v43, %v664_v35  ;;  %v747_v35 = vld [vmem:[%s1530_s25 + $0x8] sm:$0xff]  ;;  %s774_s25 = scalar_lea.vmem [#allocation2], %s1192_s20 }
  0xe9   : > { %v732_v15 = vrot.slane %v703_v44, 1  ;;  %v677_v19 = vadd.f32 %v673_v34, %v667_v50  ;;  %v710_v46 = vrot.slane %v650_v58, 7  ;;  %v750_v17 = vmul.f32 0.8164966, %v746_v26 }
  0xea   : > { %v716_v53 = vsel %vm712_vm2, %v711_v56, %v708_v62  ;;  %v676_v59 = vadd.f32 %v672_v38, %v666_v14  ;;  %v731_v25 = vrot.slane %v702_v48, 1  ;;  %v751_v21 = vmul.f32 0.8164966, %v747_v35 }
  0xeb   : > { %v717_v47 = vsel %vm1611_vm4, %v716_v53, 0.0  ;;  %v737_v27 = vsel %vm733_vm3, %v732_v15, %v729_v31  ;;  %v713_v57 = vsel %vm712_vm2, %v710_v46, %v711_v56  ;;  %v714_v63 = vsel %vm712_vm2, %v709_v24, %v710_v46 }
  0xec   : > { %v721_v49 = vadd.f32 %v717_v47, %v674_v42  ;;  %v741_v30 = vsel %vm1617_vm5, %v737_v27, 0.0  ;;  %v719_v12 = vsel %vm1621_vm6, %v714_v63, 0.0  ;;  %v724_v13 = vadd.f32 %v713_v57, %v677_v19 }
  0xed   : > { %v734_v16 = vsel %vm733_vm3, %v731_v25, %v732_v15  ;;  %v735_v61 = vsel %vm733_vm3, %v730_v28, %v731_v25  ;;  %v723_v43 = vadd.f32 %v719_v12, %v676_v59  ;;  %v753_v22 = vmul.f32 0.8164966, %v749_v51 }
  0xee   : > { %v742_v20 = vadd.f32 %v736_v40, %v721_v49  ;;  %v739_v52 = vsel %vm1646_vm7, %v735_v61, 0.0  ;;  %v745_v18 = vadd.f32 %v741_v30, %v724_v13  ;;  %v752_v54 = vmul.f32 0.8164966, %v748_v45 }
  0xef   : > { %v743_v23 = vadd.f32 %v739_v52, %v722_v55  ;;  %v744_v62 = vadd.f32 %v734_v16, %v723_v43  ;;  %v764_v29 = vstv %s763_s17 }
  0xf0   : > { %v754_v24 = vmul.f32 -1.1795356, %v742_v20  ;;  %v757_v41 = vmul.f32 -1.1795356, %v745_v18 }
  0xf1   : > { %v755_v31 = vmul.f32 -1.1795356, %v743_v23  ;;  %v756_v32 = vmul.f32 -1.1795356, %v744_v62 }
  0xf2   : > { %v758_v28 = vadd.f32 %v754_v24, %v750_v17  ;;  %v761_v34 = vadd.f32 %v757_v41, %v753_v22 }
  0xf3   : > { %v759_v33 = vadd.f32 %v755_v31, %v751_v21  ;;  %v760_v36 = vadd.f32 %v756_v32, %v752_v54 }
  0xf4   : > { %v765_v38 = vadd.f32 %v764_v29, %v758_v28  ;;  %v768_v40 = vadd.f32 %v764_v29, %v761_v34 }
  0xf5   : > { %v766_v39 = vadd.f32 %v764_v29, %v759_v33  ;;  %v767_v44 = vadd.f32 %v764_v29, %v760_v36 }
  0xf6   : > { %769 = vst [vmem:[%s1535_s30] sm:$0xff] %v765_v38  ;;  %775 = vst [vmem:[%s774_s25] sm:$0xff] %v765_v38 }
  0xf7   : > { %770 = vst [vmem:[%s1535_s30 + $0x8] sm:$0xff] %v766_v39  ;;  %772 = vst [vmem:[%s1535_s30 + $0x18] sm:$0xff] %v768_v40 }
  0xf8   : > { %776 = vst [vmem:[%s774_s25 + $0x8] sm:$0xff] %v766_v39  ;;  %778 = vst [vmem:[%s774_s25 + $0x18] sm:$0xff] %v768_v40 }
  0xf9   : > { %771 = vst [vmem:[%s1535_s30 + $0x10] sm:$0xff] %v767_v44  ;;  %777 = vst [vmem:[%s774_s25 + $0x10] sm:$0xff] %v767_v44 }
  0xfa PF: > { %p1193_p7 = scmp.lt.s32.totalorder %s1434_s0, 3 }
  0xfb   : > { %s1194_s26 = sadd.s32 (!%p1193_p7), 4294967293, %s1434_s0  ;;  %s1196_s28 = sshll.u32 (!%p1193_p7), %s1434_s0, 5  ;;  %v813_v0 = vlaneseq (!%p1193_p7)  ;;  %v970_v22 = vld [vmem:[%s1503_s10] sm:$0xff] (!%p1193_p7)  ;;  %v971_v32 = vld [vmem:[%s1503_s10 + $0x8] sm:$0xff] (!%p1193_p7)  ;;  %v973_v39 = vld [vmem:[%s1503_s10 + $0x18] sm:$0xff] (!%p1193_p7) }
  0xfc   : > { %782 = sbr.rel (%p1193_p7) target bundleno = 410 (0x19a), region = 72  ;;  %s1195_s29 = sshll.u32 (!%p1193_p7), %s1194_s26, 5  ;;  %v1735_v38 = vmul.f32 (!%p1193_p7), 1.1795356, %v970_v22 }
  0xfd   : > { %s1065_s22 = scalar_lea.vmem (!%p1193_p7), [#allocation2], %s1196_s28  ;;  %s785_s23 = scalar_lea.vmem (!%p1193_p7), [#allocation2], %s1195_s29 }
  0xfe   : > { %s1373_s0 = smov (!%p1193_p7), 1   ;;  %s1374_s27 = smov (!%p1193_p7), 127  }
  0xff   : > { %s1201_s11 = sld [smem:[#allocation7 + $0x1]] (!%p1193_p7)  ;;  %s1204_s13 = sld [smem:[#allocation7 + $0x4]] (!%p1193_p7) }
 0x100   : > { %v1199_v37 = vld [vmem:[%s1065_s22 - $0x30] sm:$0xff] (!%p1193_p7)  ;;  %v1197_v50 = vld [vmem:[%s1065_s22 - $0x40] sm:$0xff] (!%p1193_p7)  ;;  %v1200_v55 = vld [vmem:[%s1065_s22 - $0x28] sm:$0xff] (!%p1193_p7)  ;;  %s850_s16 = sld [smem:[#allocation7]] (!%p1193_p7)  ;;  %s1207_s12 = sld [smem:[#allocation7 + $0x7]] (!%p1193_p7) }
 0x101   : > { %v788_v56 = vld [vmem:[%s785_s23 + $0x10] sm:$0xff] (!%p1193_p7)  ;;  %v803_v58 = vmul.f32 (!%p1193_p7), %v1244_v10, %v1199_v37  ;;  %v786_v14 = vld [vmem:[%s785_s23] sm:$0xff] (!%p1193_p7)  ;;  %v801_v15 = vmul.f32 (!%p1193_p7), %v1240_v8, %v1197_v50  ;;  %v789_v60 = vld [vmem:[%s785_s23 + $0x18] sm:$0xff] (!%p1193_p7)  ;;  %v804_v48 = vmul.f32 (!%p1193_p7), %v1245_v11, %v1200_v55  ;;  %s1203_s18 = sld [smem:[#allocation7 + $0x3]] (!%p1193_p7)  ;;  %s1206_s19 = sld [smem:[#allocation7 + $0x6]] (!%p1193_p7) }
 0x102   : > { %v792_v42 = vmul.f32 (!%p1193_p7), %v1236_v4, %v788_v56  ;;  %v790_v19 = vmul.f32 (!%p1193_p7), %v1232_v2, %v786_v14  ;;  %v793_v53 = vmul.f32 (!%p1193_p7), %v1237_v5, %v789_v60  ;;  %v787_v46 = vld [vmem:[%s785_s23 + $0x8] sm:$0xff] (!%p1193_p7)  ;;  %s1202_s21 = sld [smem:[#allocation7 + $0x2]] (!%p1193_p7)  ;;  %s1701_s24 = sld [smem:[#allocation7 + $0x5]] (!%p1193_p7)  ;;  %v1705_v5 = vshrl.u32 (!%p1193_p7), %v813_v0, 7 }
 0x103   : > { %v1198_v26 = vld [vmem:[%s1065_s22 - $0x38] sm:$0xff]  ;;  %v791_v10 = vmul.f32 %v1233_v3, %v787_v46  ;;  %v1699_v3 = vand.u32 127, %v813_v0  ;;  %s1703_s15 = sld [smem:[#allocation7 + $0x8]]  ;;  %v1744_v60 = vmul.f32 1.1795356, %v971_v32  ;;  %s1786_s17 = sld [smem:[#allocation9 + $0x1]] }
 0x104   : > { %v802_v8 = vmul.f32 %v1241_v9, %v1198_v26  ;;  %v807_v47 = vadd.f32 %v803_v58, %v792_v42  ;;  %v805_v7 = vadd.f32 %v801_v15, %v790_v19  ;;  %v808_v11 = vadd.f32 %v804_v48, %v793_v53 }
 0x105   : > { %v857_v6 = vstv %s1201_s11  ;;  %v883_v9 = vstv %s1204_s13  ;;  %vm824_vm8 = vcmp.ge.s32.totalorder %v1699_v3, 1  ;;  %vm837_vm9 = vcmp.le.s32.totalorder %v1699_v3, 126 }
 0x106   : > { %v806_v27 = vadd.f32 %v802_v8, %v791_v10  ;;  %v811_v59 = vmul.f32 0.5, %v807_v47  ;;  %v809_v4 = vmul.f32 0.5, %v805_v7  ;;  %v812_v2 = vmul.f32 0.5, %v808_v11 }
 0x107   : > { %v909_v25 = vstv %s1207_s12  ;;  %v851_v49 = vstv %s850_s16  ;;  %v877_v30 = vstv %s1203_s18  ;;  %v903_v35 = vstv %s1206_s19 }
 0x108   : > { %829 = vrot.lane.b32.xlu1 %v811_v59, %s1373_s0  ;;  %825 = vrot.lane.b32.xlu0 %v809_v4, %s1373_s0  ;;  %v810_v1 = vmul.f32 0.5, %v806_v27  ;;  %v860_v51 = vmul.f32 %v857_v6, %v811_v59  ;;  %v1708_v57 = vmul.f32 %v883_v9, %v811_v59  ;;  %v858_v63 = vmul.f32 %v857_v6, %v809_v4 }
 0x109   : > { %v1710_v45 = vmul.f32 %v883_v9, %v809_v4  ;;  %v912_v12 = vmul.f32 %v909_v25, %v811_v59  ;;  %v910_v13 = vmul.f32 %v909_v25, %v809_v4  ;;  %v861_v16 = vmul.f32 %v857_v6, %v812_v2 }
 0x10a   : > { %v819_v61 = vadd.s32 24, %v1705_v5  ;;  %v1714_v43 = vmul.f32 %v883_v9, %v812_v2  ;;  %v913_v52 = vmul.f32 %v909_v25, %v812_v2  ;;  %v1716_v21 = vstv %s1202_s21 }
 0x10b   : > { %v1720_v23 = vadd.s32 8, %v1705_v5  ;;  %v859_v54 = vmul.f32 %v857_v6, %v810_v1  ;;  %v818_v62 = vadd.s32 16, %v1705_v5  ;;  %v885_v31 = vmul.f32 %v883_v9, %v810_v1 }
 0x10c   : > { %831 = vrot.lane.b32.xlu1 %v812_v2, %s1373_s0  ;;  %827 = vrot.lane.b32.xlu0 %v810_v1, %s1373_s0  ;;  %v911_v41 = vmul.f32 %v909_v25, %v810_v1  ;;  %v1728_v28 = vstv %s1701_s24  ;;  %v1731_v29 = vstv %s1703_s15  ;;  %v820_v34 = vand.u32 15, %v1705_v5 }
 0x10d   : > { %v823_v36 = vand.u32 15, %v819_v61  ;;  %v821_v56 = vand.u32 15, %v1720_v23  ;;  %vm936_vm10 = vcmp.lt.s32.totalorder %v1705_v5, 1  ;;  %v822_v15 = vand.u32 15, %v818_v62 }
 0x10e   : > { %vm957_vm11 = vcmp.lt.s32.totalorder %v1705_v5, 7  ;;  %v1747_v53 = vmul.f32 1.1795356, %v973_v39  ;;  %vm1756_vm12 = vcmp.ge.s32.totalorder %v820_v34, 1  ;;  %v983_v61 = vstv %s1786_s17 }
 0x10f   : > { %vm1762_vm13 = vcmp.le.s32.totalorder %v823_v36, 14  ;;  %vm1766_vm14 = vcmp.ge.s32.totalorder %v822_v15, 1  ;;  %vm1792_vm15 = vcmp.le.s32.totalorder %v821_v56, 14 }
 0x110   : > { %840 = vrot.lane.b32.xlu1 %v810_v1, %s1374_s27  ;;  %838 = vrot.lane.b32.xlu0 %v809_v4, %s1374_s27 }
 0x114   : > { %844 = vrot.lane.b32.xlu1 %v812_v2, %s1374_s27  ;;  %842 = vrot.lane.b32.xlu0 %v811_v59, %s1374_s27 }
 0x17a   : > { %v830_v17 = vpop.permute.xlu1 %829  ;;  %v826_v20 = vpop.permute.xlu0 %825 }
 0x17b   : > { %v835_v18 = vsel %vm824_vm8, %v830_v17, 0.0  ;;  %v833_v24 = vsel %vm824_vm8, %v826_v20, 0.0 }
 0x17c   : > { %v854_v33 = vmul.f32 %v851_v49, %v835_v18  ;;  %v906_v40 = vmul.f32 %v903_v35, %v835_v18  ;;  %v852_v44 = vmul.f32 %v851_v49, %v833_v24  ;;  %v904_v37 = vmul.f32 %v903_v35, %v833_v24 }
 0x17d   : > { %v880_v48 = vmul.f32 %v877_v30, %v835_v18  ;;  %v878_v42 = vmul.f32 %v877_v30, %v833_v24 }
 0x17e   : > { %v832_v50 = vpop.permute.xlu1 %831  ;;  %v828_v55 = vpop.permute.xlu0 %827  ;;  %v864_v46 = vadd.f32 %v860_v51, %v854_v33  ;;  %v916_v47 = vadd.f32 %v912_v12, %v906_v40  ;;  %v862_v7 = vadd.f32 %v858_v63, %v852_v44  ;;  %v914_v11 = vadd.f32 %v910_v13, %v904_v37 }
 0x17f   : > { %v836_v58 = vsel %vm824_vm8, %v832_v50, 0.0  ;;  %v834_v14 = vsel %vm824_vm8, %v828_v55, 0.0 }
 0x180   : > { %v853_v19 = vmul.f32 %v851_v49, %v834_v14  ;;  %v855_v26 = vmul.f32 %v851_v49, %v836_v58  ;;  %v907_v10 = vmul.f32 %v903_v35, %v836_v58  ;;  %v905_v8 = vmul.f32 %v903_v35, %v834_v14 }
 0x181   : > { %v879_v27 = vmul.f32 %v877_v30, %v834_v14  ;;  %v881_v2 = vmul.f32 %v877_v30, %v836_v58 }
 0x182   : > { %v841_v59 = vpop.permute.xlu1 %840  ;;  %v839_v4 = vpop.permute.xlu0 %838  ;;  %v863_v1 = vadd.f32 %v859_v54, %v853_v19  ;;  %v915_v9 = vadd.f32 %v911_v41, %v905_v8  ;;  %v865_v63 = vadd.f32 %v861_v16, %v855_v26  ;;  %v917_v30 = vadd.f32 %v913_v52, %v907_v10 }
 0x183   : > { %v847_v0 = vsel %vm837_vm9, %v841_v59, 0.0  ;;  %v846_v6 = vsel %vm837_vm9, %v839_v4, 0.0  ;;  %v889_v17 = vadd.f32 %v885_v31, %v879_v27  ;;  %v888_v10 = vadd.f32 %v1710_v45, %v878_v42 }
 0x184   : > { %v869_v25 = vmul.f32 %v1716_v21, %v847_v0  ;;  %v921_v49 = vmul.f32 %v1731_v29, %v847_v0  ;;  %v868_v35 = vmul.f32 %v1716_v21, %v846_v6  ;;  %v895_v12 = vmul.f32 %v1728_v28, %v847_v0 }
 0x185   : > { %v920_v13 = vmul.f32 %v1731_v29, %v846_v6  ;;  %v894_v16 = vmul.f32 %v1728_v28, %v846_v6  ;;  %v891_v27 = vadd.f32 %v1714_v43, %v881_v2  ;;  %v972_v43 = vld [vmem:[%s1503_s10 + $0x10] sm:$0xff] }
 0x186   : > { %v873_v20 = vadd.f32 %v869_v25, %v863_v1  ;;  %v925_v22 = vadd.f32 %v921_v49, %v915_v9  ;;  %v872_v18 = vadd.f32 %v868_v35, %v862_v7  ;;  %v845_v24 = vpop.permute.xlu1 %844  ;;  %v843_v62 = vpop.permute.xlu0 %842  ;;  %v899_v39 = vadd.f32 %v895_v12, %v889_v17 }
 0x187   : > { %v924_v52 = vadd.f32 %v920_v13, %v914_v11  ;;  %v849_v41 = vsel %vm837_vm9, %v845_v24, 0.0  ;;  %v848_v32 = vsel %vm837_vm9, %v843_v62, 0.0  ;;  %v890_v11 = vadd.f32 %v1708_v57, %v880_v48 }
 0x188   : > { %v933_v33 = vrot.slane %v873_v20, 7  ;;  %v954_v31 = vrot.slane %v925_v22, 1  ;;  %v932_v34 = vrot.slane %v872_v18, 7  ;;  %v871_v36 = vmul.f32 %v1716_v21, %v849_v41 }
 0x189   : > { %v953_v40 = vrot.slane %v924_v52, 1  ;;  %v923_v44 = vmul.f32 %v1731_v29, %v849_v41  ;;  %v870_v37 = vmul.f32 %v1716_v21, %v848_v32  ;;  %v897_v58 = vmul.f32 %v1728_v28, %v849_v41 }
 0x18a   : > { %v939_v50 = vsel %vm936_vm10, %v932_v34, %v933_v33  ;;  %v875_v55 = vadd.f32 %v871_v36, %v865_v63  ;;  %v922_v3 = vmul.f32 %v1731_v29, %v848_v32  ;;  %v896_v26 = vmul.f32 %v1728_v28, %v848_v32 }
 0x18b   : > { %v946_v14 = vadd.f32 %v939_v50, %v899_v39  ;;  %v960_v15 = vsel %vm957_vm11, %v953_v40, %v954_v31  ;;  %v927_v19 = vadd.f32 %v923_v44, %v917_v30  ;;  %v874_v21 = vadd.f32 %v870_v37, %v864_v46 }
 0x18c   : > { %v935_v8 = vrot.slane %v875_v55, 7  ;;  %v926_v7 = vadd.f32 %v922_v3, %v916_v47  ;;  %v898_v28 = vadd.f32 %v894_v16, %v888_v10  ;;  %v901_v1 = vadd.f32 %v897_v58, %v891_v27 }
 0x18d   : > { %v956_v29 = vrot.slane %v927_v19, 1  ;;  %v934_v42 = vrot.slane %v874_v21, 7  ;;  %v900_v48 = vadd.f32 %v896_v26, %v890_v11  ;;  %v976_v35 = vmul.f32 1.1795356, %v972_v43 }
 0x18e   : > { %v940_v45 = vsel %vm936_vm10, %v935_v8, %v932_v34  ;;  %v955_v4 = vrot.slane %v926_v7, 1 }
 0x18f   : > { %v941_v46 = vsel %vm1756_vm12, %v940_v45, 0.0  ;;  %v961_v57 = vsel %vm957_vm11, %v956_v29, %v953_v40  ;;  %v937_v47 = vsel %vm936_vm10, %v934_v42, %v935_v8  ;;  %v938_v2 = vsel %vm936_vm10, %v933_v33, %v934_v42 }
 0x190   : > { %v945_v23 = vadd.f32 %v941_v46, %v898_v28  ;;  %v965_v56 = vsel %vm1762_vm13, %v961_v57, 0.0  ;;  %v943_v0 = vsel %vm1766_vm14, %v938_v2, 0.0  ;;  %v948_v6 = vadd.f32 %v937_v47, %v901_v1 }
 0x191   : > { %v958_v9 = vsel %vm957_vm11, %v955_v4, %v956_v29  ;;  %v959_v25 = vsel %vm957_vm11, %v954_v31, %v955_v4  ;;  %v947_v51 = vadd.f32 %v943_v0, %v900_v48 }
 0x192   : > { %v966_v49 = vadd.f32 %v960_v15, %v945_v23  ;;  %v963_v63 = vsel %vm1792_vm15, %v959_v25, 0.0  ;;  %v969_v12 = vadd.f32 %v965_v56, %v948_v6 }
 0x193   : > { %v967_v30 = vadd.f32 %v963_v63, %v946_v14  ;;  %v968_v17 = vadd.f32 %v958_v9, %v947_v51 }
 0x194   : > { %v978_v13 = vadd.f32 %v1735_v38, %v966_v49  ;;  %v981_v5 = vadd.f32 %v1747_v53, %v969_v12 }
 0x195   : > { %v979_v20 = vadd.f32 %v1744_v60, %v967_v30  ;;  %v980_v22 = vadd.f32 %v976_v35, %v968_v17 }
 0x196   : > { %v984_v18 = vadd.f32 %v983_v61, %v978_v13  ;;  %v987_v54 = vadd.f32 %v983_v61, %v981_v5 }
 0x197   : > { %v985_v24 = vadd.f32 %v983_v61, %v979_v20  ;;  %v986_v62 = vadd.f32 %v983_v61, %v980_v22 }
 0x198   : > { %988 = vst [vmem:[%s1535_s30] sm:$0xff] %v984_v18  ;;  %991 = vst [vmem:[%s1535_s30 + $0x18] sm:$0xff] %v987_v54 }
 0x199   : > { %989 = vst [vmem:[%s1535_s30 + $0x8] sm:$0xff] %v985_v24  ;;  %990 = vst [vmem:[%s1535_s30 + $0x10] sm:$0xff] %v986_v62 }
 0x19a PF: > { %s27_s14 = sadd.s32 1, %s1365_s14  }
 0x19b   : > { %p24_p8 = scmp.ge.s32.totalorder %s27_s14, 7  }
 0x19d   :  { %26 = sbr.rel (!%p24_p8) target bundleno = 17 (0x11), region = 118 }
 0x1a4   :  { %1022 = vsyncpa [#allocation6], 1 }
 0x1a5   :  { %1024 = vsyncpa [#allocation6 + $0x1], 1 }
 0x1a6   :  { %1025 = vsyncpa [#allocation8], 1 }

// kernel: _lambda_.17
= control target key start
LH: loop header
LB: loop body
LE: loop exit
PB: predicated region body
PF: predicated region fallthrough
CT: control target
= control target key end

     0   :  { %s1828_s0 = inlined_call_operand.vmem [shape: s32[9,6], index: 0, kind: input, shape index: {}]   ;;  %s1829_s1 = inlined_call_operand.vmem [shape: f32[9], index: 1, kind: input, shape index: {}]   ;;  %s1830_s2 = inlined_call_operand.vmem [shape: f32[9], index: 2, kind: input, shape index: {}]   ;;  %s1831_s3 = inlined_call_operand.vmem [shape: f32[2], index: 3, kind: input, shape index: {}]   ;;  %s1832_s4 = inlined_call_operand.vmem [shape: f32[5,32,128], index: 4, kind: input, shape index: {}, may-alias: {4,5}]   ;;  %s1833_s5 = inlined_call_operand.vmem [shape: f32[5,32,128], index: 5, kind: input, shape index: {}, may-alias: {4,5}]   ;;  %s1834_s6 = inlined_call_operand.vmem [shape: bf16[72,32,128], index: 6, kind: input, shape index: {}, may-alias: {6,7}]   ;;  %s1835_s7 = inlined_call_operand.vmem [shape: bf16[72,32,128], index: 7, kind: input, shape index: {}, may-alias: {6,7}]   ;;  %s1836_s8 = inlined_call_operand.vmem [shape: f32[5,32,128], index: 8, kind: input, shape index: {}]   ;;  %s1837_s9 = inlined_call_operand.vmem [shape: f32[9,32,128], index: 9, kind: output, shape index: {}]  }
   0x1   :  { %s14_s11 = sshll.u32 %s1828_s0, 4  ;;  %s15_s11 = int_to_ptr.vmem [resolvable:$true] %s14_s11 }
   0x2   :  { %s1292_s12 = scalar_lea.vmem %s15_s11, 256  ;;  %p1297_p1 = scmp.lt.s32.totalorder %s15_s11, %s15_s11 }
   0x3   :  { %p1293_p0 = scmp.ne.s32.totalorder %s15_s11, %s1292_s12  ;;  %p1298_p2 = scmp.lt.s32.totalorder %s1292_s12, %s1292_s12 }
   0x5   :  { %p1299_p3 = por %p1298_p2, %p1297_p1 }
   0x7   :  { %p1300_p4 = pnand %p1299_p3, %p1293_p0 }
   0x9   :  { %1303 = shalt.err (!%p1300_p4)  }
   0xa   :  { %s1367_s13 = smov [#allocation4]  }
   0xb   :  { %17 = dma.vmem_to_smem %s15_s11, 256, %s1367_s13, [#allocation3] }
   0xc   :  { %1353 = dma.done.wait [#allocation3], 256 }
   0xd   :  { %1354 = vsyncadd [#allocation3], 4294967040 }
   0xe   :  { %19 = sfence }
   0xf   :  { %20 = vsyncpa [#allocation6], 0 }
  0x10   :  { %21 = vsyncpa [#allocation8], 0  ;;  %s1428_s14 = smov 0  }
  0x11 LB: > { %s1434_s0 = sadd.s32 4294967295, %s1365_s14   ;;  %p1156_p5 = scmp.ge.s32.totalorder %s1365_s14, 1  ;;  %s1365_s14 = sphi %s1428_s14, %s27_s14  }
  0x12   : > { %p285_p6 = scmp.lt.s32.totalorder %s1365_s14, 10  ;;  %s309_s17 = sshll.u32 %s1830_s2, 4  ;;  %s310_s17 = int_to_ptr.vmem [resolvable:$true] %s309_s17 }
  0x13   : > { %p1838_p8 = scmp.eq.s32.totalorder %s1434_s0, 0  ;;  %s298_s21 = sshll.u32 %s1829_s1, 4  ;;  %s299_s21 = int_to_ptr.vmem [resolvable:$true] %s298_s21 }
  0x14   : > { %p1441_p7 = pnand %p1156_p5, %p285_p6  ;;  %s320_s24 = sshll.u32 %s1831_s3, 4  ;;  %s1460_s24 = int_to_ptr.vmem [resolvable:$true] %s320_s24 }
  0x15   : > { %s1304_s26 = scalar_lea.vmem %s310_s17, 16  ;;  %p1312_p1 = scmp.lt.s32.totalorder %s310_s17, %s310_s17 }
  0x16   : > { %s1840_s18 = scalar_select %p1441_p7, 1, 0 }
  0x17   : > { %p1260_p9 = pneg %p1441_p7  ;;  %p1305_p11 = scmp.ne.s32.totalorder %s310_s17, %s1304_s26 }
  0x18   : > { %p1313_p2 = scmp.lt.s32.totalorder %s1304_s26, %s1304_s26 }
  0x19   : > { %p1456_p10 = pnand %p1838_p8, %p1260_p9 }
  0x1a   : > { %p1314_p3 = por %p1313_p2, %p1312_p1 }
  0x1b   : > { %p1306_p12 = pneg %p1456_p10 }
  0x1d   : > { %p1307_p13 = pnand %p1306_p12, %p1305_p11 }
  0x1f   : > { %p1308_p0 = pneg %p1307_p13 }
  0x21   : > { %p1315_p4 = pnand %p1314_p3, %p1308_p0 }
  0x23   : > { %1318 = shalt.err (!%p1315_p4)
}
  0x24   : > { %s1368_s27 = smov [#allocation7]   ;;  %s1319_s28 = scalar_lea.vmem %s299_s21, 16 }
  0x25   : > { %1266 = dma.vmem_to_smem (!%p1456_p10), %s310_s17, 16, %s1368_s27, [#allocation8]  }
  0x26   : > { %p1320_p5 = scmp.ne.s32.totalorder %s299_s21, %s1319_s28  ;;  %p1327_p8 = scmp.lt.s32.totalorder %s299_s21, %s299_s21 }
  0x27   : > { %p1328_p7 = scmp.lt.s32.totalorder %s1319_s28, %s1319_s28 }
  0x28   : > { %p1322_p6 = pnand %p1320_p5, %p1306_p12 }
  0x29   : > { %p1329_p11 = por %p1328_p7, %p1327_p8 }
  0x2a   : > { %p1323_p9 = pneg %p1322_p6 }
  0x2c   : > { %p1330_p13 = pnand %p1329_p11, %p1323_p9 }
  0x2e   : > { %1333 = shalt.err (!%p1330_p13)
}
  0x2f   : > { %s1369_s29 = smov [#allocation5]   ;;  %s1334_s30 = scalar_lea.vmem %s1460_s24, 16 }
  0x30   : > { %1263 = dma.vmem_to_smem (!%p1456_p10), %s299_s21, 16, %s1369_s29, [#allocation6]  }
  0x31   : > { %p1335_p0 = scmp.ne.s32.totalorder %s1460_s24, %s1334_s30  ;;  %p1342_p3 = scmp.lt.s32.totalorder %s1460_s24, %s1460_s24 }
  0x32   : > { %p1343_p4 = scmp.lt.s32.totalorder %s1334_s30, %s1334_s30 }
  0x33   : > { %p1337_p1 = pnand %p1335_p0, %p1306_p12 }
  0x34   : > { %p1344_p7 = por %p1343_p4, %p1342_p3 }
  0x35   : > { %p1338_p2 = pneg %p1337_p1 }
  0x37   : > { %p1345_p8 = pnand %p1344_p7, %p1338_p2 }
  0x39   : > { %1348 = shalt.err (!%p1345_p8)
}
  0x3a   : > { %s1370_s10 = smov [#allocation9]   ;;  %p1842_p5 = scmp.ne.s32.totalorder %s1840_s18, 0 }
  0x3b   : > { %1269 = dma.vmem_to_smem (!%p1456_p10), %s1460_s24, 16, %s1370_s10, [#allocation8]  }
  0x3c   : > { %401 = sbr.rel (%p1842_p5) target bundleno = 410 (0x19a), region = 52  ;;  %p1843_p6 = scmp.eq.s32.totalorder (!%p1842_p5), %s1434_s0, 0 }
  0x43   : > { %1356 = dma.done.wait (%p1843_p6), [#allocation6], 16   ;;  %p1844_p12 = pmov %p1843_p6 }
  0x44   : > { %p1845_p9 = pmov %p1843_p6 }
  0x45   : > { %1358 = vsyncadd (%p1844_p12), [#allocation6], 4294967280 }
  0x46   : > { %1360 = dma.done.wait (%p1845_p9), [#allocation8], 32   ;;  %p1846_p11 = pmov %p1843_p6 }
  0x48   : > { %1362 = vsyncadd (%p1846_p11), [#allocation8], 4294967264 }
  0x49   : > { %415 = sfence }
  0x4a   : > { %s1165_s11 = sshll.u32 %s1434_s0, 7  ;;  %p1183_p4 = scmp.ge.s32.totalorder %s1434_s0, 5 }
  0x4b   : > { %s482_s12 = sld [smem:[#allocation4 + %s1165_s11]]  ;;  %s491_s13 = sadd.s32 1, %s1165_s11  ;;  %v589_v36 = vlaneseq (!%p1183_p4) }
  0x4c   : > { %s492_s15 = sld [smem:[#allocation4 + %s491_s13]]  ;;  %s502_s16 = sadd.s32 2, %s1165_s11 }
  0x4d   : > { %s503_s17 = sld [smem:[#allocation4 + %s502_s16]]  ;;  %s513_s18 = sadd.s32 3, %s1165_s11  ;;  %v1562_v37 = vand.u32 (!%p1183_p4), 127, %v589_v36  ;;  %v1570_v41 = vshrl.u32 (!%p1183_p4), %v589_v36, 7 }
  0x4e   : > { %s524_s19 = sadd.s32 4, %s1165_s11  ;;  %s514_s20 = sld [smem:[#allocation4 + %s513_s18]] }
  0x4f   : > { %s535_s21 = sadd.s32 5, %s1165_s11  ;;  %s525_s22 = sld [smem:[#allocation4 + %s524_s19]]  ;;  %vm600_vm0 = vcmp.ge.s32.totalorder (!%p1183_p4), %v1562_v37, 1  ;;  %vm613_vm1 = vcmp.le.s32.totalorder (!%p1183_p4), %v1562_v37, 126  ;;  %v595_v58 = vadd.s32 (!%p1183_p4), 24, %v1570_v41  ;;  %v1582_v59 = vadd.s32 (!%p1183_p4), 8, %v1570_v41 }
  0x50   : > { %s536_s23 = sld [smem:[#allocation4 + %s535_s21]]  ;;  %v594_v63 = vadd.s32 (!%p1183_p4), 16, %v1570_v41  ;;  %vm712_vm2 = vcmp.lt.s32.totalorder (!%p1183_p4), %v1570_v41, 1  ;;  %vm733_vm3 = vcmp.lt.s32.totalorder (!%p1183_p4), %v1570_v41, 7 }
  0x51   : > { %p483_p10 = scmp.lt.s32.totalorder %s482_s12, 4  ;;  %s1190_s13 = sld [smem:[#allocation5 + $0x7]] (!%p1183_p4) }
  0x52   : > { %p493_p13 = scmp.lt.s32.totalorder %s492_s15, 4  ;;  %s626_s16 = sld [smem:[#allocation5]] (!%p1183_p4) }
  0x53   : > { %s1864_s12 = smov (!%p483_p10, %s482_s12), 4  ;;  %p504_p0 = scmp.lt.s32.totalorder %s503_s17, 71 }
  0x54   : > { %s1866_s15 = smov (!%p493_p13, %s492_s15), 4  ;;  %s1224_s24 = sshll.u32 %s1864_s12, 5 }
  0x55   : > { %s1498_s27 = scalar_lea.vmem %s1832_s4, %s1224_s24  ;;  %s1225_s28 = sshll.u32 %s1866_s15, 5 }
  0x56   : > { %s1503_s10 = scalar_lea.vmem %s1833_s5, %s1225_s28  ;;  %p515_p1 = scmp.lt.s32.totalorder %s514_s20, 71  ;;  %v567_v12 = vld [vmem:[%s1498_s27 + $0x10] sm:$0xff] (!%p1183_p4)  ;;  %v565_v14 = vld [vmem:[%s1498_s27] sm:$0xff] (!%p1183_p4)  ;;  %v568_v19 = vld [vmem:[%s1498_s27 + $0x18] sm:$0xff] (!%p1183_p4) }
  0x57   : > { %s1868_s17 = smov (!%p504_p0, %s503_s17), 71  ;;  %p526_p2 = scmp.lt.s32.totalorder %s525_s22, 4  ;;  %v575_v13 = vld [vmem:[%s1503_s10 + $0x10] sm:$0xff] (!%p1183_p4)  ;;  %v573_v18 = vld [vmem:[%s1503_s10] sm:$0xff] (!%p1183_p4)  ;;  %v576_v20 = vld [vmem:[%s1503_s10 + $0x18] sm:$0xff] (!%p1183_p4)  ;;  %v685_v40 = vstv (!%p1183_p4), %s1190_s13 }
  0x58   : > { %s1870_s20 = smov (!%p515_p1, %s514_s20), 71  ;;  %s1226_s11 = sshll.u32 %s1868_s17, 4  ;;  %v566_v24 = vld [vmem:[%s1498_s27 + $0x8] sm:$0xff] (!%p1183_p4)  ;;  %v627_v42 = vstv (!%p1183_p4), %s626_s16 }
  0x59   : > { %s508_s12 = scalar_lea.vmem %s1834_s6, %s1226_s11  ;;  %s1227_s18 = sshll.u32 %s1870_s20, 4  ;;  %v574_v25 = vld [vmem:[%s1503_s10 + $0x8] sm:$0xff] (!%p1183_p4) }
  0x5a   : > { %s519_s24 = scalar_lea.vmem %s1835_s7, %s1227_s18  ;;  %p537_p3 = scmp.lt.s32.totalorder %s536_s23, 8  ;;  %v1511_v0 = vld [vmem:[%s508_s12] sm:$0xff]   ;;  %v1513_v1 = vld [vmem:[%s508_s12 + $0x8] sm:$0xff]  }
  0x5b   : > { %s1872_s22 = smov (!%p526_p2, %s525_s22), 4  ;;  %v1232_v2 = vunpack.c.l.bf16 %v1511_v0  ;;  %v1233_v3 = vunpack.c.h.bf16 %v1511_v0  ;;  %v1236_v4 = vunpack.c.l.bf16 %v1513_v1  ;;  %v1237_v5 = vunpack.c.h.bf16 %v1513_v1  ;;  %v1519_v6 = vld [vmem:[%s519_s24] sm:$0xff]   ;;  %v1521_v7 = vld [vmem:[%s519_s24 + $0x8] sm:$0xff]   ;;  %564 = sbr.rel (%p1183_p4) target bundleno = 250 (0xfa), region = 68 }
  0x5c   : > { %s1874_s23 = smov (!%p537_p3, %s536_s23), 8  ;;  %v1240_v8 = vunpack.c.l.bf16 %v1519_v6  ;;  %v1241_v9 = vunpack.c.h.bf16 %v1519_v6  ;;  %v1244_v10 = vunpack.c.l.bf16 %v1521_v7  ;;  %v1245_v11 = vunpack.c.h.bf16 %v1521_v7  ;;  %s1228_s15 = sshll.u32 %s1872_s22, 5 }
  0x5d   : > { %s1530_s25 = scalar_lea.vmem %s1836_s8, %s1228_s15  ;;  %s1229_s26 = sshll.u32 %s1874_s23, 5  ;;  %v571_v15 = vmul.f32 (!%p1183_p4), %v1236_v4, %v567_v12  ;;  %v569_v17 = vmul.f32 (!%p1183_p4), %v1232_v2, %v565_v14  ;;  %v572_v22 = vmul.f32 (!%p1183_p4), %v1237_v5, %v568_v19  ;;  %v570_v27 = vmul.f32 (!%p1183_p4), %v1233_v3, %v566_v24 }
  0x5e   : > { %s1535_s30 = scalar_lea.vmem %s1837_s9, %s1229_s26  ;;  %v579_v16 = vmul.f32 (!%p1183_p4), %v1244_v10, %v575_v13  ;;  %v577_v21 = vmul.f32 (!%p1183_p4), %v1240_v8, %v573_v18  ;;  %v580_v23 = vmul.f32 (!%p1183_p4), %v1245_v11, %v576_v20  ;;  %v578_v28 = vmul.f32 (!%p1183_p4), %v1241_v9, %v574_v25  ;;  %s1371_s22 = smov (!%p1183_p4), 1  }
  0x5f   : > { %s1372_s23 = smov (!%p1183_p4), 127   ;;  %s1184_s27 = sld [smem:[#allocation5 + $0x1]] (!%p1183_p4)  ;;  %v596_v20 = vand.u32 (!%p1183_p4), 15, %v1570_v41  ;;  %v599_v24 = vand.u32 (!%p1183_p4), 15, %v595_v58  ;;  %v597_v25 = vand.u32 (!%p1183_p4), 15, %v1582_v59 }
  0x60   : > { %v583_v26 = vadd.f32 (!%p1183_p4), %v579_v16, %v571_v15  ;;  %v581_v29 = vadd.f32 (!%p1183_p4), %v577_v21, %v569_v17  ;;  %v584_v30 = vadd.f32 (!%p1183_p4), %v580_v23, %v572_v22  ;;  %v582_v32 = vadd.f32 (!%p1183_p4), %v578_v28, %v570_v27  ;;  %s1187_s11 = sld [smem:[#allocation5 + $0x4]] (!%p1183_p4)  ;;  %s1186_s12 = sld [smem:[#allocation5 + $0x3]] (!%p1183_p4) }
  0x61   : > { %s1189_s18 = sld [smem:[#allocation5 + $0x6]] (!%p1183_p4)  ;;  %s1564_s19 = sld [smem:[#allocation5 + $0x2]] (!%p1183_p4)  ;;  %vm1611_vm4 = vcmp.ge.s32.totalorder (!%p1183_p4), %v596_v20, 1  ;;  %vm1617_vm5 = vcmp.le.s32.totalorder (!%p1183_p4), %v599_v24, 14  ;;  %vm1646_vm7 = vcmp.le.s32.totalorder (!%p1183_p4), %v597_v25, 14 }
  0x62   : > { %v587_v31 = vmul.f32 0.5, %v583_v26  ;;  %v585_v33 = vmul.f32 0.5, %v581_v29  ;;  %v588_v34 = vmul.f32 0.5, %v584_v30  ;;  %v586_v35 = vmul.f32 0.5, %v582_v32  ;;  %s1566_s21 = sld [smem:[#allocation5 + $0x5]]  ;;  %s1568_s24 = sld [smem:[#allocation5 + $0x8]] }
  0x63   : > { %v598_v29 = vand.u32 15, %v594_v63  ;;  %s1633_s15 = sld [smem:[#allocation9]]  ;;  %s1192_s20 = sshll.u32 %s1434_s0, 5 }
  0x64   : > { %605 = vrot.lane.b32.xlu1 %v587_v31, %s1371_s22  ;;  %601 = vrot.lane.b32.xlu0 %v585_v33, %s1371_s22  ;;  %v688_v48 = vmul.f32 %v685_v40, %v587_v31  ;;  %v686_v51 = vmul.f32 %v685_v40, %v585_v33  ;;  %v689_v54 = vmul.f32 %v685_v40, %v588_v34 }
  0x65   : > { %v633_v38 = vstv %s1184_s27  ;;  %v687_v13 = vmul.f32 %v685_v40, %v586_v35  ;;  %vm1621_vm6 = vcmp.ge.s32.totalorder %v598_v29, 1 }
  0x66   : > { %v659_v39 = vstv %s1187_s11  ;;  %v653_v43 = vstv %s1186_s12  ;;  %v636_v44 = vmul.f32 %v633_v38, %v587_v31  ;;  %v634_v45 = vmul.f32 %v633_v38, %v585_v33 }
  0x67   : > { %v679_v46 = vstv %s1189_s18  ;;  %v1574_v47 = vmul.f32 %v659_v39, %v587_v31  ;;  %v660_v49 = vmul.f32 %v659_v39, %v585_v33  ;;  %v637_v52 = vmul.f32 %v633_v38, %v588_v34 }
  0x68   : > { %607 = vrot.lane.b32.xlu1 %v588_v34, %s1371_s22  ;;  %603 = vrot.lane.b32.xlu0 %v586_v35, %s1371_s22  ;;  %v1576_v53 = vmul.f32 %v659_v39, %v588_v34  ;;  %v635_v57 = vmul.f32 %v633_v38, %v586_v35  ;;  %v661_v62 = vmul.f32 %v659_v39, %v586_v35  ;;  %v1588_v14 = vstv %s1564_s19 }
  0x69   : > { %v1591_v15 = vstv %s1566_s21  ;;  %v1594_v19 = vstv %s1568_s24  ;;  %s763_s17 = smul.f32 -1.1795356, %s1633_s15 }
  0x6c   : > { %616 = vrot.lane.b32.xlu1 %v586_v35, %s1372_s23  ;;  %614 = vrot.lane.b32.xlu0 %v585_v33, %s1372_s23 }
  0x70   : > { %620 = vrot.lane.b32.xlu1 %v588_v34, %s1372_s23  ;;  %618 = vrot.lane.b32.xlu0 %v587_v31, %s1372_s23 }
  0xd6   : > { %v606_v50 = vpop.permute.xlu1 %605  ;;  %v602_v56 = vpop.permute.xlu0 %601 }
  0xd7   : > { %v611_v55 = vsel %vm600_vm0, %v606_v50, 0.0  ;;  %v609_v61 = vsel %vm600_vm0, %v602_v56, 0.0 }
  0xd8   : > { %v630_v60 = vmul.f32 %v627_v42, %v611_v55  ;;  %v682_v12 = vmul.f32 %v679_v46, %v611_v55  ;;  %v628_v16 = vmul.f32 %v627_v42, %v609_v61  ;;  %v654_v17 = vmul.f32 %v653_v43, %v609_v61 }
  0xd9   : > { %v680_v21 = vmul.f32 %v679_v46, %v609_v61  ;;  %v656_v27 = vmul.f32 %v653_v43, %v611_v55 }
  0xda   : > { %v608_v18 = vpop.permute.xlu1 %607  ;;  %v604_v23 = vpop.permute.xlu0 %603  ;;  %v640_v26 = vadd.f32 %v636_v44, %v630_v60  ;;  %v692_v30 = vadd.f32 %v688_v48, %v682_v12  ;;  %v638_v34 = vadd.f32 %v634_v45, %v628_v16  ;;  %v664_v35 = vadd.f32 %v660_v49, %v654_v17  ;;  %v748_v45 = vld [vmem:[%s1530_s25 + $0x10] sm:$0xff] }
  0xdb   : > { %v612_v22 = vsel %vm600_vm0, %v608_v18, 0.0  ;;  %v610_v28 = vsel %vm600_vm0, %v604_v23, 0.0  ;;  %v690_v40 = vadd.f32 %v686_v51, %v680_v21 }
  0xdc   : > { %v631_v31 = vmul.f32 %v627_v42, %v612_v22  ;;  %v629_v32 = vmul.f32 %v627_v42, %v610_v28  ;;  %v681_v33 = vmul.f32 %v679_v46, %v610_v28  ;;  %v683_v36 = vmul.f32 %v679_v46, %v612_v22 }
  0xdd   : > { %v655_v38 = vmul.f32 %v653_v43, %v610_v28  ;;  %v657_v49 = vmul.f32 %v653_v43, %v612_v22 }
  0xde   : > { %v617_v39 = vpop.permute.xlu1 %616  ;;  %v639_v44 = vadd.f32 %v635_v57, %v629_v32  ;;  %v691_v50 = vadd.f32 %v687_v13, %v681_v33  ;;  %v615_v56 = vpop.permute.xlu0 %614  ;;  %v641_v46 = vadd.f32 %v637_v52, %v631_v31  ;;  %v693_v63 = vadd.f32 %v689_v54, %v683_v36 }
  0xdf   : > { %v623_v55 = vsel %vm613_vm1, %v617_v39, 0.0  ;;  %v622_v42 = vsel %vm613_vm1, %v615_v56, 0.0  ;;  %v665_v12 = vadd.f32 %v661_v62, %v655_v38 }
  0xe0   : > { %v645_v58 = vmul.f32 %v1588_v14, %v623_v55  ;;  %v671_v60 = vmul.f32 %v1591_v15, %v623_v55  ;;  %v697_v48 = vmul.f32 %v1594_v19, %v623_v55  ;;  %v644_v51 = vmul.f32 %v1588_v14, %v622_v42 }
  0xe1   : > { %v696_v57 = vmul.f32 %v1594_v19, %v622_v42  ;;  %v670_v43 = vmul.f32 %v1591_v15, %v622_v42 }
  0xe2   : > { %v649_v13 = vadd.f32 %v645_v58, %v639_v44  ;;  %v701_v16 = vadd.f32 %v697_v48, %v691_v50  ;;  %v621_v17 = vpop.permute.xlu1 %620  ;;  %v648_v20 = vadd.f32 %v644_v51, %v638_v34  ;;  %v619_v22 = vpop.permute.xlu0 %618  ;;  %v675_v23 = vadd.f32 %v671_v60, %v665_v12  ;;  %v749_v51 = vld [vmem:[%s1530_s25 + $0x18] sm:$0xff] }
  0xe3   : > { %v700_v52 = vadd.f32 %v696_v57, %v690_v40  ;;  %v625_v21 = vsel %vm613_vm1, %v621_v17, 0.0  ;;  %v624_v32 = vsel %vm613_vm1, %v619_v22, 0.0  ;;  %v667_v50 = vadd.f32 %v1576_v53, %v657_v49 }
  0xe4   : > { %v709_v24 = vrot.slane %v649_v13, 7  ;;  %v730_v28 = vrot.slane %v701_v16, 1  ;;  %v647_v54 = vmul.f32 %v1588_v14, %v625_v21  ;;  %v708_v62 = vrot.slane %v648_v20, 7 }
  0xe5   : > { %v729_v31 = vrot.slane %v700_v52, 1  ;;  %v699_v29 = vmul.f32 %v1594_v19, %v625_v21  ;;  %v673_v34 = vmul.f32 %v1591_v15, %v625_v21  ;;  %v646_v36 = vmul.f32 %v1588_v14, %v624_v32 }
  0xe6   : > { %v651_v33 = vadd.f32 %v647_v54, %v641_v46  ;;  %v672_v38 = vmul.f32 %v1591_v15, %v624_v32  ;;  %v715_v39 = vsel %vm712_vm2, %v708_v62, %v709_v24  ;;  %v698_v37 = vmul.f32 %v1594_v19, %v624_v32 }
  0xe7   : > { %v736_v40 = vsel %vm733_vm3, %v729_v31, %v730_v28  ;;  %v703_v44 = vadd.f32 %v699_v29, %v693_v63  ;;  %v722_v55 = vadd.f32 %v715_v39, %v675_v23  ;;  %v650_v58 = vadd.f32 %v646_v36, %v640_v26  ;;  %v746_v26 = vld [vmem:[%s1530_s25] sm:$0xff] }
  0xe8   : > { %v711_v56 = vrot.slane %v651_v33, 7  ;;  %v666_v14 = vadd.f32 %v1574_v47, %v656_v27  ;;  %v702_v48 = vadd.f32 %v698_v37, %v692_v30  ;;  %v674_v42 = vadd.f32 %v670_v43, %v664_v35  ;;  %v747_v35 = vld [vmem:[%s1530_s25 + $0x8] sm:$0xff]  ;;  %s774_s25 = scalar_lea.vmem [#allocation2], %s1192_s20 }
  0xe9   : > { %v732_v15 = vrot.slane %v703_v44, 1  ;;  %v677_v19 = vadd.f32 %v673_v34, %v667_v50  ;;  %v710_v46 = vrot.slane %v650_v58, 7  ;;  %v750_v17 = vmul.f32 0.8164966, %v746_v26 }
  0xea   : > { %v716_v53 = vsel %vm712_vm2, %v711_v56, %v708_v62  ;;  %v676_v59 = vadd.f32 %v672_v38, %v666_v14  ;;  %v731_v25 = vrot.slane %v702_v48, 1  ;;  %v751_v21 = vmul.f32 0.8164966, %v747_v35 }
  0xeb   : > { %v717_v47 = vsel %vm1611_vm4, %v716_v53, 0.0  ;;  %v737_v27 = vsel %vm733_vm3, %v732_v15, %v729_v31  ;;  %v713_v57 = vsel %vm712_vm2, %v710_v46, %v711_v56  ;;  %v714_v63 = vsel %vm712_vm2, %v709_v24, %v710_v46 }
  0xec   : > { %v721_v49 = vadd.f32 %v717_v47, %v674_v42  ;;  %v741_v30 = vsel %vm1617_vm5, %v737_v27, 0.0  ;;  %v719_v12 = vsel %vm1621_vm6, %v714_v63, 0.0  ;;  %v724_v13 = vadd.f32 %v713_v57, %v677_v19 }
  0xed   : > { %v734_v16 = vsel %vm733_vm3, %v731_v25, %v732_v15  ;;  %v735_v61 = vsel %vm733_vm3, %v730_v28, %v731_v25  ;;  %v723_v43 = vadd.f32 %v719_v12, %v676_v59  ;;  %v753_v22 = vmul.f32 0.8164966, %v749_v51 }
  0xee   : > { %v742_v20 = vadd.f32 %v736_v40, %v721_v49  ;;  %v739_v52 = vsel %vm1646_vm7, %v735_v61, 0.0  ;;  %v745_v18 = vadd.f32 %v741_v30, %v724_v13  ;;  %v752_v54 = vmul.f32 0.8164966, %v748_v45 }
  0xef   : > { %v743_v23 = vadd.f32 %v739_v52, %v722_v55  ;;  %v744_v62 = vadd.f32 %v734_v16, %v723_v43  ;;  %v764_v29 = vstv %s763_s17 }
  0xf0   : > { %v754_v24 = vmul.f32 -1.1795356, %v742_v20  ;;  %v757_v41 = vmul.f32 -1.1795356, %v745_v18 }
  0xf1   : > { %v755_v31 = vmul.f32 -1.1795356, %v743_v23  ;;  %v756_v32 = vmul.f32 -1.1795356, %v744_v62 }
  0xf2   : > { %v758_v28 = vadd.f32 %v754_v24, %v750_v17  ;;  %v761_v34 = vadd.f32 %v757_v41, %v753_v22 }
  0xf3   : > { %v759_v33 = vadd.f32 %v755_v31, %v751_v21  ;;  %v760_v36 = vadd.f32 %v756_v32, %v752_v54 }
  0xf4   : > { %v765_v38 = vadd.f32 %v764_v29, %v758_v28  ;;  %v768_v40 = vadd.f32 %v764_v29, %v761_v34 }
  0xf5   : > { %v766_v39 = vadd.f32 %v764_v29, %v759_v33  ;;  %v767_v44 = vadd.f32 %v764_v29, %v760_v36 }
  0xf6   : > { %769 = vst [vmem:[%s1535_s30] sm:$0xff] %v765_v38  ;;  %775 = vst [vmem:[%s774_s25] sm:$0xff] %v765_v38 }
  0xf7   : > { %770 = vst [vmem:[%s1535_s30 + $0x8] sm:$0xff] %v766_v39  ;;  %772 = vst [vmem:[%s1535_s30 + $0x18] sm:$0xff] %v768_v40 }
  0xf8   : > { %776 = vst [vmem:[%s774_s25 + $0x8] sm:$0xff] %v766_v39  ;;  %778 = vst [vmem:[%s774_s25 + $0x18] sm:$0xff] %v768_v40 }
  0xf9   : > { %771 = vst [vmem:[%s1535_s30 + $0x10] sm:$0xff] %v767_v44  ;;  %777 = vst [vmem:[%s774_s25 + $0x10] sm:$0xff] %v767_v44 }
  0xfa PF: > { %p1193_p7 = scmp.lt.s32.totalorder %s1434_s0, 5 }
  0xfb   : > { %s1194_s26 = sadd.s32 (!%p1193_p7), 4294967291, %s1434_s0  ;;  %s1196_s28 = sshll.u32 (!%p1193_p7), %s1434_s0, 5  ;;  %v813_v0 = vlaneseq (!%p1193_p7)  ;;  %v970_v22 = vld [vmem:[%s1503_s10] sm:$0xff] (!%p1193_p7)  ;;  %v971_v32 = vld [vmem:[%s1503_s10 + $0x8] sm:$0xff] (!%p1193_p7)  ;;  %v973_v39 = vld [vmem:[%s1503_s10 + $0x18] sm:$0xff] (!%p1193_p7) }
  0xfc   : > { %782 = sbr.rel (%p1193_p7) target bundleno = 410 (0x19a), region = 72  ;;  %s1195_s29 = sshll.u32 (!%p1193_p7), %s1194_s26, 5  ;;  %v1735_v38 = vmul.f32 (!%p1193_p7), 1.1795356, %v970_v22 }
  0xfd   : > { %s1065_s22 = scalar_lea.vmem (!%p1193_p7), [#allocation2], %s1196_s28  ;;  %s785_s23 = scalar_lea.vmem (!%p1193_p7), [#allocation2], %s1195_s29 }
  0xfe   : > { %s1373_s0 = smov (!%p1193_p7), 1   ;;  %s1374_s27 = smov (!%p1193_p7), 127  }
  0xff   : > { %s1201_s11 = sld [smem:[#allocation7 + $0x1]] (!%p1193_p7)  ;;  %s1204_s13 = sld [smem:[#allocation7 + $0x4]] (!%p1193_p7) }
 0x100   : > { %v1199_v37 = vld [vmem:[%s1065_s22 - $0x70] sm:$0xff] (!%p1193_p7)  ;;  %v1197_v50 = vld [vmem:[%s1065_s22 - $0x80] sm:$0xff] (!%p1193_p7)  ;;  %v1200_v55 = vld [vmem:[%s1065_s22 - $0x68] sm:$0xff] (!%p1193_p7)  ;;  %s850_s16 = sld [smem:[#allocation7]] (!%p1193_p7)  ;;  %s1207_s12 = sld [smem:[#allocation7 + $0x7]] (!%p1193_p7) }
 0x101   : > { %v788_v56 = vld [vmem:[%s785_s23 + $0x10] sm:$0xff] (!%p1193_p7)  ;;  %v803_v58 = vmul.f32 (!%p1193_p7), %v1244_v10, %v1199_v37  ;;  %v786_v14 = vld [vmem:[%s785_s23] sm:$0xff] (!%p1193_p7)  ;;  %v801_v15 = vmul.f32 (!%p1193_p7), %v1240_v8, %v1197_v50  ;;  %v789_v60 = vld [vmem:[%s785_s23 + $0x18] sm:$0xff] (!%p1193_p7)  ;;  %v804_v48 = vmul.f32 (!%p1193_p7), %v1245_v11, %v1200_v55  ;;  %s1203_s18 = sld [smem:[#allocation7 + $0x3]] (!%p1193_p7)  ;;  %s1206_s19 = sld [smem:[#allocation7 + $0x6]] (!%p1193_p7) }
 0x102   : > { %v792_v42 = vmul.f32 (!%p1193_p7), %v1236_v4, %v788_v56  ;;  %v790_v19 = vmul.f32 (!%p1193_p7), %v1232_v2, %v786_v14  ;;  %v793_v53 = vmul.f32 (!%p1193_p7), %v1237_v5, %v789_v60  ;;  %v787_v46 = vld [vmem:[%s785_s23 + $0x8] sm:$0xff] (!%p1193_p7)  ;;  %s1202_s21 = sld [smem:[#allocation7 + $0x2]] (!%p1193_p7)  ;;  %s1701_s24 = sld [smem:[#allocation7 + $0x5]] (!%p1193_p7)  ;;  %v1705_v5 = vshrl.u32 (!%p1193_p7), %v813_v0, 7 }
 0x103   : > { %v1198_v26 = vld [vmem:[%s1065_s22 - $0x78] sm:$0xff]  ;;  %v791_v10 = vmul.f32 %v1233_v3, %v787_v46  ;;  %v1699_v3 = vand.u32 127, %v813_v0  ;;  %s1703_s15 = sld [smem:[#allocation7 + $0x8]]  ;;  %v1744_v60 = vmul.f32 1.1795356, %v971_v32  ;;  %s1786_s17 = sld [smem:[#allocation9 + $0x1]] }
 0x104   : > { %v802_v8 = vmul.f32 %v1241_v9, %v1198_v26  ;;  %v807_v47 = vadd.f32 %v803_v58, %v792_v42  ;;  %v805_v7 = vadd.f32 %v801_v15, %v790_v19  ;;  %v808_v11 = vadd.f32 %v804_v48, %v793_v53 }
 0x105   : > { %v857_v6 = vstv %s1201_s11  ;;  %v883_v9 = vstv %s1204_s13  ;;  %vm824_vm8 = vcmp.ge.s32.totalorder %v1699_v3, 1  ;;  %vm837_vm9 = vcmp.le.s32.totalorder %v1699_v3, 126 }
 0x106   : > { %v806_v27 = vadd.f32 %v802_v8, %v791_v10  ;;  %v811_v59 = vmul.f32 0.5, %v807_v47  ;;  %v809_v4 = vmul.f32 0.5, %v805_v7  ;;  %v812_v2 = vmul.f32 0.5, %v808_v11 }
 0x107   : > { %v909_v25 = vstv %s1207_s12  ;;  %v851_v49 = vstv %s850_s16  ;;  %v877_v30 = vstv %s1203_s18  ;;  %v903_v35 = vstv %s1206_s19 }
 0x108   : > { %829 = vrot.lane.b32.xlu1 %v811_v59, %s1373_s0  ;;  %825 = vrot.lane.b32.xlu0 %v809_v4, %s1373_s0  ;;  %v810_v1 = vmul.f32 0.5, %v806_v27  ;;  %v860_v51 = vmul.f32 %v857_v6, %v811_v59  ;;  %v1708_v57 = vmul.f32 %v883_v9, %v811_v59  ;;  %v858_v63 = vmul.f32 %v857_v6, %v809_v4 }
 0x109   : > { %v1710_v45 = vmul.f32 %v883_v9, %v809_v4  ;;  %v912_v12 = vmul.f32 %v909_v25, %v811_v59  ;;  %v910_v13 = vmul.f32 %v909_v25, %v809_v4  ;;  %v861_v16 = vmul.f32 %v857_v6, %v812_v2 }
 0x10a   : > { %v819_v61 = vadd.s32 24, %v1705_v5  ;;  %v1714_v43 = vmul.f32 %v883_v9, %v812_v2  ;;  %v913_v52 = vmul.f32 %v909_v25, %v812_v2  ;;  %v1716_v21 = vstv %s1202_s21 }
 0x10b   : > { %v1720_v23 = vadd.s32 8, %v1705_v5  ;;  %v859_v54 = vmul.f32 %v857_v6, %v810_v1  ;;  %v818_v62 = vadd.s32 16, %v1705_v5  ;;  %v885_v31 = vmul.f32 %v883_v9, %v810_v1 }
 0x10c   : > { %831 = vrot.lane.b32.xlu1 %v812_v2, %s1373_s0  ;;  %827 = vrot.lane.b32.xlu0 %v810_v1, %s1373_s0  ;;  %v911_v41 = vmul.f32 %v909_v25, %v810_v1  ;;  %v1728_v28 = vstv %s1701_s24  ;;  %v1731_v29 = vstv %s1703_s15  ;;  %v820_v34 = vand.u32 15, %v1705_v5 }
 0x10d   : > { %v823_v36 = vand.u32 15, %v819_v61  ;;  %v821_v56 = vand.u32 15, %v1720_v23  ;;  %vm936_vm10 = vcmp.lt.s32.totalorder %v1705_v5, 1  ;;  %v822_v15 = vand.u32 15, %v818_v62 }
 0x10e   : > { %vm957_vm11 = vcmp.lt.s32.totalorder %v1705_v5, 7  ;;  %v1747_v53 = vmul.f32 1.1795356, %v973_v39  ;;  %vm1756_vm12 = vcmp.ge.s32.totalorder %v820_v34, 1  ;;  %v983_v61 = vstv %s1786_s17 }
 0x10f   : > { %vm1762_vm13 = vcmp.le.s32.totalorder %v823_v36, 14  ;;  %vm1766_vm14 = vcmp.ge.s32.totalorder %v822_v15, 1  ;;  %vm1792_vm15 = vcmp.le.s32.totalorder %v821_v56, 14 }
 0x110   : > { %840 = vrot.lane.b32.xlu1 %v810_v1, %s1374_s27  ;;  %838 = vrot.lane.b32.xlu0 %v809_v4, %s1374_s27 }
 0x114   : > { %844 = vrot.lane.b32.xlu1 %v812_v2, %s1374_s27  ;;  %842 = vrot.lane.b32.xlu0 %v811_v59, %s1374_s27 }
 0x17a   : > { %v830_v17 = vpop.permute.xlu1 %829  ;;  %v826_v20 = vpop.permute.xlu0 %825 }
 0x17b   : > { %v835_v18 = vsel %vm824_vm8, %v830_v17, 0.0  ;;  %v833_v24 = vsel %vm824_vm8, %v826_v20, 0.0 }
 0x17c   : > { %v854_v33 = vmul.f32 %v851_v49, %v835_v18  ;;  %v906_v40 = vmul.f32 %v903_v35, %v835_v18  ;;  %v852_v44 = vmul.f32 %v851_v49, %v833_v24  ;;  %v904_v37 = vmul.f32 %v903_v35, %v833_v24 }
 0x17d   : > { %v880_v48 = vmul.f32 %v877_v30, %v835_v18  ;;  %v878_v42 = vmul.f32 %v877_v30, %v833_v24 }
 0x17e   : > { %v832_v50 = vpop.permute.xlu1 %831  ;;  %v828_v55 = vpop.permute.xlu0 %827  ;;  %v864_v46 = vadd.f32 %v860_v51, %v854_v33  ;;  %v916_v47 = vadd.f32 %v912_v12, %v906_v40  ;;  %v862_v7 = vadd.f32 %v858_v63, %v852_v44  ;;  %v914_v11 = vadd.f32 %v910_v13, %v904_v37 }
 0x17f   : > { %v836_v58 = vsel %vm824_vm8, %v832_v50, 0.0  ;;  %v834_v14 = vsel %vm824_vm8, %v828_v55, 0.0 }
 0x180   : > { %v853_v19 = vmul.f32 %v851_v49, %v834_v14  ;;  %v855_v26 = vmul.f32 %v851_v49, %v836_v58  ;;  %v907_v10 = vmul.f32 %v903_v35, %v836_v58  ;;  %v905_v8 = vmul.f32 %v903_v35, %v834_v14 }
 0x181   : > { %v879_v27 = vmul.f32 %v877_v30, %v834_v14  ;;  %v881_v2 = vmul.f32 %v877_v30, %v836_v58 }
 0x182   : > { %v841_v59 = vpop.permute.xlu1 %840  ;;  %v839_v4 = vpop.permute.xlu0 %838  ;;  %v863_v1 = vadd.f32 %v859_v54, %v853_v19  ;;  %v915_v9 = vadd.f32 %v911_v41, %v905_v8  ;;  %v865_v63 = vadd.f32 %v861_v16, %v855_v26  ;;  %v917_v30 = vadd.f32 %v913_v52, %v907_v10 }
 0x183   : > { %v847_v0 = vsel %vm837_vm9, %v841_v59, 0.0  ;;  %v846_v6 = vsel %vm837_vm9, %v839_v4, 0.0  ;;  %v889_v17 = vadd.f32 %v885_v31, %v879_v27  ;;  %v888_v10 = vadd.f32 %v1710_v45, %v878_v42 }
 0x184   : > { %v869_v25 = vmul.f32 %v1716_v21, %v847_v0  ;;  %v921_v49 = vmul.f32 %v1731_v29, %v847_v0  ;;  %v868_v35 = vmul.f32 %v1716_v21, %v846_v6  ;;  %v895_v12 = vmul.f32 %v1728_v28, %v847_v0 }
 0x185   : > { %v920_v13 = vmul.f32 %v1731_v29, %v846_v6  ;;  %v894_v16 = vmul.f32 %v1728_v28, %v846_v6  ;;  %v891_v27 = vadd.f32 %v1714_v43, %v881_v2  ;;  %v972_v43 = vld [vmem:[%s1503_s10 + $0x10] sm:$0xff] }
 0x186   : > { %v873_v20 = vadd.f32 %v869_v25, %v863_v1  ;;  %v925_v22 = vadd.f32 %v921_v49, %v915_v9  ;;  %v872_v18 = vadd.f32 %v868_v35, %v862_v7  ;;  %v845_v24 = vpop.permute.xlu1 %844  ;;  %v843_v62 = vpop.permute.xlu0 %842  ;;  %v899_v39 = vadd.f32 %v895_v12, %v889_v17 }
 0x187   : > { %v924_v52 = vadd.f32 %v920_v13, %v914_v11  ;;  %v849_v41 = vsel %vm837_vm9, %v845_v24, 0.0  ;;  %v848_v32 = vsel %vm837_vm9, %v843_v62, 0.0  ;;  %v890_v11 = vadd.f32 %v1708_v57, %v880_v48 }
 0x188   : > { %v933_v33 = vrot.slane %v873_v20, 7  ;;  %v954_v31 = vrot.slane %v925_v22, 1  ;;  %v932_v34 = vrot.slane %v872_v18, 7  ;;  %v871_v36 = vmul.f32 %v1716_v21, %v849_v41 }
 0x189   : > { %v953_v40 = vrot.slane %v924_v52, 1  ;;  %v923_v44 = vmul.f32 %v1731_v29, %v849_v41  ;;  %v870_v37 = vmul.f32 %v1716_v21, %v848_v32  ;;  %v897_v58 = vmul.f32 %v1728_v28, %v849_v41 }
 0x18a   : > { %v939_v50 = vsel %vm936_vm10, %v932_v34, %v933_v33  ;;  %v875_v55 = vadd.f32 %v871_v36, %v865_v63  ;;  %v922_v3 = vmul.f32 %v1731_v29, %v848_v32  ;;  %v896_v26 = vmul.f32 %v1728_v28, %v848_v32 }
 0x18b   : > { %v946_v14 = vadd.f32 %v939_v50, %v899_v39  ;;  %v960_v15 = vsel %vm957_vm11, %v953_v40, %v954_v31  ;;  %v927_v19 = vadd.f32 %v923_v44, %v917_v30  ;;  %v874_v21 = vadd.f32 %v870_v37, %v864_v46 }
 0x18c   : > { %v935_v8 = vrot.slane %v875_v55, 7  ;;  %v926_v7 = vadd.f32 %v922_v3, %v916_v47  ;;  %v898_v28 = vadd.f32 %v894_v16, %v888_v10  ;;  %v901_v1 = vadd.f32 %v897_v58, %v891_v27 }
 0x18d   : > { %v956_v29 = vrot.slane %v927_v19, 1  ;;  %v934_v42 = vrot.slane %v874_v21, 7  ;;  %v900_v48 = vadd.f32 %v896_v26, %v890_v11  ;;  %v976_v35 = vmul.f32 1.1795356, %v972_v43 }
 0x18e   : > { %v940_v45 = vsel %vm936_vm10, %v935_v8, %v932_v34  ;;  %v955_v4 = vrot.slane %v926_v7, 1 }
 0x18f   : > { %v941_v46 = vsel %vm1756_vm12, %v940_v45, 0.0  ;;  %v961_v57 = vsel %vm957_vm11, %v956_v29, %v953_v40  ;;  %v937_v47 = vsel %vm936_vm10, %v934_v42, %v935_v8  ;;  %v938_v2 = vsel %vm936_vm10, %v933_v33, %v934_v42 }
 0x190   : > { %v945_v23 = vadd.f32 %v941_v46, %v898_v28  ;;  %v965_v56 = vsel %vm1762_vm13, %v961_v57, 0.0  ;;  %v943_v0 = vsel %vm1766_vm14, %v938_v2, 0.0  ;;  %v948_v6 = vadd.f32 %v937_v47, %v901_v1 }
 0x191   : > { %v958_v9 = vsel %vm957_vm11, %v955_v4, %v956_v29  ;;  %v959_v25 = vsel %vm957_vm11, %v954_v31, %v955_v4  ;;  %v947_v51 = vadd.f32 %v943_v0, %v900_v48 }
 0x192   : > { %v966_v49 = vadd.f32 %v960_v15, %v945_v23  ;;  %v963_v63 = vsel %vm1792_vm15, %v959_v25, 0.0  ;;  %v969_v12 = vadd.f32 %v965_v56, %v948_v6 }
 0x193   : > { %v967_v30 = vadd.f32 %v963_v63, %v946_v14  ;;  %v968_v17 = vadd.f32 %v958_v9, %v947_v51 }
 0x194   : > { %v978_v13 = vadd.f32 %v1735_v38, %v966_v49  ;;  %v981_v5 = vadd.f32 %v1747_v53, %v969_v12 }
 0x195   : > { %v979_v20 = vadd.f32 %v1744_v60, %v967_v30  ;;  %v980_v22 = vadd.f32 %v976_v35, %v968_v17 }
 0x196   : > { %v984_v18 = vadd.f32 %v983_v61, %v978_v13  ;;  %v987_v54 = vadd.f32 %v983_v61, %v981_v5 }
 0x197   : > { %v985_v24 = vadd.f32 %v983_v61, %v979_v20  ;;  %v986_v62 = vadd.f32 %v983_v61, %v980_v22 }
 0x198   : > { %988 = vst [vmem:[%s1535_s30] sm:$0xff] %v984_v18  ;;  %991 = vst [vmem:[%s1535_s30 + $0x18] sm:$0xff] %v987_v54 }
 0x199   : > { %989 = vst [vmem:[%s1535_s30 + $0x8] sm:$0xff] %v985_v24  ;;  %990 = vst [vmem:[%s1535_s30 + $0x10] sm:$0xff] %v986_v62 }
 0x19a PF: > { %s27_s14 = sadd.s32 1, %s1365_s14  }
 0x19b   : > { %p24_p8 = scmp.ge.s32.totalorder %s27_s14, 11  }
 0x19d   :  { %26 = sbr.rel (!%p24_p8) target bundleno = 17 (0x11), region = 118 }
 0x1a4   :  { %1022 = vsyncpa [#allocation6], 1 }
 0x1a5   :  { %1024 = vsyncpa [#allocation6 + $0x1], 1 }
 0x1a6   :  { %1025 = vsyncpa [#allocation8], 1 }

</bundles_post_ra>
